<compile_context>
chip_gen: v7x
topology: tpu7x:2x2x1
jax: 0.10.0
libtpu: 0.0.40
codegen_flags: <defaults>
</compile_context>

<pallas_src>
import functools

import numpy as np
import jax
import jax.numpy as jnp
from jax.experimental import pallas as pl
from jax.experimental.pallas import tpu as pltpu


LANES = 128


# ----------------------------- Pallas kernel ------------------------------- #

def _bn_lrelu(y, gamma, beta, m_valid, eps):
    """Training-mode BN folded into scale/shift (rsqrt on EUP) + LeakyReLU."""
    inv_m = jnp.float32(1.0 / m_valid)
    s = jnp.sum(y, axis=0, keepdims=True)
    ssq = jnp.sum(y * y, axis=0, keepdims=True)
    mean = s * inv_m
    var = ssq * inv_m - mean * mean        # fine at these sizes; Welford at scale
    scale = gamma * jax.lax.rsqrt(var + eps)
    shift = beta - mean * scale
    z = y * scale + shift
    return jnp.where(z >= 0, z, 0.1 * z)


def fused_inputnet_kernel(p1_ref, w1_ref, g1_ref, be1_ref,
                          sel_ref, w2_ref, g2_ref, be2_ref,
                          o_ref, *, m1_valid, m2_valid, eps):
    """conv1 -> BN1 -> LReLU -> conv2(s2) -> BN2 -> LReLU, fully in VMEM."""
    # ---- layer 1: conv1 as im2col matmul on the MXU (f32 accumulate).
    # No conv bias: it cancels exactly under BN mean subtraction (dead work).
    y1 = jnp.dot(p1_ref[...], w1_ref[...], preferred_element_type=jnp.float32)
    a1 = _bn_lrelu(y1, g1_ref[...], be1_ref[...], m1_valid, eps)
    # a1: (M1p, 128) lane-dense, stays resident in VMEM/vregs for layer 2.

    # ---- layer 2: conv2 taps gathered from the resident slab via one-hot
    # selection matmuls (gather-as-matmul), accumulated in f32 on the MXU.
    ntaps = sel_ref.shape[0]
    tap0 = jnp.dot(sel_ref[0], a1, preferred_element_type=jnp.float32)
    y2 = jnp.dot(tap0, w2_ref[0], preferred_element_type=jnp.float32)
    for t in range(1, ntaps):                       # static unroll over 3x3 taps
        tap = jnp.dot(sel_ref[t], a1, preferred_element_type=jnp.float32)
        y2 = y2 + jnp.dot(tap, w2_ref[t], preferred_element_type=jnp.float32)

    o_ref[...] = _bn_lrelu(y2, g2_ref[...], be2_ref[...], m2_valid, eps)


# ------------------------------- Host glue --------------------------------- #

def _round_up(v, m):
    return ((v + m - 1) // m) * m


def _im2col(x_nhwc, ksize, stride, pad):
    """3x3 patches -> (N*Ho*Wo, k*k*C), column order (kh, kw, c)."""
    # TODO(synk): at real resolutions build conv1's taps in-kernel from an
    # NHWC row band to avoid the 9x HBM read amplification of host im2col.
    n, h, w, c = x_nhwc.shape
    xp = jnp.pad(x_nhwc, ((0, 0), (pad, pad), (pad, pad), (0, 0)))
    ho = (h + 2 * pad - ksize) // stride + 1
    wo = (w + 2 * pad - ksize) // stride + 1
    cols = []
    for kh in range(ksize):
        for kw in range(ksize):
            cols.append(xp[:, kh:kh + stride * ho:stride,
                           kw:kw + stride * wo:stride, :])
    patches = jnp.concatenate(cols, axis=-1)
    return patches.reshape(n * ho * wo, ksize * ksize * c), ho, wo


def _conv_selectors(n, h, w, ho, wo, ksize, stride, pad, m1_pad):
    """One-hot row-selection matrices: conv1-output rows -> conv2 tap rows.

    sel[t, m2, m1] = 1 iff conv2 output row m2, tap t, reads conv1-output row
    m1; out-of-range taps leave an all-zero row (implicit zero padding).
    Built with numpy at trace time (static shapes, compile-time constant).
    """
    m2_pad = _round_up(n * ho * wo, 8)
    sel = np.zeros((ksize * ksize, m2_pad, m1_pad), np.float32)
    for b in range(n):
        for oh in range(ho):
            for ow in range(wo):
                r2 = b * ho * wo + oh * wo + ow
                for kh in range(ksize):
                    for kw in range(ksize):
                        ih = oh * stride - pad + kh
                        iw = ow * stride - pad + kw
                        if 0 <= ih < h and 0 <= iw < w:
                            sel[kh * ksize + kw, r2,
                                b * h * w + ih * w + iw] = 1.0
    return sel


def _pad_lanes_1xC(v, lanes):
    v = v.reshape(1, -1)
    return jnp.pad(v, ((0, 0), (0, lanes - v.shape[1])))


def inputnet_forward(x_nchw, params, eps=1e-5):
    """Full module forward in ONE pallas_call. NCHW in / NCHW out."""
    n, _, _, _ = x_nchw.shape
    cout1 = params["w1"].shape[0]
    cout2 = params["w2"].shape[0]

    x = jnp.transpose(x_nchw, (0, 2, 3, 1)).astype(jnp.float32)        # NHWC

    # Layer-1 im2col (cin=3, tiny).
    patches1, ho1, wo1 = _im2col(x, 3, 1, 1)                           # (M1, 27)
    m1, k1 = patches1.shape
    m1_pad = _round_up(m1, 8)
    if m1_pad != m1:
        patches1 = jnp.pad(patches1, ((0, m1_pad - m1), (0, 0)))

    # Conv2 geometry (3x3, stride 2, pad 1) + gather selectors.
    ho2 = (ho1 + 2 - 3) // 2 + 1
    wo2 = (wo1 + 2 - 3) // 2 + 1
    m2 = n * ho2 * wo2
    m2_pad = _round_up(m2, 8)
    sel = jnp.asarray(_conv_selectors(n, ho1, wo1, ho2, wo2, 3, 2, 1, m1_pad))

    # Weights / BN params, zero-padded to 128 lanes once; the lane-dense
    # padded channel layout is kept between the two layers inside the kernel.
    w1m = jnp.transpose(params["w1"], (2, 3, 1, 0)).reshape(k1, cout1)
    w1m = jnp.pad(w1m, ((0, 0), (0, LANES - cout1)))
    w2m = jnp.transpose(params["w2"], (2, 3, 1, 0))                    # (3,3,cin2,cout2)
    w2m = jnp.pad(w2m, ((0, 0), (0, 0),
                        (0, LANES - w2m.shape[2]), (0, LANES - cout2)))
    w2m = w2m.reshape(9, LANES, LANES)
    g1p = _pad_lanes_1xC(params["g1"], LANES)
    be1p = _pad_lanes_1xC(params["be1"], LANES)
    g2p = _pad_lanes_1xC(params["g2"], LANES)
    be2p = _pad_lanes_1xC(params["be2"], LANES)

    kern = functools.partial(fused_inputnet_kernel,
                             m1_valid=m1, m2_valid=m2, eps=eps)
    out = pl.pallas_call(
        kern,
        out_shape=jax.ShapeDtypeStruct((m2_pad, LANES), jnp.float32),
        grid_spec=pltpu.PrefetchScalarGridSpec(
            num_scalar_prefetch=0, grid=(1,),
            in_specs=[
                pl.BlockSpec((m1_pad, k1), lambda i: (0, 0)),
                pl.BlockSpec((k1, LANES), lambda i: (0, 0)),
                pl.BlockSpec((1, LANES), lambda i: (0, 0)),
                pl.BlockSpec((1, LANES), lambda i: (0, 0)),
                pl.BlockSpec((9, m2_pad, m1_pad), lambda i: (0, 0, 0)),
                pl.BlockSpec((9, LANES, LANES), lambda i: (0, 0, 0)),
                pl.BlockSpec((1, LANES), lambda i: (0, 0)),
                pl.BlockSpec((1, LANES), lambda i: (0, 0)),
            ],
            out_specs=pl.BlockSpec((m2_pad, LANES), lambda i: (0, 0)),
        ),
        compiler_params=pltpu.CompilerParams(
            dimension_semantics=("arbitrary",),
            vmem_limit_bytes=32 * 1024 * 1024),
    )(patches1.astype(jnp.float32), w1m.astype(jnp.float32),
      g1p.astype(jnp.float32), be1p.astype(jnp.float32),
      sel, w2m.astype(jnp.float32),
      g2p.astype(jnp.float32), be2p.astype(jnp.float32))

    out = out[:m2, :cout2].reshape(n, ho2, wo2, cout2)
    return jnp.transpose(out, (0, 3, 1, 2))                            # NCHW


# ------------------------------ Reference ---------------------------------- #

def _ref_forward(x, p, eps=1e-5):
    def conv(x, w, b, s):
        y = jax.lax.conv_general_dilated(
            x, w, (s, s), ((1, 1), (1, 1)),
            dimension_numbers=("NCHW", "OIHW", "NCHW"))
        return y + b.reshape(1, -1, 1, 1)

    def bn_lrelu(y, g, b):
        mean = y.mean(axis=(0, 2, 3), keepdims=True)
        var = y.var(axis=(0, 2, 3), keepdims=True)   # biased, as in BN training
        z = (y - mean) / jnp.sqrt(var + eps)
        z = z * g.reshape(1, -1, 1, 1) + b.reshape(1, -1, 1, 1)
        return jnp.where(z >= 0, z, 0.1 * z)

    y = bn_lrelu(conv(x, p["w1"], p["b1"], 1), p["g1"], p["be1"])
    y = bn_lrelu(conv(y, p["w2"], p["b2"], 2), p["g2"], p["be2"])
    return y


# --------------------------------- Main ------------------------------------ #

if __name__ == "__main__":
    key = jax.random.PRNGKey(0)
    ks = jax.random.split(key, 9)

    params = {
        "w1": 0.1 * jax.random.normal(ks[0], (32, 3, 3, 3), jnp.float32),
        "b1": 0.1 * jax.random.normal(ks[1], (32,), jnp.float32),
        "g1": 1.0 + 0.1 * jax.random.normal(ks[2], (32,), jnp.float32),
        "be1": 0.1 * jax.random.normal(ks[3], (32,), jnp.float32),
        "w2": 0.05 * jax.random.normal(ks[4], (64, 32, 3, 3), jnp.float32),
        "b2": 0.1 * jax.random.normal(ks[5], (64,), jnp.float32),
        "g2": 1.0 + 0.1 * jax.random.normal(ks[6], (64,), jnp.float32),
        "be2": 0.1 * jax.random.normal(ks[7], (64,), jnp.float32),
    }

    x = jax.random.normal(ks[8], (2, 3, 16, 16), jnp.float32)   # NCHW like torch

    out = jax.jit(inputnet_forward)(x, params)
    out = jax.block_until_ready(out)

    ref = _ref_forward(x, params)
    assert out.shape == (2, 64, 8, 8), out.shape
    assert jnp.allclose(out, ref, rtol=1e-3, atol=1e-3), (
        float(jnp.max(jnp.abs(out - ref))))

    print("KERNEL_OK")
</pallas_src>

<mosaic_0001>
module attributes {stable_mosaic.version = 11 : i64} {
  func.func @fused_inputnet_kernel(%arg0: i32, %arg1: memref<512x27xf32, #tpu.memory_space<vmem>>, %arg2: memref<27x128xf32, #tpu.memory_space<vmem>>, %arg3: memref<1x128xf32, #tpu.memory_space<vmem>>, %arg4: memref<1x128xf32, #tpu.memory_space<vmem>>, %arg5: memref<9x128x512xf32, #tpu.memory_space<vmem>>, %arg6: memref<9x128x128xf32, #tpu.memory_space<vmem>>, %arg7: memref<1x128xf32, #tpu.memory_space<vmem>>, %arg8: memref<1x128xf32, #tpu.memory_space<vmem>>, %arg9: memref<128x128xf32, #tpu.memory_space<vmem>>) attributes {dimension_semantics = [#tpu.dimension_semantics<arbitrary>], iteration_bounds = array<i64: 1>, scalar_prefetch = 0 : i64, scratch_operands = 0 : i64, tpu.core_type = #tpu.core_type<tc>, window_params = [{pipeline_mode = #tpu.pipeline_mode<synchronous>, transform_indices = @transform_0, window_bounds = array<i64: 512, 27>}, {pipeline_mode = #tpu.pipeline_mode<synchronous>, transform_indices = @transform_1, window_bounds = array<i64: 27, 128>}, {pipeline_mode = #tpu.pipeline_mode<synchronous>, transform_indices = @transform_2, window_bounds = array<i64: 1, 128>}, {pipeline_mode = #tpu.pipeline_mode<synchronous>, transform_indices = @transform_3, window_bounds = array<i64: 1, 128>}, {pipeline_mode = #tpu.pipeline_mode<synchronous>, transform_indices = @transform_4, window_bounds = array<i64: 9, 128, 512>}, {pipeline_mode = #tpu.pipeline_mode<synchronous>, transform_indices = @transform_5, window_bounds = array<i64: 9, 128, 128>}, {pipeline_mode = #tpu.pipeline_mode<synchronous>, transform_indices = @transform_6, window_bounds = array<i64: 1, 128>}, {pipeline_mode = #tpu.pipeline_mode<synchronous>, transform_indices = @transform_7, window_bounds = array<i64: 1, 128>}, {pipeline_mode = #tpu.pipeline_mode<synchronous>, transform_indices = @transform_8, window_bounds = array<i64: 128, 128>}]} {
    %c0 = arith.constant 0 : index
    %c0_0 = arith.constant 0 : index
    %0 = vector.load %arg1[%c0, %c0_0] : memref<512x27xf32, #tpu.memory_space<vmem>>, vector<512x27xf32>
    %c0_1 = arith.constant 0 : index
    %c0_2 = arith.constant 0 : index
    %1 = vector.load %arg2[%c0_1, %c0_2] : memref<27x128xf32, #tpu.memory_space<vmem>>, vector<27x128xf32>
    %cst = arith.constant dense<0.000000e+00> : vector<512x128xf32>
    %2 = tpu.matmul %0, %1, %cst {dimension_numbers = #tpu.dot_dimension_numbers<[1], [0], [0], [1], [0, 0, 1, 1], [], []>} : vector<512x27xf32>, vector<27x128xf32>, vector<512x128xf32> -> vector<512x128xf32>
    %c0_3 = arith.constant 0 : index
    %c0_4 = arith.constant 0 : index
    %3 = vector.load %arg3[%c0_3, %c0_4] : memref<1x128xf32, #tpu.memory_space<vmem>>, vector<1x128xf32>
    %c0_5 = arith.constant 0 : index
    %c0_6 = arith.constant 0 : index
    %4 = vector.load %arg4[%c0_5, %c0_6] : memref<1x128xf32, #tpu.memory_space<vmem>>, vector<1x128xf32>
    %cst_7 = arith.constant dense<0.000000e+00> : vector<128xf32>
    %5 = vector.multi_reduction <add>, %2, %cst_7 [0] : vector<512x128xf32> to vector<128xf32>
    %6 = vector.shape_cast %5 : vector<128xf32> to vector<1x128xf32>
    %7 = arith.mulf %2, %2 : vector<512x128xf32>
    %cst_8 = arith.constant dense<0.000000e+00> : vector<128xf32>
    %8 = vector.multi_reduction <add>, %7, %cst_8 [0] : vector<512x128xf32> to vector<128xf32>
    %9 = vector.shape_cast %8 : vector<128xf32> to vector<1x128xf32>
    %cst_9 = arith.constant 0.001953125 : f32
    %10 = vector.broadcast %cst_9 : f32 to vector<1x128xf32>
    %11 = arith.mulf %6, %10 : vector<1x128xf32>
    %cst_10 = arith.constant 0.001953125 : f32
    %12 = vector.broadcast %cst_10 : f32 to vector<1x128xf32>
    %13 = arith.mulf %9, %12 : vector<1x128xf32>
    %14 = arith.mulf %11, %11 : vector<1x128xf32>
    %15 = arith.subf %13, %14 : vector<1x128xf32>
    %cst_11 = arith.constant 9.99999974E-6 : f32
    %16 = vector.broadcast %cst_11 : f32 to vector<1x128xf32>
    %17 = arith.addf %15, %16 : vector<1x128xf32>
    %18 = math.rsqrt %17 : vector<1x128xf32>
    %19 = arith.mulf %3, %18 : vector<1x128xf32>
    %20 = arith.mulf %11, %19 : vector<1x128xf32>
    %21 = arith.subf %4, %20 : vector<1x128xf32>
    %22 = vector.broadcast %19 : vector<1x128xf32> to vector<512x128xf32>
    %23 = arith.mulf %2, %22 : vector<512x128xf32>
    %24 = vector.broadcast %21 : vector<1x128xf32> to vector<512x128xf32>
    %25 = arith.addf %23, %24 : vector<512x128xf32>
    %cst_12 = arith.constant 0.000000e+00 : f32
    %26 = vector.broadcast %cst_12 : f32 to vector<512x128xf32>
    %27 = arith.cmpf oge, %25, %26 : vector<512x128xf32>
    %cst_13 = arith.constant 1.000000e-01 : f32
    %28 = vector.broadcast %cst_13 : f32 to vector<512x128xf32>
    %29 = arith.mulf %28, %25 : vector<512x128xf32>
    %30 = arith.select %27, %25, %29 : vector<512x128xi1>, vector<512x128xf32>
    %c0_14 = arith.constant 0 : index
    %c0_15 = arith.constant 0 : index
    %c0_16 = arith.constant 0 : index
    %31 = vector.load %arg5[%c0_14, %c0_15, %c0_16] : memref<9x128x512xf32, #tpu.memory_space<vmem>>, vector<1x128x512xf32>
    %32 = vector.shape_cast %31 : vector<1x128x512xf32> to vector<128x512xf32>
    %cst_17 = arith.constant dense<0.000000e+00> : vector<128x128xf32>
    %33 = tpu.matmul %32, %30, %cst_17 {dimension_numbers = #tpu.dot_dimension_numbers<[1], [0], [0], [1], [0, 0, 1, 1], [], []>} : vector<128x512xf32>, vector<512x128xf32>, vector<128x128xf32> -> vector<128x128xf32>
    %c0_18 = arith.constant 0 : index
    %c0_19 = arith.constant 0 : index
    %c0_20 = arith.constant 0 : index
    %34 = vector.load %arg6[%c0_18, %c0_19, %c0_20] : memref<9x128x128xf32, #tpu.memory_space<vmem>>, vector<1x128x128xf32>
    %35 = vector.shape_cast %34 : vector<1x128x128xf32> to vector<128x128xf32>
    %cst_21 = arith.constant dense<0.000000e+00> : vector<128x128xf32>
    %36 = tpu.matmul %33, %35, %cst_21 {dimension_numbers = #tpu.dot_dimension_numbers<[1], [0], [0], [1], [0, 0, 1, 1], [], []>} : vector<128x128xf32>, vector<128x128xf32>, vector<128x128xf32> -> vector<128x128xf32>
    %c1 = arith.constant 1 : index
    %c0_22 = arith.constant 0 : index
    %c0_23 = arith.constant 0 : index
    %37 = vector.load %arg5[%c1, %c0_22, %c0_23] : memref<9x128x512xf32, #tpu.memory_space<vmem>>, vector<1x128x512xf32>
    %38 = vector.shape_cast %37 : vector<1x128x512xf32> to vector<128x512xf32>
    %cst_24 = arith.constant dense<0.000000e+00> : vector<128x128xf32>
    %39 = tpu.matmul %38, %30, %cst_24 {dimension_numbers = #tpu.dot_dimension_numbers<[1], [0], [0], [1], [0, 0, 1, 1], [], []>} : vector<128x512xf32>, vector<512x128xf32>, vector<128x128xf32> -> vector<128x128xf32>
    %c1_25 = arith.constant 1 : index
    %c0_26 = arith.constant 0 : index
    %c0_27 = arith.constant 0 : index
    %40 = vector.load %arg6[%c1_25, %c0_26, %c0_27] : memref<9x128x128xf32, #tpu.memory_space<vmem>>, vector<1x128x128xf32>
    %41 = vector.shape_cast %40 : vector<1x128x128xf32> to vector<128x128xf32>
    %cst_28 = arith.constant dense<0.000000e+00> : vector<128x128xf32>
    %42 = tpu.matmul %39, %41, %cst_28 {dimension_numbers = #tpu.dot_dimension_numbers<[1], [0], [0], [1], [0, 0, 1, 1], [], []>} : vector<128x128xf32>, vector<128x128xf32>, vector<128x128xf32> -> vector<128x128xf32>
    %43 = arith.addf %36, %42 : vector<128x128xf32>
    %c2 = arith.constant 2 : index
    %c0_29 = arith.constant 0 : index
    %c0_30 = arith.constant 0 : index
    %44 = vector.load %arg5[%c2, %c0_29, %c0_30] : memref<9x128x512xf32, #tpu.memory_space<vmem>>, vector<1x128x512xf32>
    %45 = vector.shape_cast %44 : vector<1x128x512xf32> to vector<128x512xf32>
    %cst_31 = arith.constant dense<0.000000e+00> : vector<128x128xf32>
    %46 = tpu.matmul %45, %30, %cst_31 {dimension_numbers = #tpu.dot_dimension_numbers<[1], [0], [0], [1], [0, 0, 1, 1], [], []>} : vector<128x512xf32>, vector<512x128xf32>, vector<128x128xf32> -> vector<128x128xf32>
    %c2_32 = arith.constant 2 : index
    %c0_33 = arith.constant 0 : index
    %c0_34 = arith.constant 0 : index
    %47 = vector.load %arg6[%c2_32, %c0_33, %c0_34] : memref<9x128x128xf32, #tpu.memory_space<vmem>>, vector<1x128x128xf32>
    %48 = vector.shape_cast %47 : vector<1x128x128xf32> to vector<128x128xf32>
    %cst_35 = arith.constant dense<0.000000e+00> : vector<128x128xf32>
    %49 = tpu.matmul %46, %48, %cst_35 {dimension_numbers = #tpu.dot_dimension_numbers<[1], [0], [0], [1], [0, 0, 1, 1], [], []>} : vector<128x128xf32>, vector<128x128xf32>, vector<128x128xf32> -> vector<128x128xf32>
    %50 = arith.addf %43, %49 : vector<128x128xf32>
    %c3 = arith.constant 3 : index
    %c0_36 = arith.constant 0 : index
    %c0_37 = arith.constant 0 : index
    %51 = vector.load %arg5[%c3, %c0_36, %c0_37] : memref<9x128x512xf32, #tpu.memory_space<vmem>>, vector<1x128x512xf32>
    %52 = vector.shape_cast %51 : vector<1x128x512xf32> to vector<128x512xf32>
    %cst_38 = arith.constant dense<0.000000e+00> : vector<128x128xf32>
    %53 = tpu.matmul %52, %30, %cst_38 {dimension_numbers = #tpu.dot_dimension_numbers<[1], [0], [0], [1], [0, 0, 1, 1], [], []>} : vector<128x512xf32>, vector<512x128xf32>, vector<128x128xf32> -> vector<128x128xf32>
    %c3_39 = arith.constant 3 : index
    %c0_40 = arith.constant 0 : index
    %c0_41 = arith.constant 0 : index
    %54 = vector.load %arg6[%c3_39, %c0_40, %c0_41] : memref<9x128x128xf32, #tpu.memory_space<vmem>>, vector<1x128x128xf32>
    %55 = vector.shape_cast %54 : vector<1x128x128xf32> to vector<128x128xf32>
    %cst_42 = arith.constant dense<0.000000e+00> : vector<128x128xf32>
    %56 = tpu.matmul %53, %55, %cst_42 {dimension_numbers = #tpu.dot_dimension_numbers<[1], [0], [0], [1], [0, 0, 1, 1], [], []>} : vector<128x128xf32>, vector<128x128xf32>, vector<128x128xf32> -> vector<128x128xf32>
    %57 = arith.addf %50, %56 : vector<128x128xf32>
    %c4 = arith.constant 4 : index
    %c0_43 = arith.constant 0 : index
    %c0_44 = arith.constant 0 : index
    %58 = vector.load %arg5[%c4, %c0_43, %c0_44] : memref<9x128x512xf32, #tpu.memory_space<vmem>>, vector<1x128x512xf32>
    %59 = vector.shape_cast %58 : vector<1x128x512xf32> to vector<128x512xf32>
    %cst_45 = arith.constant dense<0.000000e+00> : vector<128x128xf32>
    %60 = tpu.matmul %59, %30, %cst_45 {dimension_numbers = #tpu.dot_dimension_numbers<[1], [0], [0], [1], [0, 0, 1, 1], [], []>} : vector<128x512xf32>, vector<512x128xf32>, vector<128x128xf32> -> vector<128x128xf32>
    %c4_46 = arith.constant 4 : index
    %c0_47 = arith.constant 0 : index
    %c0_48 = arith.constant 0 : index
    %61 = vector.load %arg6[%c4_46, %c0_47, %c0_48] : memref<9x128x128xf32, #tpu.memory_space<vmem>>, vector<1x128x128xf32>
    %62 = vector.shape_cast %61 : vector<1x128x128xf32> to vector<128x128xf32>
    %cst_49 = arith.constant dense<0.000000e+00> : vector<128x128xf32>
    %63 = tpu.matmul %60, %62, %cst_49 {dimension_numbers = #tpu.dot_dimension_numbers<[1], [0], [0], [1], [0, 0, 1, 1], [], []>} : vector<128x128xf32>, vector<128x128xf32>, vector<128x128xf32> -> vector<128x128xf32>
    %64 = arith.addf %57, %63 : vector<128x128xf32>
    %c5 = arith.constant 5 : index
    %c0_50 = arith.constant 0 : index
    %c0_51 = arith.constant 0 : index
    %65 = vector.load %arg5[%c5, %c0_50, %c0_51] : memref<9x128x512xf32, #tpu.memory_space<vmem>>, vector<1x128x512xf32>
    %66 = vector.shape_cast %65 : vector<1x128x512xf32> to vector<128x512xf32>
    %cst_52 = arith.constant dense<0.000000e+00> : vector<128x128xf32>
    %67 = tpu.matmul %66, %30, %cst_52 {dimension_numbers = #tpu.dot_dimension_numbers<[1], [0], [0], [1], [0, 0, 1, 1], [], []>} : vector<128x512xf32>, vector<512x128xf32>, vector<128x128xf32> -> vector<128x128xf32>
    %c5_53 = arith.constant 5 : index
    %c0_54 = arith.constant 0 : index
    %c0_55 = arith.constant 0 : index
    %68 = vector.load %arg6[%c5_53, %c0_54, %c0_55] : memref<9x128x128xf32, #tpu.memory_space<vmem>>, vector<1x128x128xf32>
    %69 = vector.shape_cast %68 : vector<1x128x128xf32> to vector<128x128xf32>
    %cst_56 = arith.constant dense<0.000000e+00> : vector<128x128xf32>
    %70 = tpu.matmul %67, %69, %cst_56 {dimension_numbers = #tpu.dot_dimension_numbers<[1], [0], [0], [1], [0, 0, 1, 1], [], []>} : vector<128x128xf32>, vector<128x128xf32>, vector<128x128xf32> -> vector<128x128xf32>
    %71 = arith.addf %64, %70 : vector<128x128xf32>
    %c6 = arith.constant 6 : index
    %c0_57 = arith.constant 0 : index
    %c0_58 = arith.constant 0 : index
    %72 = vector.load %arg5[%c6, %c0_57, %c0_58] : memref<9x128x512xf32, #tpu.memory_space<vmem>>, vector<1x128x512xf32>
    %73 = vector.shape_cast %72 : vector<1x128x512xf32> to vector<128x512xf32>
    %cst_59 = arith.constant dense<0.000000e+00> : vector<128x128xf32>
    %74 = tpu.matmul %73, %30, %cst_59 {dimension_numbers = #tpu.dot_dimension_numbers<[1], [0], [0], [1], [0, 0, 1, 1], [], []>} : vector<128x512xf32>, vector<512x128xf32>, vector<128x128xf32> -> vector<128x128xf32>
    %c6_60 = arith.constant 6 : index
    %c0_61 = arith.constant 0 : index
    %c0_62 = arith.constant 0 : index
    %75 = vector.load %arg6[%c6_60, %c0_61, %c0_62] : memref<9x128x128xf32, #tpu.memory_space<vmem>>, vector<1x128x128xf32>
    %76 = vector.shape_cast %75 : vector<1x128x128xf32> to vector<128x128xf32>
    %cst_63 = arith.constant dense<0.000000e+00> : vector<128x128xf32>
    %77 = tpu.matmul %74, %76, %cst_63 {dimension_numbers = #tpu.dot_dimension_numbers<[1], [0], [0], [1], [0, 0, 1, 1], [], []>} : vector<128x128xf32>, vector<128x128xf32>, vector<128x128xf32> -> vector<128x128xf32>
    %78 = arith.addf %71, %77 : vector<128x128xf32>
    %c7 = arith.constant 7 : index
    %c0_64 = arith.constant 0 : index
    %c0_65 = arith.constant 0 : index
    %79 = vector.load %arg5[%c7, %c0_64, %c0_65] : memref<9x128x512xf32, #tpu.memory_space<vmem>>, vector<1x128x512xf32>
    %80 = vector.shape_cast %79 : vector<1x128x512xf32> to vector<128x512xf32>
    %cst_66 = arith.constant dense<0.000000e+00> : vector<128x128xf32>
    %81 = tpu.matmul %80, %30, %cst_66 {dimension_numbers = #tpu.dot_dimension_numbers<[1], [0], [0], [1], [0, 0, 1, 1], [], []>} : vector<128x512xf32>, vector<512x128xf32>, vector<128x128xf32> -> vector<128x128xf32>
    %c7_67 = arith.constant 7 : index
    %c0_68 = arith.constant 0 : index
    %c0_69 = arith.constant 0 : index
    %82 = vector.load %arg6[%c7_67, %c0_68, %c0_69] : memref<9x128x128xf32, #tpu.memory_space<vmem>>, vector<1x128x128xf32>
    %83 = vector.shape_cast %82 : vector<1x128x128xf32> to vector<128x128xf32>
    %cst_70 = arith.constant dense<0.000000e+00> : vector<128x128xf32>
    %84 = tpu.matmul %81, %83, %cst_70 {dimension_numbers = #tpu.dot_dimension_numbers<[1], [0], [0], [1], [0, 0, 1, 1], [], []>} : vector<128x128xf32>, vector<128x128xf32>, vector<128x128xf32> -> vector<128x128xf32>
    %85 = arith.addf %78, %84 : vector<128x128xf32>
    %c8 = arith.constant 8 : index
    %c0_71 = arith.constant 0 : index
    %c0_72 = arith.constant 0 : index
    %86 = vector.load %arg5[%c8, %c0_71, %c0_72] : memref<9x128x512xf32, #tpu.memory_space<vmem>>, vector<1x128x512xf32>
    %87 = vector.shape_cast %86 : vector<1x128x512xf32> to vector<128x512xf32>
    %cst_73 = arith.constant dense<0.000000e+00> : vector<128x128xf32>
    %88 = tpu.matmul %87, %30, %cst_73 {dimension_numbers = #tpu.dot_dimension_numbers<[1], [0], [0], [1], [0, 0, 1, 1], [], []>} : vector<128x512xf32>, vector<512x128xf32>, vector<128x128xf32> -> vector<128x128xf32>
    %c8_74 = arith.constant 8 : index
    %c0_75 = arith.constant 0 : index
    %c0_76 = arith.constant 0 : index
    %89 = vector.load %arg6[%c8_74, %c0_75, %c0_76] : memref<9x128x128xf32, #tpu.memory_space<vmem>>, vector<1x128x128xf32>
    %90 = vector.shape_cast %89 : vector<1x128x128xf32> to vector<128x128xf32>
    %cst_77 = arith.constant dense<0.000000e+00> : vector<128x128xf32>
    %91 = tpu.matmul %88, %90, %cst_77 {dimension_numbers = #tpu.dot_dimension_numbers<[1], [0], [0], [1], [0, 0, 1, 1], [], []>} : vector<128x128xf32>, vector<128x128xf32>, vector<128x128xf32> -> vector<128x128xf32>
    %92 = arith.addf %85, %91 : vector<128x128xf32>
    %c0_78 = arith.constant 0 : index
    %c0_79 = arith.constant 0 : index
    %93 = vector.load %arg7[%c0_78, %c0_79] : memref<1x128xf32, #tpu.memory_space<vmem>>, vector<1x128xf32>
    %c0_80 = arith.constant 0 : index
    %c0_81 = arith.constant 0 : index
    %94 = vector.load %arg8[%c0_80, %c0_81] : memref<1x128xf32, #tpu.memory_space<vmem>>, vector<1x128xf32>
    %cst_82 = arith.constant dense<0.000000e+00> : vector<128xf32>
    %95 = vector.multi_reduction <add>, %92, %cst_82 [0] : vector<128x128xf32> to vector<128xf32>
    %96 = vector.shape_cast %95 : vector<128xf32> to vector<1x128xf32>
    %97 = arith.mulf %92, %92 : vector<128x128xf32>
    %cst_83 = arith.constant dense<0.000000e+00> : vector<128xf32>
    %98 = vector.multi_reduction <add>, %97, %cst_83 [0] : vector<128x128xf32> to vector<128xf32>
    %99 = vector.shape_cast %98 : vector<128xf32> to vector<1x128xf32>
    %cst_84 = arith.constant 7.812500e-03 : f32
    %100 = vector.broadcast %cst_84 : f32 to vector<1x128xf32>
    %101 = arith.mulf %96, %100 : vector<1x128xf32>
    %cst_85 = arith.constant 7.812500e-03 : f32
    %102 = vector.broadcast %cst_85 : f32 to vector<1x128xf32>
    %103 = arith.mulf %99, %102 : vector<1x128xf32>
    %104 = arith.mulf %101, %101 : vector<1x128xf32>
    %105 = arith.subf %103, %104 : vector<1x128xf32>
    %cst_86 = arith.constant 9.99999974E-6 : f32
    %106 = vector.broadcast %cst_86 : f32 to vector<1x128xf32>
    %107 = arith.addf %105, %106 : vector<1x128xf32>
    %108 = math.rsqrt %107 : vector<1x128xf32>
    %109 = arith.mulf %93, %108 : vector<1x128xf32>
    %110 = arith.mulf %101, %109 : vector<1x128xf32>
    %111 = arith.subf %94, %110 : vector<1x128xf32>
    %112 = vector.broadcast %109 : vector<1x128xf32> to vector<128x128xf32>
    %113 = arith.mulf %92, %112 : vector<128x128xf32>
    %114 = vector.broadcast %111 : vector<1x128xf32> to vector<128x128xf32>
    %115 = arith.addf %113, %114 : vector<128x128xf32>
    %cst_87 = arith.constant 0.000000e+00 : f32
    %116 = vector.broadcast %cst_87 : f32 to vector<128x128xf32>
    %117 = arith.cmpf oge, %115, %116 : vector<128x128xf32>
    %cst_88 = arith.constant 1.000000e-01 : f32
    %118 = vector.broadcast %cst_88 : f32 to vector<128x128xf32>
    %119 = arith.mulf %118, %115 : vector<128x128xf32>
    %120 = arith.select %117, %115, %119 : vector<128x128xi1>, vector<128x128xf32>
    %c0_89 = arith.constant 0 : index
    %c0_90 = arith.constant 0 : index
    %121 = vector.load %arg9[%c0_89, %c0_90] : memref<128x128xf32, #tpu.memory_space<vmem>>, vector<128x128xf32>
    tpu.vector_store %arg9[%c0_89, %c0_90], %120 {strides = array<i32>} : memref<128x128xf32, #tpu.memory_space<vmem>>, vector<128x128xf32>,
    return
  }
  func.func @transform_0(%arg0: i32) -> (i32, i32) {
    %c0_i32 = arith.constant 0 : i32
    %c0_i32_0 = arith.constant 0 : i32
    %c0_i32_1 = arith.constant 0 : i32
    return %c0_i32, %c0_i32_0 : i32, i32
  }
  func.func @transform_1(%arg0: i32) -> (i32, i32) {
    %c0_i32 = arith.constant 0 : i32
    %c0_i32_0 = arith.constant 0 : i32
    %c0_i32_1 = arith.constant 0 : i32
    return %c0_i32, %c0_i32_0 : i32, i32
  }
  func.func @transform_2(%arg0: i32) -> (i32, i32) {
    %c0_i32 = arith.constant 0 : i32
    %c0_i32_0 = arith.constant 0 : i32
    %c0_i32_1 = arith.constant 0 : i32
    return %c0_i32, %c0_i32_0 : i32, i32
  }
  func.func @transform_3(%arg0: i32) -> (i32, i32) {
    %c0_i32 = arith.constant 0 : i32
    %c0_i32_0 = arith.constant 0 : i32
    %c0_i32_1 = arith.constant 0 : i32
    return %c0_i32, %c0_i32_0 : i32, i32
  }
  func.func @transform_4(%arg0: i32) -> (i32, i32, i32) {
    %c0_i32 = arith.constant 0 : i32
    %c0_i32_0 = arith.constant 0 : i32
    %c0_i32_1 = arith.constant 0 : i32
    %c0_i32_2 = arith.constant 0 : i32
    return %c0_i32, %c0_i32_0, %c0_i32_1 : i32, i32, i32
  }
  func.func @transform_5(%arg0: i32) -> (i32, i32, i32) {
    %c0_i32 = arith.constant 0 : i32
    %c0_i32_0 = arith.constant 0 : i32
    %c0_i32_1 = arith.constant 0 : i32
    %c0_i32_2 = arith.constant 0 : i32
    return %c0_i32, %c0_i32_0, %c0_i32_1 : i32, i32, i32
  }
  func.func @transform_6(%arg0: i32) -> (i32, i32) {
    %c0_i32 = arith.constant 0 : i32
    %c0_i32_0 = arith.constant 0 : i32
    %c0_i32_1 = arith.constant 0 : i32
    return %c0_i32, %c0_i32_0 : i32, i32
  }
  func.func @transform_7(%arg0: i32) -> (i32, i32) {
    %c0_i32 = arith.constant 0 : i32
    %c0_i32_0 = arith.constant 0 : i32
    %c0_i32_1 = arith.constant 0 : i32
    return %c0_i32, %c0_i32_0 : i32, i32
  }
  func.func @transform_8(%arg0: i32) -> (i32, i32) {
    %c0_i32 = arith.constant 0 : i32
    %c0_i32_0 = arith.constant 0 : i32
    %c0_i32_1 = arith.constant 0 : i32
    return %c0_i32, %c0_i32_0 : i32, i32
  }
}

</mosaic_0001>

<bundles_post_ra>
// kernel: inputnet_forward.1
= control target key start
LH: loop header
LB: loop body
LE: loop exit
PB: predicated region body
PF: predicated region fallthrough
CT: control target
= control target key end

     0   :  { %vm291_vm0 = vcmask 1042432   ;;  %vm98_vm1 = vcmask 220160   ;;  %vm10340_vm2 = vmmov 1   ;;  %s15063_s0 = inlined_call_operand.vmem [shape: f32[512,27], index: 0, kind: input, shape index: {}]   ;;  %s15064_s1 = inlined_call_operand.vmem [shape: f32[27,128], index: 1, kind: input, shape index: {}]   ;;  %s15065_s2 = inlined_call_operand.vmem [shape: f32[1,128], index: 2, kind: input, shape index: {}]   ;;  %s15066_s3 = inlined_call_operand.vmem [shape: f32[1,128], index: 3, kind: input, shape index: {}]   ;;  %s15067_s4 = inlined_call_operand.vmem [shape: f32[9,128,512], index: 4, kind: input, shape index: {}]   ;;  %s15068_s5 = inlined_call_operand.vmem [shape: f32[9,128,128], index: 5, kind: input, shape index: {}]   ;;  %s15069_s6 = inlined_call_operand.vmem [shape: f32[1,128], index: 6, kind: input, shape index: {}]   ;;  %s15070_s7 = inlined_call_operand.vmem [shape: f32[1,128], index: 7, kind: input, shape index: {}]   ;;  %s15071_s8 = inlined_call_operand.hbm [shape: f32[128,128], index: 8, kind: output, shape index: {}]  }
   0x1   :  { %v94_v0 = vld [vmem:[%s15064_s1] sm:$0xff]  ;;  %v95_v1 = vld [vmem:[%s15064_s1 + $0x8] sm:$0xff]  ;;  %v96_v2 = vld [vmem:[%s15064_s1 + $0x10] sm:$0xff] }
   0x2   :  { %v9290_v3 = vpack.c.bf16 %v95_v1, %v94_v0  ;;  %v97_v4 = vld [vmem:[%s15064_s1 + $0x18] sm:$0x7]  ;;  %v30_v5 = vld [vmem:[%s15063_s0] sm:$0xff]  ;;  %vm9295_vm3 = vmpackc.low %vm291_vm0, %vm10340_vm2 }
   0x3   :  { %v9294_v6 = vpack.c.bf16 %v97_v4, %v96_v2  ;;  %8690 = vmatprep.mubr.msk.f32.mxu0 %vm98_vm1, %v30_v5  ;;  %v31_v7 = vld [vmem:[%s15063_s0 + $0x8] sm:$0xff]  ;;  %v32_v8 = vld [vmem:[%s15063_s0 + $0x10] sm:$0xff]  ;;  %v33_v9 = vld [vmem:[%s15063_s0 + $0x18] sm:$0xff] }
   0x4   :  { %9291 = vmatprep.subr.bf16.mxu0 %v9290_v3  ;;  %v34_v10 = vld [vmem:[%s15063_s0 + $0x20] sm:$0xff]  ;;  %v35_v11 = vld [vmem:[%s15063_s0 + $0x28] sm:$0xff]  ;;  %v36_v12 = vld [vmem:[%s15063_s0 + $0x30] sm:$0xff] }
   0x5   :  { %9293 = vmatpush3.bf16.msra.mxu0 %v9290_v3  ;;  %v37_v13 = vld [vmem:[%s15063_s0 + $0x38] sm:$0xff]  ;;  %v38_v14 = vld [vmem:[%s15063_s0 + $0x40] sm:$0xff] }
   0x6   :  { %9296 = vmatprep.subr.msk.bf16.mxu0 %vm9295_vm3, %v9294_v6 }
   0x9   :  { %9299 = vmatpush3.bf16.msk.msra.mxu0 %vm9295_vm3, %v9294_v6 }
   0xc   :  { %8691 = vmatmul.mubr.msk.f32.vlgmr.msra.gmra.mrb[0].mxu0 %vm98_vm1, %v31_v7 }
   0xd   :  { %8693 = vmatprep.mubr.msk.f32.mxu0 %vm98_vm1, %v32_v8 }
  0x10   :  { %8694 = vmatmul.mubr.msk.f32.gmra.mrb[2].mxu0 %vm98_vm1, %v33_v9 }
  0x11   :  { %8696 = vmatprep.mubr.msk.f32.mxu0 %vm98_vm1, %v34_v10 }
  0x14   :  { %8697 = vmatmul.mubr.msk.f32.gmra.mrb[4].mxu0 %vm98_vm1, %v35_v11 }
  0x15   :  { %8699 = vmatprep.mubr.msk.f32.mxu0 %vm98_vm1, %v36_v12 }
  0x18   :  { %8700 = vmatmul.mubr.msk.f32.gmra.mrb[6].mxu0 %vm98_vm1, %v37_v13 }
  0x19   :  { %13 = vsyncpa [#allocation3], 0  ;;  %8702 = vmatprep.mubr.msk.f32.mxu0 %vm98_vm1, %v38_v14  ;;  %v39_v15 = vld [vmem:[%s15063_s0 + $0x48] sm:$0xff]  ;;  %v40_v16 = vld [vmem:[%s15063_s0 + $0x50] sm:$0xff] }
  0x1a   :  { %v41_v17 = vld [vmem:[%s15063_s0 + $0x58] sm:$0xff]  ;;  %v42_v18 = vld [vmem:[%s15063_s0 + $0x60] sm:$0xff]  ;;  %v43_v19 = vld [vmem:[%s15063_s0 + $0x68] sm:$0xff] }
  0x1b   :  { %v44_v20 = vld [vmem:[%s15063_s0 + $0x70] sm:$0xff]  ;;  %v45_v21 = vld [vmem:[%s15063_s0 + $0x78] sm:$0xff]  ;;  %v46_v22 = vld [vmem:[%s15063_s0 + $0x80] sm:$0xff] }
  0x1c   :  { %8703 = vmatmul.mubr.msk.f32.gmra.mrb[8].mxu0 %vm98_vm1, %v39_v15  ;;  %v47_v23 = vld [vmem:[%s15063_s0 + $0x88] sm:$0xff]  ;;  %v48_v24 = vld [vmem:[%s15063_s0 + $0x90] sm:$0xff]  ;;  %v49_v25 = vld [vmem:[%s15063_s0 + $0x98] sm:$0xff] }
  0x1d   :  { %8705 = vmatprep.mubr.msk.f32.mxu0 %vm98_vm1, %v40_v16  ;;  %v50_v26 = vld [vmem:[%s15063_s0 + $0xa0] sm:$0xff]  ;;  %v51_v27 = vld [vmem:[%s15063_s0 + $0xa8] sm:$0xff]  ;;  %v52_v28 = vld [vmem:[%s15063_s0 + $0xb0] sm:$0xff] }
  0x1e   :  { %v53_v29 = vld [vmem:[%s15063_s0 + $0xb8] sm:$0xff]  ;;  %v54_v30 = vld [vmem:[%s15063_s0 + $0xc0] sm:$0xff]  ;;  %v55_v31 = vld [vmem:[%s15063_s0 + $0xc8] sm:$0xff] }
  0x1f   :  { %v56_v32 = vld [vmem:[%s15063_s0 + $0xd0] sm:$0xff]  ;;  %v57_v33 = vld [vmem:[%s15063_s0 + $0xd8] sm:$0xff]  ;;  %v58_v34 = vld [vmem:[%s15063_s0 + $0xe0] sm:$0xff] }
  0x20   :  { %8706 = vmatmul.mubr.msk.f32.gmra.mrb[10].mxu0 %vm98_vm1, %v41_v17  ;;  %v59_v35 = vld [vmem:[%s15063_s0 + $0xe8] sm:$0xff]  ;;  %v60_v36 = vld [vmem:[%s15063_s0 + $0xf0] sm:$0xff]  ;;  %v61_v37 = vld [vmem:[%s15063_s0 + $0xf8] sm:$0xff] }
  0x21   :  { %8708 = vmatprep.mubr.msk.f32.mxu0 %vm98_vm1, %v42_v18  ;;  %v62_v38 = vld [vmem:[%s15063_s0 + $0x100] sm:$0xff]  ;;  %v63_v39 = vld [vmem:[%s15063_s0 + $0x108] sm:$0xff]  ;;  %v64_v40 = vld [vmem:[%s15063_s0 + $0x110] sm:$0xff] }
  0x22   :  { %v65_v41 = vld [vmem:[%s15063_s0 + $0x118] sm:$0xff]  ;;  %v66_v42 = vld [vmem:[%s15063_s0 + $0x120] sm:$0xff]  ;;  %v67_v43 = vld [vmem:[%s15063_s0 + $0x128] sm:$0xff] }
  0x23   :  { %v68_v44 = vld [vmem:[%s15063_s0 + $0x130] sm:$0xff]  ;;  %v69_v45 = vld [vmem:[%s15063_s0 + $0x138] sm:$0xff]  ;;  %v70_v46 = vld [vmem:[%s15063_s0 + $0x140] sm:$0xff] }
  0x24   :  { %8709 = vmatmul.mubr.msk.f32.gmra.mrb[12].mxu0 %vm98_vm1, %v43_v19  ;;  %v71_v47 = vld [vmem:[%s15063_s0 + $0x148] sm:$0xff]  ;;  %v72_v48 = vld [vmem:[%s15063_s0 + $0x150] sm:$0xff]  ;;  %v73_v49 = vld [vmem:[%s15063_s0 + $0x158] sm:$0xff] }
  0x25   :  { %8711 = vmatprep.mubr.msk.f32.mxu0 %vm98_vm1, %v44_v20  ;;  %v74_v50 = vld [vmem:[%s15063_s0 + $0x160] sm:$0xff]  ;;  %v75_v51 = vld [vmem:[%s15063_s0 + $0x168] sm:$0xff]  ;;  %v76_v52 = vld [vmem:[%s15063_s0 + $0x170] sm:$0xff] }
  0x26   :  { %v77_v53 = vld [vmem:[%s15063_s0 + $0x178] sm:$0xff]  ;;  %v78_v54 = vld [vmem:[%s15063_s0 + $0x180] sm:$0xff]  ;;  %v79_v55 = vld [vmem:[%s15063_s0 + $0x188] sm:$0xff] }
  0x27   :  { %v80_v56 = vld [vmem:[%s15063_s0 + $0x190] sm:$0xff]  ;;  %v81_v57 = vld [vmem:[%s15063_s0 + $0x198] sm:$0xff]  ;;  %v82_v58 = vld [vmem:[%s15063_s0 + $0x1a0] sm:$0xff] }
  0x28   :  { %8712 = vmatmul.mubr.msk.f32.gmra.mrb[14].mxu0 %vm98_vm1, %v45_v21  ;;  %v83_v59 = vld [vmem:[%s15063_s0 + $0x1a8] sm:$0xff]  ;;  %v84_v60 = vld [vmem:[%s15063_s0 + $0x1b0] sm:$0xff]  ;;  %v85_v61 = vld [vmem:[%s15063_s0 + $0x1b8] sm:$0xff] }
  0x29   :  { %8714 = vmatprep.mubr.msk.f32.mxu0 %vm98_vm1, %v46_v22  ;;  %v86_v62 = vld [vmem:[%s15063_s0 + $0x1c0] sm:$0xff]  ;;  %v87_v63 = vld [vmem:[%s15063_s0 + $0x1c8] sm:$0xff]  ;;  %v88_v0 = vld [vmem:[%s15063_s0 + $0x1d0] sm:$0xff] }
  0x2a   :  { %v89_v1 = vld [vmem:[%s15063_s0 + $0x1d8] sm:$0xff]  ;;  %v90_v2 = vld [vmem:[%s15063_s0 + $0x1e0] sm:$0xff]  ;;  %v91_v3 = vld [vmem:[%s15063_s0 + $0x1e8] sm:$0xff] }
  0x2b   :  { %v92_v4 = vld [vmem:[%s15063_s0 + $0x1f0] sm:$0xff]  ;;  %v93_v5 = vld [vmem:[%s15063_s0 + $0x1f8] sm:$0xff] }
  0x2c   :  { %8715 = vmatmul.mubr.msk.f32.gmra.mrb[16].mxu0 %vm98_vm1, %v47_v23 }
  0x2d   :  { %8717 = vmatprep.mubr.msk.f32.mxu0 %vm98_vm1, %v48_v24 }
  0x30   :  { %8718 = vmatmul.mubr.msk.f32.gmra.mrb[18].mxu0 %vm98_vm1, %v49_v25 }
  0x31   :  { %8720 = vmatprep.mubr.msk.f32.mxu0 %vm98_vm1, %v50_v26 }
  0x34   :  { %8721 = vmatmul.mubr.msk.f32.gmra.mrb[20].mxu0 %vm98_vm1, %v51_v27 }
  0x35   :  { %8723 = vmatprep.mubr.msk.f32.mxu0 %vm98_vm1, %v52_v28 }
  0x38   :  { %8724 = vmatmul.mubr.msk.f32.gmra.mrb[22].mxu0 %vm98_vm1, %v53_v29 }
  0x39   :  { %8726 = vmatprep.mubr.msk.f32.mxu0 %vm98_vm1, %v54_v30 }
  0x3c   :  { %8727 = vmatmul.mubr.msk.f32.gmra.mrb[24].mxu0 %vm98_vm1, %v55_v31 }
  0x3d   :  { %8729 = vmatprep.mubr.msk.f32.mxu0 %vm98_vm1, %v56_v32 }
  0x40   :  { %8730 = vmatmul.mubr.msk.f32.gmra.mrb[26].mxu0 %vm98_vm1, %v57_v33 }
  0x41   :  { %8732 = vmatprep.mubr.msk.f32.mxu0 %vm98_vm1, %v58_v34 }
  0x44   :  { %8733 = vmatmul.mubr.msk.f32.gmra.mrb[28].mxu0 %vm98_vm1, %v59_v35 }
  0x45   :  { %8735 = vmatprep.mubr.msk.f32.mxu0 %vm98_vm1, %v60_v36 }
  0x48   :  { %8736 = vmatmul.mubr.msk.f32.gmra.mrb[30].mxu0 %vm98_vm1, %v61_v37 }
  0x49   :  { %8738 = vmatprep.mubr.msk.f32.mxu0 %vm98_vm1, %v62_v38 }
  0x4c   :  { %8739 = vmatmul.mubr.msk.f32.gmra.mrb[32].mxu0 %vm98_vm1, %v63_v39 }
  0x4d   :  { %8741 = vmatprep.mubr.msk.f32.mxu0 %vm98_vm1, %v64_v40 }
  0x50   :  { %8742 = vmatmul.mubr.msk.f32.gmra.mrb[34].mxu0 %vm98_vm1, %v65_v41 }
  0x51   :  { %8744 = vmatprep.mubr.msk.f32.mxu0 %vm98_vm1, %v66_v42 }
  0x54   :  { %8745 = vmatmul.mubr.msk.f32.gmra.mrb[36].mxu0 %vm98_vm1, %v67_v43 }
  0x55   :  { %8747 = vmatprep.mubr.msk.f32.mxu0 %vm98_vm1, %v68_v44 }
  0x58   :  { %8748 = vmatmul.mubr.msk.f32.gmra.mrb[38].mxu0 %vm98_vm1, %v69_v45 }
  0x59   :  { %8750 = vmatprep.mubr.msk.f32.mxu0 %vm98_vm1, %v70_v46 }
  0x5c   :  { %8751 = vmatmul.mubr.msk.f32.gmra.mrb[40].mxu0 %vm98_vm1, %v71_v47 }
  0x5d   :  { %8753 = vmatprep.mubr.msk.f32.mxu0 %vm98_vm1, %v72_v48 }
  0x60   :  { %8754 = vmatmul.mubr.msk.f32.gmra.mrb[42].mxu0 %vm98_vm1, %v73_v49 }
  0x61   :  { %8756 = vmatprep.mubr.msk.f32.mxu0 %vm98_vm1, %v74_v50 }
  0x64   :  { %8757 = vmatmul.mubr.msk.f32.gmra.mrb[44].mxu0 %vm98_vm1, %v75_v51 }
  0x65   :  { %8759 = vmatprep.mubr.msk.f32.mxu0 %vm98_vm1, %v76_v52 }
  0x68   :  { %8760 = vmatmul.mubr.msk.f32.gmra.mrb[46].mxu0 %vm98_vm1, %v77_v53 }
  0x69   :  { %8762 = vmatprep.mubr.msk.f32.mxu0 %vm98_vm1, %v78_v54 }
  0x6c   :  { %8763 = vmatmul.mubr.msk.f32.gmra.mrb[48].mxu0 %vm98_vm1, %v79_v55 }
  0x6d   :  { %8765 = vmatprep.mubr.msk.f32.mxu0 %vm98_vm1, %v80_v56 }
  0x70   :  { %8766 = vmatmul.mubr.msk.f32.gmra.mrb[50].mxu0 %vm98_vm1, %v81_v57 }
  0x71   :  { %8768 = vmatprep.mubr.msk.f32.mxu0 %vm98_vm1, %v82_v58 }
  0x74   :  { %8769 = vmatmul.mubr.msk.f32.gmra.mrb[52].mxu0 %vm98_vm1, %v83_v59 }
  0x75   :  { %8771 = vmatprep.mubr.msk.f32.mxu0 %vm98_vm1, %v84_v60 }
  0x78   :  { %8772 = vmatmul.mubr.msk.f32.gmra.mrb[54].mxu0 %vm98_vm1, %v85_v61 }
  0x79   :  { %8774 = vmatprep.mubr.msk.f32.mxu0 %vm98_vm1, %v86_v62 }
  0x7c   :  { %8775 = vmatmul.mubr.msk.f32.gmra.mrb[56].mxu0 %vm98_vm1, %v87_v63 }
  0x7d   :  { %8777 = vmatprep.mubr.msk.f32.mxu0 %vm98_vm1, %v88_v0 }
  0x80   :  { %8778 = vmatmul.mubr.msk.f32.gmra.mrb[58].mxu0 %vm98_vm1, %v89_v1 }
  0x81   :  { %8780 = vmatprep.mubr.msk.f32.mxu0 %vm98_vm1, %v90_v2 }
  0x84   :  { %8781 = vmatmul.mubr.msk.f32.gmra.mrb[60].mxu0 %vm98_vm1, %v91_v3 }
  0x85   :  { %8783 = vmatprep.mubr.msk.f32.mxu0 %vm98_vm1, %v92_v4 }
  0x88   :  { %8784 = vmatmul.mubr.msk.f32.gmra.mrb[62].mxu0 %vm98_vm1, %v93_v5 }
  0xdf   :  { %v10657_v6 = vpop.f32.mrb[0].mxu0 }
  0xe0   :  { %v752_v7 = vmul.f32 %v10657_v6, %v10657_v6  ;;  %v10661_v8 = vpop.f32.mrb[1].mxu0 }
  0xe1   :  { %v682_v9 = vadd.f32 %v10657_v6, %v10661_v8  ;;  %v751_v10 = vmul.f32 %v10661_v8, %v10661_v8 }
  0xe3   :  { %v815_v11 = vadd.f32 %v752_v7, %v751_v10  ;;  %v10667_v12 = vpop.f32.mrb[2].mxu0 }
  0xe4   :  { %v10669_v13 = vpop.f32.mrb[3].mxu0  ;;  %v754_v16 = vmul.f32 %v10667_v12, %v10667_v12 }
  0xe5   :  { %v683_v14 = vadd.f32 %v682_v9, %v10669_v13  ;;  %v753_v15 = vmul.f32 %v10669_v13, %v10669_v13 }
  0xe7   :  { %v816_v17 = vadd.f32 %v815_v11, %v753_v15  ;;  %v10676_v18 = vpop.f32.mrb[4].mxu0  ;;  %v684_v19 = vadd.f32 %v10667_v12, %v683_v14 }
  0xe8   :  { %v10679_v20 = vpop.f32.mrb[5].mxu0  ;;  %v756_v24 = vmul.f32 %v10676_v18, %v10676_v18 }
  0xe9   :  { %v685_v21 = vadd.f32 %v684_v19, %v10679_v20  ;;  %v755_v22 = vmul.f32 %v10679_v20, %v10679_v20  ;;  %v817_v23 = vadd.f32 %v816_v17, %v754_v16 }
  0xeb   :  { %v818_v25 = vadd.f32 %v817_v23, %v755_v22  ;;  %v10686_v26 = vpop.f32.mrb[6].mxu0  ;;  %v686_v27 = vadd.f32 %v10676_v18, %v685_v21 }
  0xec   :  { %v10689_v28 = vpop.f32.mrb[7].mxu0  ;;  %v758_v32 = vmul.f32 %v10686_v26, %v10686_v26 }
  0xed   :  { %v687_v29 = vadd.f32 %v686_v27, %v10689_v28  ;;  %v757_v30 = vmul.f32 %v10689_v28, %v10689_v28  ;;  %v819_v31 = vadd.f32 %v818_v25, %v756_v24 }
  0xef   :  { %v820_v33 = vadd.f32 %v819_v31, %v757_v30  ;;  %v10696_v34 = vpop.f32.mrb[8].mxu0  ;;  %v688_v35 = vadd.f32 %v10686_v26, %v687_v29 }
  0xf0   :  { %v10699_v36 = vpop.f32.mrb[9].mxu0  ;;  %v760_v40 = vmul.f32 %v10696_v34, %v10696_v34 }
  0xf1   :  { %v689_v37 = vadd.f32 %v688_v35, %v10699_v36  ;;  %v759_v38 = vmul.f32 %v10699_v36, %v10699_v36  ;;  %v821_v39 = vadd.f32 %v820_v33, %v758_v32 }
  0xf3   :  { %v822_v41 = vadd.f32 %v821_v39, %v759_v38  ;;  %v10706_v42 = vpop.f32.mrb[10].mxu0  ;;  %v690_v43 = vadd.f32 %v10696_v34, %v689_v37 }
  0xf4   :  { %v10709_v44 = vpop.f32.mrb[11].mxu0  ;;  %v762_v48 = vmul.f32 %v10706_v42, %v10706_v42 }
  0xf5   :  { %v691_v45 = vadd.f32 %v690_v43, %v10709_v44  ;;  %v761_v46 = vmul.f32 %v10709_v44, %v10709_v44  ;;  %v823_v47 = vadd.f32 %v822_v41, %v760_v40 }
  0xf7   :  { %v824_v49 = vadd.f32 %v823_v47, %v761_v46  ;;  %v10716_v50 = vpop.f32.mrb[12].mxu0  ;;  %v692_v51 = vadd.f32 %v10706_v42, %v691_v45 }
  0xf8   :  { %v10719_v52 = vpop.f32.mrb[13].mxu0  ;;  %v764_v56 = vmul.f32 %v10716_v50, %v10716_v50 }
  0xf9   :  { %v693_v53 = vadd.f32 %v692_v51, %v10719_v52  ;;  %v763_v54 = vmul.f32 %v10719_v52, %v10719_v52  ;;  %v825_v55 = vadd.f32 %v824_v49, %v762_v48 }
  0xfb   :  { %v826_v57 = vadd.f32 %v825_v55, %v763_v54  ;;  %v10726_v58 = vpop.f32.mrb[14].mxu0  ;;  %v694_v59 = vadd.f32 %v10716_v50, %v693_v53 }
  0xfc   :  { %v10729_v60 = vpop.f32.mrb[15].mxu0  ;;  %v766_v0 = vmul.f32 %v10726_v58, %v10726_v58 }
  0xfd   :  { %v765_v61 = vmul.f32 %v10729_v60, %v10729_v60  ;;  %v695_v62 = vadd.f32 %v694_v59, %v10729_v60  ;;  %v827_v63 = vadd.f32 %v826_v57, %v764_v56 }
  0xff   :  { %v10736_v1 = vpop.f32.mrb[16].mxu0  ;;  %v696_v2 = vadd.f32 %v10726_v58, %v695_v62  ;;  %v828_v3 = vadd.f32 %v827_v63, %v765_v61 }
 0x100   :  { %v10739_v4 = vpop.f32.mrb[17].mxu0  ;;  %v768_v10 = vmul.f32 %v10736_v1, %v10736_v1 }
 0x101   :  { %v697_v5 = vadd.f32 %v696_v2, %v10739_v4  ;;  %v767_v7 = vmul.f32 %v10739_v4, %v10739_v4  ;;  %v829_v9 = vadd.f32 %v828_v3, %v766_v0 }
 0x103   :  { %v830_v11 = vadd.f32 %v829_v9, %v767_v7  ;;  %v10746_v14 = vpop.f32.mrb[18].mxu0  ;;  %v698_v15 = vadd.f32 %v10736_v1, %v697_v5 }
 0x104   :  { %v10749_v16 = vpop.f32.mrb[19].mxu0  ;;  %v770_v22 = vmul.f32 %v10746_v14, %v10746_v14 }
 0x105   :  { %v699_v17 = vadd.f32 %v698_v15, %v10749_v16  ;;  %v769_v19 = vmul.f32 %v10749_v16, %v10749_v16  ;;  %v831_v21 = vadd.f32 %v830_v11, %v768_v10 }
 0x107   :  { %v832_v23 = vadd.f32 %v831_v21, %v769_v19  ;;  %v10756_v24 = vpop.f32.mrb[20].mxu0  ;;  %v700_v25 = vadd.f32 %v10746_v14, %v699_v17 }
 0x108   :  { %v10759_v27 = vpop.f32.mrb[21].mxu0  ;;  %v772_v32 = vmul.f32 %v10756_v24, %v10756_v24 }
 0x109   :  { %v701_v29 = vadd.f32 %v700_v25, %v10759_v27  ;;  %v771_v30 = vmul.f32 %v10759_v27, %v10759_v27  ;;  %v833_v31 = vadd.f32 %v832_v23, %v770_v22 }
 0x10b   :  { %v834_v33 = vadd.f32 %v833_v31, %v771_v30  ;;  %v10766_v35 = vpop.f32.mrb[22].mxu0  ;;  %v702_v37 = vadd.f32 %v10756_v24, %v701_v29 }
 0x10c   :  { %v10769_v38 = vpop.f32.mrb[23].mxu0  ;;  %v774_v43 = vmul.f32 %v10766_v35, %v10766_v35 }
 0x10d   :  { %v703_v39 = vadd.f32 %v702_v37, %v10769_v38  ;;  %v773_v40 = vmul.f32 %v10769_v38, %v10769_v38  ;;  %v835_v41 = vadd.f32 %v834_v33, %v772_v32 }
 0x10f   :  { %v836_v45 = vadd.f32 %v835_v41, %v773_v40  ;;  %v10776_v46 = vpop.f32.mrb[24].mxu0  ;;  %v704_v47 = vadd.f32 %v10766_v35, %v703_v39 }
 0x110   :  { %v10779_v48 = vpop.f32.mrb[25].mxu0  ;;  %v776_v54 = vmul.f32 %v10776_v46, %v10776_v46 }
 0x111   :  { %v705_v49 = vadd.f32 %v704_v47, %v10779_v48  ;;  %v775_v51 = vmul.f32 %v10779_v48, %v10779_v48  ;;  %v837_v53 = vadd.f32 %v836_v45, %v774_v43 }
 0x113   :  { %v838_v55 = vadd.f32 %v837_v53, %v775_v51  ;;  %v10786_v56 = vpop.f32.mrb[26].mxu0  ;;  %v706_v57 = vadd.f32 %v10776_v46, %v705_v49 }
 0x114   :  { %v10789_v59 = vpop.f32.mrb[27].mxu0  ;;  %v778_v0 = vmul.f32 %v10786_v56, %v10786_v56 }
 0x115   :  { %v707_v61 = vadd.f32 %v706_v57, %v10789_v59  ;;  %v777_v62 = vmul.f32 %v10789_v59, %v10789_v59  ;;  %v839_v63 = vadd.f32 %v838_v55, %v776_v54 }
 0x117   :  { %v840_v2 = vadd.f32 %v839_v63, %v777_v62  ;;  %v10796_v3 = vpop.f32.mrb[28].mxu0  ;;  %v708_v5 = vadd.f32 %v10786_v56, %v707_v61 }
 0x118   :  { %v10799_v7 = vpop.f32.mrb[29].mxu0  ;;  %v780_v15 = vmul.f32 %v10796_v3, %v10796_v3 }
 0x119   :  { %v709_v9 = vadd.f32 %v708_v5, %v10799_v7  ;;  %v779_v10 = vmul.f32 %v10799_v7, %v10799_v7  ;;  %v841_v11 = vadd.f32 %v840_v2, %v778_v0 }
 0x11b   :  { %v842_v17 = vadd.f32 %v841_v11, %v779_v10  ;;  %v10806_v19 = vpop.f32.mrb[30].mxu0  ;;  %v710_v21 = vadd.f32 %v10796_v3, %v709_v9 }
 0x11c   :  { %v10809_v22 = vpop.f32.mrb[31].mxu0  ;;  %v782_v30 = vmul.f32 %v10806_v19, %v10806_v19 }
 0x11d   :  { %v711_v23 = vadd.f32 %v710_v21, %v10809_v22  ;;  %v781_v25 = vmul.f32 %v10809_v22, %v10809_v22  ;;  %v843_v29 = vadd.f32 %v842_v17, %v780_v15 }
 0x11f   :  { %v844_v31 = vadd.f32 %v843_v29, %v781_v25  ;;  %v10816_v32 = vpop.f32.mrb[32].mxu0  ;;  %v712_v33 = vadd.f32 %v10806_v19, %v711_v23 }
 0x120   :  { %v10819_v37 = vpop.f32.mrb[33].mxu0  ;;  %v784_v43 = vmul.f32 %v10816_v32, %v10816_v32 }
 0x121   :  { %v713_v39 = vadd.f32 %v712_v33, %v10819_v37  ;;  %v783_v40 = vmul.f32 %v10819_v37, %v10819_v37  ;;  %v845_v41 = vadd.f32 %v844_v31, %v782_v30 }
 0x123   :  { %v846_v45 = vadd.f32 %v845_v41, %v783_v40  ;;  %v10826_v47 = vpop.f32.mrb[34].mxu0  ;;  %v714_v49 = vadd.f32 %v10816_v32, %v713_v39 }
 0x124   :  { %v10829_v51 = vpop.f32.mrb[35].mxu0  ;;  %v786_v57 = vmul.f32 %v10826_v47, %v10826_v47 }
 0x125   :  { %v715_v53 = vadd.f32 %v714_v49, %v10829_v51  ;;  %v785_v54 = vmul.f32 %v10829_v51, %v10829_v51  ;;  %v847_v55 = vadd.f32 %v846_v45, %v784_v43 }
 0x127   :  { %v848_v61 = vadd.f32 %v847_v55, %v785_v54  ;;  %v10836_v62 = vpop.f32.mrb[36].mxu0  ;;  %v716_v63 = vadd.f32 %v10826_v47, %v715_v53 }
 0x128   :  { %v10839_v0 = vpop.f32.mrb[37].mxu0  ;;  %v788_v10 = vmul.f32 %v10836_v62, %v10836_v62 }
 0x129   :  { %v717_v2 = vadd.f32 %v716_v63, %v10839_v0  ;;  %v787_v5 = vmul.f32 %v10839_v0, %v10839_v0  ;;  %v849_v9 = vadd.f32 %v848_v61, %v786_v57 }
 0x12b   :  { %v850_v11 = vadd.f32 %v849_v9, %v787_v5  ;;  %v10846_v15 = vpop.f32.mrb[38].mxu0  ;;  %v718_v17 = vadd.f32 %v10836_v62, %v717_v2 }
 0x12c   :  { %15174 = vst [vmem:[#allocation5_spill] sm:$0xff] %v10846_v15  ;;  %v10849_v21 = vpop.f32.mrb[39].mxu0  ;;  %v790_v30 = vmul.f32 %v10846_v15, %v10846_v15 }
 0x12d   :  { %15175 = vst [vmem:[#allocation6_spill] sm:$0xff] %v10849_v21  ;;  %v719_v23 = vadd.f32 %v718_v17, %v10849_v21  ;;  %v789_v25 = vmul.f32 %v10849_v21, %v10849_v21  ;;  %v851_v29 = vadd.f32 %v850_v11, %v788_v10 }
 0x12f   :  { %v852_v31 = vadd.f32 %v851_v29, %v789_v25  ;;  %v10856_v33 = vpop.f32.mrb[40].mxu0  ;;  %v720_v39 = vadd.f32 %v10846_v15, %v719_v23 }
 0x130   :  { %15176 = vst [vmem:[#allocation7_spill] sm:$0xff] %v10856_v33  ;;  %v10859_v40 = vpop.f32.mrb[41].mxu0  ;;  %v792_v49 = vmul.f32 %v10856_v33, %v10856_v33 }
 0x131   :  { %15177 = vst [vmem:[#allocation8_spill] sm:$0xff] %v10859_v40  ;;  %v721_v41 = vadd.f32 %v720_v39, %v10859_v40  ;;  %v791_v43 = vmul.f32 %v10859_v40, %v10859_v40  ;;  %v853_v45 = vadd.f32 %v852_v31, %v790_v30 }
 0x133   :  { %v854_v53 = vadd.f32 %v853_v45, %v791_v43  ;;  %v10866_v54 = vpop.f32.mrb[42].mxu0  ;;  %v722_v55 = vadd.f32 %v10856_v33, %v721_v41 }
 0x134   :  { %15178 = vst [vmem:[#allocation9_spill] sm:$0xff] %v10866_v54  ;;  %v10869_v57 = vpop.f32.mrb[43].mxu0  ;;  %v794_v5 = vmul.f32 %v10866_v54, %v10866_v54 }
 0x135   :  { %15179 = vst [vmem:[#allocation10_spill] sm:$0xff] %v10869_v57  ;;  %v723_v61 = vadd.f32 %v722_v55, %v10869_v57  ;;  %v793_v63 = vmul.f32 %v10869_v57, %v10869_v57  ;;  %v855_v2 = vadd.f32 %v854_v53, %v792_v49 }
 0x137   :  { %v856_v9 = vadd.f32 %v855_v2, %v793_v63  ;;  %v10876_v10 = vpop.f32.mrb[44].mxu0  ;;  %v724_v11 = vadd.f32 %v10866_v54, %v723_v61 }
 0x138   :  { %15180 = vst [vmem:[#allocation11_spill] sm:$0xff] %v10876_v10  ;;  %v10879_v17 = vpop.f32.mrb[45].mxu0  ;;  %v796_v30 = vmul.f32 %v10876_v10, %v10876_v10 }
 0x139   :  { %15181 = vst [vmem:[#allocation12_spill] sm:$0xff] %v10879_v17  ;;  %v725_v23 = vadd.f32 %v724_v11, %v10879_v17  ;;  %v795_v25 = vmul.f32 %v10879_v17, %v10879_v17  ;;  %v857_v29 = vadd.f32 %v856_v9, %v794_v5 }
 0x13b   :  { %v858_v31 = vadd.f32 %v857_v29, %v795_v25  ;;  %v10886_v39 = vpop.f32.mrb[46].mxu0  ;;  %v726_v41 = vadd.f32 %v10876_v10, %v725_v23 }
 0x13c   :  { %15182 = vst [vmem:[#allocation13_spill] sm:$0xff] %v10886_v39  ;;  %v10889_v43 = vpop.f32.mrb[47].mxu0  ;;  %v798_v55 = vmul.f32 %v10886_v39, %v10886_v39 }
 0x13d   :  { %15183 = vst [vmem:[#allocation14_spill] sm:$0xff] %v10889_v43  ;;  %v727_v45 = vadd.f32 %v726_v41, %v10889_v43  ;;  %v797_v49 = vmul.f32 %v10889_v43, %v10889_v43  ;;  %v859_v53 = vadd.f32 %v858_v31, %v796_v30 }
 0x13f   :  { %v860_v61 = vadd.f32 %v859_v53, %v797_v49  ;;  %v10896_v63 = vpop.f32.mrb[48].mxu0  ;;  %v728_v2 = vadd.f32 %v10886_v39, %v727_v45 }
 0x140   :  { %15184 = vst [vmem:[#allocation15_spill] sm:$0xff] %v10896_v63  ;;  %v10899_v5 = vpop.f32.mrb[49].mxu0  ;;  %v800_v25 = vmul.f32 %v10896_v63, %v10896_v63 }
 0x141   :  { %15185 = vst [vmem:[#allocation16_spill] sm:$0xff] %v10899_v5  ;;  %v729_v9 = vadd.f32 %v728_v2, %v10899_v5  ;;  %v799_v11 = vmul.f32 %v10899_v5, %v10899_v5  ;;  %v861_v23 = vadd.f32 %v860_v61, %v798_v55 }
 0x143   :  { %v862_v29 = vadd.f32 %v861_v23, %v799_v11  ;;  %v10906_v30 = vpop.f32.mrb[50].mxu0  ;;  %v730_v31 = vadd.f32 %v10896_v63, %v729_v9 }
 0x144   :  { %15186 = vst [vmem:[#allocation17_spill] sm:$0xff] %v10906_v30  ;;  %v10909_v41 = vpop.f32.mrb[51].mxu0  ;;  %v802_v2 = vmul.f32 %v10906_v30, %v10906_v30 }
 0x145   :  { %15187 = vst [vmem:[#allocation18_spill] sm:$0xff] %v10909_v41  ;;  %v731_v45 = vadd.f32 %v730_v31, %v10909_v41  ;;  %v801_v49 = vmul.f32 %v10909_v41, %v10909_v41  ;;  %v863_v53 = vadd.f32 %v862_v29, %v800_v25 }
 0x147   :  { %v864_v55 = vadd.f32 %v863_v53, %v801_v49  ;;  %v10916_v61 = vpop.f32.mrb[52].mxu0  ;;  %v732_v11 = vadd.f32 %v10906_v30, %v731_v45 }
 0x148   :  { %15188 = vst [vmem:[#allocation19_spill] sm:$0xff] %v10916_v61  ;;  %v10919_v23 = vpop.f32.mrb[53].mxu0  ;;  %v804_v41 = vmul.f32 %v10916_v61, %v10916_v61 }
 0x149   :  { %15189 = vst [vmem:[#allocation20_spill] sm:$0xff] %v10919_v23  ;;  %v733_v9 = vadd.f32 %v732_v11, %v10919_v23  ;;  %v803_v63 = vmul.f32 %v10919_v23, %v10919_v23  ;;  %v865_v31 = vadd.f32 %v864_v55, %v802_v2 }
 0x14b   :  { %v866_v25 = vadd.f32 %v865_v31, %v803_v63  ;;  %v10926_v29 = vpop.f32.mrb[54].mxu0  ;;  %v734_v49 = vadd.f32 %v10916_v61, %v733_v9 }
 0x14c   :  { %15190 = vst [vmem:[#allocation21_spill] sm:$0xff] %v10926_v29  ;;  %v10929_v53 = vpop.f32.mrb[55].mxu0  ;;  %v806_v23 = vmul.f32 %v10926_v29, %v10926_v29 }
 0x14d   :  { %15191 = vst [vmem:[#allocation22_spill] sm:$0xff] %v10929_v53  ;;  %v735_v45 = vadd.f32 %v734_v49, %v10929_v53  ;;  %v805_v30 = vmul.f32 %v10929_v53, %v10929_v53  ;;  %v867_v11 = vadd.f32 %v866_v25, %v804_v41 }
 0x14f   :  { %v868_v2 = vadd.f32 %v867_v11, %v805_v30  ;;  %v10936_v55 = vpop.f32.mrb[56].mxu0  ;;  %v736_v63 = vadd.f32 %v10926_v29, %v735_v45 }
 0x150   :  { %15192 = vst [vmem:[#allocation23_spill] sm:$0xff] %v10936_v55  ;;  %v10939_v31 = vpop.f32.mrb[57].mxu0  ;;  %v808_v53 = vmul.f32 %v10936_v55, %v10936_v55 }
 0x151   :  { %15193 = vst [vmem:[#allocation24_spill] sm:$0xff] %v10939_v31  ;;  %v737_v9 = vadd.f32 %v736_v63, %v10939_v31  ;;  %v807_v61 = vmul.f32 %v10939_v31, %v10939_v31  ;;  %v869_v49 = vadd.f32 %v868_v2, %v806_v23 }
 0x153   :  { %v870_v41 = vadd.f32 %v869_v49, %v807_v61  ;;  %v10946_v25 = vpop.f32.mrb[58].mxu0  ;;  %v738_v30 = vadd.f32 %v10936_v55, %v737_v9 }
 0x154   :  { %15194 = vst [vmem:[#allocation25_spill] sm:$0xff] %v10946_v25  ;;  %v10949_v11 = vpop.f32.mrb[59].mxu0  ;;  %v810_v31 = vmul.f32 %v10946_v25, %v10946_v25 }
 0x155   :  { %15195 = vst [vmem:[#allocation26_spill] sm:$0xff] %v10949_v11  ;;  %v739_v45 = vadd.f32 %v738_v30, %v10949_v11  ;;  %v809_v29 = vmul.f32 %v10949_v11, %v10949_v11  ;;  %v871_v63 = vadd.f32 %v870_v41, %v808_v53 }
 0x157   :  { %v872_v23 = vadd.f32 %v871_v63, %v809_v29  ;;  %v10956_v2 = vpop.f32.mrb[60].mxu0  ;;  %v740_v61 = vadd.f32 %v10946_v25, %v739_v45 }
 0x158   :  { %15196 = vst [vmem:[#allocation27_spill] sm:$0xff] %v10956_v2  ;;  %v10959_v49 = vpop.f32.mrb[61].mxu0  ;;  %v812_v11 = vmul.f32 %v10956_v2, %v10956_v2 }
 0x159   :  { %15197 = vst [vmem:[#allocation28_spill] sm:$0xff] %v10959_v49  ;;  %v741_v9 = vadd.f32 %v740_v61, %v10959_v49  ;;  %v811_v55 = vmul.f32 %v10959_v49, %v10959_v49  ;;  %v873_v30 = vadd.f32 %v872_v23, %v810_v31 }
 0x15b   :  { %v874_v53 = vadd.f32 %v873_v30, %v811_v55  ;;  %v8785_v41 = vpop.f32.mrb[62].mxu0  ;;  %v742_v5 = vadd.f32 %v10956_v2, %v741_v9 }
 0x15c   :  { %v671_v29 = vpop.f32.mrb[63].mxu0  ;;  %v814_v45 = vmul.f32 %v8785_v41, %v8785_v41 }
 0x15d   :  { %v743_v63 = vadd.f32 %v742_v5, %v671_v29  ;;  %v813_v39 = vmul.f32 %v671_v29, %v671_v29  ;;  %v875_v43 = vadd.f32 %v874_v53, %v812_v11 }
 0x15f   :  { %v744_v25 = vadd.f32 %v8785_v41, %v743_v63  ;;  %v876_v10 = vadd.f32 %v875_v43, %v813_v39  ;;  %v894_v39 = vlaneseq }
 0x161   :  { %v745_v17 = vrot.slane %v744_v25, 4  ;;  %v877_v61 = vadd.f32 %v876_v10, %v814_v45  ;;  %v1226_v10 = vld [vmem:[%s15067_s4 + $0x8] sm:$0xff] }
 0x162   :  { %1353 = vmatprep.mubr.f32.mxu1 %v1226_v10 }
 0x163   :  { %v746_v54 = vadd.f32 %v745_v17, %v744_v25  ;;  %v878_v57 = vrot.slane %v877_v61, 4 }
 0x165   :  { %v747_v49 = vrot.slane %v746_v54, 2  ;;  %v879_v31 = vadd.f32 %v878_v57, %v877_v61  ;;  %v895_v57 = vshrl.u32 %v894_v39, 7 }
 0x167   :  { %v748_v23 = vadd.f32 %v747_v49, %v746_v54  ;;  %v880_v33 = vrot.slane %v879_v31, 2 }
 0x169   :  { %v749_v40 = vrot.slane %v748_v23, 1  ;;  %v881_v55 = vadd.f32 %v880_v33, %v879_v31  ;;  %v680_v33 = vld [vmem:[%s15065_s2] sm:$0x1] }
 0x16b   :  { %v750_v30 = vadd.f32 %v749_v40, %v748_v23  ;;  %v882_v15 = vrot.slane %v881_v55, 1  ;;  %v10973_v40 = vsub.s32 0, %v895_v57  ;;  %v15207_v57 = vld [vmem:[#allocation6_spill] sm:$0xff] }
 0x16d   :  { %v883_v9 = vadd.f32 %v882_v15, %v881_v55  ;;  %v884_v2 = vmul.f32 0.001953125, %v750_v30  ;;  %15198 = vst [vmem:[#allocation29_spill] sm:$0xff] %v10973_v40 }
 0x16f   :  { %v885_v5 = vmul.f32 0.001953125, %v883_v9  ;;  %v886_v21 = vmul.f32 %v884_v2, %v884_v2 }
 0x171   :  { %v887_v11 = vsub.f32 %v885_v5, %v886_v21  ;;  %v681_v21 = vld [vmem:[%s15066_s3] sm:$0x1] }
 0x173   :  { %v888_v53 = vadd.f32 1e-05, %v887_v11 }
 0x175   :  { %10312 = vrsqrt.f32 %v888_v53 }
 0x17f   :  { %v10313_v15 = vpop.eup %10312 }
 0x180   :  { %v890_v54 = vmul.f32 %v10313_v15, %v680_v33  ;;  %v15209_v15 = vld [vmem:[#allocation8_spill] sm:$0xff] }
 0x182   :  { %v891_v17 = vmul.f32 %v890_v54, %v884_v2  ;;  %v10979_v43 = vrot.slane %v890_v54, %v10973_v40 }
 0x184   :  { %v892_v25 = vsub.f32 %v681_v21, %v891_v17  ;;  %v961_v49 = vmul.f32 %v10979_v43, %v671_v29  ;;  %v962_v63 = vmul.f32 %v8785_v41, %v10979_v43  ;;  %v10985_v45 = vmul.f32 %v10979_v43, %v10661_v8  ;;  %v15211_v21 = vld [vmem:[#allocation10_spill] sm:$0xff] }
 0x185   :  { %v10989_v61 = vmul.f32 %v10657_v6, %v10979_v43  ;;  %v10993_v31 = vmul.f32 %v10979_v43, %v10669_v13  ;;  %v10997_v2 = vmul.f32 %v10667_v12, %v10979_v43  ;;  %v11001_v29 = vmul.f32 %v10979_v43, %v10679_v20 }
 0x186   :  { %v11004_v41 = vrot.slane %v892_v25, %v10973_v40  ;;  %v11008_v8 = vmul.f32 %v10676_v18, %v10979_v43  ;;  %v11012_v6 = vmul.f32 %v10979_v43, %v10689_v28  ;;  %v11016_v13 = vmul.f32 %v10686_v26, %v10979_v43  ;;  %v15213_v25 = vld [vmem:[#allocation12_spill] sm:$0xff] }
 0x187   :  { %v11020_v12 = vmul.f32 %v10979_v43, %v10699_v36  ;;  %v11024_v20 = vmul.f32 %v10696_v34, %v10979_v43  ;;  %v11028_v18 = vmul.f32 %v10979_v43, %v10709_v44  ;;  %v11032_v28 = vmul.f32 %v10706_v42, %v10979_v43 }
 0x188   :  { %v1031_v23 = vadd.f32 %v11004_v41, %v961_v49  ;;  %v1032_v26 = vadd.f32 %v11004_v41, %v962_v63  ;;  %v11038_v36 = vmul.f32 %v10979_v43, %v10719_v52  ;;  %v11042_v34 = vmul.f32 %v10716_v50, %v10979_v43  ;;  %v15214_v49 = vld [vmem:[#allocation11_spill] sm:$0xff] }
 0x189   :  { %v11046_v44 = vmul.f32 %v10979_v43, %v10729_v60  ;;  %v11050_v42 = vmul.f32 %v10726_v58, %v10979_v43  ;;  %v11054_v55 = vmul.f32 %v10979_v43, %v10739_v4  ;;  %v11058_v52 = vmul.f32 %v10736_v1, %v10979_v43 }
 0x18a   :  { %vm1095_vm4 = vcmp.ge.f32.partialorder %v1031_v23, 0.0  ;;  %vm1096_vm5 = vcmp.ge.f32.partialorder %v1032_v26, 0.0  ;;  %v1159_v50 = vmul.f32 0.1, %v1031_v23  ;;  %v1160_v30 = vmul.f32 0.1, %v1032_v26 }
 0x18b   :  { %15199 = vst [vmem:[#allocation30_spill] sm:$0xff] %v11058_v52  ;;  %v11062_v60 = vmul.f32 %v10979_v43, %v10749_v16  ;;  %v11066_v58 = vmul.f32 %v10746_v14, %v10979_v43  ;;  %v11070_v4 = vmul.f32 %v10979_v43, %v10759_v27  ;;  %v11074_v1 = vmul.f32 %v10756_v24, %v10979_v43 }
 0x18c   :  { %v1223_v9 = vsel %vm1095_vm4, %v1031_v23, %v1159_v50  ;;  %v1224_v5 = vsel %vm1096_vm5, %v1032_v26, %v1160_v30  ;;  %v11078_v11 = vmul.f32 %v10979_v43, %v10769_v38  ;;  %v11082_v16 = vmul.f32 %v10766_v35, %v10979_v43  ;;  %v15215_v23 = vld [vmem:[#allocation14_spill] sm:$0xff]  ;;  %v15216_v50 = vld [vmem:[#allocation13_spill] sm:$0xff] }
 0x18d   :  { %15200 = vst [vmem:[#allocation31_spill] sm:$0xff] %v11062_v60  ;;  %15201 = vst [vmem:[#allocation32_spill] sm:$0xff] %v11066_v58  ;;  %v11084_v14 = vpack.c.bf16 %v1224_v5, %v1223_v9  ;;  %v923_v27 = vmul.f32 %v10979_v43, %v10779_v48  ;;  %v924_v53 = vmul.f32 %v10776_v46, %v10979_v43  ;;  %v15217_v9 = vld [vmem:[#allocation16_spill] sm:$0xff] }
 0x18e   :  { %15202 = vst [vmem:[#allocation33_spill] sm:$0xff] %v11070_v4  ;;  %15203 = vst [vmem:[#allocation34_spill] sm:$0xff] %v11074_v1  ;;  %v925_v24 = vmul.f32 %v10979_v43, %v10789_v59  ;;  %v926_v39 = vmul.f32 %v10786_v56, %v10979_v43  ;;  %v927_v38 = vmul.f32 %v10979_v43, %v10799_v7  ;;  %v15227_v4 = vld [vmem:[#allocation26_spill] sm:$0xff]  ;;  %v15229_v60 = vld [vmem:[#allocation28_spill] sm:$0xff] }
 0x18f   :  { %15204 = vst [vmem:[#allocation35_spill] sm:$0xff] %v11078_v11  ;;  %15205 = vst [vmem:[#allocation36_spill] sm:$0xff] %v11082_v16  ;;  %v928_v35 = vmul.f32 %v10796_v3, %v10979_v43  ;;  %v929_v10 = vmul.f32 %v10979_v43, %v10809_v22  ;;  %v930_v48 = vmul.f32 %v10806_v19, %v10979_v43  ;;  %v15225_v11 = vld [vmem:[#allocation24_spill] sm:$0xff] }
 0x190   :  { %15206 = vst [vmem:[#allocation37_spill] sm:$0xff] %v11084_v14  ;;  %v931_v46 = vmul.f32 %v10979_v43, %v10819_v37  ;;  %v932_v59 = vmul.f32 %v10816_v32, %v10979_v43  ;;  %v933_v56 = vmul.f32 %v10979_v43, %v10829_v51  ;;  %v934_v7 = vmul.f32 %v10826_v47, %v10979_v43  ;;  %v15208_v37 = vld [vmem:[#allocation5_spill] sm:$0xff]  ;;  %v15210_v51 = vld [vmem:[#allocation7_spill] sm:$0xff]  ;;  %v15223_v14 = vld [vmem:[#allocation22_spill] sm:$0xff] }
 0x191   :  { %v935_v3 = vmul.f32 %v10979_v43, %v10839_v0  ;;  %v936_v22 = vmul.f32 %v10836_v62, %v10979_v43  ;;  %v937_v19 = vmul.f32 %v10979_v43, %v15207_v57  ;;  %v938_v33 = vmul.f32 %v15208_v37, %v10979_v43  ;;  %v15212_v0 = vld [vmem:[#allocation9_spill] sm:$0xff]  ;;  %v15218_v57 = vld [vmem:[#allocation15_spill] sm:$0xff] }
 0x192   :  { %v939_v32 = vmul.f32 %v10979_v43, %v15209_v15  ;;  %v940_v54 = vmul.f32 %v15210_v51, %v10979_v43  ;;  %v941_v47 = vmul.f32 %v10979_v43, %v15211_v21  ;;  %v942_v17 = vmul.f32 %v15212_v0, %v10979_v43  ;;  %v15219_v15 = vld [vmem:[#allocation18_spill] sm:$0xff]  ;;  %v15220_v21 = vld [vmem:[#allocation17_spill] sm:$0xff] }
 0x193   :  { %v943_v62 = vmul.f32 %v10979_v43, %v15213_v25  ;;  %v944_v63 = vmul.f32 %v15214_v49, %v10979_v43  ;;  %v945_v26 = vmul.f32 %v10979_v43, %v15215_v23  ;;  %v946_v30 = vmul.f32 %v15216_v50, %v10979_v43  ;;  %v15221_v25 = vld [vmem:[#allocation20_spill] sm:$0xff]  ;;  %v15222_v23 = vld [vmem:[#allocation19_spill] sm:$0xff] }
 0x194   :  { %v947_v5 = vmul.f32 %v10979_v43, %v15217_v9  ;;  %v948_v37 = vmul.f32 %v15218_v57, %v10979_v43  ;;  %v949_v51 = vmul.f32 %v10979_v43, %v15219_v15  ;;  %v950_v0 = vmul.f32 %v15220_v21, %v10979_v43  ;;  %v15224_v9 = vld [vmem:[#allocation21_spill] sm:$0xff]  ;;  %v15226_v15 = vld [vmem:[#allocation23_spill] sm:$0xff] }
 0x195   :  { %v951_v49 = vmul.f32 %v10979_v43, %v15221_v25  ;;  %v952_v40 = vmul.f32 %v15222_v23, %v10979_v43  ;;  %v953_v50 = vmul.f32 %v10979_v43, %v15223_v14  ;;  %v954_v16 = vmul.f32 %v15224_v9, %v10979_v43  ;;  %v15228_v25 = vld [vmem:[#allocation25_spill] sm:$0xff]  ;;  %v15230_v14 = vld [vmem:[#allocation27_spill] sm:$0xff] }
 0x196   :  { %v955_v57 = vmul.f32 %v10979_v43, %v15225_v11  ;;  %v956_v1 = vmul.f32 %v15226_v15, %v10979_v43  ;;  %v957_v21 = vmul.f32 %v10979_v43, %v15227_v4  ;;  %v958_v58 = vmul.f32 %v15228_v25, %v10979_v43  ;;  %v15236_v25 = vld [vmem:[#allocation31_spill] sm:$0xff] }
 0x197   :  { %v959_v23 = vmul.f32 %v10979_v43, %v15229_v60  ;;  %v960_v52 = vmul.f32 %v15230_v14, %v10979_v43  ;;  %v11164_v9 = vadd.f32 %v11004_v41, %v10985_v45  ;;  %v11168_v11 = vadd.f32 %v11004_v41, %v10989_v61  ;;  %v15238_v14 = vld [vmem:[#allocation32_spill] sm:$0xff] }
 0x198   :  { %v11172_v4 = vadd.f32 %v11004_v41, %v10993_v31  ;;  %v11176_v15 = vadd.f32 %v11004_v41, %v10997_v2  ;;  %v11180_v60 = vadd.f32 %v11004_v41, %v11001_v29  ;;  %v11184_v43 = vadd.f32 %v11004_v41, %v11008_v8 }
 0x199   :  { %v11188_v45 = vadd.f32 %v11004_v41, %v11012_v6  ;;  %v11192_v61 = vadd.f32 %v11004_v41, %v11016_v13  ;;  %v11196_v31 = vadd.f32 %v11004_v41, %v11020_v12  ;;  %v11200_v2 = vadd.f32 %v11004_v41, %v11024_v20 }
 0x19a   :  { %v11204_v29 = vadd.f32 %v11004_v41, %v11028_v18  ;;  %v11208_v8 = vadd.f32 %v11004_v41, %v11032_v28  ;;  %v11212_v6 = vadd.f32 %v11004_v41, %v11038_v36  ;;  %v11216_v13 = vadd.f32 %v11004_v41, %v11042_v34  ;;  %v15234_v28 = vld [vmem:[#allocation30_spill] sm:$0xff] }
 0x19b   :  { %v11220_v12 = vadd.f32 %v11004_v41, %v11046_v44  ;;  %v11224_v20 = vadd.f32 %v11004_v41, %v11050_v42  ;;  %v11228_v18 = vadd.f32 %v11004_v41, %v11054_v55  ;;  %v11232_v36 = vadd.f32 %v11004_v41, %v15234_v28 }
 0x19c   :  { %v11236_v34 = vadd.f32 %v11004_v41, %v15236_v25  ;;  %v11240_v44 = vadd.f32 %v11004_v41, %v15238_v14  ;;  %v11262_v14 = vadd.f32 %v11004_v41, %v924_v53  ;;  %v11283_v53 = vadd.f32 %v11004_v41, %v931_v46 }
 0x19d   :  { %15231 = vst [vmem:[#allocation6_spill] sm:$0xff] %v11220_v12  ;;  %15232 = vst [vmem:[#allocation5_spill] sm:$0xff] %v11224_v20  ;;  %v15239_v12 = vld [vmem:[#allocation33_spill] sm:$0xff]  ;;  %v15240_v20 = vld [vmem:[#allocation34_spill] sm:$0xff]  ;;  %v11304_v46 = vadd.f32 %v11004_v41, %v938_v33  ;;  %v11325_v33 = vadd.f32 %v11004_v41, %v945_v26  ;;  %v11346_v26 = vadd.f32 %v11004_v41, %v952_v40  ;;  %vm1033_vm6 = vcmp.ge.f32.partialorder %v11164_v9, 0.0 }
 0x19e   :  { %15233 = vst [vmem:[#allocation8_spill] sm:$0xff] %v11228_v18  ;;  %15235 = vst [vmem:[#allocation7_spill] sm:$0xff] %v11232_v36  ;;  %v11244_v42 = vadd.f32 %v11004_v41, %v15239_v12  ;;  %v11248_v55 = vadd.f32 %v11004_v41, %v15240_v20  ;;  %v15242_v18 = vld [vmem:[#allocation35_spill] sm:$0xff]  ;;  %v15243_v36 = vld [vmem:[#allocation36_spill] sm:$0xff]  ;;  %v11265_v12 = vadd.f32 %v11004_v41, %v925_v24  ;;  %vm1034_vm7 = vcmp.ge.f32.partialorder %v11168_v11, 0.0 }
 0x19f   :  { %15237 = vst [vmem:[#allocation10_spill] sm:$0xff] %v11236_v34  ;;  %v11252_v28 = vadd.f32 %v11004_v41, %v15242_v18  ;;  %v11256_v25 = vadd.f32 %v11004_v41, %v15243_v36  ;;  %v11259_v34 = vadd.f32 %v11004_v41, %v923_v27  ;;  %v11268_v20 = vadd.f32 %v11004_v41, %v926_v39 }
 0x1a0   :  { %15241 = vst [vmem:[#allocation9_spill] sm:$0xff] %v11248_v55  ;;  %v11271_v55 = vadd.f32 %v11004_v41, %v927_v38  ;;  %v11274_v18 = vadd.f32 %v11004_v41, %v928_v35  ;;  %v11277_v36 = vadd.f32 %v11004_v41, %v929_v10  ;;  %v11280_v27 = vadd.f32 %v11004_v41, %v930_v48 }
 0x1a1   :  { %v11286_v24 = vadd.f32 %v11004_v41, %v932_v59  ;;  %v11289_v39 = vadd.f32 %v11004_v41, %v933_v56  ;;  %v11292_v38 = vadd.f32 %v11004_v41, %v934_v7  ;;  %v11295_v35 = vadd.f32 %v11004_v41, %v935_v3  ;;  %15247 = vst [vmem:[#allocation13_spill] sm:$0xff] %v11325_v33 }
 0x1a2   :  { %v11298_v10 = vadd.f32 %v11004_v41, %v936_v22  ;;  %v11301_v48 = vadd.f32 %v11004_v41, %v937_v19  ;;  %v11307_v59 = vadd.f32 %v11004_v41, %v939_v32  ;;  %v11310_v56 = vadd.f32 %v11004_v41, %v940_v54  ;;  %15254 = vst [vmem:[#allocation22_spill] sm:$0xff] %v11346_v26 }
 0x1a3   :  { %v11313_v7 = vadd.f32 %v11004_v41, %v941_v47  ;;  %v11316_v3 = vadd.f32 %v11004_v41, %v942_v17  ;;  %v11319_v22 = vadd.f32 %v11004_v41, %v943_v62  ;;  %v11322_v19 = vadd.f32 %v11004_v41, %v944_v63 }
 0x1a4   :  { %v11328_v32 = vadd.f32 %v11004_v41, %v946_v30  ;;  %v11331_v54 = vadd.f32 %v11004_v41, %v947_v5  ;;  %v11334_v47 = vadd.f32 %v11004_v41, %v948_v37  ;;  %v11337_v17 = vadd.f32 %v11004_v41, %v949_v51 }
 0x1a5   :  { %15244 = vst [vmem:[#allocation12_spill] sm:$0xff] %v11316_v3  ;;  %15245 = vst [vmem:[#allocation11_spill] sm:$0xff] %v11319_v22  ;;  %v11340_v62 = vadd.f32 %v11004_v41, %v950_v0  ;;  %v11343_v63 = vadd.f32 %v11004_v41, %v951_v49  ;;  %v11349_v30 = vadd.f32 %v11004_v41, %v953_v50  ;;  %vm1035_vm8 = vcmp.ge.f32.partialorder %v11172_v4, 0.0 }
 0x1a6   :  { %15246 = vst [vmem:[#allocation14_spill] sm:$0xff] %v11322_v19  ;;  %15248 = vst [vmem:[#allocation16_spill] sm:$0xff] %v11328_v32  ;;  %v11352_v5 = vadd.f32 %v11004_v41, %v954_v16  ;;  %v11355_v37 = vadd.f32 %v11004_v41, %v955_v57  ;;  %v11358_v51 = vadd.f32 %v11004_v41, %v956_v1  ;;  %vm1036_vm9 = vcmp.ge.f32.partialorder %v11176_v15, 0.0 }
 0x1a7   :  { %15249 = vst [vmem:[#allocation15_spill] sm:$0xff] %v11331_v54  ;;  %15250 = vst [vmem:[#allocation18_spill] sm:$0xff] %v11334_v47  ;;  %v11361_v0 = vadd.f32 %v11004_v41, %v957_v21  ;;  %v11364_v49 = vadd.f32 %v11004_v41, %v958_v58  ;;  %v11367_v40 = vadd.f32 %v11004_v41, %v959_v23  ;;  %vm1037_vm10 = vcmp.ge.f32.partialorder %v11180_v60, 0.0 }
 0x1a8   :  { %15251 = vst [vmem:[#allocation17_spill] sm:$0xff] %v11337_v17  ;;  %15252 = vst [vmem:[#allocation20_spill] sm:$0xff] %v11340_v62  ;;  %v11370_v50 = vadd.f32 %v11004_v41, %v960_v52  ;;  %vm1038_vm11 = vcmp.ge.f32.partialorder %v11184_v43, 0.0  ;;  %vm1039_vm12 = vcmp.ge.f32.partialorder %v11188_v45, 0.0  ;;  %vm1040_vm13 = vcmp.ge.f32.partialorder %v11192_v61, 0.0 }
 0x1a9   :  { %15253 = vst [vmem:[#allocation19_spill] sm:$0xff] %v11343_v63  ;;  %15255 = vst [vmem:[#allocation21_spill] sm:$0xff] %v11349_v30  ;;  %vm1041_vm14 = vcmp.ge.f32.partialorder %v11196_v31, 0.0  ;;  %vm1042_vm15 = vcmp.ge.f32.partialorder %v11200_v2, 0.0  ;;  %v1097_v41 = vmul.f32 0.1, %v11164_v9 }
 0x1aa   :  { %15256 = vst [vmem:[#allocation24_spill] sm:$0xff] %v11352_v5  ;;  %15257 = vst [vmem:[#allocation23_spill] sm:$0xff] %v11355_v37  ;;  %vm1043_vm0 = vcmp.ge.f32.partialorder %v11204_v29, 0.0  ;;  %v1098_v52 = vmul.f32 0.1, %v11168_v11  ;;  %vm1044_vm1 = vcmp.ge.f32.partialorder %v11208_v8, 0.0 }
 0x1ab   :  { %15258 = vst [vmem:[#allocation26_spill] sm:$0xff] %v11358_v51  ;;  %15259 = vst [vmem:[#allocation25_spill] sm:$0xff] %v11361_v0  ;;  %v1099_v58 = vmul.f32 0.1, %v11172_v4  ;;  %v1100_v1 = vmul.f32 0.1, %v11176_v15  ;;  %v11394_v23 = vsel %vm1033_vm6, %v11164_v9, %v1097_v41 }
 0x1ac   :  { %15260 = vst [vmem:[#allocation28_spill] sm:$0xff] %v11364_v49  ;;  %15261 = vst [vmem:[#allocation27_spill] sm:$0xff] %v11367_v40  ;;  %v1101_v16 = vmul.f32 0.1, %v11180_v60  ;;  %v1102_v57 = vmul.f32 0.1, %v11184_v43  ;;  %v11403_v0 = vsel %vm1034_vm7, %v11168_v11, %v1098_v52 }
 0x1ad   :  { %15262 = vst [vmem:[#allocation30_spill] sm:$0xff] %v11370_v50  ;;  %v1103_v21 = vmul.f32 0.1, %v11188_v45  ;;  %15263 = vst [vmem:[#allocation31_spill] sm:$0xff] %v11394_v23  ;;  %vm1045_vm2 = vcmp.ge.f32.partialorder %v11212_v6, 0.0  ;;  %vm1046_vm3 = vcmp.ge.f32.partialorder %v11216_v13, 0.0  ;;  %v11414_v23 = vsel %vm1035_vm8, %v11172_v4, %v1099_v58 }
 0x1ae   :  { %v1104_v50 = vmul.f32 0.1, %v11192_v61  ;;  %v1105_v40 = vmul.f32 0.1, %v11196_v31  ;;  %v1106_v49 = vmul.f32 0.1, %v11200_v2  ;;  %v11429_v30 = vsel %vm1036_vm9, %v11176_v15, %v1100_v1 }
 0x1af   :  { %15264 = vst [vmem:[#allocation32_spill] sm:$0xff] %v11403_v0  ;;  %v1107_v51 = vmul.f32 0.1, %v11204_v29  ;;  %v1108_v9 = vmul.f32 0.1, %v11208_v8  ;;  %15265 = vst [vmem:[#allocation33_spill] sm:$0xff] %v11414_v23 }
 0x1b0   :  { %v11409_v41 = vmul.f32 0.1, %v11212_v6  ;;  %v15266_v37 = vld [vmem:[#allocation6_spill] sm:$0xff]  ;;  %v11418_v5 = vmul.f32 0.1, %v11216_v13  ;;  %v15267_v52 = vld [vmem:[#allocation5_spill] sm:$0xff] }
 0x1b1   :  { %vm1047_vm4 = vcmp.ge.f32.partialorder %v15266_v37, 0.0  ;;  %v11421_v11 = vmul.f32 0.1, %v15266_v37  ;;  %v11424_v0 = vmul.f32 0.1, %v15267_v52  ;;  %15269 = vst [vmem:[#allocation35_spill] sm:$0xff] %v11429_v30 }
 0x1b2   :  { %vm1048_vm5 = vcmp.ge.f32.partialorder %v15267_v52, 0.0  ;;  %v15270_v4 = vld [vmem:[#allocation8_spill] sm:$0xff]  ;;  %v15272_v23 = vld [vmem:[#allocation7_spill] sm:$0xff]  ;;  %v15273_v63 = vld [vmem:[#allocation10_spill] sm:$0xff]  ;;  %v11448_v15 = vmul.f32 0.1, %v11240_v44 }
 0x1b3   :  { %15268 = vst [vmem:[#allocation34_spill] sm:$0xff] %v11424_v0  ;;  %v11433_v58 = vmul.f32 0.1, %v15270_v4  ;;  %v11436_v26 = vmul.f32 0.1, %v15272_v23  ;;  %v11444_v0 = vsel %vm1037_vm10, %v11180_v60, %v1101_v16  ;;  %vm1049_vm6 = vcmp.ge.f32.partialorder %v15270_v4, 0.0 }
 0x1b4   :  { %v11439_v62 = vmul.f32 0.1, %v15273_v63  ;;  %15275 = vst [vmem:[#allocation5_spill] sm:$0xff] %v11444_v0  ;;  %v11451_v1 = vmul.f32 0.1, %v11244_v42  ;;  %v15276_v30 = vld [vmem:[#allocation9_spill] sm:$0xff] }
 0x1b5   :  { %15271 = vst [vmem:[#allocation36_spill] sm:$0xff] %v11433_v58  ;;  %v11454_v58 = vmul.f32 0.1, %v15276_v30  ;;  %vm1050_vm7 = vcmp.ge.f32.partialorder %v15272_v23, 0.0  ;;  %v11463_v60 = vmul.f32 0.1, %v11252_v28 }
 0x1b6   :  { %15274 = vst [vmem:[#allocation6_spill] sm:$0xff] %v11439_v62  ;;  %v11459_v62 = vsel %vm1038_vm11, %v11184_v43, %v1102_v57  ;;  %v11466_v16 = vmul.f32 0.1, %v11256_v25  ;;  %v11469_v0 = vmul.f32 0.1, %v11259_v34  ;;  %vm1051_vm8 = vcmp.ge.f32.partialorder %v15273_v63, 0.0 }
 0x1b7   :  { %15277 = vst [vmem:[#allocation8_spill] sm:$0xff] %v11454_v58  ;;  %15278 = vst [vmem:[#allocation7_spill] sm:$0xff] %v11459_v62  ;;  %v11474_v58 = vsel %vm1039_vm12, %v11188_v45, %v1103_v21  ;;  %v11478_v43 = vmul.f32 0.1, %v11262_v14  ;;  %v11481_v57 = vmul.f32 0.1, %v11265_v12 }
 0x1b8   :  { %15279 = vst [vmem:[#allocation10_spill] sm:$0xff] %v11469_v0  ;;  %15280 = vst [vmem:[#allocation9_spill] sm:$0xff] %v11474_v58  ;;  %v11484_v62 = vmul.f32 0.1, %v11268_v20  ;;  %v11489_v0 = vsel %vm1040_vm13, %v11192_v61, %v1104_v50  ;;  %vm1052_vm9 = vcmp.ge.f32.partialorder %v11240_v44, 0.0  ;;  %v11506_v61 = vsel %vm1041_vm14, %v11196_v31, %v1105_v40 }
 0x1b9   :  { %15281 = vst [vmem:[#allocation38_spill] sm:$0xff] %v11489_v0  ;;  %v11495_v45 = vmul.f32 0.1, %v11271_v55  ;;  %v11498_v21 = vmul.f32 0.1, %v11274_v18  ;;  %15283 = vst [vmem:[#allocation40_spill] sm:$0xff] %v11506_v61  ;;  %v11524_v31 = vsel %vm1042_vm15, %v11200_v2, %v1106_v49  ;;  %v11542_v2 = vsel %vm1043_vm0, %v11204_v29, %v1107_v51 }
 0x1ba   :  { %v11501_v58 = vmul.f32 0.1, %v11277_v36  ;;  %vm1055_vm12 = vcmp.ge.f32.partialorder %v11252_v28, 0.0  ;;  %v11513_v50 = vmul.f32 0.1, %v11280_v27  ;;  %15285 = vst [vmem:[#allocation42_spill] sm:$0xff] %v11524_v31  ;;  %v11560_v29 = vsel %vm1044_vm1, %v11208_v8, %v1108_v9 }
 0x1bb   :  { %v11516_v0 = vmul.f32 0.1, %v11283_v53  ;;  %vm1059_vm14 = vcmp.ge.f32.partialorder %v11265_v12, 0.0  ;;  %v11531_v40 = vmul.f32 0.1, %v11289_v39  ;;  %15287 = vst [vmem:[#allocation44_spill] sm:$0xff] %v11542_v2  ;;  %v11579_v8 = vsel %vm1045_vm2, %v11212_v6, %v11409_v41 }
 0x1bc   :  { %15282 = vst [vmem:[#allocation39_spill] sm:$0xff] %v11501_v58  ;;  %v11519_v58 = vmul.f32 0.1, %v11286_v24  ;;  %v11534_v61 = vmul.f32 0.1, %v11292_v38  ;;  %vm1063_vm15 = vcmp.ge.f32.partialorder %v11277_v36, 0.0  ;;  %v11598_v6 = vsel %vm1046_vm3, %v11216_v13, %v11418_v5 }
 0x1bd   :  { %v11549_v49 = vmul.f32 0.1, %v11298_v10  ;;  %v11552_v31 = vmul.f32 0.1, %v11301_v48  ;;  %15289 = vst [vmem:[#allocation46_spill] sm:$0xff] %v11560_v29  ;;  %vm1067_vm0 = vcmp.ge.f32.partialorder %v11289_v39, 0.0  ;;  %v11617_v13 = vsel %vm1047_vm4, %v15266_v37, %v11421_v11 }
 0x1be   :  { %15284 = vst [vmem:[#allocation41_spill] sm:$0xff] %v11519_v58  ;;  %v11537_v58 = vmul.f32 0.1, %v11295_v35  ;;  %v11567_v51 = vmul.f32 0.1, %v11307_v59  ;;  %15291 = vst [vmem:[#allocation48_spill] sm:$0xff] %v11579_v8 }
 0x1bf   :  { %v11570_v2 = vmul.f32 0.1, %v11310_v56  ;;  %vm1071_vm1 = vcmp.ge.f32.partialorder %v11301_v48, 0.0  ;;  %v11586_v9 = vmul.f32 0.1, %v11316_v3  ;;  %15295 = vst [vmem:[#allocation52_spill] sm:$0xff] %v11598_v6 }
 0x1c0   :  { %15286 = vst [vmem:[#allocation43_spill] sm:$0xff] %v11537_v58  ;;  %v11555_v58 = vmul.f32 0.1, %v11304_v46  ;;  %v11589_v29 = vmul.f32 0.1, %v11319_v22  ;;  %vm1075_vm2 = vcmp.ge.f32.partialorder %v11313_v7, 0.0  ;;  %v1178_v22 = vsel %vm1050_vm7, %v15272_v23, %v11436_v26 }
 0x1c1   :  { %15292 = vst [vmem:[#allocation49_spill] sm:$0xff] %v11586_v9  ;;  %v11605_v41 = vmul.f32 0.1, %v11325_v33  ;;  %v11608_v8 = vmul.f32 0.1, %v11328_v32  ;;  %15299 = vst [vmem:[#allocation56_spill] sm:$0xff] %v11617_v13  ;;  %v1180_v23 = vsel %vm1052_vm9, %v11240_v44, %v11448_v15 }
 0x1c2   :  { %15288 = vst [vmem:[#allocation45_spill] sm:$0xff] %v11555_v58  ;;  %v11573_v58 = vmul.f32 0.1, %v11313_v7  ;;  %15293 = vst [vmem:[#allocation50_spill] sm:$0xff] %v11589_v29  ;;  %vm1079_vm3 = vcmp.ge.f32.partialorder %v11325_v33, 0.0  ;;  %v15303_v11 = vld [vmem:[#allocation19_spill] sm:$0xff] }
 0x1c3   :  { %15296 = vst [vmem:[#allocation53_spill] sm:$0xff] %v11605_v41  ;;  %15297 = vst [vmem:[#allocation54_spill] sm:$0xff] %v11608_v8  ;;  %v1146_v5 = vmul.f32 0.1, %v11334_v47  ;;  %v1147_v6 = vmul.f32 0.1, %v11337_v17 }
 0x1c4   :  { %15290 = vst [vmem:[#allocation47_spill] sm:$0xff] %v11573_v58  ;;  %v11592_v58 = vmul.f32 0.1, %v11322_v19  ;;  %v15300_v8 = vld [vmem:[#allocation20_spill] sm:$0xff]  ;;  %v15301_v41 = vld [vmem:[#allocation34_spill] sm:$0xff]  ;;  %v15305_v32 = vld [vmem:[#allocation21_spill] sm:$0xff] }
 0x1c5   :  { %v11630_v37 = vsel %vm1048_vm5, %v15267_v52, %v15301_v41  ;;  %v15304_v13 = vld [vmem:[#allocation22_spill] sm:$0xff]  ;;  %v1149_v47 = vmul.f32 0.1, %v15303_v11  ;;  %v1151_v33 = vmul.f32 0.1, %v15305_v32  ;;  %v15306_v19 = vld [vmem:[#allocation36_spill] sm:$0xff] }
 0x1c6   :  { %15294 = vst [vmem:[#allocation51_spill] sm:$0xff] %v11592_v58  ;;  %v11611_v58 = vmul.f32 0.1, %v11331_v54  ;;  %15302 = vst [vmem:[#allocation34_spill] sm:$0xff] %v11630_v37  ;;  %vm1086_vm10 = vcmp.ge.f32.partialorder %v15304_v13, 0.0  ;;  %v1177_v52 = vsel %vm1049_vm6, %v15270_v4, %v15306_v19  ;;  %v15307_v41 = vld [vmem:[#allocation24_spill] sm:$0xff] }
 0x1c7   :  { %v1150_v54 = vmul.f32 0.1, %v15304_v13  ;;  %v15308_v37 = vld [vmem:[#allocation23_spill] sm:$0xff]  ;;  %v1152_v17 = vmul.f32 0.1, %v15307_v41  ;;  %v15310_v19 = vld [vmem:[#allocation25_spill] sm:$0xff] }
 0x1c8   :  { %15298 = vst [vmem:[#allocation55_spill] sm:$0xff] %v11611_v58  ;;  %v1148_v58 = vmul.f32 0.1, %v15300_v8  ;;  %v15309_v8 = vld [vmem:[#allocation26_spill] sm:$0xff]  ;;  %v1153_v11 = vmul.f32 0.1, %v15308_v37 }
 0x1c9   :  { %vm1090_vm11 = vcmp.ge.f32.partialorder %v15309_v8, 0.0  ;;  %v1154_v13 = vmul.f32 0.1, %v15309_v8  ;;  %vm1091_vm6 = vcmp.ge.f32.partialorder %v15310_v19, 0.0  ;;  %v15311_v4 = vld [vmem:[#allocation28_spill] sm:$0xff]  ;;  %v15312_v32 = vld [vmem:[#allocation27_spill] sm:$0xff] }
 0x1ca   :  { %vm1092_vm5 = vcmp.ge.f32.partialorder %v15311_v4, 0.0  ;;  %vm1093_vm4 = vcmp.ge.f32.partialorder %v15312_v32, 0.0  ;;  %v15313_v29 = vld [vmem:[#allocation30_spill] sm:$0xff]  ;;  %v1155_v3 = vmul.f32 0.1, %v15310_v19  ;;  %vm15315_vm7 = vcmp.ge.f32.partialorder %v11244_v42, 0.0 }
 0x1cb   :  { %v1156_v41 = vmul.f32 0.1, %v15311_v4  ;;  %v1157_v37 = vmul.f32 0.1, %v15312_v32  ;;  %v15314_v8 = vld [vmem:[#allocation6_spill] sm:$0xff]  ;;  %v1181_v19 = vsel %vm15315_vm7, %v11244_v42, %v11451_v1  ;;  %v15316_v4 = vld [vmem:[#allocation8_spill] sm:$0xff] }
 0x1cc   :  { %v1179_v9 = vsel %vm1051_vm8, %v15273_v63, %v15314_v8  ;;  %v1158_v26 = vmul.f32 0.1, %v15313_v29  ;;  %vm15317_vm13 = vcmp.ge.f32.partialorder %v15276_v30, 0.0  ;;  %v1183_v63 = vsel %vm1055_vm12, %v11252_v28, %v11463_v60  ;;  %v15319_v15 = vld [vmem:[#allocation10_spill] sm:$0xff]  ;;  %v15325_v1 = vld [vmem:[#allocation39_spill] sm:$0xff] }
 0x1cd   :  { %v1182_v32 = vsel %vm15317_vm13, %v15276_v30, %v15316_v4  ;;  %vm15318_vm8 = vcmp.ge.f32.partialorder %v11256_v25, 0.0  ;;  %vm15320_vm9 = vcmp.ge.f32.partialorder %v11259_v34, 0.0  ;;  %vm15321_vm7 = vcmp.ge.f32.partialorder %v11262_v14, 0.0  ;;  %v15331_v60 = vld [vmem:[#allocation43_spill] sm:$0xff] }
 0x1ce   :  { %v1184_v44 = vsel %vm15318_vm8, %v11256_v25, %v11466_v16  ;;  %v1185_v42 = vsel %vm15320_vm9, %v11259_v34, %v15319_v15  ;;  %v1186_v30 = vsel %vm15321_vm7, %v11262_v14, %v11478_v43  ;;  %v1187_v28 = vsel %vm1059_vm14, %v11265_v12, %v11481_v57  ;;  %v15338_v16 = vld [vmem:[#allocation47_spill] sm:$0xff]  ;;  %v15339_v43 = vld [vmem:[#allocation49_spill] sm:$0xff]  ;;  %v15340_v57 = vld [vmem:[#allocation12_spill] sm:$0xff] }
 0x1cf   :  { %vm15322_vm12 = vcmp.ge.f32.partialorder %v11268_v20, 0.0  ;;  %vm15323_vm13 = vcmp.ge.f32.partialorder %v11271_v55, 0.0  ;;  %vm15324_vm8 = vcmp.ge.f32.partialorder %v11274_v18, 0.0  ;;  %v1191_v12 = vsel %vm1063_vm15, %v11277_v36, %v15325_v1  ;;  %v15353_v8 = vld [vmem:[#allocation55_spill] sm:$0xff]  ;;  %v15356_v1 = vld [vmem:[#allocation18_spill] sm:$0xff] }
 0x1d0   :  { %v1188_v25 = vsel %vm15322_vm12, %v11268_v20, %v11484_v62  ;;  %v1189_v34 = vsel %vm15323_vm13, %v11271_v55, %v11495_v45  ;;  %v1190_v14 = vsel %vm15324_vm8, %v11274_v18, %v11498_v21  ;;  %vm15326_vm14 = vcmp.ge.f32.partialorder %v11280_v27, 0.0  ;;  %v15328_v62 = vld [vmem:[#allocation41_spill] sm:$0xff]  ;;  %v15342_v45 = vld [vmem:[#allocation50_spill] sm:$0xff]  ;;  %v15343_v21 = vld [vmem:[#allocation11_spill] sm:$0xff] }
 0x1d1   :  { %v1192_v20 = vsel %vm15326_vm14, %v11280_v27, %v11513_v50  ;;  %vm15327_vm9 = vcmp.ge.f32.partialorder %v11283_v53, 0.0  ;;  %vm15329_vm7 = vcmp.ge.f32.partialorder %v11286_v24, 0.0  ;;  %v1195_v36 = vsel %vm1067_vm0, %v11289_v39, %v11531_v40  ;;  %v15346_v50 = vld [vmem:[#allocation14_spill] sm:$0xff]  ;;  %v15349_v40 = vld [vmem:[#allocation13_spill] sm:$0xff]  ;;  %v15354_v4 = vld [vmem:[#allocation15_spill] sm:$0xff] }
 0x1d2   :  { %v1193_v55 = vsel %vm15327_vm9, %v11283_v53, %v11516_v0  ;;  %v1194_v18 = vsel %vm15329_vm7, %v11286_v24, %v15328_v62  ;;  %vm15330_vm15 = vcmp.ge.f32.partialorder %v11292_v38, 0.0  ;;  %vm15332_vm12 = vcmp.ge.f32.partialorder %v11295_v35, 0.0  ;;  %v15334_v0 = vld [vmem:[#allocation45_spill] sm:$0xff] }
 0x1d3   :  { %v1196_v27 = vsel %vm15330_vm15, %v11292_v38, %v11534_v61  ;;  %v1197_v53 = vsel %vm15332_vm12, %v11295_v35, %v15331_v60  ;;  %vm15333_vm13 = vcmp.ge.f32.partialorder %v11298_v10, 0.0  ;;  %v1199_v39 = vsel %vm1071_vm1, %v11301_v48, %v11552_v31  ;;  %v15345_v61 = vld [vmem:[#allocation51_spill] sm:$0xff]  ;;  %v15348_v31 = vld [vmem:[#allocation53_spill] sm:$0xff] }
 0x1d4   :  { %v1198_v24 = vsel %vm15333_vm13, %v11298_v10, %v11549_v49  ;;  %vm15335_vm0 = vcmp.ge.f32.partialorder %v11304_v46, 0.0  ;;  %vm15336_vm8 = vcmp.ge.f32.partialorder %v11307_v59, 0.0  ;;  %vm15337_vm14 = vcmp.ge.f32.partialorder %v11310_v56, 0.0  ;;  %v15351_v49 = vld [vmem:[#allocation16_spill] sm:$0xff]  ;;  %v15358_v60 = vld [vmem:[#allocation17_spill] sm:$0xff] }
 0x1d5   :  { %v1200_v38 = vsel %vm15335_vm0, %v11304_v46, %v15334_v0  ;;  %v1201_v35 = vsel %vm15336_vm8, %v11307_v59, %v11567_v51  ;;  %v1202_v10 = vsel %vm15337_vm14, %v11310_v56, %v11570_v2  ;;  %v1203_v48 = vsel %vm1075_vm2, %v11313_v7, %v15338_v16  ;;  %v15350_v2 = vld [vmem:[#allocation54_spill] sm:$0xff]  ;;  %v15360_v16 = vld [vmem:[#allocation20_spill] sm:$0xff] }
 0x1d6   :  { %vm15341_vm1 = vcmp.ge.f32.partialorder %v15340_v57, 0.0  ;;  %vm15344_vm9 = vcmp.ge.f32.partialorder %v15343_v21, 0.0  ;;  %vm15347_vm7 = vcmp.ge.f32.partialorder %v15346_v50, 0.0  ;;  %v1207_v7 = vsel %vm1079_vm3, %v15349_v40, %v15348_v31  ;;  %v15367_v31 = vld [vmem:[#allocation24_spill] sm:$0xff]  ;;  %v15369_v40 = vld [vmem:[#allocation23_spill] sm:$0xff] }
 0x1d7   :  { %v1204_v46 = vsel %vm15341_vm1, %v15340_v57, %v15339_v43  ;;  %v1205_v59 = vsel %vm15344_vm9, %v15343_v21, %v15342_v45  ;;  %v1206_v56 = vsel %vm15347_vm7, %v15346_v50, %v15345_v61  ;;  %vm15352_vm2 = vcmp.ge.f32.partialorder %v15351_v49, 0.0  ;;  %v15362_v57 = vld [vmem:[#allocation19_spill] sm:$0xff]  ;;  %v15364_v21 = vld [vmem:[#allocation22_spill] sm:$0xff]  ;;  %v15365_v50 = vld [vmem:[#allocation21_spill] sm:$0xff] }
 0x1d8   :  { %v1208_v51 = vsel %vm15352_vm2, %v15351_v49, %v15350_v2  ;;  %vm15355_vm15 = vcmp.ge.f32.partialorder %v15354_v4, 0.0  ;;  %vm15357_vm12 = vcmp.ge.f32.partialorder %v15356_v1, 0.0  ;;  %vm15359_vm13 = vcmp.ge.f32.partialorder %v15358_v60, 0.0  ;;  %v15371_v2 = vld [vmem:[#allocation26_spill] sm:$0xff]  ;;  %v15372_v49 = vld [vmem:[#allocation25_spill] sm:$0xff] }
 0x1d9   :  { %v1209_v15 = vsel %vm15355_vm15, %v15354_v4, %v15353_v8  ;;  %v1210_v62 = vsel %vm15357_vm12, %v15356_v1, %v1146_v5  ;;  %v1211_v0 = vsel %vm15359_vm13, %v15358_v60, %v1147_v6  ;;  %vm15361_vm3 = vcmp.ge.f32.partialorder %v15360_v16, 0.0  ;;  %v15373_v8 = vld [vmem:[#allocation28_spill] sm:$0xff]  ;;  %v15374_v4 = vld [vmem:[#allocation27_spill] sm:$0xff] }
 0x1da   :  { %v1212_v43 = vsel %vm15361_vm3, %v15360_v16, %v1148_v58  ;;  %vm15363_vm0 = vcmp.ge.f32.partialorder %v15362_v57, 0.0  ;;  %v1214_v61 = vsel %vm1086_vm10, %v15364_v21, %v1150_v54  ;;  %vm15366_vm8 = vcmp.ge.f32.partialorder %v15365_v50, 0.0  ;;  %v15376_v60 = vld [vmem:[#allocation31_spill] sm:$0xff] }
 0x1db   :  { %v1213_v45 = vsel %vm15363_vm0, %v15362_v57, %v1149_v47  ;;  %v1215_v5 = vsel %vm15366_vm8, %v15365_v50, %v1151_v33  ;;  %vm15368_vm14 = vcmp.ge.f32.partialorder %v15367_v31, 0.0  ;;  %vm15370_vm1 = vcmp.ge.f32.partialorder %v15369_v40, 0.0  ;;  %v15381_v21 = vld [vmem:[#allocation35_spill] sm:$0xff] }
 0x1dc   :  { %v1216_v6 = vsel %vm15368_vm14, %v15367_v31, %v1152_v17  ;;  %v1217_v58 = vsel %vm15370_vm1, %v15369_v40, %v1153_v11  ;;  %v1218_v47 = vsel %vm1090_vm11, %v15371_v2, %v1154_v13  ;;  %v1219_v54 = vsel %vm1091_vm6, %v15372_v49, %v1155_v3  ;;  %v15377_v13 = vld [vmem:[#allocation32_spill] sm:$0xff]  ;;  %v15380_v3 = vld [vmem:[#allocation33_spill] sm:$0xff] }
 0x1dd   :  { %v1220_v33 = vsel %vm1092_vm5, %v15373_v8, %v1156_v41  ;;  %v1221_v17 = vsel %vm1093_vm4, %v15374_v4, %v1157_v37  ;;  %vm15375_vm10 = vcmp.ge.f32.partialorder %v15313_v29, 0.0  ;;  %v11825_v1 = vpack.c.bf16 %v1178_v22, %v1177_v52  ;;  %v15384_v31 = vld [vmem:[#allocation5_spill] sm:$0xff]  ;;  %v15385_v37 = vld [vmem:[#allocation7_spill] sm:$0xff]  ;;  %v15396_v8 = vld [vmem:[#allocation46_spill] sm:$0xff] }
 0x1de   :  { %v1222_v11 = vsel %vm15375_vm10, %v15313_v29, %v1158_v26  ;;  %v11829_v16 = vpack.c.bf16 %v15377_v13, %v15376_v60  ;;  %v11831_v57 = vpack.c.bf16 %v1180_v23, %v1179_v9  ;;  %v11835_v50 = vpack.c.bf16 %v15381_v21, %v15380_v3  ;;  %v15387_v22 = vld [vmem:[#allocation9_spill] sm:$0xff]  ;;  %v15388_v29 = vld [vmem:[#allocation38_spill] sm:$0xff]  ;;  %v15391_v26 = vld [vmem:[#allocation40_spill] sm:$0xff] }
 0x1df   :  { %v11837_v41 = vpack.c.bf16 %v1182_v32, %v1181_v19  ;;  %v11841_v40 = vpack.c.bf16 %v15385_v37, %v15384_v31  ;;  %v11843_v2 = vpack.c.bf16 %v1184_v44, %v1183_v63  ;;  %v11847_v52 = vpack.c.bf16 %v15388_v29, %v15387_v22  ;;  %9301 = vmatprep.subr.bf16.mxu1 %v11825_v1  ;;  %v15392_v23 = vld [vmem:[#allocation42_spill] sm:$0xff]  ;;  %v15395_v19 = vld [vmem:[#allocation44_spill] sm:$0xff]  ;;  %v6266_v22 = vld [vmem:[%s15067_s4 + $0x2a0] sm:$0xff] }
 0x1e0   :  { %15378 = vst [vmem:[#allocation36_spill] sm:$0xff] %v11829_v16  ;;  %15379 = vst [vmem:[#allocation30_spill] sm:$0xff] %v11831_v57  ;;  %v11850_v9 = vpack.c.bf16 %v1186_v30, %v1185_v42  ;;  %v11854_v49 = vpack.c.bf16 %v15392_v23, %v15391_v26  ;;  %v11856_v32 = vpack.c.bf16 %v1188_v25, %v1187_v28  ;;  %v15399_v44 = vld [vmem:[#allocation48_spill] sm:$0xff]  ;;  %v15404_v30 = vld [vmem:[#allocation34_spill] sm:$0xff]  ;;  %9365 = vmatprep.subr.bf16.mxu0 %v11825_v1 }
 0x1e1   :  { %15382 = vst [vmem:[#allocation6_spill] sm:$0xff] %v11835_v50  ;;  %15383 = vst [vmem:[#allocation8_spill] sm:$0xff] %v11837_v41  ;;  %v11860_v4 = vpack.c.bf16 %v15396_v8, %v15395_v19  ;;  %v11862_v63 = vpack.c.bf16 %v1190_v14, %v1189_v34  ;;  %v15400_v60 = vld [vmem:[#allocation52_spill] sm:$0xff]  ;;  %v11868_v3 = vpack.c.bf16 %v1192_v20, %v1191_v12  ;;  %9303 = vmatpush3.bf16.msra.mxu1 %v11829_v16  ;;  %v1249_v29 = vld [vmem:[%s15067_s4 + $0xc0] sm:$0xff] }
 0x1e2   :  { %15386 = vst [vmem:[#allocation10_spill] sm:$0xff] %v11843_v2  ;;  %15389 = vst [vmem:[#allocation39_spill] sm:$0xff] %v11847_v52  ;;  %v11866_v13 = vpack.c.bf16 %v15400_v60, %v15399_v44  ;;  %v15403_v42 = vld [vmem:[#allocation56_spill] sm:$0xff]  ;;  %v11875_v28 = vpack.c.bf16 %v1210_v62, %v1209_v15  ;;  %v11877_v25 = vpack.c.bf16 %v1194_v18, %v1193_v55  ;;  %9367 = vmatpush3.bf16.msra.mxu0 %v11829_v16  ;;  %v6255_v62 = vld [vmem:[%s15067_s4 + $0x248] sm:$0xff] }
 0x1e3   :  { %15390 = vst [vmem:[#allocation41_spill] sm:$0xff] %v11850_v9  ;;  %15393 = vst [vmem:[#allocation43_spill] sm:$0xff] %v11854_v49  ;;  %v11872_v21 = vpack.c.bf16 %v15404_v30, %v15403_v42  ;;  %v11879_v31 = vpack.c.bf16 %v1212_v43, %v1211_v0  ;;  %v11881_v34 = vpack.c.bf16 %v1196_v27, %v1195_v36  ;;  %9305 = vmatprep.subr.bf16.mxu1 %v11831_v57  ;;  %v6254_v0 = vld [vmem:[%s15067_s4 + $0x240] sm:$0xff]  ;;  %v1254_v26 = vld [vmem:[%s15067_s4 + $0xe8] sm:$0xff] }
 0x1e4   :  { %15394 = vst [vmem:[#allocation45_spill] sm:$0xff] %v11856_v32  ;;  %15397 = vst [vmem:[#allocation47_spill] sm:$0xff] %v11860_v4  ;;  %v11884_v14 = vpack.c.bf16 %v1214_v61, %v1213_v45  ;;  %v11886_v12 = vpack.c.bf16 %v1198_v24, %v1197_v53  ;;  %v11888_v20 = vpack.c.bf16 %v1216_v6, %v1215_v5  ;;  %9369 = vmatprep.subr.bf16.mxu0 %v11831_v57  ;;  %v1237_v43 = vld [vmem:[%s15067_s4 + $0x60] sm:$0xff]  ;;  %v1242_v45 = vld [vmem:[%s15067_s4 + $0x88] sm:$0xff] }
 0x1e5   :  { %15398 = vst [vmem:[#allocation49_spill] sm:$0xff] %v11862_v63  ;;  %15401 = vst [vmem:[#allocation12_spill] sm:$0xff] %v11866_v13  ;;  %v11890_v37 = vpack.c.bf16 %v1200_v38, %v1199_v39  ;;  %v11893_v15 = vpack.c.bf16 %v1218_v47, %v1217_v58  ;;  %v11895_v55 = vpack.c.bf16 %v1202_v10, %v1201_v35  ;;  %9307 = vmatpush3.bf16.msra.mxu1 %v11835_v50  ;;  %v6247_v39 = vld [vmem:[%s15067_s4 + $0x208] sm:$0xff]  ;;  %v1225_v38 = vld [vmem:[%s15067_s4] sm:$0xff] }
 0x1e6   :  { %15402 = vst [vmem:[#allocation50_spill] sm:$0xff] %v11868_v3  ;;  %15405 = vst [vmem:[#allocation11_spill] sm:$0xff] %v11872_v21  ;;  %v11897_v18 = vpack.c.bf16 %v1220_v33, %v1219_v54  ;;  %v11899_v36 = vpack.c.bf16 %v1204_v46, %v1203_v48  ;;  %v11902_v27 = vpack.c.bf16 %v1222_v11, %v1221_v17  ;;  %9371 = vmatpush3.bf16.msra.mxu0 %v11835_v50  ;;  %v1230_v35 = vld [vmem:[%s15067_s4 + $0x28] sm:$0xff]  ;;  %v6246_v10 = vld [vmem:[%s15067_s4 + $0x200] sm:$0xff] }
 0x1e7   :  { %v11904_v53 = vpack.c.bf16 %v1206_v56, %v1205_v59  ;;  %v11906_v24 = vpack.c.bf16 %v1208_v51, %v1207_v7  ;;  %9309 = vmatprep.subr.bf16.mxu1 %v11837_v41  ;;  %9373 = vmatprep.subr.bf16.mxu0 %v11837_v41  ;;  %v1229_v48 = vld [vmem:[%s15067_s4 + $0x20] sm:$0xff]  ;;  %v1234_v46 = vld [vmem:[%s15067_s4 + $0x48] sm:$0xff] }
 0x1e8   :  { %1724 = vmatprep.mubr.f32.mxu0 %v6247_v39  ;;  %v6251_v59 = vld [vmem:[%s15067_s4 + $0x228] sm:$0xff]  ;;  %v6250_v56 = vld [vmem:[%s15067_s4 + $0x220] sm:$0xff] }
 0x1e9   :  { %9311 = vmatpush3.bf16.msra.mxu1 %v11841_v40  ;;  %v1233_v7 = vld [vmem:[%s15067_s4 + $0x40] sm:$0xff]  ;;  %v1238_v51 = vld [vmem:[%s15067_s4 + $0x68] sm:$0xff] }
 0x1ea   :  { %9375 = vmatpush3.bf16.msra.mxu0 %v11841_v40  ;;  %9313 = vmatprep.subr.bf16.mxu1 %v11843_v2  ;;  %v6259_v61 = vld [vmem:[%s15067_s4 + $0x268] sm:$0xff]  ;;  %v6258_v5 = vld [vmem:[%s15067_s4 + $0x260] sm:$0xff] }
 0x1eb   :  { %9377 = vmatprep.subr.bf16.mxu0 %v11843_v2  ;;  %v1241_v6 = vld [vmem:[%s15067_s4 + $0x80] sm:$0xff]  ;;  %v1246_v58 = vld [vmem:[%s15067_s4 + $0xa8] sm:$0xff] }
 0x1ec   :  { %v6263_v47 = vld [vmem:[%s15067_s4 + $0x288] sm:$0xff]  ;;  %v6262_v54 = vld [vmem:[%s15067_s4 + $0x280] sm:$0xff] }
 0x1ed   :  { %9315 = vmatpush3.bf16.msra.mxu1 %v11847_v52  ;;  %v1245_v33 = vld [vmem:[%s15067_s4 + $0xa0] sm:$0xff]  ;;  %v1250_v17 = vld [vmem:[%s15067_s4 + $0xc8] sm:$0xff] }
 0x1ee   :  { %9379 = vmatpush3.bf16.msra.mxu0 %v11847_v52  ;;  %9317 = vmatprep.subr.bf16.mxu1 %v11850_v9  ;;  %v6267_v11 = vld [vmem:[%s15067_s4 + $0x2a8] sm:$0xff]  ;;  %v6270_v19 = vld [vmem:[%s15067_s4 + $0x2c0] sm:$0xff] }
 0x1ef   :  { %9381 = vmatprep.subr.bf16.mxu0 %v11850_v9  ;;  %v6271_v23 = vld [vmem:[%s15067_s4 + $0x2c8] sm:$0xff]  ;;  %v1253_v8 = vld [vmem:[%s15067_s4 + $0xe0] sm:$0xff] }
 0x1f0   :  { %v15406_v44 = vld [vmem:[#allocation37_spill] sm:$0xff]  ;;  %v1258_v60 = vld [vmem:[%s15067_s4 + $0x108] sm:$0xff] }
 0x1f1   :  { %9319 = vmatpush3.bf16.msra.mxu1 %v11854_v49  ;;  %v6275_v42 = vld [vmem:[%s15067_s4 + $0x2e8] sm:$0xff]  ;;  %v6274_v30 = vld [vmem:[%s15067_s4 + $0x2e0] sm:$0xff] }
 0x1f2   :  { %9383 = vmatpush3.bf16.msra.mxu0 %v11854_v49  ;;  %9321 = vmatprep.subr.bf16.mxu1 %v11856_v32  ;;  %v1257_v39 = vld [vmem:[%s15067_s4 + $0x100] sm:$0xff] }
 0x1f3   :  { %9385 = vmatprep.subr.bf16.mxu0 %v11856_v32 }
 0x1f5   :  { %9323 = vmatpush3.bf16.msra.mxu1 %v11860_v4 }
 0x1f6   :  { %9387 = vmatpush3.bf16.msra.mxu0 %v11860_v4  ;;  %9325 = vmatprep.subr.bf16.mxu1 %v11862_v63 }
 0x1f7   :  { %9389 = vmatprep.subr.bf16.mxu0 %v11862_v63 }
 0x1f9   :  { %9327 = vmatpush3.bf16.msra.mxu1 %v11866_v13 }
 0x1fa   :  { %9391 = vmatpush3.bf16.msra.mxu0 %v11866_v13  ;;  %9329 = vmatprep.subr.bf16.mxu1 %v11868_v3 }
 0x1fb   :  { %9393 = vmatprep.subr.bf16.mxu0 %v11868_v3 }
 0x1fd   :  { %9331 = vmatpush3.bf16.msra.mxu1 %v11872_v21 }
 0x1fe   :  { %9395 = vmatpush3.bf16.msra.mxu0 %v11872_v21  ;;  %9333 = vmatprep.subr.bf16.mxu1 %v11875_v28 }
 0x200   :  { %1354 = vmatmul.mubr.f32.vlgmr.msra.gmra.mrb[0].mxu1 %v1225_v38  ;;  %v1262_v38 = vld [vmem:[%s15067_s4 + $0x128] sm:$0xff] }
 0x201   :  { %9335 = vmatpush3.bf16.msra.mxu1 %v11877_v25  ;;  %1358 = vmatprep.mubr.f32.mxu1 %v1230_v35  ;;  %v6279_v35 = vld [vmem:[%s15067_s4 + $0x308] sm:$0xff] }
 0x202   :  { %9337 = vmatprep.subr.bf16.mxu1 %v11879_v31  ;;  %1725 = vmatmul.mubr.f32.vlgmr.msra.gmra.mrb[64].mxu0 %v6246_v10  ;;  %v6278_v10 = vld [vmem:[%s15067_s4 + $0x300] sm:$0xff] }
 0x203   :  { %1729 = vmatprep.mubr.f32.mxu0 %v6251_v59  ;;  %v1266_v59 = vld [vmem:[%s15067_s4 + $0x148] sm:$0xff] }
 0x204   :  { %1359 = vmatmul.mubr.f32.gmra.mrb[2].mxu1 %v1229_v48  ;;  %v6283_v48 = vld [vmem:[%s15067_s4 + $0x328] sm:$0xff] }
 0x205   :  { %9339 = vmatpush3.bf16.msra.mxu1 %v11881_v34  ;;  %1363 = vmatprep.mubr.f32.mxu1 %v1234_v46  ;;  %v1261_v46 = vld [vmem:[%s15067_s4 + $0x120] sm:$0xff] }
 0x206   :  { %9341 = vmatprep.subr.bf16.mxu1 %v11884_v14  ;;  %1730 = vmatmul.mubr.f32.gmra.mrb[66].mxu0 %v6250_v56  ;;  %v6282_v56 = vld [vmem:[%s15067_s4 + $0x320] sm:$0xff] }
 0x207   :  { %1734 = vmatprep.mubr.f32.mxu0 %v6255_v62  ;;  %v1270_v62 = vld [vmem:[%s15067_s4 + $0x168] sm:$0xff] }
 0x208   :  { %1364 = vmatmul.mubr.f32.gmra.mrb[4].mxu1 %v1233_v7  ;;  %v6287_v7 = vld [vmem:[%s15067_s4 + $0x348] sm:$0xff] }
 0x209   :  { %9343 = vmatpush3.bf16.msra.mxu1 %v11886_v12  ;;  %1368 = vmatprep.mubr.f32.mxu1 %v1238_v51  ;;  %v1265_v51 = vld [vmem:[%s15067_s4 + $0x140] sm:$0xff] }
 0x20a   :  { %9345 = vmatprep.subr.bf16.mxu1 %v11888_v20  ;;  %1735 = vmatmul.mubr.f32.gmra.mrb[68].mxu0 %v6254_v0  ;;  %v6286_v0 = vld [vmem:[%s15067_s4 + $0x340] sm:$0xff] }
 0x20b   :  { %1739 = vmatprep.mubr.f32.mxu0 %v6259_v61  ;;  %v1274_v61 = vld [vmem:[%s15067_s4 + $0x188] sm:$0xff] }
 0x20c   :  { %1369 = vmatmul.mubr.f32.gmra.mrb[6].mxu1 %v1237_v43  ;;  %v6291_v43 = vld [vmem:[%s15067_s4 + $0x368] sm:$0xff] }
 0x20d   :  { %9347 = vmatpush3.bf16.msra.mxu1 %v11890_v37  ;;  %1373 = vmatprep.mubr.f32.mxu1 %v1242_v45  ;;  %v1269_v45 = vld [vmem:[%s15067_s4 + $0x160] sm:$0xff] }
 0x20e   :  { %9349 = vmatprep.subr.bf16.mxu1 %v11893_v15  ;;  %1740 = vmatmul.mubr.f32.gmra.mrb[70].mxu0 %v6258_v5  ;;  %v6290_v5 = vld [vmem:[%s15067_s4 + $0x360] sm:$0xff] }
 0x20f   :  { %1744 = vmatprep.mubr.f32.mxu0 %v6263_v47  ;;  %v1278_v47 = vld [vmem:[%s15067_s4 + $0x1a8] sm:$0xff] }
 0x210   :  { %1374 = vmatmul.mubr.f32.gmra.mrb[8].mxu1 %v1241_v6  ;;  %v6295_v6 = vld [vmem:[%s15067_s4 + $0x388] sm:$0xff] }
 0x211   :  { %9351 = vmatpush3.bf16.msra.mxu1 %v11895_v55  ;;  %1378 = vmatprep.mubr.f32.mxu1 %v1246_v58  ;;  %v1273_v58 = vld [vmem:[%s15067_s4 + $0x180] sm:$0xff] }
 0x212   :  { %9353 = vmatprep.subr.bf16.mxu1 %v11897_v18  ;;  %1745 = vmatmul.mubr.f32.gmra.mrb[72].mxu0 %v6262_v54  ;;  %v6294_v54 = vld [vmem:[%s15067_s4 + $0x380] sm:$0xff] }
 0x213   :  { %1749 = vmatprep.mubr.f32.mxu0 %v6267_v11  ;;  %v1282_v11 = vld [vmem:[%s15067_s4 + $0x1c8] sm:$0xff] }
 0x214   :  { %1379 = vmatmul.mubr.f32.gmra.mrb[10].mxu1 %v1245_v33  ;;  %v6299_v33 = vld [vmem:[%s15067_s4 + $0x3a8] sm:$0xff] }
 0x215   :  { %9355 = vmatpush3.bf16.msra.mxu1 %v11899_v36  ;;  %1383 = vmatprep.mubr.f32.mxu1 %v1250_v17  ;;  %v1277_v17 = vld [vmem:[%s15067_s4 + $0x1a0] sm:$0xff] }
 0x216   :  { %9357 = vmatprep.subr.bf16.mxu1 %v11902_v27  ;;  %1750 = vmatmul.mubr.f32.gmra.mrb[74].mxu0 %v6266_v22  ;;  %v6298_v22 = vld [vmem:[%s15067_s4 + $0x3a0] sm:$0xff] }
 0x217   :  { %1754 = vmatprep.mubr.f32.mxu0 %v6271_v23  ;;  %v1286_v23 = vld [vmem:[%s15067_s4 + $0x1e8] sm:$0xff] }
 0x218   :  { %1384 = vmatmul.mubr.f32.gmra.mrb[12].mxu1 %v1249_v29  ;;  %v6303_v29 = vld [vmem:[%s15067_s4 + $0x3c8] sm:$0xff] }
 0x219   :  { %9359 = vmatpush3.bf16.msra.mxu1 %v11904_v53  ;;  %1388 = vmatprep.mubr.f32.mxu1 %v1254_v26  ;;  %v1281_v26 = vld [vmem:[%s15067_s4 + $0x1c0] sm:$0xff] }
 0x21a   :  { %9361 = vmatprep.subr.bf16.mxu1 %v15406_v44  ;;  %1755 = vmatmul.mubr.f32.gmra.mrb[76].mxu0 %v6270_v19  ;;  %v6302_v19 = vld [vmem:[%s15067_s4 + $0x3c0] sm:$0xff] }
 0x21b   :  { %1759 = vmatprep.mubr.f32.mxu0 %v6275_v42  ;;  %v1228_v42 = vld [vmem:[%s15067_s4 + $0x18] sm:$0xff] }
 0x21c   :  { %1389 = vmatmul.mubr.f32.gmra.mrb[14].mxu1 %v1253_v8  ;;  %v6307_v8 = vld [vmem:[%s15067_s4 + $0x3e8] sm:$0xff] }
 0x21d   :  { %9363 = vmatpush3.bf16.msra.mxu1 %v11906_v24  ;;  %1393 = vmatprep.mubr.f32.mxu1 %v1258_v60  ;;  %v1285_v60 = vld [vmem:[%s15067_s4 + $0x1e0] sm:$0xff] }
 0x21e   :  { %9397 = vmatprep.subr.bf16.mxu1 %v11875_v28  ;;  %1760 = vmatmul.mubr.f32.gmra.mrb[78].mxu0 %v6274_v30  ;;  %v6306_v30 = vld [vmem:[%s15067_s4 + $0x3e0] sm:$0xff] }
 0x21f   :  { %1764 = vmatprep.mubr.f32.mxu0 %v6279_v35  ;;  %v1231_v35 = vld [vmem:[%s15067_s4 + $0x30] sm:$0xff] }
 0x220   :  { %1394 = vmatmul.mubr.f32.gmra.mrb[16].mxu1 %v1257_v39  ;;  %v1227_v39 = vld [vmem:[%s15067_s4 + $0x10] sm:$0xff] }
 0x221   :  { %1398 = vmatprep.mubr.f32.mxu1 %v1262_v38  ;;  %v1232_v38 = vld [vmem:[%s15067_s4 + $0x38] sm:$0xff] }
 0x222   :  { %1765 = vmatmul.mubr.f32.gmra.mrb[80].mxu0 %v6278_v10  ;;  %v1236_v10 = vld [vmem:[%s15067_s4 + $0x58] sm:$0xff] }
 0x223   :  { %1769 = vmatprep.mubr.f32.mxu0 %v6283_v48  ;;  %v1235_v48 = vld [vmem:[%s15067_s4 + $0x50] sm:$0xff] }
 0x224   :  { %1399 = vmatmul.mubr.f32.gmra.mrb[18].mxu1 %v1261_v46  ;;  %v1240_v46 = vld [vmem:[%s15067_s4 + $0x78] sm:$0xff] }
 0x225   :  { %1403 = vmatprep.mubr.f32.mxu1 %v1266_v59  ;;  %v1239_v59 = vld [vmem:[%s15067_s4 + $0x70] sm:$0xff] }
 0x226   :  { %1770 = vmatmul.mubr.f32.gmra.mrb[82].mxu0 %v6282_v56  ;;  %v1244_v56 = vld [vmem:[%s15067_s4 + $0x98] sm:$0xff] }
 0x227   :  { %1774 = vmatprep.mubr.f32.mxu0 %v6287_v7  ;;  %v1243_v7 = vld [vmem:[%s15067_s4 + $0x90] sm:$0xff] }
 0x228   :  { %1404 = vmatmul.mubr.f32.gmra.mrb[20].mxu1 %v1265_v51  ;;  %v1248_v51 = vld [vmem:[%s15067_s4 + $0xb8] sm:$0xff] }
 0x229   :  { %1408 = vmatprep.mubr.f32.mxu1 %v1270_v62  ;;  %v1247_v62 = vld [vmem:[%s15067_s4 + $0xb0] sm:$0xff] }
 0x22a   :  { %1775 = vmatmul.mubr.f32.gmra.mrb[84].mxu0 %v6286_v0  ;;  %v1252_v0 = vld [vmem:[%s15067_s4 + $0xd8] sm:$0xff] }
 0x22b   :  { %1779 = vmatprep.mubr.f32.mxu0 %v6291_v43  ;;  %v1251_v43 = vld [vmem:[%s15067_s4 + $0xd0] sm:$0xff] }
 0x22c   :  { %1409 = vmatmul.mubr.f32.gmra.mrb[22].mxu1 %v1269_v45  ;;  %v1256_v45 = vld [vmem:[%s15067_s4 + $0xf8] sm:$0xff] }
 0x22d   :  { %1413 = vmatprep.mubr.f32.mxu1 %v1274_v61  ;;  %v1255_v61 = vld [vmem:[%s15067_s4 + $0xf0] sm:$0xff] }
 0x22e   :  { %1780 = vmatmul.mubr.f32.gmra.mrb[86].mxu0 %v6290_v5  ;;  %v1260_v5 = vld [vmem:[%s15067_s4 + $0x118] sm:$0xff] }
 0x22f   :  { %1784 = vmatprep.mubr.f32.mxu0 %v6295_v6  ;;  %v1259_v6 = vld [vmem:[%s15067_s4 + $0x110] sm:$0xff] }
 0x230   :  { %1414 = vmatmul.mubr.f32.gmra.mrb[24].mxu1 %v1273_v58  ;;  %v1264_v58 = vld [vmem:[%s15067_s4 + $0x138] sm:$0xff] }
 0x231   :  { %1418 = vmatprep.mubr.f32.mxu1 %v1278_v47  ;;  %v1263_v47 = vld [vmem:[%s15067_s4 + $0x130] sm:$0xff] }
 0x232   :  { %1785 = vmatmul.mubr.f32.gmra.mrb[88].mxu0 %v6294_v54  ;;  %v1268_v54 = vld [vmem:[%s15067_s4 + $0x158] sm:$0xff] }
 0x233   :  { %1789 = vmatprep.mubr.f32.mxu0 %v6299_v33  ;;  %v1267_v33 = vld [vmem:[%s15067_s4 + $0x150] sm:$0xff] }
 0x234   :  { %1419 = vmatmul.mubr.f32.gmra.mrb[26].mxu1 %v1277_v17  ;;  %v1272_v17 = vld [vmem:[%s15067_s4 + $0x178] sm:$0xff] }
 0x235   :  { %1423 = vmatprep.mubr.f32.mxu1 %v1282_v11  ;;  %v1271_v11 = vld [vmem:[%s15067_s4 + $0x170] sm:$0xff] }
 0x236   :  { %1790 = vmatmul.mubr.f32.gmra.mrb[90].mxu0 %v6298_v22  ;;  %v1276_v22 = vld [vmem:[%s15067_s4 + $0x198] sm:$0xff] }
 0x237   :  { %1794 = vmatprep.mubr.f32.mxu0 %v6303_v29  ;;  %v1275_v29 = vld [vmem:[%s15067_s4 + $0x190] sm:$0xff] }
 0x238   :  { %1424 = vmatmul.mubr.f32.gmra.mrb[28].mxu1 %v1281_v26  ;;  %v1280_v26 = vld [vmem:[%s15067_s4 + $0x1b8] sm:$0xff] }
 0x239   :  { %1428 = vmatprep.mubr.f32.mxu1 %v1286_v23  ;;  %v1279_v23 = vld [vmem:[%s15067_s4 + $0x1b0] sm:$0xff] }
 0x23a   :  { %1795 = vmatmul.mubr.f32.gmra.mrb[92].mxu0 %v6302_v19  ;;  %v1284_v19 = vld [vmem:[%s15067_s4 + $0x1d8] sm:$0xff] }
 0x23b   :  { %1799 = vmatprep.mubr.f32.mxu0 %v6307_v8  ;;  %v1283_v8 = vld [vmem:[%s15067_s4 + $0x1d0] sm:$0xff] }
 0x23c   :  { %1429 = vmatmul.mubr.f32.gmra.mrb[30].mxu1 %v1285_v60  ;;  %v1288_v60 = vld [vmem:[%s15067_s4 + $0x1f8] sm:$0xff] }
 0x23d   :  { %1498 = vmatprep.mubr.f32.mxu1 %v1228_v42  ;;  %v1287_v42 = vld [vmem:[%s15067_s4 + $0x1f0] sm:$0xff] }
 0x23e   :  { %1800 = vmatmul.mubr.f32.gmra.mrb[94].mxu0 %v6306_v30  ;;  %v6249_v30 = vld [vmem:[%s15067_s4 + $0x218] sm:$0xff] }
 0x240   :  { %1499 = vmatmul.mubr.f32.vlgmr.msra.gmra.mrb[32].mxu1 %v1227_v39  ;;  %v6248_v39 = vld [vmem:[%s15067_s4 + $0x210] sm:$0xff] }
 0x241   :  { %9399 = vmatpush3.bf16.msra.mxu1 %v11877_v25  ;;  %1503 = vmatprep.mubr.f32.mxu1 %v1232_v38  ;;  %v6253_v38 = vld [vmem:[%s15067_s4 + $0x238] sm:$0xff] }
 0x242   :  { %9401 = vmatprep.subr.bf16.mxu1 %v11879_v31 }
 0x244   :  { %1504 = vmatmul.mubr.f32.gmra.mrb[34].mxu1 %v1231_v35  ;;  %v6252_v35 = vld [vmem:[%s15067_s4 + $0x230] sm:$0xff] }
 0x245   :  { %9403 = vmatpush3.bf16.msra.mxu1 %v11881_v34  ;;  %1508 = vmatprep.mubr.f32.mxu1 %v1236_v10  ;;  %v6257_v10 = vld [vmem:[%s15067_s4 + $0x258] sm:$0xff] }
 0x246   :  { %9405 = vmatprep.subr.bf16.mxu1 %v11884_v14 }
 0x248   :  { %1509 = vmatmul.mubr.f32.gmra.mrb[36].mxu1 %v1235_v48  ;;  %v6256_v48 = vld [vmem:[%s15067_s4 + $0x250] sm:$0xff] }
 0x249   :  { %9407 = vmatpush3.bf16.msra.mxu1 %v11886_v12  ;;  %1513 = vmatprep.mubr.f32.mxu1 %v1240_v46  ;;  %v6261_v46 = vld [vmem:[%s15067_s4 + $0x278] sm:$0xff] }
 0x24a   :  { %9409 = vmatprep.subr.bf16.mxu1 %v11888_v20 }
 0x24c   :  { %1514 = vmatmul.mubr.f32.gmra.mrb[38].mxu1 %v1239_v59  ;;  %v6260_v59 = vld [vmem:[%s15067_s4 + $0x270] sm:$0xff] }
 0x24d   :  { %9411 = vmatpush3.bf16.msra.mxu1 %v11890_v37  ;;  %1518 = vmatprep.mubr.f32.mxu1 %v1244_v56  ;;  %v6265_v56 = vld [vmem:[%s15067_s4 + $0x298] sm:$0xff] }
 0x24e   :  { %9413 = vmatprep.subr.bf16.mxu1 %v11893_v15 }
 0x250   :  { %1519 = vmatmul.mubr.f32.gmra.mrb[40].mxu1 %v1243_v7  ;;  %v6264_v7 = vld [vmem:[%s15067_s4 + $0x290] sm:$0xff] }
 0x251   :  { %9415 = vmatpush3.bf16.msra.mxu1 %v11895_v55  ;;  %1523 = vmatprep.mubr.f32.mxu1 %v1248_v51  ;;  %v6269_v51 = vld [vmem:[%s15067_s4 + $0x2b8] sm:$0xff] }
 0x252   :  { %9417 = vmatprep.subr.bf16.mxu1 %v11897_v18 }
 0x254   :  { %1524 = vmatmul.mubr.f32.gmra.mrb[42].mxu1 %v1247_v62  ;;  %v6268_v62 = vld [vmem:[%s15067_s4 + $0x2b0] sm:$0xff] }
 0x255   :  { %9419 = vmatpush3.bf16.msra.mxu1 %v11899_v36  ;;  %1528 = vmatprep.mubr.f32.mxu1 %v1252_v0  ;;  %v6273_v0 = vld [vmem:[%s15067_s4 + $0x2d8] sm:$0xff] }
 0x256   :  { %9421 = vmatprep.subr.bf16.mxu1 %v11902_v27 }
 0x258   :  { %1529 = vmatmul.mubr.f32.gmra.mrb[44].mxu1 %v1251_v43  ;;  %v6272_v43 = vld [vmem:[%s15067_s4 + $0x2d0] sm:$0xff] }
 0x259   :  { %9423 = vmatpush3.bf16.msra.mxu1 %v11904_v53  ;;  %1533 = vmatprep.mubr.f32.mxu1 %v1256_v45  ;;  %v6277_v45 = vld [vmem:[%s15067_s4 + $0x2f8] sm:$0xff] }
 0x25a   :  { %9425 = vmatprep.subr.bf16.mxu1 %v15406_v44 }
 0x25c   :  { %1534 = vmatmul.mubr.f32.gmra.mrb[46].mxu1 %v1255_v61  ;;  %v6276_v61 = vld [vmem:[%s15067_s4 + $0x2f0] sm:$0xff] }
 0x25d   :  { %9427 = vmatpush3.bf16.msra.mxu1 %v11906_v24  ;;  %1538 = vmatprep.mubr.f32.mxu1 %v1260_v5  ;;  %v6281_v5 = vld [vmem:[%s15067_s4 + $0x318] sm:$0xff] }
 0x25e   :  { %9493 = vmatprep.subr.bf16.mxu1 %v11825_v1 }
 0x260   :  { %1539 = vmatmul.mubr.f32.gmra.mrb[48].mxu1 %v1259_v6  ;;  %v6280_v6 = vld [vmem:[%s15067_s4 + $0x310] sm:$0xff] }
 0x261   :  { %1543 = vmatprep.mubr.f32.mxu1 %v1264_v58  ;;  %v6285_v58 = vld [vmem:[%s15067_s4 + $0x338] sm:$0xff] }
 0x264   :  { %1544 = vmatmul.mubr.f32.gmra.mrb[50].mxu1 %v1263_v47  ;;  %v6284_v47 = vld [vmem:[%s15067_s4 + $0x330] sm:$0xff] }
 0x265   :  { %1548 = vmatprep.mubr.f32.mxu1 %v1268_v54  ;;  %v6289_v54 = vld [vmem:[%s15067_s4 + $0x358] sm:$0xff] }
 0x268   :  { %1549 = vmatmul.mubr.f32.gmra.mrb[52].mxu1 %v1267_v33  ;;  %v6288_v33 = vld [vmem:[%s15067_s4 + $0x350] sm:$0xff] }
 0x269   :  { %1553 = vmatprep.mubr.f32.mxu1 %v1272_v17  ;;  %v6293_v17 = vld [vmem:[%s15067_s4 + $0x378] sm:$0xff] }
 0x26c   :  { %1554 = vmatmul.mubr.f32.gmra.mrb[54].mxu1 %v1271_v11  ;;  %v6292_v11 = vld [vmem:[%s15067_s4 + $0x370] sm:$0xff] }
 0x26d   :  { %1558 = vmatprep.mubr.f32.mxu1 %v1276_v22  ;;  %v6297_v22 = vld [vmem:[%s15067_s4 + $0x398] sm:$0xff] }
 0x270   :  { %1559 = vmatmul.mubr.f32.gmra.mrb[56].mxu1 %v1275_v29  ;;  %v6296_v29 = vld [vmem:[%s15067_s4 + $0x390] sm:$0xff] }
 0x271   :  { %1563 = vmatprep.mubr.f32.mxu1 %v1280_v26  ;;  %v6301_v26 = vld [vmem:[%s15067_s4 + $0x3b8] sm:$0xff] }
 0x274   :  { %1564 = vmatmul.mubr.f32.gmra.mrb[58].mxu1 %v1279_v23  ;;  %v6300_v23 = vld [vmem:[%s15067_s4 + $0x3b0] sm:$0xff] }
 0x275   :  { %1568 = vmatprep.mubr.f32.mxu1 %v1284_v19  ;;  %v6305_v19 = vld [vmem:[%s15067_s4 + $0x3d8] sm:$0xff] }
 0x278   :  { %1569 = vmatmul.mubr.f32.gmra.mrb[60].mxu1 %v1283_v8  ;;  %v6304_v8 = vld [vmem:[%s15067_s4 + $0x3d0] sm:$0xff] }
 0x279   :  { %1573 = vmatprep.mubr.f32.mxu1 %v1288_v60  ;;  %v6309_v60 = vld [vmem:[%s15067_s4 + $0x3f8] sm:$0xff] }
 0x27c   :  { %1574 = vmatmul.mubr.f32.gmra.mrb[62].mxu1 %v1287_v42  ;;  %v6308_v42 = vld [vmem:[%s15067_s4 + $0x3f0] sm:$0xff] }
 0x27d   :  { %1869 = vmatprep.mubr.f32.mxu1 %v6249_v30  ;;  %v6310_v30 = vld [vmem:[%s15068_s5 + $0x80] sm:$0xff] }
 0x280   :  { %1870 = vmatmul.mubr.f32.vlgmr.msra.gmra.mrb[64].mxu1 %v6248_v39  ;;  %v6311_v39 = vld [vmem:[%s15068_s5 + $0x88] sm:$0xff] }
 0x281   :  { %9495 = vmatpush3.bf16.msra.mxu1 %v11829_v16  ;;  %1874 = vmatprep.mubr.f32.mxu1 %v6253_v38  ;;  %v6327_v38 = vld [vmem:[%s15067_s4 + $0x408] sm:$0xff] }
 0x282   :  { %9497 = vmatprep.subr.bf16.mxu1 %v11831_v57 }
 0x284   :  { %1875 = vmatmul.mubr.f32.gmra.mrb[66].mxu1 %v6252_v35  ;;  %v9428_v35 = vpack.c.bf16 %v6311_v39, %v6310_v30 }
 0x285   :  { %9499 = vmatpush3.bf16.msra.mxu1 %v11835_v50  ;;  %1879 = vmatprep.mubr.f32.mxu1 %v6257_v10  ;;  %v6326_v10 = vld [vmem:[%s15067_s4 + $0x400] sm:$0xff] }
 0x286   :  { %9501 = vmatprep.subr.bf16.mxu1 %v11837_v41  ;;  %9429 = vmatprep.subr.bf16.mxu0 %v9428_v35 }
 0x287   :  { %9431 = vmatpush3.bf16.msra.mxu0 %v9428_v35 }
 0x288   :  { %1880 = vmatmul.mubr.f32.gmra.mrb[68].mxu1 %v6256_v48  ;;  %v6331_v48 = vld [vmem:[%s15067_s4 + $0x428] sm:$0xff] }
 0x289   :  { %9503 = vmatpush3.bf16.msra.mxu1 %v11841_v40  ;;  %1884 = vmatprep.mubr.f32.mxu1 %v6261_v46  ;;  %v6330_v46 = vld [vmem:[%s15067_s4 + $0x420] sm:$0xff] }
 0x28a   :  { %9505 = vmatprep.subr.bf16.mxu1 %v11843_v2 }
 0x28c   :  { %1885 = vmatmul.mubr.f32.gmra.mrb[70].mxu1 %v6260_v59  ;;  %v6312_v59 = vld [vmem:[%s15068_s5 + $0x90] sm:$0xff] }
 0x28d   :  { %9507 = vmatpush3.bf16.msra.mxu1 %v11847_v52  ;;  %1889 = vmatprep.mubr.f32.mxu1 %v6265_v56  ;;  %v6313_v56 = vld [vmem:[%s15068_s5 + $0x98] sm:$0xff] }
 0x28e   :  { %9509 = vmatprep.subr.bf16.mxu1 %v11850_v9 }
 0x290   :  { %1890 = vmatmul.mubr.f32.gmra.mrb[72].mxu1 %v6264_v7  ;;  %v6335_v7 = vld [vmem:[%s15067_s4 + $0x448] sm:$0xff] }
 0x291   :  { %9511 = vmatpush3.bf16.msra.mxu1 %v11854_v49  ;;  %1894 = vmatprep.mubr.f32.mxu1 %v6269_v51  ;;  %v9432_v51 = vpack.c.bf16 %v6313_v56, %v6312_v59 }
 0x292   :  { %9513 = vmatprep.subr.bf16.mxu1 %v11856_v32 }
 0x293   :  { %9433 = vmatprep.subr.bf16.mxu0 %v9432_v51 }
 0x294   :  { %1895 = vmatmul.mubr.f32.gmra.mrb[74].mxu1 %v6268_v62  ;;  %v6334_v62 = vld [vmem:[%s15067_s4 + $0x440] sm:$0xff]  ;;  %9435 = vmatpush3.bf16.msra.mxu0 %v9432_v51 }
 0x295   :  { %9515 = vmatpush3.bf16.msra.mxu1 %v11860_v4  ;;  %1899 = vmatprep.mubr.f32.mxu1 %v6273_v0  ;;  %v6314_v0 = vld [vmem:[%s15068_s5 + $0xa0] sm:$0xff] }
 0x296   :  { %9517 = vmatprep.subr.bf16.mxu1 %v11862_v63 }
 0x298   :  { %1900 = vmatmul.mubr.f32.gmra.mrb[76].mxu1 %v6272_v43  ;;  %v6315_v43 = vld [vmem:[%s15068_s5 + $0xa8] sm:$0xff] }
 0x299   :  { %9519 = vmatpush3.bf16.msra.mxu1 %v11866_v13  ;;  %1904 = vmatprep.mubr.f32.mxu1 %v6277_v45  ;;  %v6339_v45 = vld [vmem:[%s15067_s4 + $0x468] sm:$0xff] }
 0x29a   :  { %9521 = vmatprep.subr.bf16.mxu1 %v11868_v3 }
 0x29c   :  { %1905 = vmatmul.mubr.f32.gmra.mrb[78].mxu1 %v6276_v61  ;;  %v9436_v61 = vpack.c.bf16 %v6315_v43, %v6314_v0  ;;  %v6354_v43 = vld [vmem:[%s15067_s4 + $0x4e0] sm:$0xff] }
 0x29d   :  { %9523 = vmatpush3.bf16.msra.mxu1 %v11872_v21  ;;  %1909 = vmatprep.mubr.f32.mxu1 %v6281_v5  ;;  %v6338_v5 = vld [vmem:[%s15067_s4 + $0x460] sm:$0xff] }
 0x29e   :  { %9589 = vmatprep.subr.bf16.mxu1 %v11825_v1  ;;  %9437 = vmatprep.subr.bf16.mxu0 %v9436_v61 }
 0x29f   :  { %9439 = vmatpush3.bf16.msra.mxu0 %v9436_v61  ;;  %v6359_v61 = vld [vmem:[%s15067_s4 + $0x508] sm:$0xff] }
 0x2a0   :  { %1910 = vmatmul.mubr.f32.gmra.mrb[80].mxu1 %v6280_v6  ;;  %v6316_v6 = vld [vmem:[%s15068_s5 + $0xb0] sm:$0xff] }
 0x2a1   :  { %1914 = vmatprep.mubr.f32.mxu1 %v6285_v58  ;;  %v6317_v58 = vld [vmem:[%s15068_s5 + $0xb8] sm:$0xff] }
 0x2a4   :  { %1915 = vmatmul.mubr.f32.gmra.mrb[82].mxu1 %v6284_v47  ;;  %v6343_v47 = vld [vmem:[%s15067_s4 + $0x488] sm:$0xff] }
 0x2a5   :  { %1919 = vmatprep.mubr.f32.mxu1 %v6289_v54  ;;  %v9440_v54 = vpack.c.bf16 %v6317_v58, %v6316_v6 }
 0x2a7   :  { %9441 = vmatprep.subr.bf16.mxu0 %v9440_v54 }
 0x2a8   :  { %1920 = vmatmul.mubr.f32.gmra.mrb[84].mxu1 %v6288_v33  ;;  %v6342_v33 = vld [vmem:[%s15067_s4 + $0x480] sm:$0xff]  ;;  %9443 = vmatpush3.bf16.msra.mxu0 %v9440_v54  ;;  %v6325_v54 = vld [vmem:[%s15068_s5 + $0xf8] sm:$0xff] }
 0x2a9   :  { %1924 = vmatprep.mubr.f32.mxu1 %v6293_v17  ;;  %v6318_v17 = vld [vmem:[%s15068_s5 + $0xc0] sm:$0xff] }
 0x2ac   :  { %1925 = vmatmul.mubr.f32.gmra.mrb[86].mxu1 %v6292_v11  ;;  %v6319_v11 = vld [vmem:[%s15068_s5 + $0xc8] sm:$0xff] }
 0x2ad   :  { %1929 = vmatprep.mubr.f32.mxu1 %v6297_v22  ;;  %v6347_v22 = vld [vmem:[%s15067_s4 + $0x4a8] sm:$0xff] }
 0x2b0   :  { %1930 = vmatmul.mubr.f32.gmra.mrb[88].mxu1 %v6296_v29  ;;  %v9444_v29 = vpack.c.bf16 %v6319_v11, %v6318_v17 }
 0x2b1   :  { %1934 = vmatprep.mubr.f32.mxu1 %v6301_v26  ;;  %v6346_v26 = vld [vmem:[%s15067_s4 + $0x4a0] sm:$0xff] }
 0x2b2   :  { %9445 = vmatprep.subr.bf16.mxu0 %v9444_v29 }
 0x2b3   :  { %9447 = vmatpush3.bf16.msra.mxu0 %v9444_v29 }
 0x2b4   :  { %1935 = vmatmul.mubr.f32.gmra.mrb[90].mxu1 %v6300_v23  ;;  %v6320_v23 = vld [vmem:[%s15068_s5 + $0xd0] sm:$0xff] }
 0x2b5   :  { %1939 = vmatprep.mubr.f32.mxu1 %v6305_v19  ;;  %v6321_v19 = vld [vmem:[%s15068_s5 + $0xd8] sm:$0xff] }
 0x2b8   :  { %1940 = vmatmul.mubr.f32.gmra.mrb[92].mxu1 %v6304_v8  ;;  %v6351_v8 = vld [vmem:[%s15067_s4 + $0x4c8] sm:$0xff] }
 0x2b9   :  { %1944 = vmatprep.mubr.f32.mxu1 %v6309_v60  ;;  %v9448_v60 = vpack.c.bf16 %v6321_v19, %v6320_v23  ;;  %v1580_v23 = vld [vmem:[%s15068_s5 + $0x8] sm:$0xff] }
 0x2ba   :  { %v6363_v19 = vld [vmem:[%s15067_s4 + $0x528] sm:$0xff] }
 0x2bb   :  { %9449 = vmatprep.subr.bf16.mxu0 %v9448_v60 }
 0x2bc   :  { %1945 = vmatmul.mubr.f32.gmra.mrb[94].mxu1 %v6308_v42  ;;  %9451 = vmatpush3.bf16.msra.mxu0 %v9448_v60 }
 0x2bd   :  { %2386 = vmatprep.mubr.f32.mxu1 %v6327_v38  ;;  %v6350_v38 = vld [vmem:[%s15067_s4 + $0x4c0] sm:$0xff] }
 0x2c0   :  { %2387 = vmatmul.mubr.f32.vlgmr.msra.gmra.mrb[96].mxu1 %v6326_v10  ;;  %v6322_v10 = vld [vmem:[%s15068_s5 + $0xe0] sm:$0xff] }
 0x2c1   :  { %9591 = vmatpush3.bf16.msra.mxu1 %v11829_v16  ;;  %2391 = vmatprep.mubr.f32.mxu1 %v6331_v48  ;;  %v6323_v48 = vld [vmem:[%s15068_s5 + $0xe8] sm:$0xff] }
 0x2c2   :  { %9593 = vmatprep.subr.bf16.mxu1 %v11831_v57  ;;  %v9452_v56 = vpack.c.bf16 %v6323_v48, %v6322_v10  ;;  %v6362_v10 = vld [vmem:[%s15067_s4 + $0x520] sm:$0xff] }
 0x2c4   :  { %2392 = vmatmul.mubr.f32.gmra.mrb[98].mxu1 %v6330_v46  ;;  %v6355_v46 = vld [vmem:[%s15067_s4 + $0x4e8] sm:$0xff]  ;;  %9453 = vmatprep.subr.bf16.mxu0 %v9452_v56 }
 0x2c5   :  { %9595 = vmatpush3.bf16.msra.mxu1 %v11835_v50  ;;  %2396 = vmatprep.mubr.f32.mxu1 %v6335_v7 }
 0x2c6   :  { %9597 = vmatprep.subr.bf16.mxu1 %v11837_v41  ;;  %9455 = vmatpush3.bf16.msra.mxu0 %v9452_v56 }
 0x2c8   :  { %2397 = vmatmul.mubr.f32.gmra.mrb[100].mxu1 %v6334_v62 }
 0x2c9   :  { %9599 = vmatpush3.bf16.msra.mxu1 %v11841_v40  ;;  %2401 = vmatprep.mubr.f32.mxu1 %v6339_v45 }
 0x2ca   :  { %9601 = vmatprep.subr.bf16.mxu1 %v11843_v2 }
 0x2cc   :  { %2402 = vmatmul.mubr.f32.gmra.mrb[102].mxu1 %v6338_v5 }
 0x2cd   :  { %9603 = vmatpush3.bf16.msra.mxu1 %v11847_v52  ;;  %2406 = vmatprep.mubr.f32.mxu1 %v6343_v47  ;;  %v6324_v47 = vld [vmem:[%s15068_s5 + $0xf0] sm:$0xff]  ;;  %v6431_v52 = vld [vmem:[%s15067_s4 + $0x6c8] sm:$0xff] }
 0x2ce   :  { %9605 = vmatprep.subr.bf16.mxu1 %v11850_v9  ;;  %v9456_v17 = vpack.c.bf16 %v6325_v54, %v6324_v47 }
 0x2d0   :  { %2407 = vmatmul.mubr.f32.gmra.mrb[104].mxu1 %v6342_v33  ;;  %9457 = vmatprep.subr.bf16.mxu0 %v9456_v17 }
 0x2d1   :  { %9607 = vmatpush3.bf16.msra.mxu1 %v11854_v49  ;;  %2411 = vmatprep.mubr.f32.mxu1 %v6347_v22  ;;  %v6358_v22 = vld [vmem:[%s15067_s4 + $0x500] sm:$0xff]  ;;  %v6427_v49 = vld [vmem:[%s15067_s4 + $0x6a8] sm:$0xff] }
 0x2d2   :  { %9609 = vmatprep.subr.bf16.mxu1 %v11856_v32  ;;  %9459 = vmatpush3.bf16.msra.mxu0 %v9456_v17 }
 0x2d3   :  { %v6986_v42 = vpop.f32.mrb[0].mxu1 }
 0x2d4   :  { %v6987_v30 = vpop.f32.mrb[1].mxu1  ;;  %2412 = vmatmul.mubr.f32.gmra.mrb[106].mxu1 %v6346_v26  ;;  %v1579_v26 = vld [vmem:[%s15068_s5] sm:$0xff] }
 0x2d5   :  { %v12450_v39 = vadd.f32 %v6987_v30, %v6986_v42  ;;  %9611 = vmatpush3.bf16.msra.mxu1 %v11860_v4  ;;  %2416 = vmatprep.mubr.f32.mxu1 %v6351_v8  ;;  %v7146_v35 = vpop.f32.mrb[64].mxu0  ;;  %v12502_v60 = vpack.c.bf16 %v1580_v23, %v1579_v26  ;;  %v6375_v26 = vld [vmem:[%s15067_s4 + $0x588] sm:$0xff] }
 0x2d6   :  { %9613 = vmatprep.subr.bf16.mxu1 %v11862_v63  ;;  %v7147_v59 = vpop.f32.mrb[65].mxu0  ;;  %v6423_v4 = vld [vmem:[%s15067_s4 + $0x688] sm:$0xff] }
 0x2d7   :  { %v6989_v7 = vpop.f32.mrb[2].mxu1  ;;  %v12466_v51 = vadd.f32 %v7147_v59, %v7146_v35  ;;  %9461 = vmatprep.subr.bf16.mxu0 %v12502_v60 }
 0x2d8   :  { %v6990_v62 = vpop.f32.mrb[3].mxu1  ;;  %2417 = vmatmul.mubr.f32.gmra.mrb[108].mxu1 %v6350_v38 }
 0x2d9   :  { %v12468_v0 = vadd.f32 %v6990_v62, %v6989_v7  ;;  %9615 = vmatpush3.bf16.msra.mxu1 %v11866_v13  ;;  %2421 = vmatprep.mubr.f32.mxu1 %v6355_v46  ;;  %v7149_v45 = vpop.f32.mrb[66].mxu0  ;;  %v6367_v46 = vld [vmem:[%s15067_s4 + $0x548] sm:$0xff] }
 0x2da   :  { %9617 = vmatprep.subr.bf16.mxu1 %v11868_v3  ;;  %v7150_v5 = vpop.f32.mrb[67].mxu0  ;;  %v6419_v13 = vld [vmem:[%s15067_s4 + $0x668] sm:$0xff] }
 0x2db   :  { %v6992_v6 = vpop.f32.mrb[4].mxu1  ;;  %v12478_v58 = vadd.f32 %v7150_v5, %v7149_v45  ;;  %v6366_v45 = vld [vmem:[%s15067_s4 + $0x540] sm:$0xff]  ;;  %v6371_v5 = vld [vmem:[%s15067_s4 + $0x568] sm:$0xff] }
 0x2dc   :  { %v6993_v33 = vpop.f32.mrb[5].mxu1  ;;  %2422 = vmatmul.mubr.f32.gmra.mrb[110].mxu1 %v6354_v43 }
 0x2dd   :  { %v12486_v11 = vadd.f32 %v6993_v33, %v6992_v6  ;;  %9619 = vmatpush3.bf16.msra.mxu1 %v11872_v21  ;;  %2426 = vmatprep.mubr.f32.mxu1 %v6359_v61  ;;  %v7152_v29 = vpop.f32.mrb[68].mxu0 }
 0x2de   :  { %9621 = vmatprep.subr.bf16.mxu1 %v11875_v28  ;;  %v7153_v8 = vpop.f32.mrb[69].mxu0 }
 0x2df   :  { %v6995_v42 = vpop.f32.mrb[6].mxu1  ;;  %v12504_v30 = vadd.f32 %v7153_v8, %v7152_v29 }
 0x2e0   :  { %v6996_v38 = vpop.f32.mrb[7].mxu1  ;;  %2427 = vmatmul.mubr.f32.gmra.mrb[112].mxu1 %v6358_v22  ;;  %v6370_v22 = vld [vmem:[%s15067_s4 + $0x560] sm:$0xff] }
 0x2e1   :  { %v12507_v35 = vadd.f32 %v6996_v38, %v6995_v42  ;;  %2431 = vmatprep.mubr.f32.mxu1 %v6363_v19  ;;  %v7155_v48 = vpop.f32.mrb[70].mxu0 }
 0x2e2   :  { %v7156_v59 = vpop.f32.mrb[71].mxu0 }
 0x2e3   :  { %v6998_v56 = vpop.f32.mrb[8].mxu1  ;;  %v12515_v7 = vadd.f32 %v7156_v59, %v7155_v48 }
 0x2e4   :  { %v6999_v62 = vpop.f32.mrb[9].mxu1  ;;  %2432 = vmatmul.mubr.f32.gmra.mrb[114].mxu1 %v6362_v10  ;;  %v6374_v10 = vld [vmem:[%s15067_s4 + $0x580] sm:$0xff] }
 0x2e5   :  { %v12517_v43 = vadd.f32 %v6999_v62, %v6998_v56  ;;  %2436 = vmatprep.mubr.f32.mxu1 %v6367_v46  ;;  %v7158_v61 = vpop.f32.mrb[72].mxu0  ;;  %v6379_v46 = vld [vmem:[%s15067_s4 + $0x5a8] sm:$0xff] }
 0x2e6   :  { %v7159_v6 = vpop.f32.mrb[73].mxu0 }
 0x2e7   :  { %v7001_v47 = vpop.f32.mrb[10].mxu1  ;;  %v12525_v54 = vadd.f32 %v7159_v6, %v7158_v61 }
 0x2e8   :  { %v7002_v33 = vpop.f32.mrb[11].mxu1  ;;  %2437 = vmatmul.mubr.f32.gmra.mrb[116].mxu1 %v6366_v45 }
 0x2e9   :  { %v12527_v17 = vadd.f32 %v7002_v33, %v7001_v47  ;;  %2441 = vmatprep.mubr.f32.mxu1 %v6371_v5  ;;  %v7161_v29 = vpop.f32.mrb[74].mxu0  ;;  %v6378_v5 = vld [vmem:[%s15067_s4 + $0x5a0] sm:$0xff]  ;;  %v6383_v47 = vld [vmem:[%s15067_s4 + $0x5c8] sm:$0xff] }
 0x2ea   :  { %v7162_v23 = vpop.f32.mrb[75].mxu0 }
 0x2eb   :  { %v7004_v19 = vpop.f32.mrb[12].mxu1  ;;  %v12535_v8 = vadd.f32 %v7162_v23, %v7161_v29 }
 0x2ec   :  { %v7005_v42 = vpop.f32.mrb[13].mxu1  ;;  %2442 = vmatmul.mubr.f32.gmra.mrb[118].mxu1 %v6370_v22 }
 0x2ed   :  { %v12537_v38 = vadd.f32 %v7005_v42, %v7004_v19  ;;  %2446 = vmatprep.mubr.f32.mxu1 %v6375_v26  ;;  %v7164_v48 = vpop.f32.mrb[76].mxu0  ;;  %v6382_v19 = vld [vmem:[%s15067_s4 + $0x5c0] sm:$0xff] }
 0x2ee   :  { %v7165_v59 = vpop.f32.mrb[77].mxu0 }
 0x2ef   :  { %v7007_v56 = vpop.f32.mrb[14].mxu1  ;;  %v12545_v62 = vadd.f32 %v7165_v59, %v7164_v48 }
 0x2f0   :  { %v7008_v45 = vpop.f32.mrb[15].mxu1  ;;  %2447 = vmatmul.mubr.f32.gmra.mrb[120].mxu1 %v6374_v10  ;;  %v6387_v10 = vld [vmem:[%s15067_s4 + $0x5e8] sm:$0xff] }
 0x2f1   :  { %v12547_v61 = vadd.f32 %v7008_v45, %v7007_v56  ;;  %2451 = vmatprep.mubr.f32.mxu1 %v6379_v46  ;;  %v7167_v6 = vpop.f32.mrb[78].mxu0 }
 0x2f2   :  { %v7168_v33 = vpop.f32.mrb[79].mxu0 }
 0x2f3   :  { %v7010_v22 = vpop.f32.mrb[16].mxu1  ;;  %v12555_v29 = vadd.f32 %v7168_v33, %v7167_v6 }
 0x2f4   :  { %v7011_v26 = vpop.f32.mrb[17].mxu1  ;;  %2452 = vmatmul.mubr.f32.gmra.mrb[122].mxu1 %v6378_v5  ;;  %v6386_v5 = vld [vmem:[%s15067_s4 + $0x5e0] sm:$0xff] }
 0x2f5   :  { %v12557_v23 = vadd.f32 %v7011_v26, %v7010_v22  ;;  %2456 = vmatprep.mubr.f32.mxu1 %v6383_v47  ;;  %v7170_v42 = vpop.f32.mrb[80].mxu0  ;;  %v6407_v47 = vld [vmem:[%s15067_s4 + $0x608] sm:$0xff] }
 0x2f6   :  { %v7171_v48 = vpop.f32.mrb[81].mxu0 }
 0x2f7   :  { %v7013_v46 = vpop.f32.mrb[18].mxu1  ;;  %v12565_v59 = vadd.f32 %v7171_v48, %v7170_v42 }
 0x2f8   :  { %v7014_v56 = vpop.f32.mrb[19].mxu1  ;;  %2457 = vmatmul.mubr.f32.gmra.mrb[124].mxu1 %v6382_v19  ;;  %v6406_v19 = vld [vmem:[%s15067_s4 + $0x600] sm:$0xff] }
 0x2f9   :  { %v12567_v45 = vadd.f32 %v7014_v56, %v7013_v46  ;;  %2461 = vmatprep.mubr.f32.mxu1 %v6387_v10  ;;  %v7173_v6 = vpop.f32.mrb[82].mxu0  ;;  %v6411_v46 = vld [vmem:[%s15067_s4 + $0x628] sm:$0xff] }
 0x2fa   :  { %v7174_v33 = vpop.f32.mrb[83].mxu0 }
 0x2fb   :  { %v7016_v22 = vpop.f32.mrb[20].mxu1  ;;  %v12575_v26 = vadd.f32 %v7174_v33, %v7173_v6 }
 0x2fc   :  { %v7017_v42 = vpop.f32.mrb[21].mxu1  ;;  %2462 = vmatmul.mubr.f32.gmra.mrb[126].mxu1 %v6386_v5  ;;  %v6410_v5 = vld [vmem:[%s15067_s4 + $0x620] sm:$0xff] }
 0x2fd   :  { %v12577_v48 = vadd.f32 %v7017_v42, %v7016_v22  ;;  %2919 = vmatprep.mubr.f32.mxu1 %v6407_v47  ;;  %v7176_v10 = vpop.f32.mrb[84].mxu0  ;;  %v6415_v22 = vld [vmem:[%s15067_s4 + $0x648] sm:$0xff] }
 0x2fe   :  { %v7177_v56 = vpop.f32.mrb[85].mxu0 }
 0x2ff   :  { %v7019_v21 = vpop.f32.mrb[22].mxu1  ;;  %v12585_v3 = vadd.f32 %v7177_v56, %v7176_v10 }
 0x300   :  { %v7020_v6 = vpop.f32.mrb[23].mxu1  ;;  %2920 = vmatmul.mubr.f32.vlgmr.msra.gmra.mrb[128].mxu1 %v6406_v19 }
 0x301   :  { %v12587_v33 = vadd.f32 %v7020_v6, %v7019_v21  ;;  %9623 = vmatpush3.bf16.msra.mxu1 %v11877_v25  ;;  %2924 = vmatprep.mubr.f32.mxu1 %v6411_v46  ;;  %v7179_v47 = vpop.f32.mrb[86].mxu0  ;;  %v6414_v46 = vld [vmem:[%s15067_s4 + $0x640] sm:$0xff] }
 0x302   :  { %9625 = vmatprep.subr.bf16.mxu1 %v11879_v31  ;;  %v7180_v42 = vpop.f32.mrb[87].mxu0 }
 0x303   :  { %v7022_v10 = vpop.f32.mrb[24].mxu1  ;;  %v12597_v56 = vadd.f32 %v7180_v42, %v7179_v47 }
 0x304   :  { %v7023_v21 = vpop.f32.mrb[25].mxu1  ;;  %2925 = vmatmul.mubr.f32.gmra.mrb[130].mxu1 %v6410_v5 }
 0x305   :  { %v12599_v19 = vadd.f32 %v7023_v21, %v7022_v10  ;;  %9627 = vmatpush3.bf16.msra.mxu1 %v11881_v34  ;;  %2929 = vmatprep.mubr.f32.mxu1 %v6415_v22  ;;  %v7182_v6 = vpop.f32.mrb[88].mxu0  ;;  %v6418_v22 = vld [vmem:[%s15067_s4 + $0x660] sm:$0xff] }
 0x306   :  { %9629 = vmatprep.subr.bf16.mxu1 %v11884_v14  ;;  %v7183_v47 = vpop.f32.mrb[89].mxu0 }
 0x307   :  { %v7025_v42 = vpop.f32.mrb[26].mxu1  ;;  %v12609_v63 = vadd.f32 %v7183_v47, %v7182_v6 }
 0x308   :  { %v7026_v5 = vpop.f32.mrb[27].mxu1  ;;  %2930 = vmatmul.mubr.f32.gmra.mrb[132].mxu1 %v6414_v46 }
 0x309   :  { %v12611_v10 = vadd.f32 %v7026_v5, %v7025_v42  ;;  %9631 = vmatpush3.bf16.msra.mxu1 %v11886_v12  ;;  %2934 = vmatprep.mubr.f32.mxu1 %v6419_v13  ;;  %v7185_v21 = vpop.f32.mrb[90].mxu0  ;;  %v6422_v13 = vld [vmem:[%s15067_s4 + $0x680] sm:$0xff] }
 0x30a   :  { %9633 = vmatprep.subr.bf16.mxu1 %v11888_v20  ;;  %v7186_v6 = vpop.f32.mrb[91].mxu0 }
 0x30b   :  { %v7028_v47 = vpop.f32.mrb[28].mxu1  ;;  %v12621_v32 = vadd.f32 %v7186_v6, %v7185_v21 }
 0x30c   :  { %v7029_v46 = vpop.f32.mrb[29].mxu1  ;;  %2935 = vmatmul.mubr.f32.gmra.mrb[134].mxu1 %v6418_v22 }
 0x30d   :  { %15407 = vst [vmem:[#allocation51_spill] sm:$0xff] %v12621_v32  ;;  %v12623_v42 = vadd.f32 %v7029_v46, %v7028_v47  ;;  %9635 = vmatpush3.bf16.msra.mxu1 %v11890_v37  ;;  %2939 = vmatprep.mubr.f32.mxu1 %v6423_v4  ;;  %v7188_v5 = vpop.f32.mrb[92].mxu0  ;;  %v6426_v4 = vld [vmem:[%s15067_s4 + $0x6a0] sm:$0xff] }
 0x30e   :  { %9637 = vmatprep.subr.bf16.mxu1 %v11893_v15  ;;  %v7189_v21 = vpop.f32.mrb[93].mxu0 }
 0x30f   :  { %v7031_v6 = vpop.f32.mrb[30].mxu1  ;;  %v12633_v9 = vadd.f32 %v7189_v21, %v7188_v5 }
 0x310   :  { %v7032_v22 = vpop.f32.mrb[31].mxu1  ;;  %2940 = vmatmul.mubr.f32.gmra.mrb[136].mxu1 %v6422_v13 }
 0x311   :  { %15408 = vst [vmem:[#allocation14_spill] sm:$0xff] %v12633_v9  ;;  %v12635_v47 = vadd.f32 %v7032_v22, %v7031_v6  ;;  %9639 = vmatpush3.bf16.msra.mxu1 %v11895_v55  ;;  %2944 = vmatprep.mubr.f32.mxu1 %v6427_v49  ;;  %v7191_v46 = vpop.f32.mrb[94].mxu0  ;;  %v6430_v49 = vld [vmem:[%s15067_s4 + $0x6c0] sm:$0xff]  ;;  %v6435_v22 = vld [vmem:[%s15067_s4 + $0x6e8] sm:$0xff] }
 0x312   :  { %9641 = vmatprep.subr.bf16.mxu1 %v11897_v18  ;;  %v7192_v5 = vpop.f32.mrb[95].mxu0 }
 0x313   :  { %v7066_v21 = vpop.f32.mrb[32].mxu1  ;;  %v12645_v9 = vadd.f32 %v7192_v5, %v7191_v46 }
 0x314   :  { %v7067_v13 = vpop.f32.mrb[33].mxu1  ;;  %2945 = vmatmul.mubr.f32.gmra.mrb[138].mxu1 %v6426_v4 }
 0x315   :  { %v7068_v6 = vadd.f32 %v7067_v13, %v7066_v21  ;;  %9643 = vmatpush3.bf16.msra.mxu1 %v11899_v36  ;;  %2949 = vmatprep.mubr.f32.mxu1 %v6431_v52  ;;  %v6434_v52 = vld [vmem:[%s15067_s4 + $0x6e0] sm:$0xff]  ;;  %v6439_v21 = vld [vmem:[%s15067_s4 + $0x708] sm:$0xff] }
 0x316   :  { %9645 = vmatprep.subr.bf16.mxu1 %v11902_v27 }
 0x317   :  { %v7069_v32 = vpop.f32.mrb[34].mxu1  ;;  %v12656_v46 = vadd.f32 %v7068_v6, %v12450_v39 }
 0x318   :  { %v7070_v5 = vpop.f32.mrb[35].mxu1  ;;  %2950 = vmatmul.mubr.f32.gmra.mrb[140].mxu1 %v6430_v49  ;;  %v6438_v49 = vld [vmem:[%s15067_s4 + $0x700] sm:$0xff] }
 0x319   :  { %15409 = vst [vmem:[#allocation53_spill] sm:$0xff] %v12656_v46  ;;  %v7071_v4 = vadd.f32 %v7070_v5, %v7069_v32  ;;  %9647 = vmatpush3.bf16.msra.mxu1 %v11904_v53  ;;  %2954 = vmatprep.mubr.f32.mxu1 %v6435_v22  ;;  %v6443_v22 = vld [vmem:[%s15067_s4 + $0x728] sm:$0xff] }
 0x31a   :  { %9649 = vmatprep.subr.bf16.mxu1 %v15406_v44 }
 0x31b   :  { %v12667_v13 = vadd.f32 %v7071_v4, %v12468_v0  ;;  %v7072_v39 = vpop.f32.mrb[36].mxu1 }
 0x31c   :  { %v7073_v6 = vpop.f32.mrb[37].mxu1  ;;  %2955 = vmatmul.mubr.f32.gmra.mrb[142].mxu1 %v6434_v52 }
 0x31d   :  { %15410 = vst [vmem:[#allocation13_spill] sm:$0xff] %v12667_v13  ;;  %v7074_v32 = vadd.f32 %v7073_v6, %v7072_v39  ;;  %9651 = vmatpush3.bf16.msra.mxu1 %v11906_v24  ;;  %2959 = vmatprep.mubr.f32.mxu1 %v6439_v21  ;;  %v6442_v21 = vld [vmem:[%s15067_s4 + $0x720] sm:$0xff]  ;;  %v6447_v39 = vld [vmem:[%s15067_s4 + $0x748] sm:$0xff] }
 0x31e   :  { %9717 = vmatprep.subr.bf16.mxu1 %v11875_v28 }
 0x31f   :  { %v7075_v5 = vpop.f32.mrb[38].mxu1  ;;  %v12678_v0 = vadd.f32 %v7074_v32, %v12486_v11  ;;  %v6446_v32 = vld [vmem:[%s15067_s4 + $0x740] sm:$0xff] }
 0x320   :  { %v7076_v4 = vpop.f32.mrb[39].mxu1  ;;  %2960 = vmatmul.mubr.f32.gmra.mrb[144].mxu1 %v6438_v49  ;;  %v6451_v49 = vld [vmem:[%s15067_s4 + $0x768] sm:$0xff] }
 0x321   :  { %v7077_v52 = vadd.f32 %v7076_v4, %v7075_v5  ;;  %2964 = vmatprep.mubr.f32.mxu1 %v6443_v22 }
 0x323   :  { %v7078_v6 = vpop.f32.mrb[40].mxu1  ;;  %v12687_v13 = vadd.f32 %v7077_v52, %v12507_v35  ;;  %v6455_v52 = vld [vmem:[%s15067_s4 + $0x788] sm:$0xff] }
 0x324   :  { %v7079_v46 = vpop.f32.mrb[41].mxu1  ;;  %2965 = vmatmul.mubr.f32.gmra.mrb[146].mxu1 %v6442_v21 }
 0x325   :  { %v7080_v11 = vadd.f32 %v7079_v46, %v7078_v6  ;;  %2969 = vmatprep.mubr.f32.mxu1 %v6447_v39  ;;  %v6450_v46 = vld [vmem:[%s15067_s4 + $0x760] sm:$0xff] }
 0x327   :  { %v7081_v22 = vpop.f32.mrb[42].mxu1  ;;  %v12696_v5 = vadd.f32 %v7080_v11, %v12517_v43  ;;  %v6454_v11 = vld [vmem:[%s15067_s4 + $0x780] sm:$0xff] }
 0x328   :  { %v7082_v4 = vpop.f32.mrb[43].mxu1  ;;  %2970 = vmatmul.mubr.f32.gmra.mrb[148].mxu1 %v6446_v32  ;;  %v6459_v32 = vld [vmem:[%s15067_s4 + $0x7a8] sm:$0xff] }
 0x329   :  { %v7083_v35 = vadd.f32 %v7082_v4, %v7081_v22  ;;  %2974 = vmatprep.mubr.f32.mxu1 %v6451_v49 }
 0x32b   :  { %v7084_v21 = vpop.f32.mrb[44].mxu1  ;;  %v12705_v39 = vadd.f32 %v7083_v35, %v12527_v17  ;;  %v6458_v35 = vld [vmem:[%s15067_s4 + $0x7a0] sm:$0xff] }
 0x32c   :  { %v7085_v6 = vpop.f32.mrb[45].mxu1  ;;  %2975 = vmatmul.mubr.f32.gmra.mrb[150].mxu1 %v6450_v46  ;;  %v6463_v46 = vld [vmem:[%s15067_s4 + $0x7c8] sm:$0xff] }
 0x32d   :  { %v7086_v43 = vadd.f32 %v7085_v6, %v7084_v21  ;;  %2979 = vmatprep.mubr.f32.mxu1 %v6455_v52 }
 0x32f   :  { %v7087_v49 = vpop.f32.mrb[46].mxu1  ;;  %v12714_v22 = vadd.f32 %v7086_v43, %v12537_v38  ;;  %v6462_v43 = vld [vmem:[%s15067_s4 + $0x7c0] sm:$0xff] }
 0x330   :  { %v7088_v4 = vpop.f32.mrb[47].mxu1  ;;  %2980 = vmatmul.mubr.f32.gmra.mrb[152].mxu1 %v6454_v11  ;;  %v6467_v11 = vld [vmem:[%s15067_s4 + $0x7e8] sm:$0xff] }
 0x331   :  { %v7089_v17 = vadd.f32 %v7088_v4, %v7087_v49  ;;  %2984 = vmatprep.mubr.f32.mxu1 %v6459_v32 }
 0x333   :  { %v7090_v52 = vpop.f32.mrb[48].mxu1  ;;  %v12723_v21 = vadd.f32 %v7089_v17, %v12547_v61  ;;  %v6466_v17 = vld [vmem:[%s15067_s4 + $0x7e0] sm:$0xff] }
 0x334   :  { %v7091_v6 = vpop.f32.mrb[49].mxu1  ;;  %2985 = vmatmul.mubr.f32.gmra.mrb[154].mxu1 %v6458_v35  ;;  %v6409_v35 = vld [vmem:[%s15067_s4 + $0x618] sm:$0xff] }
 0x335   :  { %v7092_v38 = vadd.f32 %v7091_v6, %v7090_v52  ;;  %2989 = vmatprep.mubr.f32.mxu1 %v6463_v46 }
 0x337   :  { %v7093_v32 = vpop.f32.mrb[50].mxu1  ;;  %v12732_v49 = vadd.f32 %v7092_v38, %v12557_v23  ;;  %v6408_v38 = vld [vmem:[%s15067_s4 + $0x610] sm:$0xff] }
 0x338   :  { %v7094_v4 = vpop.f32.mrb[51].mxu1  ;;  %2990 = vmatmul.mubr.f32.gmra.mrb[156].mxu1 %v6462_v43  ;;  %v6413_v43 = vld [vmem:[%s15067_s4 + $0x638] sm:$0xff] }
 0x339   :  { %v7095_v61 = vadd.f32 %v7094_v4, %v7093_v32  ;;  %2994 = vmatprep.mubr.f32.mxu1 %v6467_v11 }
 0x33b   :  { %v7096_v46 = vpop.f32.mrb[52].mxu1  ;;  %v12741_v52 = vadd.f32 %v7095_v61, %v12567_v45  ;;  %v6412_v61 = vld [vmem:[%s15067_s4 + $0x630] sm:$0xff] }
 0x33c   :  { %v7097_v6 = vpop.f32.mrb[53].mxu1  ;;  %2995 = vmatmul.mubr.f32.gmra.mrb[158].mxu1 %v6466_v17  ;;  %v6417_v17 = vld [vmem:[%s15067_s4 + $0x658] sm:$0xff] }
 0x33d   :  { %v7098_v23 = vadd.f32 %v7097_v6, %v7096_v46  ;;  %3064 = vmatprep.mubr.f32.mxu1 %v6409_v35 }
 0x33f   :  { %v7099_v11 = vpop.f32.mrb[54].mxu1  ;;  %v12750_v32 = vadd.f32 %v7098_v23, %v12577_v48  ;;  %v6416_v23 = vld [vmem:[%s15067_s4 + $0x650] sm:$0xff] }
 0x340   :  { %v7100_v4 = vpop.f32.mrb[55].mxu1  ;;  %3065 = vmatmul.mubr.f32.vlgmr.msra.gmra.mrb[160].mxu1 %v6408_v38  ;;  %v6421_v38 = vld [vmem:[%s15067_s4 + $0x678] sm:$0xff] }
 0x341   :  { %v7101_v45 = vadd.f32 %v7100_v4, %v7099_v11  ;;  %9719 = vmatpush3.bf16.msra.mxu1 %v11877_v25  ;;  %3069 = vmatprep.mubr.f32.mxu1 %v6413_v43 }
 0x342   :  { %9721 = vmatprep.subr.bf16.mxu1 %v11879_v31 }
 0x343   :  { %v7102_v35 = vpop.f32.mrb[56].mxu1  ;;  %v12761_v48 = vadd.f32 %v7101_v45, %v12587_v33  ;;  %v6420_v45 = vld [vmem:[%s15067_s4 + $0x670] sm:$0xff] }
 0x344   :  { %v7103_v46 = vpop.f32.mrb[57].mxu1  ;;  %3070 = vmatmul.mubr.f32.gmra.mrb[162].mxu1 %v6412_v61  ;;  %v6425_v61 = vld [vmem:[%s15067_s4 + $0x698] sm:$0xff] }
 0x345   :  { %v7104_v6 = vadd.f32 %v7103_v46, %v7102_v35  ;;  %9723 = vmatpush3.bf16.msra.mxu1 %v11881_v34  ;;  %3074 = vmatprep.mubr.f32.mxu1 %v6417_v17 }
 0x346   :  { %9725 = vmatprep.subr.bf16.mxu1 %v11884_v14 }
 0x347   :  { %v7105_v43 = vpop.f32.mrb[58].mxu1  ;;  %v12772_v33 = vadd.f32 %v7104_v6, %v12599_v19  ;;  %v6424_v6 = vld [vmem:[%s15067_s4 + $0x690] sm:$0xff] }
 0x348   :  { %v7106_v11 = vpop.f32.mrb[59].mxu1  ;;  %3075 = vmatmul.mubr.f32.gmra.mrb[164].mxu1 %v6416_v23  ;;  %v6429_v23 = vld [vmem:[%s15067_s4 + $0x6b8] sm:$0xff] }
 0x349   :  { %v7107_v4 = vadd.f32 %v7106_v11, %v7105_v43  ;;  %9727 = vmatpush3.bf16.msra.mxu1 %v11886_v12  ;;  %3079 = vmatprep.mubr.f32.mxu1 %v6421_v38 }
 0x34a   :  { %9729 = vmatprep.subr.bf16.mxu1 %v11888_v20 }
 0x34b   :  { %v7108_v17 = vpop.f32.mrb[60].mxu1  ;;  %v12783_v19 = vadd.f32 %v7107_v4, %v12611_v10  ;;  %v6428_v4 = vld [vmem:[%s15067_s4 + $0x6b0] sm:$0xff] }
 0x34c   :  { %v7109_v35 = vpop.f32.mrb[61].mxu1  ;;  %3080 = vmatmul.mubr.f32.gmra.mrb[166].mxu1 %v6420_v45  ;;  %v6433_v45 = vld [vmem:[%s15067_s4 + $0x6d8] sm:$0xff] }
 0x34d   :  { %v7110_v46 = vadd.f32 %v7109_v35, %v7108_v17  ;;  %9731 = vmatpush3.bf16.msra.mxu1 %v11890_v37  ;;  %3084 = vmatprep.mubr.f32.mxu1 %v6425_v61 }
 0x34e   :  { %9733 = vmatprep.subr.bf16.mxu1 %v11893_v15 }
 0x34f   :  { %v7111_v38 = vpop.f32.mrb[62].mxu1  ;;  %v12794_v10 = vadd.f32 %v7110_v46, %v12623_v42  ;;  %v6432_v46 = vld [vmem:[%s15067_s4 + $0x6d0] sm:$0xff] }
 0x350   :  { %v7112_v43 = vpop.f32.mrb[63].mxu1  ;;  %3085 = vmatmul.mubr.f32.gmra.mrb[168].mxu1 %v6424_v6 }
 0x351   :  { %v7113_v11 = vadd.f32 %v7112_v43, %v7111_v38  ;;  %9735 = vmatpush3.bf16.msra.mxu1 %v11895_v55  ;;  %3089 = vmatprep.mubr.f32.mxu1 %v6429_v23  ;;  %v1581_v43 = vld [vmem:[%s15068_s5 + $0x10] sm:$0xff] }
 0x352   :  { %9737 = vmatprep.subr.bf16.mxu1 %v11897_v18 }
 0x353   :  { %v7226_v61 = vpop.f32.mrb[64].mxu1  ;;  %v12805_v42 = vadd.f32 %v7113_v11, %v12635_v47  ;;  %v6437_v47 = vld [vmem:[%s15067_s4 + $0x6f8] sm:$0xff] }
 0x354   :  { %v7227_v17 = vpop.f32.mrb[65].mxu1  ;;  %3090 = vmatmul.mubr.f32.gmra.mrb[170].mxu1 %v6428_v4  ;;  %v1582_v11 = vld [vmem:[%s15068_s5 + $0x18] sm:$0xff] }
 0x355   :  { %v7228_v35 = vadd.f32 %v7227_v17, %v7226_v61  ;;  %9739 = vmatpush3.bf16.msra.mxu1 %v11899_v36  ;;  %3094 = vmatprep.mubr.f32.mxu1 %v6433_v45  ;;  %v9464_v17 = vpack.c.bf16 %v1582_v11, %v1581_v43 }
 0x356   :  { %9741 = vmatprep.subr.bf16.mxu1 %v11902_v27 }
 0x357   :  { %v7229_v6 = vpop.f32.mrb[66].mxu1  ;;  %v1872_v23 = vadd.f32 %v7228_v35, %v12466_v51  ;;  %v6436_v51 = vld [vmem:[%s15067_s4 + $0x6f0] sm:$0xff] }
 0x358   :  { %v7230_v38 = vpop.f32.mrb[67].mxu1  ;;  %3095 = vmatmul.mubr.f32.gmra.mrb[172].mxu1 %v6432_v46  ;;  %v6441_v46 = vld [vmem:[%s15067_s4 + $0x718] sm:$0xff] }
 0x359   :  { %v7231_v4 = vadd.f32 %v7230_v38, %v7229_v6  ;;  %9743 = vmatpush3.bf16.msra.mxu1 %v11904_v53  ;;  %8818 = vmatprep.mubr.f32.mxu0 %v1872_v23  ;;  %v1583_v6 = vld [vmem:[%s15068_s5 + $0x20] sm:$0xff]  ;;  %v1584_v23 = vld [vmem:[%s15068_s5 + $0x28] sm:$0xff] }
 0x35a   :  { %9745 = vmatprep.subr.bf16.mxu1 %v15406_v44  ;;  %3099 = vmatprep.mubr.f32.mxu1 %v6437_v47  ;;  %v6445_v47 = vld [vmem:[%s15067_s4 + $0x738] sm:$0xff] }
 0x35b   :  { %v1877_v45 = vadd.f32 %v7231_v4, %v12478_v58  ;;  %v7232_v61 = vpop.f32.mrb[68].mxu1  ;;  %v6440_v58 = vld [vmem:[%s15067_s4 + $0x710] sm:$0xff]  ;;  %v9468_v4 = vpack.c.bf16 %v1584_v23, %v1583_v6 }
 0x35c   :  { %v7233_v35 = vpop.f32.mrb[69].mxu1  ;;  %3100 = vmatmul.mubr.f32.gmra.mrb[174].mxu1 %v6436_v51 }
 0x35d   :  { %v7234_v38 = vadd.f32 %v7233_v35, %v7232_v61  ;;  %9747 = vmatpush3.bf16.msra.mxu1 %v11906_v24  ;;  %8819 = vmatmul.mubr.f32.vlgmr.msra.gmra.mrb[96].mxu0 %v1877_v45  ;;  %v1585_v45 = vld [vmem:[%s15068_s5 + $0x30] sm:$0xff] }
 0x35e   :  { %9463 = vmatpush3.bf16.msra.mxu0 %v12502_v60  ;;  %9781 = vmatprep.subr.bf16.mxu1 %v11825_v1  ;;  %v1586_v60 = vld [vmem:[%s15068_s5 + $0x38] sm:$0xff]  ;;  %v6444_v35 = vld [vmem:[%s15067_s4 + $0x730] sm:$0xff] }
 0x35f   :  { %v7235_v43 = vpop.f32.mrb[70].mxu1  ;;  %3104 = vmatprep.mubr.f32.mxu1 %v6441_v46  ;;  %9465 = vmatprep.subr.bf16.mxu0 %v9464_v17  ;;  %v1882_v11 = vadd.f32 %v7234_v38, %v12504_v30  ;;  %v6449_v30 = vld [vmem:[%s15067_s4 + $0x758] sm:$0xff]  ;;  %v9472_v23 = vpack.c.bf16 %v1586_v60, %v1585_v45 }
 0x360   :  { %v7236_v51 = vpop.f32.mrb[71].mxu1  ;;  %3105 = vmatmul.mubr.f32.gmra.mrb[176].mxu1 %v6440_v58  ;;  %v1587_v58 = vld [vmem:[%s15068_s5 + $0x40] sm:$0xff] }
 0x361   :  { %v7237_v61 = vadd.f32 %v7236_v51, %v7235_v43  ;;  %8821 = vmatprep.mubr.f32.mxu0 %v1882_v11  ;;  %3109 = vmatprep.mubr.f32.mxu1 %v6445_v47  ;;  %v1588_v47 = vld [vmem:[%s15068_s5 + $0x48] sm:$0xff]  ;;  %v6448_v43 = vld [vmem:[%s15067_s4 + $0x750] sm:$0xff] }
 0x362   :  { %9467 = vmatpush3.bf16.msra.mxu0 %v9464_v17  ;;  %v9476_v45 = vpack.c.bf16 %v1588_v47, %v1587_v58  ;;  %v1591_v47 = vld [vmem:[%s15068_s5 + $0x60] sm:$0xff] }
 0x363   :  { %v7238_v46 = vpop.f32.mrb[72].mxu1  ;;  %9469 = vmatprep.subr.bf16.mxu0 %v9468_v4  ;;  %v1887_v6 = vadd.f32 %v7237_v61, %v12515_v7  ;;  %v6453_v7 = vld [vmem:[%s15067_s4 + $0x778] sm:$0xff]  ;;  %v1589_v61 = vld [vmem:[%s15068_s5 + $0x50] sm:$0xff] }
 0x364   :  { %v7239_v38 = vpop.f32.mrb[73].mxu1  ;;  %3110 = vmatmul.mubr.f32.gmra.mrb[178].mxu1 %v6444_v35  ;;  %v1590_v35 = vld [vmem:[%s15068_s5 + $0x58] sm:$0xff] }
 0x365   :  { %v7240_v17 = vadd.f32 %v7239_v38, %v7238_v46  ;;  %8822 = vmatmul.mubr.f32.gmra.mrb[98].mxu0 %v1887_v6  ;;  %3114 = vmatprep.mubr.f32.mxu1 %v6449_v30  ;;  %v6452_v30 = vld [vmem:[%s15067_s4 + $0x770] sm:$0xff]  ;;  %v9480_v38 = vpack.c.bf16 %v1590_v35, %v1589_v61  ;;  %v1594_v35 = vld [vmem:[%s15068_s5 + $0x78] sm:$0xff] }
 0x366   :  { %9471 = vmatpush3.bf16.msra.mxu0 %v9468_v4  ;;  %v1593_v61 = vld [vmem:[%s15068_s5 + $0x70] sm:$0xff] }
 0x367   :  { %v7241_v11 = vpop.f32.mrb[74].mxu1  ;;  %9473 = vmatprep.subr.bf16.mxu0 %v9472_v23  ;;  %v1892_v51 = vadd.f32 %v7240_v17, %v12525_v54  ;;  %v6457_v54 = vld [vmem:[%s15067_s4 + $0x798] sm:$0xff]  ;;  %v1592_v17 = vld [vmem:[%s15068_s5 + $0x68] sm:$0xff] }
 0x368   :  { %v7242_v60 = vpop.f32.mrb[75].mxu1  ;;  %3115 = vmatmul.mubr.f32.gmra.mrb[180].mxu1 %v6448_v43  ;;  %v6456_v43 = vld [vmem:[%s15067_s4 + $0x790] sm:$0xff] }
 0x369   :  { %v7243_v4 = vadd.f32 %v7242_v60, %v7241_v11  ;;  %8824 = vmatprep.mubr.f32.mxu0 %v1892_v51  ;;  %3119 = vmatprep.mubr.f32.mxu1 %v6453_v7  ;;  %v9484_v51 = vpack.c.bf16 %v1592_v17, %v1591_v47  ;;  %v6464_v47 = vld [vmem:[%s15067_s4 + $0x7d0] sm:$0xff] }
 0x36a   :  { %9475 = vmatpush3.bf16.msra.mxu0 %v9472_v23 }
 0x36b   :  { %v7244_v46 = vpop.f32.mrb[76].mxu1  ;;  %9477 = vmatprep.subr.bf16.mxu0 %v9476_v45  ;;  %v1897_v6 = vadd.f32 %v7243_v4, %v12535_v8  ;;  %v6461_v8 = vld [vmem:[%s15067_s4 + $0x7b8] sm:$0xff]  ;;  %v6460_v4 = vld [vmem:[%s15067_s4 + $0x7b0] sm:$0xff] }
 0x36c   :  { %v7245_v58 = vpop.f32.mrb[77].mxu1  ;;  %3120 = vmatmul.mubr.f32.gmra.mrb[182].mxu1 %v6452_v30 }
 0x36d   :  { %v7246_v23 = vadd.f32 %v7245_v58, %v7244_v46  ;;  %8825 = vmatmul.mubr.f32.gmra.mrb[100].mxu0 %v1897_v6  ;;  %3124 = vmatprep.mubr.f32.mxu1 %v6457_v54  ;;  %v9488_v46 = vpack.c.bf16 %v1594_v35, %v1593_v61  ;;  %v6488_v61 = vld [vmem:[%s15067_s4 + $0x810] sm:$0xff] }
 0x36e   :  { %9479 = vmatpush3.bf16.msra.mxu0 %v9476_v45 }
 0x36f   :  { %v7247_v7 = vpop.f32.mrb[78].mxu1  ;;  %9481 = vmatprep.subr.bf16.mxu0 %v9480_v38  ;;  %v1902_v11 = vadd.f32 %v7246_v23, %v12545_v62  ;;  %v6465_v62 = vld [vmem:[%s15067_s4 + $0x7d8] sm:$0xff] }
 0x370   :  { %v7248_v60 = vpop.f32.mrb[79].mxu1  ;;  %3125 = vmatmul.mubr.f32.gmra.mrb[184].mxu1 %v6456_v43 }
 0x371   :  { %v7249_v45 = vadd.f32 %v7248_v60, %v7247_v7  ;;  %8827 = vmatprep.mubr.f32.mxu0 %v1902_v11  ;;  %3129 = vmatprep.mubr.f32.mxu1 %v6461_v8  ;;  %v6468_v8 = vld [vmem:[%s15067_s4 + $0x7f0] sm:$0xff]  ;;  %v6489_v7 = vld [vmem:[%s15067_s4 + $0x818] sm:$0xff] }
 0x372   :  { %9483 = vmatpush3.bf16.msra.mxu0 %v9480_v38  ;;  %v6469_v38 = vld [vmem:[%s15067_s4 + $0x7f8] sm:$0xff] }
 0x373   :  { %v7250_v30 = vpop.f32.mrb[80].mxu1  ;;  %9485 = vmatprep.subr.bf16.mxu0 %v9484_v51  ;;  %v1907_v54 = vadd.f32 %v7249_v45, %v12555_v29 }
 0x374   :  { %v7251_v6 = vpop.f32.mrb[81].mxu1  ;;  %3130 = vmatmul.mubr.f32.gmra.mrb[186].mxu1 %v6460_v4  ;;  %v6493_v4 = vld [vmem:[%s15067_s4 + $0x838] sm:$0xff] }
 0x375   :  { %v7252_v58 = vadd.f32 %v7251_v6, %v7250_v30  ;;  %8828 = vmatmul.mubr.f32.gmra.mrb[102].mxu0 %v1907_v54  ;;  %3134 = vmatprep.mubr.f32.mxu1 %v6465_v62 }
 0x376   :  { %9487 = vmatpush3.bf16.msra.mxu0 %v9484_v51 }
 0x377   :  { %v7253_v17 = vpop.f32.mrb[82].mxu1  ;;  %9489 = vmatprep.subr.bf16.mxu0 %v9488_v46  ;;  %v1912_v23 = vadd.f32 %v7252_v58, %v12565_v59 }
 0x378   :  { %v7254_v29 = vpop.f32.mrb[83].mxu1  ;;  %3135 = vmatmul.mubr.f32.gmra.mrb[188].mxu1 %v6464_v47  ;;  %v6496_v47 = vld [vmem:[%s15067_s4 + $0x850] sm:$0xff] }
 0x379   :  { %v7255_v43 = vadd.f32 %v7254_v29, %v7253_v17  ;;  %8830 = vmatprep.mubr.f32.mxu0 %v1912_v23  ;;  %3139 = vmatprep.mubr.f32.mxu1 %v6469_v38  ;;  %v6501_v17 = vld [vmem:[%s15067_s4 + $0x878] sm:$0xff] }
 0x37a   :  { %9491 = vmatpush3.bf16.msra.mxu0 %v9488_v46  ;;  %v6497_v46 = vld [vmem:[%s15067_s4 + $0x858] sm:$0xff] }
 0x37b   :  { %9525 = vmatprep.subr.bf16.mxu0 %v11875_v28  ;;  %v7256_v11 = vpop.f32.mrb[84].mxu1  ;;  %v1917_v51 = vadd.f32 %v7255_v43, %v12575_v26  ;;  %v6492_v26 = vld [vmem:[%s15067_s4 + $0x830] sm:$0xff] }
 0x37c   :  { %v7257_v59 = vpop.f32.mrb[85].mxu1  ;;  %3140 = vmatmul.mubr.f32.gmra.mrb[190].mxu1 %v6468_v8  ;;  %v6500_v43 = vld [vmem:[%s15067_s4 + $0x870] sm:$0xff] }
 0x37d   :  { %v7258_v60 = vadd.f32 %v7257_v59, %v7256_v11  ;;  %8831 = vmatmul.mubr.f32.gmra.mrb[104].mxu0 %v1917_v51  ;;  %3597 = vmatprep.mubr.f32.mxu1 %v6489_v7  ;;  %v15411_v7 = vld [vmem:[#allocation51_spill] sm:$0xff]  ;;  %v6505_v11 = vld [vmem:[%s15067_s4 + $0x898] sm:$0xff] }
 0x37f   :  { %v7259_v35 = vpop.f32.mrb[86].mxu1  ;;  %v1922_v45 = vadd.f32 %v7258_v60, %v12585_v3  ;;  %v15412_v60 = vld [vmem:[#allocation39_spill] sm:$0xff] }
 0x380   :  { %v7260_v62 = vpop.f32.mrb[87].mxu1  ;;  %3598 = vmatmul.mubr.f32.vlgmr.msra.gmra.mrb[192].mxu1 %v6488_v61  ;;  %v6504_v61 = vld [vmem:[%s15067_s4 + $0x890] sm:$0xff] }
 0x381   :  { %v7261_v30 = vadd.f32 %v7260_v62, %v7259_v35  ;;  %9783 = vmatpush3.bf16.msra.mxu1 %v11829_v16  ;;  %8833 = vmatprep.mubr.f32.mxu0 %v1922_v45  ;;  %v15413_v35 = vld [vmem:[#allocation41_spill] sm:$0xff] }
 0x382   :  { %9785 = vmatprep.subr.bf16.mxu1 %v11831_v57  ;;  %3602 = vmatprep.mubr.f32.mxu1 %v6493_v4  ;;  %v15414_v4 = vld [vmem:[#allocation14_spill] sm:$0xff] }
 0x383   :  { %v7262_v54 = vpop.f32.mrb[88].mxu1  ;;  %v1927_v3 = vadd.f32 %v7261_v30, %v12597_v56  ;;  %v6509_v30 = vld [vmem:[%s15067_s4 + $0x8b8] sm:$0xff] }
 0x384   :  { %v7263_v6 = vpop.f32.mrb[89].mxu1  ;;  %3603 = vmatmul.mubr.f32.gmra.mrb[194].mxu1 %v6492_v26 }
 0x385   :  { %v7264_v58 = vadd.f32 %v7263_v6, %v7262_v54  ;;  %9787 = vmatpush3.bf16.msra.mxu1 %v11835_v50  ;;  %8834 = vmatmul.mubr.f32.gmra.mrb[106].mxu0 %v1927_v3  ;;  %v15415_v3 = vld [vmem:[#allocation43_spill] sm:$0xff]  ;;  %v15416_v6 = vld [vmem:[#allocation45_spill] sm:$0xff] }
 0x386   :  { %9789 = vmatprep.subr.bf16.mxu1 %v11837_v41  ;;  %3607 = vmatprep.mubr.f32.mxu1 %v6497_v46  ;;  %v6508_v46 = vld [vmem:[%s15067_s4 + $0x8b0] sm:$0xff] }
 0x387   :  { %v7265_v38 = vpop.f32.mrb[90].mxu1  ;;  %v1932_v56 = vadd.f32 %v7264_v58, %v12609_v63 }
 0x388   :  { %v7266_v23 = vpop.f32.mrb[91].mxu1  ;;  %3608 = vmatmul.mubr.f32.gmra.mrb[196].mxu1 %v6496_v47  ;;  %v6513_v47 = vld [vmem:[%s15067_s4 + $0x8d8] sm:$0xff] }
 0x389   :  { %v7267_v29 = vadd.f32 %v7266_v23, %v7265_v38  ;;  %9791 = vmatpush3.bf16.msra.mxu1 %v11841_v40  ;;  %8836 = vmatprep.mubr.f32.mxu0 %v1932_v56  ;;  %v15417_v38 = vld [vmem:[#allocation47_spill] sm:$0xff]  ;;  %v15419_v23 = vld [vmem:[#allocation53_spill] sm:$0xff] }
 0x38a   :  { %9793 = vmatprep.subr.bf16.mxu1 %v11843_v2  ;;  %3612 = vmatprep.mubr.f32.mxu1 %v6501_v17  ;;  %v6512_v56 = vld [vmem:[%s15067_s4 + $0x8d0] sm:$0xff]  ;;  %v15418_v17 = vld [vmem:[#allocation49_spill] sm:$0xff] }
 0x38b   :  { %v7268_v8 = vpop.f32.mrb[92].mxu1  ;;  %v1937_v63 = vadd.f32 %v7267_v29, %v15411_v7  ;;  %v15420_v29 = vld [vmem:[#allocation12_spill] sm:$0xff]  ;;  %v6516_v7 = vld [vmem:[%s15067_s4 + $0x8f0] sm:$0xff] }
 0x38c   :  { %v7269_v51 = vpop.f32.mrb[93].mxu1  ;;  %3613 = vmatmul.mubr.f32.gmra.mrb[198].mxu1 %v6500_v43  ;;  %v6517_v43 = vld [vmem:[%s15067_s4 + $0x8f8] sm:$0xff] }
 0x38d   :  { %v7270_v59 = vadd.f32 %v7269_v51, %v7268_v8  ;;  %9795 = vmatpush3.bf16.msra.mxu1 %v15412_v60  ;;  %8837 = vmatmul.mubr.f32.gmra.mrb[108].mxu0 %v1937_v63  ;;  %v15422_v8 = vld [vmem:[#allocation50_spill] sm:$0xff]  ;;  %v6521_v63 = vld [vmem:[%s15067_s4 + $0x918] sm:$0xff]  ;;  %v6520_v51 = vld [vmem:[%s15067_s4 + $0x910] sm:$0xff] }
 0x38e   :  { %9797 = vmatprep.subr.bf16.mxu1 %v15413_v35  ;;  %3617 = vmatprep.mubr.f32.mxu1 %v6505_v11  ;;  %v15423_v11 = vld [vmem:[#allocation11_spill] sm:$0xff] }
 0x38f   :  { %v7271_v45 = vpop.f32.mrb[94].mxu1  ;;  %v1942_v62 = vadd.f32 %v7270_v59, %v15414_v4  ;;  %v6537_v59 = vld [vmem:[%s15067_s4 + $0x998] sm:$0xff] }
 0x390   :  { %v7272_v26 = vpop.f32.mrb[95].mxu1  ;;  %3618 = vmatmul.mubr.f32.gmra.mrb[200].mxu1 %v6504_v61 }
 0x391   :  { %v7273_v54 = vadd.f32 %v7272_v26, %v7271_v45  ;;  %9799 = vmatpush3.bf16.msra.mxu1 %v15415_v3  ;;  %8839 = vmatprep.mubr.f32.mxu0 %v1942_v62  ;;  %v6540_v26 = vld [vmem:[%s15067_s4 + $0x9b0] sm:$0xff] }
 0x392   :  { %9801 = vmatprep.subr.bf16.mxu1 %v15416_v6  ;;  %3622 = vmatprep.mubr.f32.mxu1 %v6509_v30 }
 0x393   :  { %v1947_v58 = vadd.f32 %v7273_v54, %v12645_v9  ;;  %v15421_v9 = vld [vmem:[#allocation13_spill] sm:$0xff] }
 0x394   :  { %3623 = vmatmul.mubr.f32.gmra.mrb[202].mxu1 %v6508_v46 }
 0x395   :  { %9803 = vmatpush3.bf16.msra.mxu1 %v15417_v38  ;;  %8840 = vmatmul.mubr.f32.gmra.mrb[110].mxu0 %v1947_v58  ;;  %v6545_v58 = vld [vmem:[%s15067_s4 + $0x9d8] sm:$0xff] }
 0x396   :  { %9805 = vmatprep.subr.bf16.mxu1 %v15418_v17  ;;  %8874 = vmatprep.mubr.f32.mxu0 %v15419_v23 }
 0x397   :  { %3627 = vmatprep.mubr.f32.mxu1 %v6513_v47  ;;  %v6329_v47 = vld [vmem:[%s15067_s4 + $0x418] sm:$0xff] }
 0x398   :  { %3628 = vmatmul.mubr.f32.gmra.mrb[204].mxu1 %v6512_v56 }
 0x399   :  { %9807 = vmatpush3.bf16.msra.mxu1 %v15420_v29  ;;  %8875 = vmatmul.mubr.f32.vlgmr.msra.gmra.mrb[96].mxu0 %v15421_v9  ;;  %v6544_v9 = vld [vmem:[%s15067_s4 + $0x9d0] sm:$0xff] }
 0x39a   :  { %9527 = vmatpush3.bf16.msra.mxu0 %v11877_v25  ;;  %9809 = vmatprep.subr.bf16.mxu1 %v15422_v8 }
 0x39b   :  { %8877 = vmatprep.mubr.f32.mxu0 %v12678_v0  ;;  %9529 = vmatprep.subr.bf16.mxu0 %v11879_v31  ;;  %v6524_v0 = vld [vmem:[%s15067_s4 + $0x930] sm:$0xff] }
 0x39c   :  { %3632 = vmatprep.mubr.f32.mxu1 %v6517_v43  ;;  %v6328_v43 = vld [vmem:[%s15067_s4 + $0x410] sm:$0xff] }
 0x39d   :  { %3633 = vmatmul.mubr.f32.gmra.mrb[206].mxu1 %v6516_v7  ;;  %8878 = vmatmul.mubr.f32.gmra.mrb[98].mxu0 %v12687_v13  ;;  %v6525_v13 = vld [vmem:[%s15067_s4 + $0x938] sm:$0xff] }
 0x39e   :  { %9811 = vmatpush3.bf16.msra.mxu1 %v15423_v11  ;;  %9531 = vmatpush3.bf16.msra.mxu0 %v11881_v34 }
 0x39f   :  { %9877 = vmatprep.subr.bf16.mxu1 %v11825_v1  ;;  %8880 = vmatprep.mubr.f32.mxu0 %v12696_v5  ;;  %v6529_v5 = vld [vmem:[%s15067_s4 + $0x958] sm:$0xff] }
 0x3a0   :  { %9533 = vmatprep.subr.bf16.mxu0 %v11884_v14  ;;  %3637 = vmatprep.mubr.f32.mxu1 %v6521_v63 }
 0x3a1   :  { %3638 = vmatmul.mubr.f32.gmra.mrb[208].mxu1 %v6520_v51  ;;  %8881 = vmatmul.mubr.f32.gmra.mrb[100].mxu0 %v12705_v39  ;;  %v6528_v39 = vld [vmem:[%s15067_s4 + $0x950] sm:$0xff]  ;;  %v6333_v51 = vld [vmem:[%s15067_s4 + $0x438] sm:$0xff] }
 0x3a2   :  { %9535 = vmatpush3.bf16.msra.mxu0 %v11886_v12  ;;  %8883 = vmatprep.mubr.f32.mxu0 %v12714_v22  ;;  %v6533_v22 = vld [vmem:[%s15067_s4 + $0x978] sm:$0xff] }
 0x3a3   :  { %9537 = vmatprep.subr.bf16.mxu0 %v11888_v20  ;;  %3642 = vmatprep.mubr.f32.mxu1 %v6525_v13 }
 0x3a5   :  { %3643 = vmatmul.mubr.f32.gmra.mrb[210].mxu1 %v6524_v0  ;;  %8884 = vmatmul.mubr.f32.gmra.mrb[102].mxu0 %v12723_v21  ;;  %v6532_v21 = vld [vmem:[%s15067_s4 + $0x970] sm:$0xff] }
 0x3a6   :  { %9539 = vmatpush3.bf16.msra.mxu0 %v11890_v37  ;;  %8886 = vmatprep.mubr.f32.mxu0 %v12732_v49  ;;  %v7370_v49 = vpop.f32.mrb[96].mxu1 }
 0x3a7   :  { %9541 = vmatprep.subr.bf16.mxu0 %v11893_v15  ;;  %3647 = vmatprep.mubr.f32.mxu1 %v6529_v5 }
 0x3a9   :  { %3648 = vmatmul.mubr.f32.gmra.mrb[212].mxu1 %v6528_v39  ;;  %8887 = vmatmul.mubr.f32.gmra.mrb[104].mxu0 %v12741_v52  ;;  %v7371_v52 = vpop.f32.mrb[97].mxu1 }
 0x3aa   :  { %9543 = vmatpush3.bf16.msra.mxu0 %v11895_v55  ;;  %8889 = vmatprep.mubr.f32.mxu0 %v12750_v32  ;;  %v6536_v32 = vld [vmem:[%s15067_s4 + $0x990] sm:$0xff]  ;;  %v13048_v61 = vadd.f32 %v7371_v52, %v7370_v49  ;;  %v7373_v45 = vpop.f32.mrb[98].mxu1  ;;  %v6567_v52 = vld [vmem:[%s15067_s4 + $0xa08] sm:$0xff] }
 0x3ab   :  { %9545 = vmatprep.subr.bf16.mxu0 %v11897_v18  ;;  %3652 = vmatprep.mubr.f32.mxu1 %v6533_v22  ;;  %v7374_v4 = vpop.f32.mrb[99].mxu1  ;;  %v6548_v22 = vld [vmem:[%s15067_s4 + $0x9f0] sm:$0xff] }
 0x3ac   :  { %v13054_v62 = vadd.f32 %v7374_v4, %v7373_v45  ;;  %v7376_v30 = vpop.f32.mrb[100].mxu1 }
 0x3ad   :  { %3653 = vmatmul.mubr.f32.gmra.mrb[214].mxu1 %v6532_v21  ;;  %8890 = vmatmul.mubr.f32.gmra.mrb[106].mxu0 %v12761_v48  ;;  %v6541_v48 = vld [vmem:[%s15067_s4 + $0x9b8] sm:$0xff]  ;;  %v6332_v21 = vld [vmem:[%s15067_s4 + $0x430] sm:$0xff] }
 0x3ae   :  { %9547 = vmatpush3.bf16.msra.mxu0 %v11899_v36  ;;  %8892 = vmatprep.mubr.f32.mxu0 %v12772_v33  ;;  %v7377_v33 = vpop.f32.mrb[101].mxu1 }
 0x3af   :  { %9549 = vmatprep.subr.bf16.mxu0 %v11902_v27  ;;  %3657 = vmatprep.mubr.f32.mxu1 %v6537_v59  ;;  %v13062_v54 = vadd.f32 %v7377_v33, %v7376_v30  ;;  %v7379_v46 = vpop.f32.mrb[102].mxu1  ;;  %v6566_v33 = vld [vmem:[%s15067_s4 + $0xa00] sm:$0xff] }
 0x3b1   :  { %3658 = vmatmul.mubr.f32.gmra.mrb[216].mxu1 %v6536_v32  ;;  %8893 = vmatmul.mubr.f32.gmra.mrb[108].mxu0 %v12783_v19  ;;  %v7380_v19 = vpop.f32.mrb[103].mxu1  ;;  %v6337_v32 = vld [vmem:[%s15067_s4 + $0x458] sm:$0xff] }
 0x3b2   :  { %9551 = vmatpush3.bf16.msra.mxu0 %v11904_v53  ;;  %8895 = vmatprep.mubr.f32.mxu0 %v12794_v10  ;;  %v13071_v10 = vadd.f32 %v7380_v19, %v7379_v46  ;;  %v7382_v56 = vpop.f32.mrb[104].mxu1  ;;  %v6571_v19 = vld [vmem:[%s15067_s4 + $0xa28] sm:$0xff] }
 0x3b3   :  { %9553 = vmatprep.subr.bf16.mxu0 %v15406_v44  ;;  %3662 = vmatprep.mubr.f32.mxu1 %v6541_v48  ;;  %v7383_v23 = vpop.f32.mrb[105].mxu1 }
 0x3b4   :  { %v13081_v7 = vadd.f32 %v7383_v23, %v7382_v56  ;;  %v7385_v63 = vpop.f32.mrb[106].mxu1  ;;  %v6341_v56 = vld [vmem:[%s15067_s4 + $0x478] sm:$0xff] }
 0x3b5   :  { %3663 = vmatmul.mubr.f32.gmra.mrb[218].mxu1 %v6540_v26  ;;  %8896 = vmatmul.mubr.f32.gmra.mrb[110].mxu0 %v12805_v42  ;;  %v6549_v42 = vld [vmem:[%s15067_s4 + $0x9f8] sm:$0xff]  ;;  %v7386_v13 = vpop.f32.mrb[107].mxu1  ;;  %v6336_v26 = vld [vmem:[%s15067_s4 + $0x450] sm:$0xff] }
 0x3b6   :  { %9555 = vmatpush3.bf16.msra.mxu0 %v11906_v24  ;;  %3667 = vmatprep.mubr.f32.mxu1 %v6545_v58  ;;  %v13089_v0 = vadd.f32 %v7386_v13, %v7385_v63  ;;  %v7388_v5 = vpop.f32.mrb[108].mxu1  ;;  %v6340_v63 = vld [vmem:[%s15067_s4 + $0x470] sm:$0xff] }
 0x3b7   :  { %2531 = vmatprep.mubr.f32.mxu0 %v6329_v47  ;;  %v7389_v39 = vpop.f32.mrb[109].mxu1 }
 0x3b8   :  { %v13097_v49 = vadd.f32 %v7389_v39, %v7388_v5  ;;  %v7391_v59 = vpop.f32.mrb[110].mxu1  ;;  %v6345_v39 = vld [vmem:[%s15067_s4 + $0x498] sm:$0xff] }
 0x3b9   :  { %3668 = vmatmul.mubr.f32.gmra.mrb[220].mxu1 %v6544_v9  ;;  %2532 = vmatmul.mubr.f32.vlgmr.msra.gmra.mrb[112].mxu0 %v6328_v43  ;;  %v7392_v45 = vpop.f32.mrb[111].mxu1  ;;  %v6570_v43 = vld [vmem:[%s15067_s4 + $0xa20] sm:$0xff] }
 0x3ba   :  { %3672 = vmatprep.mubr.f32.mxu1 %v6549_v42  ;;  %2536 = vmatprep.mubr.f32.mxu0 %v6333_v51  ;;  %v13105_v4 = vadd.f32 %v7392_v45, %v7391_v59  ;;  %v7394_v48 = vpop.f32.mrb[112].mxu1  ;;  %v6575_v51 = vld [vmem:[%s15067_s4 + $0xa48] sm:$0xff] }
 0x3bb   :  { %v7395_v30 = vpop.f32.mrb[113].mxu1 }
 0x3bc   :  { %v13113_v46 = vadd.f32 %v7395_v30, %v7394_v48  ;;  %v7397_v58 = vpop.f32.mrb[114].mxu1  ;;  %v6579_v48 = vld [vmem:[%s15067_s4 + $0xa68] sm:$0xff] }
 0x3bd   :  { %3673 = vmatmul.mubr.f32.gmra.mrb[222].mxu1 %v6548_v22  ;;  %2537 = vmatmul.mubr.f32.gmra.mrb[114].mxu0 %v6332_v21  ;;  %v7398_v47 = vpop.f32.mrb[115].mxu1 }
 0x3be   :  { %3985 = vmatprep.mubr.f32.mxu1 %v6567_v52  ;;  %2541 = vmatprep.mubr.f32.mxu0 %v6337_v32  ;;  %v13121_v23 = vadd.f32 %v7398_v47, %v7397_v58  ;;  %v7400_v9 = vpop.f32.mrb[116].mxu1  ;;  %v6574_v52 = vld [vmem:[%s15067_s4 + $0xa40] sm:$0xff]  ;;  %v6344_v32 = vld [vmem:[%s15067_s4 + $0x490] sm:$0xff] }
 0x3bf   :  { %v7401_v42 = vpop.f32.mrb[117].mxu1  ;;  %v6578_v47 = vld [vmem:[%s15067_s4 + $0xa60] sm:$0xff] }
 0x3c0   :  { %v13134_v13 = vadd.f32 %v7401_v42, %v7400_v9  ;;  %v7403_v5 = vpop.f32.mrb[118].mxu1  ;;  %v6583_v9 = vld [vmem:[%s15067_s4 + $0xa88] sm:$0xff] }
 0x3c1   :  { %3986 = vmatmul.mubr.f32.vlgmr.msra.gmra.mrb[224].mxu1 %v6566_v33  ;;  %2542 = vmatmul.mubr.f32.gmra.mrb[116].mxu0 %v6336_v26  ;;  %v7404_v22 = vpop.f32.mrb[119].mxu1  ;;  %v6349_v26 = vld [vmem:[%s15067_s4 + $0x4b8] sm:$0xff] }
 0x3c2   :  { %9879 = vmatpush3.bf16.msra.mxu1 %v11829_v16  ;;  %3990 = vmatprep.mubr.f32.mxu1 %v6571_v19  ;;  %v13139_v21 = vadd.f32 %v7404_v22, %v7403_v5  ;;  %v6582_v5 = vld [vmem:[%s15067_s4 + $0xa80] sm:$0xff]  ;;  %v6587_v22 = vld [vmem:[%s15067_s4 + $0xaa8] sm:$0xff] }
 0x3c3   :  { %9881 = vmatprep.subr.bf16.mxu1 %v11831_v57  ;;  %2546 = vmatprep.mubr.f32.mxu0 %v6341_v56  ;;  %v7406_v59 = vpop.f32.mrb[120].mxu1  ;;  %v6348_v56 = vld [vmem:[%s15067_s4 + $0x4b0] sm:$0xff] }
 0x3c4   :  { %v7407_v45 = vpop.f32.mrb[121].mxu1 }
 0x3c5   :  { %3991 = vmatmul.mubr.f32.gmra.mrb[226].mxu1 %v6570_v43  ;;  %2547 = vmatmul.mubr.f32.gmra.mrb[118].mxu0 %v6340_v63  ;;  %v13152_v30 = vadd.f32 %v7407_v45, %v7406_v59  ;;  %v6353_v63 = vld [vmem:[%s15067_s4 + $0x4d8] sm:$0xff] }
 0x3c6   :  { %9883 = vmatpush3.bf16.msra.mxu1 %v11835_v50  ;;  %3995 = vmatprep.mubr.f32.mxu1 %v6575_v51 }
 0x3c7   :  { %9885 = vmatprep.subr.bf16.mxu1 %v11837_v41  ;;  %2551 = vmatprep.mubr.f32.mxu0 %v6345_v39  ;;  %15424 = vst [vmem:[#allocation54_spill] sm:$0xff] %v13152_v30  ;;  %v7409_v33 = vpop.f32.mrb[122].mxu1  ;;  %v6352_v39 = vld [vmem:[%s15067_s4 + $0x4d0] sm:$0xff] }
 0x3c8   :  { %v7410_v58 = vpop.f32.mrb[123].mxu1 }
 0x3c9   :  { %3996 = vmatmul.mubr.f32.gmra.mrb[228].mxu1 %v6574_v52  ;;  %2552 = vmatmul.mubr.f32.gmra.mrb[120].mxu0 %v6344_v32  ;;  %v13157_v19 = vadd.f32 %v7410_v58, %v7409_v33  ;;  %v6357_v52 = vld [vmem:[%s15067_s4 + $0x4f8] sm:$0xff]  ;;  %v6356_v33 = vld [vmem:[%s15067_s4 + $0x4f0] sm:$0xff] }
 0x3ca   :  { %9887 = vmatpush3.bf16.msra.mxu1 %v11841_v40  ;;  %4000 = vmatprep.mubr.f32.mxu1 %v6579_v48  ;;  %v6586_v48 = vld [vmem:[%s15067_s4 + $0xaa0] sm:$0xff] }
 0x3cb   :  { %15425 = vst [vmem:[#allocation16_spill] sm:$0xff] %v13157_v19  ;;  %9889 = vmatprep.subr.bf16.mxu1 %v11843_v2  ;;  %2556 = vmatprep.mubr.f32.mxu0 %v6349_v26  ;;  %v7412_v43 = vpop.f32.mrb[124].mxu1  ;;  %v6591_v26 = vld [vmem:[%s15067_s4 + $0xac8] sm:$0xff] }
 0x3cc   :  { %v7413_v42 = vpop.f32.mrb[125].mxu1 }
 0x3cd   :  { %4001 = vmatmul.mubr.f32.gmra.mrb[230].mxu1 %v6578_v47  ;;  %2557 = vmatmul.mubr.f32.gmra.mrb[122].mxu0 %v6348_v56  ;;  %v13173_v51 = vadd.f32 %v7413_v42, %v7412_v43  ;;  %v6361_v47 = vld [vmem:[%s15067_s4 + $0x518] sm:$0xff]  ;;  %v6590_v43 = vld [vmem:[%s15067_s4 + $0xac0] sm:$0xff]  ;;  %v6595_v42 = vld [vmem:[%s15067_s4 + $0xae8] sm:$0xff] }
 0x3ce   :  { %9891 = vmatpush3.bf16.msra.mxu1 %v15412_v60  ;;  %4005 = vmatprep.mubr.f32.mxu1 %v6583_v9 }
 0x3cf   :  { %15426 = vst [vmem:[#allocation55_spill] sm:$0xff] %v13173_v51  ;;  %9893 = vmatprep.subr.bf16.mxu1 %v15413_v35  ;;  %2561 = vmatprep.mubr.f32.mxu0 %v6353_v63  ;;  %v7415_v59 = vpop.f32.mrb[126].mxu1  ;;  %v6360_v63 = vld [vmem:[%s15067_s4 + $0x510] sm:$0xff] }
 0x3d0   :  { %v7416_v32 = vpop.f32.mrb[127].mxu1 }
 0x3d1   :  { %4006 = vmatmul.mubr.f32.gmra.mrb[232].mxu1 %v6582_v5  ;;  %2562 = vmatmul.mubr.f32.gmra.mrb[124].mxu0 %v6352_v39  ;;  %v13189_v45 = vadd.f32 %v7416_v32, %v7415_v59  ;;  %v6365_v39 = vld [vmem:[%s15067_s4 + $0x538] sm:$0xff]  ;;  %v6364_v32 = vld [vmem:[%s15067_s4 + $0x530] sm:$0xff] }
 0x3d2   :  { %9895 = vmatpush3.bf16.msra.mxu1 %v15415_v3  ;;  %4010 = vmatprep.mubr.f32.mxu1 %v6587_v22 }
 0x3d3   :  { %15427 = vst [vmem:[#allocation15_spill] sm:$0xff] %v13189_v45  ;;  %9897 = vmatprep.subr.bf16.mxu1 %v15416_v6  ;;  %2566 = vmatprep.mubr.f32.mxu0 %v6357_v52  ;;  %v7562_v58 = vpop.f32.mrb[128].mxu1  ;;  %v6594_v52 = vld [vmem:[%s15067_s4 + $0xae0] sm:$0xff] }
 0x3d4   :  { %v7563_v56 = vpop.f32.mrb[129].mxu1  ;;  %v6618_v45 = vld [vmem:[%s15067_s4 + $0xba0] sm:$0xff] }
 0x3d5   :  { %4011 = vmatmul.mubr.f32.gmra.mrb[234].mxu1 %v6586_v48  ;;  %2567 = vmatmul.mubr.f32.gmra.mrb[126].mxu0 %v6356_v33  ;;  %v13205_v9 = vadd.f32 %v7563_v56, %v7562_v58  ;;  %v6599_v48 = vld [vmem:[%s15067_s4 + $0xb08] sm:$0xff]  ;;  %v6598_v56 = vld [vmem:[%s15067_s4 + $0xb00] sm:$0xff] }
 0x3d6   :  { %9899 = vmatpush3.bf16.msra.mxu1 %v15417_v38  ;;  %4015 = vmatprep.mubr.f32.mxu1 %v6591_v26  ;;  %v6369_v26 = vld [vmem:[%s15067_s4 + $0x558] sm:$0xff] }
 0x3d7   :  { %9901 = vmatprep.subr.bf16.mxu1 %v15418_v17  ;;  %2571 = vmatprep.mubr.f32.mxu0 %v6361_v47  ;;  %v7565_v5 = vpop.f32.mrb[130].mxu1 }
 0x3d8   :  { %v7566_v22 = vpop.f32.mrb[131].mxu1 }
 0x3d9   :  { %4016 = vmatmul.mubr.f32.gmra.mrb[236].mxu1 %v6590_v43  ;;  %2572 = vmatmul.mubr.f32.gmra.mrb[128].mxu0 %v6360_v63  ;;  %v13221_v59 = vadd.f32 %v7566_v22, %v7565_v5  ;;  %v6368_v43 = vld [vmem:[%s15067_s4 + $0x550] sm:$0xff]  ;;  %v6603_v63 = vld [vmem:[%s15067_s4 + $0xb28] sm:$0xff] }
 0x3da   :  { %9903 = vmatpush3.bf16.msra.mxu1 %v15420_v29  ;;  %4020 = vmatprep.mubr.f32.mxu1 %v6595_v42  ;;  %v6373_v42 = vld [vmem:[%s15067_s4 + $0x578] sm:$0xff] }
 0x3db   :  { %9905 = vmatprep.subr.bf16.mxu1 %v15422_v8  ;;  %2576 = vmatprep.mubr.f32.mxu0 %v6365_v39  ;;  %v7568_v33 = vpop.f32.mrb[132].mxu1 }
 0x3dc   :  { %v7569_v58 = vpop.f32.mrb[133].mxu1 }
 0x3dd   :  { %4021 = vmatmul.mubr.f32.gmra.mrb[238].mxu1 %v6594_v52  ;;  %2577 = vmatmul.mubr.f32.gmra.mrb[130].mxu0 %v6364_v32  ;;  %v13237_v47 = vadd.f32 %v7569_v58, %v7568_v33  ;;  %v6602_v52 = vld [vmem:[%s15067_s4 + $0xb20] sm:$0xff]  ;;  %v6372_v32 = vld [vmem:[%s15067_s4 + $0x570] sm:$0xff]  ;;  %v6377_v33 = vld [vmem:[%s15067_s4 + $0x598] sm:$0xff] }
 0x3de   :  { %9907 = vmatpush3.bf16.msra.mxu1 %v15423_v11  ;;  %4025 = vmatprep.mubr.f32.mxu1 %v6599_v48  ;;  %v6607_v48 = vld [vmem:[%s15067_s4 + $0xb48] sm:$0xff] }
 0x3df   :  { %9973 = vmatprep.subr.bf16.mxu1 %v11825_v1  ;;  %2581 = vmatprep.mubr.f32.mxu0 %v6369_v26  ;;  %v7571_v5 = vpop.f32.mrb[134].mxu1 }
 0x3e0   :  { %v7572_v39 = vpop.f32.mrb[135].mxu1 }
 0x3e1   :  { %4026 = vmatmul.mubr.f32.gmra.mrb[240].mxu1 %v6598_v56  ;;  %2582 = vmatmul.mubr.f32.gmra.mrb[132].mxu0 %v6368_v43  ;;  %v13253_v22 = vadd.f32 %v7572_v39, %v7571_v5  ;;  %v6606_v43 = vld [vmem:[%s15067_s4 + $0xb40] sm:$0xff]  ;;  %v6381_v5 = vld [vmem:[%s15067_s4 + $0x5b8] sm:$0xff] }
 0x3e2   :  { %4030 = vmatprep.mubr.f32.mxu1 %v6603_v63  ;;  %2586 = vmatprep.mubr.f32.mxu0 %v6373_v42  ;;  %v6376_v63 = vld [vmem:[%s15067_s4 + $0x590] sm:$0xff]  ;;  %v6611_v42 = vld [vmem:[%s15067_s4 + $0xb68] sm:$0xff] }
 0x3e3   :  { %v7574_v26 = vpop.f32.mrb[136].mxu1 }
 0x3e4   :  { %v7575_v58 = vpop.f32.mrb[137].mxu1 }
 0x3e5   :  { %4031 = vmatmul.mubr.f32.gmra.mrb[242].mxu1 %v6602_v52  ;;  %2587 = vmatmul.mubr.f32.gmra.mrb[134].mxu0 %v6372_v32  ;;  %v13267_v56 = vadd.f32 %v7575_v58, %v7574_v26  ;;  %v6615_v26 = vld [vmem:[%s15067_s4 + $0xb88] sm:$0xff]  ;;  %v6385_v58 = vld [vmem:[%s15067_s4 + $0x5d8] sm:$0xff] }
 0x3e6   :  { %4035 = vmatprep.mubr.f32.mxu1 %v6607_v48  ;;  %2591 = vmatprep.mubr.f32.mxu0 %v6377_v33  ;;  %v6610_v48 = vld [vmem:[%s15067_s4 + $0xb60] sm:$0xff]  ;;  %v6380_v33 = vld [vmem:[%s15067_s4 + $0x5b0] sm:$0xff] }
 0x3e7   :  { %v7577_v39 = vpop.f32.mrb[138].mxu1 }
 0x3e8   :  { %v7578_v52 = vpop.f32.mrb[139].mxu1 }
 0x3e9   :  { %4036 = vmatmul.mubr.f32.gmra.mrb[244].mxu1 %v6606_v43  ;;  %2592 = vmatmul.mubr.f32.gmra.mrb[136].mxu0 %v6376_v63  ;;  %v13281_v32 = vadd.f32 %v7578_v52, %v7577_v39  ;;  %v6384_v39 = vld [vmem:[%s15067_s4 + $0x5d0] sm:$0xff]  ;;  %v6619_v52 = vld [vmem:[%s15067_s4 + $0xba8] sm:$0xff] }
 0x3ea   :  { %4040 = vmatprep.mubr.f32.mxu1 %v6611_v42  ;;  %2596 = vmatprep.mubr.f32.mxu0 %v6381_v5  ;;  %v6614_v5 = vld [vmem:[%s15067_s4 + $0xb80] sm:$0xff] }
 0x3eb   :  { %v7580_v43 = vpop.f32.mrb[140].mxu1 }
 0x3ec   :  { %v7581_v63 = vpop.f32.mrb[141].mxu1 }
 0x3ed   :  { %4041 = vmatmul.mubr.f32.gmra.mrb[246].mxu1 %v6610_v48  ;;  %2597 = vmatmul.mubr.f32.gmra.mrb[138].mxu0 %v6380_v33  ;;  %v13295_v42 = vadd.f32 %v7581_v63, %v7580_v43  ;;  %v6389_v48 = vld [vmem:[%s15067_s4 + $0x5f8] sm:$0xff]  ;;  %v6391_v63 = vld [vmem:[%s15068_s5 + $0x108] sm:$0xff] }
 0x3ee   :  { %4045 = vmatprep.mubr.f32.mxu1 %v6615_v26  ;;  %2601 = vmatprep.mubr.f32.mxu0 %v6385_v58  ;;  %v6390_v58 = vld [vmem:[%s15068_s5 + $0x100] sm:$0xff] }
 0x3ef   :  { %v7583_v33 = vpop.f32.mrb[142].mxu1 }
 0x3f0   :  { %v7584_v43 = vpop.f32.mrb[143].mxu1 }
 0x3f1   :  { %4046 = vmatmul.mubr.f32.gmra.mrb[248].mxu1 %v6614_v5  ;;  %2602 = vmatmul.mubr.f32.gmra.mrb[140].mxu0 %v6384_v39  ;;  %v13309_v26 = vadd.f32 %v7584_v43, %v7583_v33  ;;  %v6388_v5 = vld [vmem:[%s15067_s4 + $0x5f0] sm:$0xff]  ;;  %v9556_v39 = vpack.c.bf16 %v6391_v63, %v6390_v58  ;;  %v6623_v33 = vld [vmem:[%s15067_s4 + $0xbc8] sm:$0xff] }
 0x3f2   :  { %4050 = vmatprep.mubr.f32.mxu1 %v6619_v52  ;;  %2606 = vmatprep.mubr.f32.mxu0 %v6389_v48  ;;  %v6622_v48 = vld [vmem:[%s15067_s4 + $0xbc0] sm:$0xff]  ;;  %v6627_v58 = vld [vmem:[%s15067_s4 + $0xbe8] sm:$0xff] }
 0x3f3   :  { %v7586_v43 = vpop.f32.mrb[144].mxu1  ;;  %9557 = vmatprep.subr.bf16.mxu0 %v9556_v39 }
 0x3f4   :  { %v7587_v51 = vpop.f32.mrb[145].mxu1  ;;  %9559 = vmatpush3.bf16.msra.mxu0 %v9556_v39 }
 0x3f5   :  { %4051 = vmatmul.mubr.f32.gmra.mrb[250].mxu1 %v6618_v45  ;;  %2607 = vmatmul.mubr.f32.gmra.mrb[142].mxu0 %v6388_v5  ;;  %v13326_v52 = vadd.f32 %v7587_v51, %v7586_v43  ;;  %v6392_v51 = vld [vmem:[%s15068_s5 + $0x110] sm:$0xff]  ;;  %v6393_v45 = vld [vmem:[%s15068_s5 + $0x118] sm:$0xff]  ;;  %v6626_v5 = vld [vmem:[%s15067_s4 + $0xbe0] sm:$0xff] }
 0x3f6   :  { %4055 = vmatprep.mubr.f32.mxu1 %v6623_v33  ;;  %v9560_v39 = vpack.c.bf16 %v6393_v45, %v6392_v51  ;;  %v6647_v33 = vld [vmem:[%s15067_s4 + $0xc08] sm:$0xff]  ;;  %v6646_v51 = vld [vmem:[%s15067_s4 + $0xc00] sm:$0xff] }
 0x3f7   :  { %v7589_v63 = vpop.f32.mrb[146].mxu1 }
 0x3f8   :  { %v7590_v19 = vpop.f32.mrb[147].mxu1  ;;  %9561 = vmatprep.subr.bf16.mxu0 %v9560_v39 }
 0x3f9   :  { %4056 = vmatmul.mubr.f32.gmra.mrb[252].mxu1 %v6622_v48  ;;  %v13334_v30 = vadd.f32 %v7590_v19, %v7589_v63  ;;  %9563 = vmatpush3.bf16.msra.mxu0 %v9560_v39  ;;  %v6395_v63 = vld [vmem:[%s15068_s5 + $0x128] sm:$0xff] }
 0x3fa   :  { %4060 = vmatprep.mubr.f32.mxu1 %v6627_v58  ;;  %v6394_v58 = vld [vmem:[%s15068_s5 + $0x120] sm:$0xff] }
 0x3fb   :  { %v7592_v19 = vpop.f32.mrb[148].mxu1  ;;  %v9564_v45 = vpack.c.bf16 %v6395_v63, %v6394_v58  ;;  %v6396_v58 = vld [vmem:[%s15068_s5 + $0x130] sm:$0xff]  ;;  %v6397_v63 = vld [vmem:[%s15068_s5 + $0x138] sm:$0xff] }
 0x3fc   :  { %v7593_v43 = vpop.f32.mrb[149].mxu1 }
 0x3fd   :  { %4061 = vmatmul.mubr.f32.gmra.mrb[254].mxu1 %v6626_v5  ;;  %v13348_v48 = vadd.f32 %v7593_v43, %v7592_v19  ;;  %v6651_v5 = vld [vmem:[%s15067_s4 + $0xc28] sm:$0xff]  ;;  %9565 = vmatprep.subr.bf16.mxu0 %v9564_v45 }
 0x3fe   :  { %4518 = vmatprep.mubr.f32.mxu1 %v6647_v33  ;;  %9567 = vmatpush3.bf16.msra.mxu0 %v9564_v45  ;;  %v6650_v33 = vld [vmem:[%s15067_s4 + $0xc20] sm:$0xff] }
 0x3ff   :  { %v7595_v19 = vpop.f32.mrb[150].mxu1 }
 0x400   :  { %v7596_v39 = vpop.f32.mrb[151].mxu1 }
 0x401   :  { %4519 = vmatmul.mubr.f32.vlgmr.msra.gmra.mrb[0].mxu1 %v6646_v51  ;;  %v13362_v43 = vadd.f32 %v7596_v39, %v7595_v19  ;;  %v6655_v51 = vld [vmem:[%s15067_s4 + $0xc48] sm:$0xff] }
 0x402   :  { %9975 = vmatpush3.bf16.msra.mxu1 %v11829_v16  ;;  %4523 = vmatprep.mubr.f32.mxu1 %v6651_v5  ;;  %v9568_v5 = vpack.c.bf16 %v6397_v63, %v6396_v58  ;;  %v6654_v16 = vld [vmem:[%s15067_s4 + $0xc40] sm:$0xff]  ;;  %v6399_v58 = vld [vmem:[%s15068_s5 + $0x148] sm:$0xff] }
 0x403   :  { %9977 = vmatprep.subr.bf16.mxu1 %v11831_v57  ;;  %v7598_v45 = vpop.f32.mrb[152].mxu1  ;;  %v6398_v57 = vld [vmem:[%s15068_s5 + $0x140] sm:$0xff] }
 0x404   :  { %v7599_v19 = vpop.f32.mrb[153].mxu1  ;;  %9569 = vmatprep.subr.bf16.mxu0 %v9568_v5 }
 0x405   :  { %4524 = vmatmul.mubr.f32.gmra.mrb[2].mxu1 %v6650_v33  ;;  %v13378_v39 = vadd.f32 %v7599_v19, %v7598_v45  ;;  %v6659_v33 = vld [vmem:[%s15067_s4 + $0xc68] sm:$0xff]  ;;  %9571 = vmatpush3.bf16.msra.mxu0 %v9568_v5 }
 0x406   :  { %9979 = vmatpush3.bf16.msra.mxu1 %v11835_v50  ;;  %4528 = vmatprep.mubr.f32.mxu1 %v6655_v51  ;;  %v9572_v51 = vpack.c.bf16 %v6399_v58, %v6398_v57  ;;  %v6658_v50 = vld [vmem:[%s15067_s4 + $0xc60] sm:$0xff]  ;;  %v6401_v57 = vld [vmem:[%s15068_s5 + $0x158] sm:$0xff] }
 0x407   :  { %9981 = vmatprep.subr.bf16.mxu1 %v11837_v41  ;;  %v7601_v63 = vpop.f32.mrb[154].mxu1  ;;  %v6400_v41 = vld [vmem:[%s15068_s5 + $0x150] sm:$0xff] }
 0x408   :  { %v7602_v45 = vpop.f32.mrb[155].mxu1  ;;  %9573 = vmatprep.subr.bf16.mxu0 %v9572_v51  ;;  %v9576_v58 = vpack.c.bf16 %v6401_v57, %v6400_v41  ;;  %v6403_v57 = vld [vmem:[%s15068_s5 + $0x168] sm:$0xff] }
 0x409   :  { %4529 = vmatmul.mubr.f32.gmra.mrb[4].mxu1 %v6654_v16  ;;  %v13394_v19 = vadd.f32 %v7602_v45, %v7601_v63  ;;  %v6663_v16 = vld [vmem:[%s15067_s4 + $0xc88] sm:$0xff]  ;;  %9575 = vmatpush3.bf16.msra.mxu0 %v9572_v51  ;;  %v6662_v45 = vld [vmem:[%s15067_s4 + $0xc80] sm:$0xff] }
 0x40a   :  { %9983 = vmatpush3.bf16.msra.mxu1 %v11841_v40  ;;  %4533 = vmatprep.mubr.f32.mxu1 %v6659_v33 }
 0x40b   :  { %9985 = vmatprep.subr.bf16.mxu1 %v11843_v2  ;;  %v7604_v5 = vpop.f32.mrb[156].mxu1  ;;  %9577 = vmatprep.subr.bf16.mxu0 %v9576_v58  ;;  %v6667_v2 = vld [vmem:[%s15067_s4 + $0xca8] sm:$0xff] }
 0x40c   :  { %v7605_v33 = vpop.f32.mrb[157].mxu1 }
 0x40d   :  { %4534 = vmatmul.mubr.f32.gmra.mrb[6].mxu1 %v6658_v50  ;;  %v13410_v63 = vadd.f32 %v7605_v33, %v7604_v5  ;;  %9579 = vmatpush3.bf16.msra.mxu0 %v9576_v58  ;;  %v6402_v50 = vld [vmem:[%s15068_s5 + $0x160] sm:$0xff]  ;;  %v6671_v33 = vld [vmem:[%s15067_s4 + $0xcc8] sm:$0xff] }
 0x40e   :  { %9987 = vmatpush3.bf16.msra.mxu1 %v15412_v60  ;;  %4538 = vmatprep.mubr.f32.mxu1 %v6663_v16  ;;  %v9580_v5 = vpack.c.bf16 %v6403_v57, %v6402_v50  ;;  %v6666_v58 = vld [vmem:[%s15067_s4 + $0xca0] sm:$0xff]  ;;  %v6675_v57 = vld [vmem:[%s15067_s4 + $0xce8] sm:$0xff] }
 0x40f   :  { %9989 = vmatprep.subr.bf16.mxu1 %v15413_v35  ;;  %v7607_v51 = vpop.f32.mrb[158].mxu1  ;;  %v6670_v50 = vld [vmem:[%s15067_s4 + $0xcc0] sm:$0xff] }
 0x410   :  { %v7608_v41 = vpop.f32.mrb[159].mxu1  ;;  %9581 = vmatprep.subr.bf16.mxu0 %v9580_v5 }
 0x411   :  { %4539 = vmatmul.mubr.f32.gmra.mrb[8].mxu1 %v6662_v45  ;;  %v13426_v16 = vadd.f32 %v7608_v41, %v7607_v51  ;;  %9583 = vmatpush3.bf16.msra.mxu0 %v9580_v5  ;;  %v6404_v45 = vld [vmem:[%s15068_s5 + $0x170] sm:$0xff] }
 0x412   :  { %9991 = vmatpush3.bf16.msra.mxu1 %v15415_v3  ;;  %4543 = vmatprep.mubr.f32.mxu1 %v6667_v2  ;;  %v6405_v2 = vld [vmem:[%s15068_s5 + $0x178] sm:$0xff] }
 0x413   :  { %9993 = vmatprep.subr.bf16.mxu1 %v15416_v6  ;;  %v7642_v35 = vpop.f32.mrb[160].mxu1  ;;  %v9584_v41 = vpack.c.bf16 %v6405_v2, %v6404_v45  ;;  %v6679_v2 = vld [vmem:[%s15067_s4 + $0xd08] sm:$0xff] }
 0x414   :  { %v7643_v60 = vpop.f32.mrb[161].mxu1 }
 0x415   :  { %4544 = vmatmul.mubr.f32.gmra.mrb[10].mxu1 %v6666_v58  ;;  %v7644_v51 = vadd.f32 %v7643_v60, %v7642_v35  ;;  %9585 = vmatprep.subr.bf16.mxu0 %v9584_v41  ;;  %v6470_v35 = vld [vmem:[%s15068_s5 + $0x180] sm:$0xff]  ;;  %v6471_v58 = vld [vmem:[%s15068_s5 + $0x188] sm:$0xff] }
 0x416   :  { %9995 = vmatpush3.bf16.msra.mxu1 %v15417_v38  ;;  %4548 = vmatprep.mubr.f32.mxu1 %v6671_v33  ;;  %v13459_v45 = vpack.c.bf16 %v6471_v58, %v6470_v35 }
 0x417   :  { %9997 = vmatprep.subr.bf16.mxu1 %v15418_v17  ;;  %v13451_v5 = vadd.f32 %v7644_v51, %v13205_v9  ;;  %v7645_v6 = vpop.f32.mrb[162].mxu1  ;;  %9587 = vmatpush3.bf16.msra.mxu0 %v9584_v41  ;;  %v6674_v9 = vld [vmem:[%s15067_s4 + $0xce0] sm:$0xff] }
 0x418   :  { %v7646_v60 = vpop.f32.mrb[163].mxu1  ;;  %9653 = vmatprep.subr.bf16.mxu0 %v13459_v45 }
 0x419   :  { %4549 = vmatmul.mubr.f32.gmra.mrb[12].mxu1 %v6670_v50  ;;  %v7647_v33 = vadd.f32 %v7646_v60, %v7645_v6 }
 0x41a   :  { %9999 = vmatpush3.bf16.msra.mxu1 %v15420_v29  ;;  %4553 = vmatprep.mubr.f32.mxu1 %v6675_v57  ;;  %v6678_v57 = vld [vmem:[%s15067_s4 + $0xd00] sm:$0xff] }
 0x41b   :  { %10001 = vmatprep.subr.bf16.mxu1 %v15422_v8  ;;  %v13470_v51 = vadd.f32 %v7647_v33, %v13221_v59  ;;  %v7648_v41 = vpop.f32.mrb[164].mxu1  ;;  %v6683_v59 = vld [vmem:[%s15067_s4 + $0xd28] sm:$0xff] }
 0x41c   :  { %v7649_v6 = vpop.f32.mrb[165].mxu1 }
 0x41d   :  { %4554 = vmatmul.mubr.f32.gmra.mrb[14].mxu1 %v6674_v9  ;;  %v7650_v50 = vadd.f32 %v7649_v6, %v7648_v41  ;;  %v6682_v9 = vld [vmem:[%s15067_s4 + $0xd20] sm:$0xff] }
 0x41e   :  { %10003 = vmatpush3.bf16.msra.mxu1 %v15423_v11  ;;  %4558 = vmatprep.mubr.f32.mxu1 %v6679_v2  ;;  %v6687_v2 = vld [vmem:[%s15067_s4 + $0xd48] sm:$0xff] }
 0x41f   :  { %10005 = vmatprep.subr.bf16.mxu1 %v11875_v28  ;;  %v13482_v60 = vadd.f32 %v7650_v50, %v13237_v47  ;;  %v7651_v35 = vpop.f32.mrb[166].mxu1  ;;  %v6686_v50 = vld [vmem:[%s15067_s4 + $0xd40] sm:$0xff] }
 0x420   :  { %v7652_v58 = vpop.f32.mrb[167].mxu1 }
 0x421   :  { %4559 = vmatmul.mubr.f32.gmra.mrb[16].mxu1 %v6678_v57  ;;  %v7653_v33 = vadd.f32 %v7652_v58, %v7651_v35  ;;  %v6691_v57 = vld [vmem:[%s15067_s4 + $0xd68] sm:$0xff] }
 0x422   :  { %4563 = vmatprep.mubr.f32.mxu1 %v6683_v59 }
 0x423   :  { %v13491_v41 = vadd.f32 %v7653_v33, %v13253_v22  ;;  %v7654_v6 = vpop.f32.mrb[168].mxu1  ;;  %v6695_v33 = vld [vmem:[%s15067_s4 + $0xd88] sm:$0xff] }
 0x424   :  { %v7655_v11 = vpop.f32.mrb[169].mxu1 }
 0x425   :  { %4564 = vmatmul.mubr.f32.gmra.mrb[18].mxu1 %v6682_v9  ;;  %v7656_v47 = vadd.f32 %v7655_v11, %v7654_v6  ;;  %v6690_v11 = vld [vmem:[%s15067_s4 + $0xd60] sm:$0xff] }
 0x426   :  { %4568 = vmatprep.mubr.f32.mxu1 %v6687_v2 }
 0x427   :  { %v13500_v59 = vadd.f32 %v7656_v47, %v13267_v56  ;;  %v7657_v35 = vpop.f32.mrb[170].mxu1  ;;  %v6694_v47 = vld [vmem:[%s15067_s4 + $0xd80] sm:$0xff] }
 0x428   :  { %v7658_v58 = vpop.f32.mrb[171].mxu1 }
 0x429   :  { %4569 = vmatmul.mubr.f32.gmra.mrb[20].mxu1 %v6686_v50  ;;  %v7659_v22 = vadd.f32 %v7658_v58, %v7657_v35  ;;  %v6699_v50 = vld [vmem:[%s15067_s4 + $0xda8] sm:$0xff] }
 0x42a   :  { %4573 = vmatprep.mubr.f32.mxu1 %v6691_v57 }
 0x42b   :  { %v13509_v9 = vadd.f32 %v7659_v22, %v13281_v32  ;;  %v7660_v2 = vpop.f32.mrb[172].mxu1  ;;  %v6698_v22 = vld [vmem:[%s15067_s4 + $0xda0] sm:$0xff] }
 0x42c   :  { %v7661_v6 = vpop.f32.mrb[173].mxu1 }
 0x42d   :  { %4574 = vmatmul.mubr.f32.gmra.mrb[22].mxu1 %v6690_v11  ;;  %v7662_v56 = vadd.f32 %v7661_v6, %v7660_v2  ;;  %v6703_v11 = vld [vmem:[%s15067_s4 + $0xdc8] sm:$0xff] }
 0x42e   :  { %4578 = vmatprep.mubr.f32.mxu1 %v6695_v33 }
 0x42f   :  { %v13518_v57 = vadd.f32 %v7662_v56, %v13295_v42  ;;  %v7663_v35 = vpop.f32.mrb[174].mxu1  ;;  %v6702_v56 = vld [vmem:[%s15067_s4 + $0xdc0] sm:$0xff] }
 0x430   :  { %v7664_v58 = vpop.f32.mrb[175].mxu1 }
 0x431   :  { %4579 = vmatmul.mubr.f32.gmra.mrb[24].mxu1 %v6694_v47  ;;  %v7665_v32 = vadd.f32 %v7664_v58, %v7663_v35  ;;  %v6707_v47 = vld [vmem:[%s15067_s4 + $0xde8] sm:$0xff] }
 0x432   :  { %4583 = vmatprep.mubr.f32.mxu1 %v6699_v50 }
 0x433   :  { %v13527_v33 = vadd.f32 %v7665_v32, %v13309_v26  ;;  %v7666_v2 = vpop.f32.mrb[176].mxu1  ;;  %v6706_v32 = vld [vmem:[%s15067_s4 + $0xde0] sm:$0xff] }
 0x434   :  { %v7667_v6 = vpop.f32.mrb[177].mxu1 }
 0x435   :  { %4584 = vmatmul.mubr.f32.gmra.mrb[26].mxu1 %v6698_v22  ;;  %v7668_v42 = vadd.f32 %v7667_v6, %v7666_v2  ;;  %v6727_v22 = vld [vmem:[%s15067_s4 + $0xe08] sm:$0xff] }
 0x436   :  { %4588 = vmatprep.mubr.f32.mxu1 %v6703_v11 }
 0x437   :  { %v13536_v50 = vadd.f32 %v7668_v42, %v13326_v52  ;;  %v7669_v35 = vpop.f32.mrb[178].mxu1  ;;  %v6726_v42 = vld [vmem:[%s15067_s4 + $0xe00] sm:$0xff] }
 0x438   :  { %v7670_v58 = vpop.f32.mrb[179].mxu1 }
 0x439   :  { %4589 = vmatmul.mubr.f32.gmra.mrb[28].mxu1 %v6702_v56  ;;  %v7671_v26 = vadd.f32 %v7670_v58, %v7669_v35  ;;  %v6731_v56 = vld [vmem:[%s15067_s4 + $0xe28] sm:$0xff] }
 0x43a   :  { %4593 = vmatprep.mubr.f32.mxu1 %v6707_v47 }
 0x43b   :  { %v13545_v11 = vadd.f32 %v7671_v26, %v13334_v30  ;;  %v7672_v2 = vpop.f32.mrb[180].mxu1  ;;  %v6730_v26 = vld [vmem:[%s15067_s4 + $0xe20] sm:$0xff] }
 0x43c   :  { %v7673_v6 = vpop.f32.mrb[181].mxu1 }
 0x43d   :  { %4594 = vmatmul.mubr.f32.gmra.mrb[30].mxu1 %v6706_v32  ;;  %v7674_v52 = vadd.f32 %v7673_v6, %v7672_v2  ;;  %v6735_v32 = vld [vmem:[%s15067_s4 + $0xe48] sm:$0xff] }
 0x43e   :  { %5051 = vmatprep.mubr.f32.mxu1 %v6727_v22 }
 0x43f   :  { %v13554_v47 = vadd.f32 %v7674_v52, %v13348_v48  ;;  %v7675_v35 = vpop.f32.mrb[182].mxu1  ;;  %v6734_v52 = vld [vmem:[%s15067_s4 + $0xe40] sm:$0xff] }
 0x440   :  { %v7676_v58 = vpop.f32.mrb[183].mxu1 }
 0x441   :  { %5052 = vmatmul.mubr.f32.vlgmr.msra.gmra.mrb[32].mxu1 %v6726_v42  ;;  %v7677_v30 = vadd.f32 %v7676_v58, %v7675_v35  ;;  %v6739_v42 = vld [vmem:[%s15067_s4 + $0xe68] sm:$0xff] }
 0x442   :  { %10007 = vmatpush3.bf16.msra.mxu1 %v11877_v25  ;;  %5056 = vmatprep.mubr.f32.mxu1 %v6731_v56 }
 0x443   :  { %10009 = vmatprep.subr.bf16.mxu1 %v11879_v31  ;;  %v13565_v48 = vadd.f32 %v7677_v30, %v13362_v43  ;;  %v7678_v22 = vpop.f32.mrb[184].mxu1  ;;  %v6738_v30 = vld [vmem:[%s15067_s4 + $0xe60] sm:$0xff] }
 0x444   :  { %v7679_v2 = vpop.f32.mrb[185].mxu1 }
 0x445   :  { %5057 = vmatmul.mubr.f32.gmra.mrb[34].mxu1 %v6730_v26  ;;  %v7680_v6 = vadd.f32 %v7679_v2, %v7678_v22  ;;  %v6743_v26 = vld [vmem:[%s15067_s4 + $0xe88] sm:$0xff] }
 0x446   :  { %10011 = vmatpush3.bf16.msra.mxu1 %v11881_v34  ;;  %5061 = vmatprep.mubr.f32.mxu1 %v6735_v32 }
 0x447   :  { %10013 = vmatprep.subr.bf16.mxu1 %v11884_v14  ;;  %v13576_v43 = vadd.f32 %v7680_v6, %v13378_v39  ;;  %v7681_v56 = vpop.f32.mrb[186].mxu1  ;;  %v6742_v6 = vld [vmem:[%s15067_s4 + $0xe80] sm:$0xff] }
 0x448   :  { %v7682_v35 = vpop.f32.mrb[187].mxu1 }
 0x449   :  { %5062 = vmatmul.mubr.f32.gmra.mrb[36].mxu1 %v6734_v52  ;;  %v7683_v58 = vadd.f32 %v7682_v35, %v7681_v56  ;;  %v6747_v52 = vld [vmem:[%s15067_s4 + $0xea8] sm:$0xff] }
 0x44a   :  { %10015 = vmatpush3.bf16.msra.mxu1 %v11886_v12  ;;  %5066 = vmatprep.mubr.f32.mxu1 %v6739_v42 }
 0x44b   :  { %10017 = vmatprep.subr.bf16.mxu1 %v11888_v20  ;;  %v13587_v39 = vadd.f32 %v7683_v58, %v13394_v19  ;;  %v7684_v32 = vpop.f32.mrb[188].mxu1  ;;  %v6746_v58 = vld [vmem:[%s15067_s4 + $0xea0] sm:$0xff] }
 0x44c   :  { %v7685_v22 = vpop.f32.mrb[189].mxu1 }
 0x44d   :  { %5067 = vmatmul.mubr.f32.gmra.mrb[38].mxu1 %v6738_v30  ;;  %v7686_v2 = vadd.f32 %v7685_v22, %v7684_v32  ;;  %v6751_v30 = vld [vmem:[%s15067_s4 + $0xec8] sm:$0xff] }
 0x44e   :  { %10019 = vmatpush3.bf16.msra.mxu1 %v11890_v37  ;;  %5071 = vmatprep.mubr.f32.mxu1 %v6743_v26  ;;  %v6750_v26 = vld [vmem:[%s15067_s4 + $0xec0] sm:$0xff]  ;;  %v6755_v32 = vld [vmem:[%s15067_s4 + $0xee8] sm:$0xff] }
 0x44f   :  { %10021 = vmatprep.subr.bf16.mxu1 %v11893_v15  ;;  %v13598_v19 = vadd.f32 %v7686_v2, %v13410_v63  ;;  %v7687_v42 = vpop.f32.mrb[190].mxu1  ;;  %v6759_v22 = vld [vmem:[%s15067_s4 + $0xf08] sm:$0xff]  ;;  %v6758_v2 = vld [vmem:[%s15067_s4 + $0xf00] sm:$0xff] }
 0x450   :  { %v7688_v56 = vpop.f32.mrb[191].mxu1 }
 0x451   :  { %5072 = vmatmul.mubr.f32.gmra.mrb[40].mxu1 %v6742_v6  ;;  %v7689_v35 = vadd.f32 %v7688_v56, %v7687_v42  ;;  %v6763_v6 = vld [vmem:[%s15067_s4 + $0xf28] sm:$0xff]  ;;  %v6766_v56 = vld [vmem:[%s15067_s4 + $0xf40] sm:$0xff] }
 0x452   :  { %10023 = vmatpush3.bf16.msra.mxu1 %v11895_v55  ;;  %5076 = vmatprep.mubr.f32.mxu1 %v6747_v52  ;;  %v6762_v52 = vld [vmem:[%s15067_s4 + $0xf20] sm:$0xff]  ;;  %v6767_v42 = vld [vmem:[%s15067_s4 + $0xf48] sm:$0xff] }
 0x453   :  { %10025 = vmatprep.subr.bf16.mxu1 %v11897_v18  ;;  %v13609_v63 = vadd.f32 %v7689_v35, %v13426_v16  ;;  %v6754_v16 = vld [vmem:[%s15067_s4 + $0xee0] sm:$0xff]  ;;  %v6771_v35 = vld [vmem:[%s15067_s4 + $0xf68] sm:$0xff] }
 0x455   :  { %5077 = vmatmul.mubr.f32.gmra.mrb[42].mxu1 %v6746_v58  ;;  %v6770_v58 = vld [vmem:[%s15067_s4 + $0xf60] sm:$0xff] }
 0x456   :  { %10027 = vmatpush3.bf16.msra.mxu1 %v11899_v36  ;;  %5081 = vmatprep.mubr.f32.mxu1 %v6751_v30  ;;  %v6775_v30 = vld [vmem:[%s15067_s4 + $0xf88] sm:$0xff] }
 0x457   :  { %10029 = vmatprep.subr.bf16.mxu1 %v11902_v27 }
 0x459   :  { %5082 = vmatmul.mubr.f32.gmra.mrb[44].mxu1 %v6750_v26  ;;  %v6774_v26 = vld [vmem:[%s15067_s4 + $0xf80] sm:$0xff] }
 0x45a   :  { %10031 = vmatpush3.bf16.msra.mxu1 %v11904_v53  ;;  %5086 = vmatprep.mubr.f32.mxu1 %v6755_v32  ;;  %v6779_v32 = vld [vmem:[%s15067_s4 + $0xfa8] sm:$0xff] }
 0x45b   :  { %10033 = vmatprep.subr.bf16.mxu1 %v15406_v44 }
 0x45d   :  { %5087 = vmatmul.mubr.f32.gmra.mrb[46].mxu1 %v6754_v16  ;;  %v6778_v16 = vld [vmem:[%s15067_s4 + $0xfa0] sm:$0xff] }
 0x45e   :  { %10035 = vmatpush3.bf16.msra.mxu1 %v11906_v24  ;;  %5091 = vmatprep.mubr.f32.mxu1 %v6759_v22  ;;  %v6783_v22 = vld [vmem:[%s15067_s4 + $0xfc8] sm:$0xff] }
 0x45f   :  { %10101 = vmatprep.subr.bf16.mxu1 %v11875_v28 }
 0x461   :  { %5092 = vmatmul.mubr.f32.gmra.mrb[48].mxu1 %v6758_v2  ;;  %v6782_v2 = vld [vmem:[%s15067_s4 + $0xfc0] sm:$0xff] }
 0x462   :  { %5096 = vmatprep.mubr.f32.mxu1 %v6763_v6  ;;  %v6787_v6 = vld [vmem:[%s15067_s4 + $0xfe8] sm:$0xff] }
 0x465   :  { %5097 = vmatmul.mubr.f32.gmra.mrb[50].mxu1 %v6762_v52  ;;  %v6786_v52 = vld [vmem:[%s15067_s4 + $0xfe0] sm:$0xff] }
 0x466   :  { %5101 = vmatprep.mubr.f32.mxu1 %v6767_v42  ;;  %v6729_v42 = vld [vmem:[%s15067_s4 + $0xe18] sm:$0xff] }
 0x469   :  { %5102 = vmatmul.mubr.f32.gmra.mrb[52].mxu1 %v6766_v56  ;;  %v6728_v56 = vld [vmem:[%s15067_s4 + $0xe10] sm:$0xff] }
 0x46a   :  { %5106 = vmatprep.mubr.f32.mxu1 %v6771_v35 }
 0x46d   :  { %5107 = vmatmul.mubr.f32.gmra.mrb[54].mxu1 %v6770_v58 }
 0x46e   :  { %5111 = vmatprep.mubr.f32.mxu1 %v6775_v30 }
 0x471   :  { %5112 = vmatmul.mubr.f32.gmra.mrb[56].mxu1 %v6774_v26 }
 0x472   :  { %5116 = vmatprep.mubr.f32.mxu1 %v6779_v32 }
 0x475   :  { %5117 = vmatmul.mubr.f32.gmra.mrb[58].mxu1 %v6778_v16 }
 0x476   :  { %5121 = vmatprep.mubr.f32.mxu1 %v6783_v22  ;;  %v6472_v22 = vld [vmem:[%s15068_s5 + $0x190] sm:$0xff] }
 0x479   :  { %5122 = vmatmul.mubr.f32.gmra.mrb[60].mxu1 %v6782_v2  ;;  %v6473_v2 = vld [vmem:[%s15068_s5 + $0x198] sm:$0xff] }
 0x47a   :  { %5126 = vmatprep.mubr.f32.mxu1 %v6787_v6 }
 0x47d   :  { %5127 = vmatmul.mubr.f32.gmra.mrb[62].mxu1 %v6786_v52 }
 0x47e   :  { %5196 = vmatprep.mubr.f32.mxu1 %v6729_v42 }
 0x481   :  { %5197 = vmatmul.mubr.f32.vlgmr.msra.gmra.mrb[64].mxu1 %v6728_v56 }
 0x482   :  { %10103 = vmatpush3.bf16.msra.mxu1 %v11877_v25 }
 0x483   :  { %10105 = vmatprep.subr.bf16.mxu1 %v11879_v31 }
 0x486   :  { %10107 = vmatpush3.bf16.msra.mxu1 %v11881_v34 }
 0x487   :  { %10109 = vmatprep.subr.bf16.mxu1 %v11884_v14 }
 0x48a   :  { %10111 = vmatpush3.bf16.msra.mxu1 %v11886_v12 }
 0x48b   :  { %10113 = vmatprep.subr.bf16.mxu1 %v11888_v20 }
 0x48c   :  { %v7450_v35 = vpop.f32.mrb[112].mxu0 }
 0x48d   :  { %v7451_v58 = vpop.f32.mrb[113].mxu0 }
 0x48e   :  { %10115 = vmatpush3.bf16.msra.mxu1 %v11890_v37  ;;  %v7452_v30 = vadd.f32 %v7451_v58, %v7450_v35  ;;  %v6474_v35 = vld [vmem:[%s15068_s5 + $0x1a0] sm:$0xff]  ;;  %v6475_v58 = vld [vmem:[%s15068_s5 + $0x1a8] sm:$0xff] }
 0x48f   :  { %10117 = vmatprep.subr.bf16.mxu1 %v11893_v15 }
 0x490   :  { %v2534_v26 = vadd.f32 %v7452_v30, %v13048_v61  ;;  %v7453_v32 = vpop.f32.mrb[114].mxu0  ;;  %v9656_v61 = vpack.c.bf16 %v6473_v2, %v6472_v22  ;;  %v6476_v22 = vld [vmem:[%s15068_s5 + $0x1b0] sm:$0xff]  ;;  %v6477_v2 = vld [vmem:[%s15068_s5 + $0x1b8] sm:$0xff] }
 0x491   :  { %v7454_v16 = vpop.f32.mrb[115].mxu0 }
 0x492   :  { %10119 = vmatpush3.bf16.msra.mxu1 %v11895_v55  ;;  %v7455_v6 = vadd.f32 %v7454_v16, %v7453_v32  ;;  %8930 = vmatprep.mubr.f32.mxu0 %v2534_v26  ;;  %v9660_v32 = vpack.c.bf16 %v6475_v58, %v6474_v35  ;;  %v6479_v35 = vld [vmem:[%s15068_s5 + $0x1c8] sm:$0xff] }
 0x493   :  { %10121 = vmatprep.subr.bf16.mxu1 %v11897_v18 }
 0x494   :  { %v2539_v52 = vadd.f32 %v7455_v6, %v13054_v62  ;;  %v7456_v42 = vpop.f32.mrb[116].mxu0 }
 0x495   :  { %v7457_v56 = vpop.f32.mrb[117].mxu0 }
 0x496   :  { %10123 = vmatpush3.bf16.msra.mxu1 %v11899_v36  ;;  %v7458_v30 = vadd.f32 %v7457_v56, %v7456_v42  ;;  %8931 = vmatmul.mubr.f32.vlgmr.msra.gmra.mrb[96].mxu0 %v2539_v52  ;;  %v9664_v52 = vpack.c.bf16 %v6477_v2, %v6476_v22  ;;  %v6478_v56 = vld [vmem:[%s15068_s5 + $0x1c0] sm:$0xff] }
 0x497   :  { %10125 = vmatprep.subr.bf16.mxu1 %v11902_v27  ;;  %9655 = vmatpush3.bf16.msra.mxu0 %v13459_v45 }
 0x498   :  { %v2544_v62 = vadd.f32 %v7458_v30, %v13062_v54  ;;  %v7459_v26 = vpop.f32.mrb[118].mxu0  ;;  %9657 = vmatprep.subr.bf16.mxu0 %v9656_v61  ;;  %v9668_v30 = vpack.c.bf16 %v6479_v35, %v6478_v56 }
 0x499   :  { %v7460_v16 = vpop.f32.mrb[119].mxu0 }
 0x49a   :  { %10127 = vmatpush3.bf16.msra.mxu1 %v11904_v53  ;;  %v7461_v6 = vadd.f32 %v7460_v16, %v7459_v26  ;;  %8933 = vmatprep.mubr.f32.mxu0 %v2544_v62  ;;  %v6480_v26 = vld [vmem:[%s15068_s5 + $0x1d0] sm:$0xff]  ;;  %v6481_v16 = vld [vmem:[%s15068_s5 + $0x1d8] sm:$0xff] }
 0x49b   :  { %10129 = vmatprep.subr.bf16.mxu1 %v15406_v44  ;;  %9659 = vmatpush3.bf16.msra.mxu0 %v9656_v61 }
 0x49c   :  { %v2549_v54 = vadd.f32 %v7461_v6, %v13071_v10  ;;  %v7462_v45 = vpop.f32.mrb[120].mxu0  ;;  %9661 = vmatprep.subr.bf16.mxu0 %v9660_v32 }
 0x49d   :  { %v7463_v42 = vpop.f32.mrb[121].mxu0 }
 0x49e   :  { %10131 = vmatpush3.bf16.msra.mxu1 %v11906_v24  ;;  %v7464_v58 = vadd.f32 %v7463_v42, %v7462_v45  ;;  %8934 = vmatmul.mubr.f32.gmra.mrb[98].mxu0 %v2549_v54  ;;  %v6482_v54 = vld [vmem:[%s15068_s5 + $0x1e0] sm:$0xff]  ;;  %v6483_v45 = vld [vmem:[%s15068_s5 + $0x1e8] sm:$0xff] }
 0x49f   :  { %9663 = vmatpush3.bf16.msra.mxu0 %v9660_v32 }
 0x4a0   :  { %v2554_v61 = vadd.f32 %v7464_v58, %v13081_v7  ;;  %v7465_v10 = vpop.f32.mrb[122].mxu0  ;;  %9665 = vmatprep.subr.bf16.mxu0 %v9664_v52  ;;  %v9672_v7 = vpack.c.bf16 %v6481_v16, %v6480_v26  ;;  %v6484_v58 = vld [vmem:[%s15068_s5 + $0x1f0] sm:$0xff] }
 0x4a1   :  { %v7466_v62 = vpop.f32.mrb[123].mxu0 }
 0x4a2   :  { %v7467_v22 = vadd.f32 %v7466_v62, %v7465_v10  ;;  %8936 = vmatprep.mubr.f32.mxu0 %v2554_v61  ;;  %v6485_v61 = vld [vmem:[%s15068_s5 + $0x1f8] sm:$0xff] }
 0x4a3   :  { %9667 = vmatpush3.bf16.msra.mxu0 %v9664_v52 }
 0x4a4   :  { %v2559_v2 = vadd.f32 %v7467_v22, %v13089_v0  ;;  %v7468_v32 = vpop.f32.mrb[124].mxu0  ;;  %9669 = vmatprep.subr.bf16.mxu0 %v9668_v30  ;;  %v9676_v0 = vpack.c.bf16 %v6483_v45, %v6482_v54 }
 0x4a5   :  { %v7469_v6 = vpop.f32.mrb[125].mxu0 }
 0x4a6   :  { %v7470_v42 = vadd.f32 %v7469_v6, %v7468_v32  ;;  %8937 = vmatmul.mubr.f32.gmra.mrb[100].mxu0 %v2559_v2 }
 0x4a7   :  { %9671 = vmatpush3.bf16.msra.mxu0 %v9668_v30 }
 0x4a8   :  { %v2564_v56 = vadd.f32 %v7470_v42, %v13097_v49  ;;  %v7471_v52 = vpop.f32.mrb[126].mxu0  ;;  %9673 = vmatprep.subr.bf16.mxu0 %v9672_v7  ;;  %v9680_v49 = vpack.c.bf16 %v6485_v61, %v6484_v58 }
 0x4a9   :  { %v7472_v35 = vpop.f32.mrb[127].mxu0 }
 0x4aa   :  { %v7473_v10 = vadd.f32 %v7472_v35, %v7471_v52  ;;  %8939 = vmatprep.mubr.f32.mxu0 %v2564_v56 }
 0x4ab   :  { %9675 = vmatpush3.bf16.msra.mxu0 %v9672_v7 }
 0x4ac   :  { %v2569_v62 = vadd.f32 %v7473_v10, %v13105_v4  ;;  %v7474_v30 = vpop.f32.mrb[128].mxu0  ;;  %9677 = vmatprep.subr.bf16.mxu0 %v9676_v0  ;;  %v15428_v10 = vld [vmem:[#allocation54_spill] sm:$0xff] }
 0x4ad   :  { %v7475_v26 = vpop.f32.mrb[129].mxu0 }
 0x4ae   :  { %v7476_v16 = vadd.f32 %v7475_v26, %v7474_v30  ;;  %8940 = vmatmul.mubr.f32.gmra.mrb[102].mxu0 %v2569_v62  ;;  %v15429_v26 = vld [vmem:[#allocation16_spill] sm:$0xff] }
 0x4af   :  { %9679 = vmatpush3.bf16.msra.mxu0 %v9676_v0 }
 0x4b0   :  { %v2574_v22 = vadd.f32 %v7476_v16, %v13113_v46  ;;  %v7477_v2 = vpop.f32.mrb[130].mxu0  ;;  %9681 = vmatprep.subr.bf16.mxu0 %v9680_v49 }
 0x4b1   :  { %v7478_v32 = vpop.f32.mrb[131].mxu0 }
 0x4b2   :  { %v7479_v6 = vadd.f32 %v7478_v32, %v7477_v2  ;;  %8942 = vmatprep.mubr.f32.mxu0 %v2574_v22  ;;  %v15430_v32 = vld [vmem:[#allocation55_spill] sm:$0xff] }
 0x4b3   :  { %9683 = vmatpush3.bf16.msra.mxu0 %v9680_v49 }
 0x4b4   :  { %v2579_v54 = vadd.f32 %v7479_v6, %v13121_v23  ;;  %9685 = vmatprep.subr.bf16.mxu0 %v11825_v1  ;;  %v7480_v4 = vpop.f32.mrb[132].mxu0 }
 0x4b5   :  { %v7481_v7 = vpop.f32.mrb[133].mxu0 }
 0x4b6   :  { %v7482_v45 = vadd.f32 %v7481_v7, %v7480_v4  ;;  %8943 = vmatmul.mubr.f32.gmra.mrb[104].mxu0 %v2579_v54  ;;  %v15431_v7 = vld [vmem:[#allocation15_spill] sm:$0xff] }
 0x4b8   :  { %v2584_v42 = vadd.f32 %v7482_v45, %v13134_v13  ;;  %v7483_v56 = vpop.f32.mrb[134].mxu0 }
 0x4b9   :  { %v7484_v52 = vpop.f32.mrb[135].mxu0 }
 0x4ba   :  { %v7485_v0 = vadd.f32 %v7484_v52, %v7483_v56  ;;  %8945 = vmatprep.mubr.f32.mxu0 %v2584_v42  ;;  %v15432_v42 = vld [vmem:[#allocation36_spill] sm:$0xff]  ;;  %v15433_v56 = vld [vmem:[#allocation30_spill] sm:$0xff] }
 0x4bb   :  { %v15434_v52 = vld [vmem:[#allocation6_spill] sm:$0xff] }
 0x4bc   :  { %v2589_v46 = vadd.f32 %v7485_v0, %v13139_v21  ;;  %v7486_v35 = vpop.f32.mrb[136].mxu0  ;;  %v15435_v0 = vld [vmem:[#allocation8_spill] sm:$0xff] }
 0x4bd   :  { %v7487_v58 = vpop.f32.mrb[137].mxu0 }
 0x4be   :  { %v7488_v61 = vadd.f32 %v7487_v58, %v7486_v35  ;;  %8946 = vmatmul.mubr.f32.gmra.mrb[106].mxu0 %v2589_v46  ;;  %v6490_v46 = vld [vmem:[%s15067_s4 + $0x820] sm:$0xff]  ;;  %v6495_v35 = vld [vmem:[%s15067_s4 + $0x848] sm:$0xff] }
 0x4c0   :  { %v2594_v23 = vadd.f32 %v7488_v61, %v15428_v10  ;;  %v7489_v62 = vpop.f32.mrb[138].mxu0  ;;  %v6556_v61 = vld [vmem:[%s15068_s5 + $0x230] sm:$0xff]  ;;  %v6557_v10 = vld [vmem:[%s15068_s5 + $0x238] sm:$0xff] }
 0x4c1   :  { %v7490_v30 = vpop.f32.mrb[139].mxu0 }
 0x4c2   :  { %v7491_v49 = vadd.f32 %v7490_v30, %v7489_v62  ;;  %8948 = vmatprep.mubr.f32.mxu0 %v2594_v23  ;;  %v6494_v23 = vld [vmem:[%s15067_s4 + $0x840] sm:$0xff]  ;;  %v6499_v62 = vld [vmem:[%s15067_s4 + $0x868] sm:$0xff]  ;;  %v9760_v30 = vpack.c.bf16 %v6557_v10, %v6556_v61 }
 0x4c3   :  { %v6531_v61 = vld [vmem:[%s15067_s4 + $0x968] sm:$0xff]  ;;  %v6530_v10 = vld [vmem:[%s15067_s4 + $0x960] sm:$0xff] }
 0x4c4   :  { %v2599_v16 = vadd.f32 %v7491_v49, %v15429_v26  ;;  %v7492_v22 = vpop.f32.mrb[140].mxu0  ;;  %v6558_v49 = vld [vmem:[%s15068_s5 + $0x240] sm:$0xff]  ;;  %v6559_v26 = vld [vmem:[%s15068_s5 + $0x248] sm:$0xff] }
 0x4c5   :  { %v7493_v13 = vpop.f32.mrb[141].mxu0 }
 0x4c6   :  { %v7494_v2 = vadd.f32 %v7493_v13, %v7492_v22  ;;  %8949 = vmatmul.mubr.f32.gmra.mrb[108].mxu0 %v2599_v16  ;;  %v6498_v16 = vld [vmem:[%s15067_s4 + $0x860] sm:$0xff]  ;;  %v6503_v22 = vld [vmem:[%s15067_s4 + $0x888] sm:$0xff]  ;;  %v9764_v13 = vpack.c.bf16 %v6559_v26, %v6558_v49 }
 0x4c7   :  { %v6538_v49 = vld [vmem:[%s15067_s4 + $0x9a0] sm:$0xff]  ;;  %v6543_v26 = vld [vmem:[%s15067_s4 + $0x9c8] sm:$0xff] }
 0x4c8   :  { %v2604_v6 = vadd.f32 %v7494_v2, %v15430_v32  ;;  %v7495_v54 = vpop.f32.mrb[142].mxu0  ;;  %v6560_v2 = vld [vmem:[%s15068_s5 + $0x250] sm:$0xff]  ;;  %v6561_v32 = vld [vmem:[%s15068_s5 + $0x258] sm:$0xff] }
 0x4c9   :  { %v7496_v21 = vpop.f32.mrb[143].mxu0 }
 0x4ca   :  { %v7497_v4 = vadd.f32 %v7496_v21, %v7495_v54  ;;  %8951 = vmatprep.mubr.f32.mxu0 %v2604_v6  ;;  %v6502_v6 = vld [vmem:[%s15067_s4 + $0x880] sm:$0xff]  ;;  %v6507_v54 = vld [vmem:[%s15067_s4 + $0x8a8] sm:$0xff]  ;;  %v9768_v21 = vpack.c.bf16 %v6561_v32, %v6560_v2  ;;  %v7834_v2 = vpop.f32.mrb[192].mxu1 }
 0x4cb   :  { %v7835_v32 = vpop.f32.mrb[193].mxu1 }
 0x4cc   :  { %v2609_v45 = vadd.f32 %v7497_v4, %v15431_v7  ;;  %v6562_v4 = vld [vmem:[%s15068_s5 + $0x260] sm:$0xff]  ;;  %v6563_v7 = vld [vmem:[%s15068_s5 + $0x268] sm:$0xff] }
 0x4ce   :  { %8952 = vmatmul.mubr.f32.gmra.mrb[110].mxu0 %v2609_v45  ;;  %v6506_v45 = vld [vmem:[%s15067_s4 + $0x8a0] sm:$0xff] }
 0x4cf   :  { %8986 = vmatprep.mubr.f32.mxu0 %v13451_v5  ;;  %v15436_v5 = vld [vmem:[#allocation10_spill] sm:$0xff] }
 0x4d2   :  { %8987 = vmatmul.mubr.f32.vlgmr.msra.gmra.mrb[96].mxu0 %v13470_v51  ;;  %v15437_v51 = vld [vmem:[#allocation39_spill] sm:$0xff] }
 0x4d3   :  { %9687 = vmatpush3.bf16.msra.mxu0 %v15432_v42  ;;  %8989 = vmatprep.mubr.f32.mxu0 %v13482_v60  ;;  %v15438_v60 = vld [vmem:[#allocation41_spill] sm:$0xff] }
 0x4d4   :  { %9689 = vmatprep.subr.bf16.mxu0 %v15433_v56 }
 0x4d6   :  { %8990 = vmatmul.mubr.f32.gmra.mrb[98].mxu0 %v13491_v41  ;;  %v15439_v41 = vld [vmem:[#allocation45_spill] sm:$0xff] }
 0x4d7   :  { %9691 = vmatpush3.bf16.msra.mxu0 %v15434_v52  ;;  %8992 = vmatprep.mubr.f32.mxu0 %v13500_v59  ;;  %v6550_v59 = vld [vmem:[%s15068_s5 + $0x200] sm:$0xff] }
 0x4d8   :  { %9693 = vmatprep.subr.bf16.mxu0 %v15435_v0 }
 0x4da   :  { %8993 = vmatmul.mubr.f32.gmra.mrb[100].mxu0 %v13509_v9  ;;  %v6551_v9 = vld [vmem:[%s15068_s5 + $0x208] sm:$0xff] }
 0x4db   :  { %9695 = vmatpush3.bf16.msra.mxu0 %v11841_v40  ;;  %8995 = vmatprep.mubr.f32.mxu0 %v13518_v57  ;;  %v6487_v57 = vld [vmem:[%s15067_s4 + $0x808] sm:$0xff] }
 0x4dc   :  { %9697 = vmatprep.subr.bf16.mxu0 %v15436_v5 }
 0x4de   :  { %8996 = vmatmul.mubr.f32.gmra.mrb[102].mxu0 %v13527_v33  ;;  %v9748_v33 = vpack.c.bf16 %v6551_v9, %v6550_v59  ;;  %v6511_v59 = vld [vmem:[%s15067_s4 + $0x8c8] sm:$0xff]  ;;  %v9772_v9 = vpack.c.bf16 %v6563_v7, %v6562_v4 }
 0x4df   :  { %9699 = vmatpush3.bf16.msra.mxu0 %v15437_v51  ;;  %8998 = vmatprep.mubr.f32.mxu0 %v13536_v50  ;;  %v6552_v50 = vld [vmem:[%s15068_s5 + $0x210] sm:$0xff] }
 0x4e0   :  { %9701 = vmatprep.subr.bf16.mxu0 %v15438_v60 }
 0x4e2   :  { %8999 = vmatmul.mubr.f32.gmra.mrb[104].mxu0 %v13545_v11  ;;  %v6553_v11 = vld [vmem:[%s15068_s5 + $0x218] sm:$0xff] }
 0x4e3   :  { %9703 = vmatpush3.bf16.msra.mxu0 %v15415_v3  ;;  %9001 = vmatprep.mubr.f32.mxu0 %v13554_v47  ;;  %v15440_v47 = vld [vmem:[#allocation11_spill] sm:$0xff] }
 0x4e4   :  { %9705 = vmatprep.subr.bf16.mxu0 %v15439_v41 }
 0x4e6   :  { %9002 = vmatmul.mubr.f32.gmra.mrb[106].mxu0 %v13565_v48  ;;  %v6486_v48 = vld [vmem:[%s15067_s4 + $0x800] sm:$0xff] }
 0x4e7   :  { %9707 = vmatpush3.bf16.msra.mxu0 %v15417_v38  ;;  %9004 = vmatprep.mubr.f32.mxu0 %v13576_v43  ;;  %v6491_v43 = vld [vmem:[%s15067_s4 + $0x828] sm:$0xff] }
 0x4e8   :  { %9709 = vmatprep.subr.bf16.mxu0 %v15418_v17 }
 0x4ea   :  { %9005 = vmatmul.mubr.f32.gmra.mrb[108].mxu0 %v13587_v39  ;;  %v9752_v39 = vpack.c.bf16 %v6553_v11, %v6552_v50  ;;  %v6510_v50 = vld [vmem:[%s15067_s4 + $0x8c0] sm:$0xff]  ;;  %v6515_v11 = vld [vmem:[%s15067_s4 + $0x8e8] sm:$0xff] }
 0x4eb   :  { %9711 = vmatpush3.bf16.msra.mxu0 %v15420_v29  ;;  %9007 = vmatprep.mubr.f32.mxu0 %v13598_v19  ;;  %v6554_v19 = vld [vmem:[%s15068_s5 + $0x220] sm:$0xff] }
 0x4ec   :  { %9713 = vmatprep.subr.bf16.mxu0 %v15422_v8 }
 0x4ee   :  { %9008 = vmatmul.mubr.f32.gmra.mrb[110].mxu0 %v13609_v63  ;;  %v6555_v63 = vld [vmem:[%s15068_s5 + $0x228] sm:$0xff] }
 0x4ef   :  { %9715 = vmatpush3.bf16.msra.mxu0 %v15440_v47  ;;  %3452 = vmatprep.mubr.f32.mxu0 %v6487_v57  ;;  %v9756_v58 = vpack.c.bf16 %v6555_v63, %v6554_v19  ;;  %v6564_v57 = vld [vmem:[%s15068_s5 + $0x270] sm:$0xff]  ;;  %v6518_v19 = vld [vmem:[%s15067_s4 + $0x900] sm:$0xff]  ;;  %v6523_v63 = vld [vmem:[%s15067_s4 + $0x928] sm:$0xff] }
 0x4f0   :  { %9749 = vmatprep.subr.bf16.mxu0 %v9748_v33 }
 0x4f2   :  { %3453 = vmatmul.mubr.f32.vlgmr.msra.gmra.mrb[144].mxu0 %v6486_v48 }
 0x4f3   :  { %9751 = vmatpush3.bf16.msra.mxu0 %v9748_v33  ;;  %3457 = vmatprep.mubr.f32.mxu0 %v6491_v43  ;;  %v6565_v33 = vld [vmem:[%s15068_s5 + $0x278] sm:$0xff]  ;;  %v6514_v43 = vld [vmem:[%s15067_s4 + $0x8e0] sm:$0xff] }
 0x4f4   :  { %9753 = vmatprep.subr.bf16.mxu0 %v9752_v39  ;;  %v9776_v48 = vpack.c.bf16 %v6565_v33, %v6564_v57 }
 0x4f6   :  { %3458 = vmatmul.mubr.f32.gmra.mrb[146].mxu0 %v6490_v46  ;;  %v6522_v46 = vld [vmem:[%s15067_s4 + $0x920] sm:$0xff] }
 0x4f7   :  { %9755 = vmatpush3.bf16.msra.mxu0 %v9752_v39  ;;  %3462 = vmatprep.mubr.f32.mxu0 %v6495_v35  ;;  %v6519_v39 = vld [vmem:[%s15067_s4 + $0x908] sm:$0xff] }
 0x4f8   :  { %9757 = vmatprep.subr.bf16.mxu0 %v9756_v58  ;;  %v6527_v35 = vld [vmem:[%s15067_s4 + $0x948] sm:$0xff] }
 0x4fa   :  { %3463 = vmatmul.mubr.f32.gmra.mrb[148].mxu0 %v6494_v23  ;;  %v6535_v23 = vld [vmem:[%s15067_s4 + $0x988] sm:$0xff] }
 0x4fb   :  { %9759 = vmatpush3.bf16.msra.mxu0 %v9756_v58  ;;  %3467 = vmatprep.mubr.f32.mxu0 %v6499_v62  ;;  %v6526_v58 = vld [vmem:[%s15067_s4 + $0x940] sm:$0xff] }
 0x4fc   :  { %9761 = vmatprep.subr.bf16.mxu0 %v9760_v30  ;;  %v6534_v62 = vld [vmem:[%s15067_s4 + $0x980] sm:$0xff] }
 0x4fe   :  { %3468 = vmatmul.mubr.f32.gmra.mrb[150].mxu0 %v6498_v16  ;;  %v6542_v16 = vld [vmem:[%s15067_s4 + $0x9c0] sm:$0xff] }
 0x4ff   :  { %9763 = vmatpush3.bf16.msra.mxu0 %v9760_v30  ;;  %3472 = vmatprep.mubr.f32.mxu0 %v6503_v22  ;;  %v6539_v30 = vld [vmem:[%s15067_s4 + $0x9a8] sm:$0xff] }
 0x500   :  { %9765 = vmatprep.subr.bf16.mxu0 %v9764_v13  ;;  %v6547_v22 = vld [vmem:[%s15067_s4 + $0x9e8] sm:$0xff] }
 0x502   :  { %3473 = vmatmul.mubr.f32.gmra.mrb[152].mxu0 %v6502_v6  ;;  %v7836_v6 = vadd.f32 %v7835_v32, %v7834_v2 }
 0x503   :  { %9767 = vmatpush3.bf16.msra.mxu0 %v9764_v13  ;;  %3477 = vmatprep.mubr.f32.mxu0 %v6507_v54  ;;  %v6546_v13 = vld [vmem:[%s15067_s4 + $0x9e0] sm:$0xff]  ;;  %v7837_v54 = vpop.f32.mrb[194].mxu1 }
 0x504   :  { %9769 = vmatprep.subr.bf16.mxu0 %v9768_v21 }
 0x506   :  { %3478 = vmatmul.mubr.f32.gmra.mrb[154].mxu0 %v6506_v45 }
 0x507   :  { %9771 = vmatpush3.bf16.msra.mxu0 %v9768_v21  ;;  %3482 = vmatprep.mubr.f32.mxu0 %v6511_v59  ;;  %v7838_v21 = vpop.f32.mrb[195].mxu1 }
 0x508   :  { %9773 = vmatprep.subr.bf16.mxu0 %v9772_v9  ;;  %v7839_v4 = vadd.f32 %v7838_v21, %v7837_v54  ;;  %v7840_v7 = vpop.f32.mrb[196].mxu1 }
 0x509   :  { %v7841_v45 = vpop.f32.mrb[197].mxu1 }
 0x50a   :  { %3483 = vmatmul.mubr.f32.gmra.mrb[156].mxu0 %v6510_v50  ;;  %v7842_v59 = vadd.f32 %v7841_v45, %v7840_v7 }
 0x50b   :  { %9775 = vmatpush3.bf16.msra.mxu0 %v9772_v9  ;;  %3487 = vmatprep.mubr.f32.mxu0 %v6515_v11  ;;  %v7843_v9 = vpop.f32.mrb[198].mxu1 }
 0x50c   :  { %9777 = vmatprep.subr.bf16.mxu0 %v9776_v48  ;;  %v7844_v57 = vpop.f32.mrb[199].mxu1 }
 0x50d   :  { %v7845_v33 = vadd.f32 %v7844_v57, %v7843_v9  ;;  %v7846_v50 = vpop.f32.mrb[200].mxu1 }
 0x50e   :  { %3488 = vmatmul.mubr.f32.gmra.mrb[158].mxu0 %v6514_v43  ;;  %v7847_v11 = vpop.f32.mrb[201].mxu1 }
 0x50f   :  { %9779 = vmatpush3.bf16.msra.mxu0 %v9776_v48  ;;  %3492 = vmatprep.mubr.f32.mxu0 %v6519_v39  ;;  %v13931_v48 = vadd.f32 %v7847_v11, %v7846_v50  ;;  %v7849_v43 = vpop.f32.mrb[202].mxu1 }
 0x510   :  { %9813 = vmatprep.subr.bf16.mxu0 %v11875_v28  ;;  %v7850_v39 = vpop.f32.mrb[203].mxu1 }
 0x512   :  { %3493 = vmatmul.mubr.f32.gmra.mrb[160].mxu0 %v6518_v19  ;;  %v13933_v19 = vadd.f32 %v7850_v39, %v7849_v43 }
 0x513   :  { %3497 = vmatprep.mubr.f32.mxu0 %v6523_v63  ;;  %v7852_v63 = vpop.f32.mrb[204].mxu1 }
 0x516   :  { %3498 = vmatmul.mubr.f32.gmra.mrb[162].mxu0 %v6522_v46  ;;  %v7853_v46 = vpop.f32.mrb[205].mxu1 }
 0x517   :  { %3502 = vmatprep.mubr.f32.mxu0 %v6527_v35  ;;  %v13935_v35 = vadd.f32 %v7853_v46, %v7852_v63 }
 0x51a   :  { %3503 = vmatmul.mubr.f32.gmra.mrb[164].mxu0 %v6526_v58  ;;  %v7855_v58 = vpop.f32.mrb[206].mxu1 }
 0x51b   :  { %3507 = vmatprep.mubr.f32.mxu0 %v6531_v61  ;;  %v7856_v61 = vpop.f32.mrb[207].mxu1 }
 0x51e   :  { %3508 = vmatmul.mubr.f32.gmra.mrb[166].mxu0 %v6530_v10  ;;  %v13937_v10 = vadd.f32 %v7856_v61, %v7855_v58 }
 0x51f   :  { %3512 = vmatprep.mubr.f32.mxu0 %v6535_v23  ;;  %v7858_v23 = vpop.f32.mrb[208].mxu1 }
 0x522   :  { %3513 = vmatmul.mubr.f32.gmra.mrb[168].mxu0 %v6534_v62  ;;  %v7859_v62 = vpop.f32.mrb[209].mxu1 }
 0x523   :  { %3517 = vmatprep.mubr.f32.mxu0 %v6539_v30  ;;  %v13939_v30 = vadd.f32 %v7859_v62, %v7858_v23 }
 0x526   :  { %3518 = vmatmul.mubr.f32.gmra.mrb[170].mxu0 %v6538_v49  ;;  %v7861_v49 = vpop.f32.mrb[210].mxu1 }
 0x527   :  { %3522 = vmatprep.mubr.f32.mxu0 %v6543_v26  ;;  %v7862_v26 = vpop.f32.mrb[211].mxu1 }
 0x52a   :  { %3523 = vmatmul.mubr.f32.gmra.mrb[172].mxu0 %v6542_v16  ;;  %v13941_v16 = vadd.f32 %v7862_v26, %v7861_v49 }
 0x52b   :  { %3527 = vmatprep.mubr.f32.mxu0 %v6547_v22  ;;  %v7864_v22 = vpop.f32.mrb[212].mxu1 }
 0x52e   :  { %3528 = vmatmul.mubr.f32.gmra.mrb[174].mxu0 %v6546_v13  ;;  %v7865_v13 = vpop.f32.mrb[213].mxu1 }
 0x52f   :  { %v13943_v2 = vadd.f32 %v7865_v13, %v7864_v22  ;;  %v7867_v32 = vpop.f32.mrb[214].mxu1 }
 0x530   :  { %v7868_v54 = vpop.f32.mrb[215].mxu1 }
 0x531   :  { %v13945_v21 = vadd.f32 %v7868_v54, %v7867_v32  ;;  %v7870_v7 = vpop.f32.mrb[216].mxu1 }
 0x532   :  { %v7871_v45 = vpop.f32.mrb[217].mxu1 }
 0x533   :  { %v13947_v9 = vadd.f32 %v7871_v45, %v7870_v7  ;;  %v7873_v57 = vpop.f32.mrb[218].mxu1 }
 0x534   :  { %v7874_v50 = vpop.f32.mrb[219].mxu1 }
 0x535   :  { %v13949_v11 = vadd.f32 %v7874_v50, %v7873_v57  ;;  %v7876_v43 = vpop.f32.mrb[220].mxu1 }
 0x536   :  { %v7877_v39 = vpop.f32.mrb[221].mxu1 }
 0x537   :  { %v13951_v63 = vadd.f32 %v7877_v39, %v7876_v43  ;;  %v7879_v46 = vpop.f32.mrb[222].mxu1 }
 0x538   :  { %v7880_v58 = vpop.f32.mrb[223].mxu1 }
 0x539   :  { %v13953_v61 = vadd.f32 %v7880_v58, %v7879_v46  ;;  %v13955_v26 = vpop.f32.mrb[224].mxu1 }
 0x5c5   :  { %v7754_v23 = vpop.f32.mrb[144].mxu0 }
 0x5c6   :  { %v7755_v62 = vpop.f32.mrb[145].mxu0 }
 0x5c7   :  { %v7756_v49 = vadd.f32 %v7755_v62, %v7754_v23 }
 0x5c9   :  { %v3600_v22 = vadd.f32 %v7836_v6, %v7756_v49  ;;  %v7757_v13 = vpop.f32.mrb[146].mxu0 }
 0x5ca   :  { %v7758_v32 = vpop.f32.mrb[147].mxu0 }
 0x5cb   :  { %v7759_v54 = vadd.f32 %v7758_v32, %v7757_v13  ;;  %9042 = vmatprep.mubr.f32.mxu0 %v3600_v22 }
 0x5cd   :  { %v3605_v7 = vadd.f32 %v7839_v4, %v7759_v54  ;;  %v7760_v45 = vpop.f32.mrb[148].mxu0 }
 0x5ce   :  { %v7761_v57 = vpop.f32.mrb[149].mxu0 }
 0x5cf   :  { %v7762_v50 = vadd.f32 %v7761_v57, %v7760_v45  ;;  %9043 = vmatmul.mubr.f32.vlgmr.msra.gmra.mrb[96].mxu0 %v3605_v7 }
 0x5d0   :  { %9815 = vmatpush3.bf16.msra.mxu0 %v11877_v25 }
 0x5d1   :  { %v3610_v43 = vadd.f32 %v7842_v59, %v7762_v50  ;;  %9817 = vmatprep.subr.bf16.mxu0 %v11879_v31  ;;  %v7763_v39 = vpop.f32.mrb[150].mxu0 }
 0x5d2   :  { %v7764_v46 = vpop.f32.mrb[151].mxu0 }
 0x5d3   :  { %v7765_v58 = vadd.f32 %v7764_v46, %v7763_v39  ;;  %9045 = vmatprep.mubr.f32.mxu0 %v3610_v43  ;;  %v6630_v46 = vld [vmem:[%s15068_s5 + $0x280] sm:$0xff] }
 0x5d4   :  { %9819 = vmatpush3.bf16.msra.mxu0 %v11881_v34 }
 0x5d5   :  { %v3615_v6 = vadd.f32 %v7845_v33, %v7765_v58  ;;  %9821 = vmatprep.subr.bf16.mxu0 %v11884_v14  ;;  %v7766_v23 = vpop.f32.mrb[152].mxu0 }
 0x5d6   :  { %v7767_v4 = vpop.f32.mrb[153].mxu0 }
 0x5d7   :  { %v7768_v62 = vadd.f32 %v7767_v4, %v7766_v23  ;;  %9046 = vmatmul.mubr.f32.gmra.mrb[98].mxu0 %v3615_v6 }
 0x5d8   :  { %9823 = vmatpush3.bf16.msra.mxu0 %v11886_v12 }
 0x5d9   :  { %v3620_v49 = vadd.f32 %v13931_v48, %v7768_v62  ;;  %9825 = vmatprep.subr.bf16.mxu0 %v11888_v20  ;;  %v7769_v59 = vpop.f32.mrb[154].mxu0 }
 0x5da   :  { %v7770_v22 = vpop.f32.mrb[155].mxu0 }
 0x5db   :  { %v7771_v13 = vadd.f32 %v7770_v22, %v7769_v59  ;;  %9048 = vmatprep.mubr.f32.mxu0 %v3620_v49 }
 0x5dc   :  { %9827 = vmatpush3.bf16.msra.mxu0 %v11890_v37 }
 0x5dd   :  { %v3625_v33 = vadd.f32 %v13933_v19, %v7771_v13  ;;  %9829 = vmatprep.subr.bf16.mxu0 %v11893_v15  ;;  %v7772_v32 = vpop.f32.mrb[156].mxu0 }
 0x5de   :  { %v7773_v54 = vpop.f32.mrb[157].mxu0 }
 0x5df   :  { %v7774_v7 = vadd.f32 %v7773_v54, %v7772_v32  ;;  %9049 = vmatmul.mubr.f32.gmra.mrb[100].mxu0 %v3625_v33 }
 0x5e0   :  { %9831 = vmatpush3.bf16.msra.mxu0 %v11895_v55 }
 0x5e1   :  { %v3630_v48 = vadd.f32 %v13935_v35, %v7774_v7  ;;  %9833 = vmatprep.subr.bf16.mxu0 %v11897_v18  ;;  %v7775_v45 = vpop.f32.mrb[158].mxu0  ;;  %v6631_v35 = vld [vmem:[%s15068_s5 + $0x288] sm:$0xff] }
 0x5e2   :  { %v7776_v57 = vpop.f32.mrb[159].mxu0  ;;  %v9844_v23 = vpack.c.bf16 %v6631_v35, %v6630_v46 }
 0x5e3   :  { %v7777_v50 = vadd.f32 %v7776_v57, %v7775_v45  ;;  %9051 = vmatprep.mubr.f32.mxu0 %v3630_v48 }
 0x5e4   :  { %9835 = vmatpush3.bf16.msra.mxu0 %v11899_v36 }
 0x5e5   :  { %v3635_v19 = vadd.f32 %v13937_v10, %v7777_v50  ;;  %9837 = vmatprep.subr.bf16.mxu0 %v11902_v27  ;;  %v7778_v43 = vpop.f32.mrb[160].mxu0 }
 0x5e6   :  { %v7779_v39 = vpop.f32.mrb[161].mxu0 }
 0x5e7   :  { %v7780_v58 = vadd.f32 %v7779_v39, %v7778_v43  ;;  %9052 = vmatmul.mubr.f32.gmra.mrb[102].mxu0 %v3635_v19 }
 0x5e8   :  { %9839 = vmatpush3.bf16.msra.mxu0 %v11904_v53 }
 0x5e9   :  { %v3640_v6 = vadd.f32 %v13939_v30, %v7780_v58  ;;  %9841 = vmatprep.subr.bf16.mxu0 %v15406_v44  ;;  %v7781_v10 = vpop.f32.mrb[162].mxu0 }
 0x5ea   :  { %v7782_v4 = vpop.f32.mrb[163].mxu0 }
 0x5eb   :  { %v7783_v62 = vadd.f32 %v7782_v4, %v7781_v10  ;;  %9054 = vmatprep.mubr.f32.mxu0 %v3640_v6 }
 0x5ec   :  { %9843 = vmatpush3.bf16.msra.mxu0 %v11906_v24 }
 0x5ed   :  { %v3645_v49 = vadd.f32 %v13941_v16, %v7783_v62  ;;  %v7784_v59 = vpop.f32.mrb[164].mxu0  ;;  %9845 = vmatprep.subr.bf16.mxu0 %v9844_v23  ;;  %v6633_v62 = vld [vmem:[%s15068_s5 + $0x298] sm:$0xff] }
 0x5ee   :  { %v7785_v22 = vpop.f32.mrb[165].mxu0 }
 0x5ef   :  { %v7786_v13 = vadd.f32 %v7785_v22, %v7784_v59  ;;  %9055 = vmatmul.mubr.f32.gmra.mrb[104].mxu0 %v3645_v49  ;;  %v6634_v59 = vld [vmem:[%s15068_s5 + $0x2a0] sm:$0xff]  ;;  %v6635_v22 = vld [vmem:[%s15068_s5 + $0x2a8] sm:$0xff] }
 0x5f1   :  { %v3650_v33 = vadd.f32 %v13943_v2, %v7786_v13  ;;  %v7787_v32 = vpop.f32.mrb[166].mxu0  ;;  %v6572_v13 = vld [vmem:[%s15067_s4 + $0xa30] sm:$0xff] }
 0x5f2   :  { %v7788_v30 = vpop.f32.mrb[167].mxu0 }
 0x5f3   :  { %v7789_v54 = vadd.f32 %v7788_v30, %v7787_v32  ;;  %9057 = vmatprep.mubr.f32.mxu0 %v3650_v33  ;;  %v6577_v33 = vld [vmem:[%s15067_s4 + $0xa58] sm:$0xff]  ;;  %v9852_v32 = vpack.c.bf16 %v6635_v22, %v6634_v59  ;;  %v6636_v30 = vld [vmem:[%s15068_s5 + $0x2b0] sm:$0xff] }
 0x5f4   :  { %v6601_v59 = vld [vmem:[%s15067_s4 + $0xb18] sm:$0xff]  ;;  %v6600_v22 = vld [vmem:[%s15067_s4 + $0xb10] sm:$0xff] }
 0x5f5   :  { %v3655_v7 = vadd.f32 %v13945_v21, %v7789_v54  ;;  %v7790_v48 = vpop.f32.mrb[168].mxu0  ;;  %v6637_v54 = vld [vmem:[%s15068_s5 + $0x2b8] sm:$0xff] }
 0x5f6   :  { %v7791_v45 = vpop.f32.mrb[169].mxu0 }
 0x5f7   :  { %v7792_v57 = vadd.f32 %v7791_v45, %v7790_v48  ;;  %9058 = vmatmul.mubr.f32.gmra.mrb[106].mxu0 %v3655_v7  ;;  %v6581_v7 = vld [vmem:[%s15067_s4 + $0xa78] sm:$0xff]  ;;  %v9856_v48 = vpack.c.bf16 %v6637_v54, %v6636_v30  ;;  %v6638_v45 = vld [vmem:[%s15068_s5 + $0x2c0] sm:$0xff]  ;;  %v6612_v54 = vld [vmem:[%s15067_s4 + $0xb70] sm:$0xff] }
 0x5f8   :  { %v6613_v30 = vld [vmem:[%s15067_s4 + $0xb78] sm:$0xff] }
 0x5f9   :  { %v3660_v50 = vadd.f32 %v13947_v9, %v7792_v57  ;;  %v7793_v16 = vpop.f32.mrb[170].mxu0  ;;  %v6569_v9 = vld [vmem:[%s15067_s4 + $0xa18] sm:$0xff]  ;;  %v6639_v57 = vld [vmem:[%s15068_s5 + $0x2c8] sm:$0xff] }
 0x5fa   :  { %v7794_v19 = vpop.f32.mrb[171].mxu0 }
 0x5fb   :  { %v7795_v43 = vadd.f32 %v7794_v19, %v7793_v16  ;;  %9060 = vmatprep.mubr.f32.mxu0 %v3660_v50  ;;  %v6580_v50 = vld [vmem:[%s15067_s4 + $0xa70] sm:$0xff]  ;;  %v6585_v16 = vld [vmem:[%s15067_s4 + $0xa98] sm:$0xff]  ;;  %v9860_v19 = vpack.c.bf16 %v6639_v57, %v6638_v45 }
 0x5fc   :  { %v6620_v45 = vld [vmem:[%s15067_s4 + $0xbb0] sm:$0xff]  ;;  %v6625_v57 = vld [vmem:[%s15067_s4 + $0xbd8] sm:$0xff] }
 0x5fd   :  { %v3665_v39 = vadd.f32 %v13949_v11, %v7795_v43  ;;  %v7796_v46 = vpop.f32.mrb[172].mxu0  ;;  %v6632_v11 = vld [vmem:[%s15068_s5 + $0x290] sm:$0xff] }
 0x5fe   :  { %v7797_v2 = vpop.f32.mrb[173].mxu0  ;;  %v9848_v49 = vpack.c.bf16 %v6633_v62, %v6632_v11  ;;  %v6640_v43 = vld [vmem:[%s15068_s5 + $0x2d0] sm:$0xff]  ;;  %v6645_v11 = vld [vmem:[%s15068_s5 + $0x2f8] sm:$0xff] }
 0x5ff   :  { %v7798_v35 = vadd.f32 %v7797_v2, %v7796_v46  ;;  %9061 = vmatmul.mubr.f32.gmra.mrb[108].mxu0 %v3665_v39  ;;  %v6641_v39 = vld [vmem:[%s15068_s5 + $0x2d8] sm:$0xff]  ;;  %v6584_v46 = vld [vmem:[%s15067_s4 + $0xa90] sm:$0xff] }
 0x600   :  { %v6589_v2 = vld [vmem:[%s15067_s4 + $0xab8] sm:$0xff]  ;;  %v6592_v62 = vld [vmem:[%s15067_s4 + $0xad0] sm:$0xff] }
 0x601   :  { %v3670_v58 = vadd.f32 %v13951_v63, %v7798_v35  ;;  %v7799_v6 = vpop.f32.mrb[174].mxu0  ;;  %v6568_v63 = vld [vmem:[%s15067_s4 + $0xa10] sm:$0xff]  ;;  %v9864_v35 = vpack.c.bf16 %v6641_v39, %v6640_v43  ;;  %v7947_v43 = vpop.f32.mrb[225].mxu1 }
 0x602   :  { %v7800_v21 = vpop.f32.mrb[175].mxu0  ;;  %v14130_v39 = vadd.f32 %v7947_v43, %v13955_v26  ;;  %v6732_v43 = vld [vmem:[%s15067_s4 + $0xe30] sm:$0xff] }
 0x603   :  { %v7801_v10 = vadd.f32 %v7800_v21, %v7799_v6  ;;  %9063 = vmatprep.mubr.f32.mxu0 %v3670_v58  ;;  %v6642_v58 = vld [vmem:[%s15068_s5 + $0x2e0] sm:$0xff]  ;;  %v6643_v6 = vld [vmem:[%s15068_s5 + $0x2e8] sm:$0xff]  ;;  %v6588_v21 = vld [vmem:[%s15067_s4 + $0xab0] sm:$0xff] }
 0x605   :  { %v3675_v4 = vadd.f32 %v13953_v61, %v7801_v10  ;;  %v6573_v61 = vld [vmem:[%s15067_s4 + $0xa38] sm:$0xff] }
 0x606   :  { %v6593_v10 = vld [vmem:[%s15067_s4 + $0xad8] sm:$0xff] }
 0x607   :  { %9064 = vmatmul.mubr.f32.gmra.mrb[110].mxu0 %v3675_v4  ;;  %v9868_v4 = vpack.c.bf16 %v6643_v6, %v6642_v58 }
 0x608   :  { %4130 = vmatprep.mubr.f32.mxu0 %v6569_v9  ;;  %v6644_v9 = vld [vmem:[%s15068_s5 + $0x2f0] sm:$0xff] }
 0x60b   :  { %4131 = vmatmul.mubr.f32.vlgmr.msra.gmra.mrb[176].mxu0 %v6568_v63  ;;  %v6597_v63 = vld [vmem:[%s15067_s4 + $0xaf8] sm:$0xff] }
 0x60c   :  { %9847 = vmatpush3.bf16.msra.mxu0 %v9844_v23  ;;  %4135 = vmatprep.mubr.f32.mxu0 %v6573_v61  ;;  %v6576_v23 = vld [vmem:[%s15067_s4 + $0xa50] sm:$0xff]  ;;  %v9872_v61 = vpack.c.bf16 %v6645_v11, %v6644_v9 }
 0x60d   :  { %9849 = vmatprep.subr.bf16.mxu0 %v9848_v49 }
 0x60f   :  { %4136 = vmatmul.mubr.f32.gmra.mrb[178].mxu0 %v6572_v13  ;;  %v6605_v13 = vld [vmem:[%s15067_s4 + $0xb38] sm:$0xff] }
 0x610   :  { %9851 = vmatpush3.bf16.msra.mxu0 %v9848_v49  ;;  %4140 = vmatprep.mubr.f32.mxu0 %v6577_v33  ;;  %v6596_v49 = vld [vmem:[%s15067_s4 + $0xaf0] sm:$0xff] }
 0x611   :  { %9853 = vmatprep.subr.bf16.mxu0 %v9852_v32  ;;  %v6604_v33 = vld [vmem:[%s15067_s4 + $0xb30] sm:$0xff] }
 0x613   :  { %4141 = vmatmul.mubr.f32.gmra.mrb[180].mxu0 %v6576_v23  ;;  %v6617_v23 = vld [vmem:[%s15067_s4 + $0xb98] sm:$0xff] }
 0x614   :  { %9855 = vmatpush3.bf16.msra.mxu0 %v9852_v32  ;;  %4145 = vmatprep.mubr.f32.mxu0 %v6581_v7  ;;  %v6609_v32 = vld [vmem:[%s15067_s4 + $0xb58] sm:$0xff]  ;;  %v6616_v7 = vld [vmem:[%s15067_s4 + $0xb90] sm:$0xff] }
 0x615   :  { %9857 = vmatprep.subr.bf16.mxu0 %v9856_v48 }
 0x617   :  { %4146 = vmatmul.mubr.f32.gmra.mrb[182].mxu0 %v6580_v50  ;;  %v6624_v50 = vld [vmem:[%s15067_s4 + $0xbd0] sm:$0xff] }
 0x618   :  { %9859 = vmatpush3.bf16.msra.mxu0 %v9856_v48  ;;  %4150 = vmatprep.mubr.f32.mxu0 %v6585_v16  ;;  %v6621_v48 = vld [vmem:[%s15067_s4 + $0xbb8] sm:$0xff] }
 0x619   :  { %9861 = vmatprep.subr.bf16.mxu0 %v9860_v19  ;;  %v6629_v16 = vld [vmem:[%s15067_s4 + $0xbf8] sm:$0xff] }
 0x61b   :  { %4151 = vmatmul.mubr.f32.gmra.mrb[184].mxu0 %v6584_v46  ;;  %v7949_v46 = vpop.f32.mrb[226].mxu1 }
 0x61c   :  { %9863 = vmatpush3.bf16.msra.mxu0 %v9860_v19  ;;  %4155 = vmatprep.mubr.f32.mxu0 %v6589_v2  ;;  %v6628_v19 = vld [vmem:[%s15067_s4 + $0xbf0] sm:$0xff]  ;;  %v7950_v2 = vpop.f32.mrb[227].mxu1 }
 0x61d   :  { %9865 = vmatprep.subr.bf16.mxu0 %v9864_v35  ;;  %v7952_v58 = vpop.f32.mrb[228].mxu1 }
 0x61e   :  { %v7953_v6 = vpop.f32.mrb[229].mxu1 }
 0x61f   :  { %4156 = vmatmul.mubr.f32.gmra.mrb[186].mxu0 %v6588_v21  ;;  %v14134_v21 = vadd.f32 %v7953_v6, %v7952_v58  ;;  %v6737_v6 = vld [vmem:[%s15067_s4 + $0xe58] sm:$0xff] }
 0x620   :  { %9867 = vmatpush3.bf16.msra.mxu0 %v9864_v35  ;;  %4160 = vmatprep.mubr.f32.mxu0 %v6593_v10  ;;  %v14132_v35 = vadd.f32 %v7950_v2, %v7949_v46  ;;  %v7955_v10 = vpop.f32.mrb[230].mxu1 }
 0x621   :  { %9869 = vmatprep.subr.bf16.mxu0 %v9868_v4 }
 0x623   :  { %4161 = vmatmul.mubr.f32.gmra.mrb[188].mxu0 %v6592_v62 }
 0x624   :  { %9871 = vmatpush3.bf16.msra.mxu0 %v9868_v4  ;;  %4165 = vmatprep.mubr.f32.mxu0 %v6597_v63  ;;  %v7956_v4 = vpop.f32.mrb[231].mxu1 }
 0x625   :  { %9873 = vmatprep.subr.bf16.mxu0 %v9872_v61  ;;  %v14136_v9 = vadd.f32 %v7956_v4, %v7955_v10  ;;  %v7958_v11 = vpop.f32.mrb[232].mxu1  ;;  %v6736_v10 = vld [vmem:[%s15067_s4 + $0xe50] sm:$0xff] }
 0x626   :  { %v7959_v62 = vpop.f32.mrb[233].mxu1 }
 0x627   :  { %4166 = vmatmul.mubr.f32.gmra.mrb[190].mxu0 %v6596_v49  ;;  %v14138_v63 = vadd.f32 %v7959_v62, %v7958_v11 }
 0x628   :  { %9875 = vmatpush3.bf16.msra.mxu0 %v9872_v61  ;;  %4170 = vmatprep.mubr.f32.mxu0 %v6601_v59  ;;  %v7961_v61 = vpop.f32.mrb[234].mxu1 }
 0x629   :  { %9909 = vmatprep.subr.bf16.mxu0 %v11875_v28  ;;  %v6608_v28 = vld [vmem:[%s15067_s4 + $0xb50] sm:$0xff]  ;;  %v7962_v49 = vpop.f32.mrb[235].mxu1 }
 0x62a   :  { %v14140_v26 = vadd.f32 %v7962_v49, %v7961_v61  ;;  %v7964_v59 = vpop.f32.mrb[236].mxu1  ;;  %v6741_v61 = vld [vmem:[%s15067_s4 + $0xe78] sm:$0xff]  ;;  %v6740_v49 = vld [vmem:[%s15067_s4 + $0xe70] sm:$0xff] }
 0x62b   :  { %4171 = vmatmul.mubr.f32.gmra.mrb[192].mxu0 %v6600_v22  ;;  %v7965_v22 = vpop.f32.mrb[237].mxu1 }
 0x62c   :  { %4175 = vmatprep.mubr.f32.mxu0 %v6605_v13  ;;  %v14142_v13 = vadd.f32 %v7965_v22, %v7964_v59 }
 0x62f   :  { %4176 = vmatmul.mubr.f32.gmra.mrb[194].mxu0 %v6604_v33  ;;  %v7967_v33 = vpop.f32.mrb[238].mxu1 }
 0x630   :  { %4180 = vmatprep.mubr.f32.mxu0 %v6609_v32  ;;  %v7968_v32 = vpop.f32.mrb[239].mxu1 }
 0x633   :  { %4181 = vmatmul.mubr.f32.gmra.mrb[196].mxu0 %v6608_v28  ;;  %v14144_v28 = vadd.f32 %v7968_v32, %v7967_v33  ;;  %v6745_v32 = vld [vmem:[%s15067_s4 + $0xe98] sm:$0xff] }
 0x634   :  { %4185 = vmatprep.mubr.f32.mxu0 %v6613_v30  ;;  %v7970_v30 = vpop.f32.mrb[240].mxu1 }
 0x637   :  { %4186 = vmatmul.mubr.f32.gmra.mrb[198].mxu0 %v6612_v54  ;;  %v7971_v54 = vpop.f32.mrb[241].mxu1 }
 0x638   :  { %4190 = vmatprep.mubr.f32.mxu0 %v6617_v23  ;;  %v14146_v23 = vadd.f32 %v7971_v54, %v7970_v30  ;;  %v6744_v30 = vld [vmem:[%s15067_s4 + $0xe90] sm:$0xff] }
 0x63b   :  { %4191 = vmatmul.mubr.f32.gmra.mrb[200].mxu0 %v6616_v7  ;;  %v7973_v7 = vpop.f32.mrb[242].mxu1 }
 0x63c   :  { %4195 = vmatprep.mubr.f32.mxu0 %v6621_v48  ;;  %v7974_v48 = vpop.f32.mrb[243].mxu1 }
 0x63f   :  { %4196 = vmatmul.mubr.f32.gmra.mrb[202].mxu0 %v6620_v45  ;;  %v14148_v45 = vadd.f32 %v7974_v48, %v7973_v7 }
 0x640   :  { %4200 = vmatprep.mubr.f32.mxu0 %v6625_v57  ;;  %v7976_v57 = vpop.f32.mrb[244].mxu1 }
 0x643   :  { %4201 = vmatmul.mubr.f32.gmra.mrb[204].mxu0 %v6624_v50  ;;  %v7977_v50 = vpop.f32.mrb[245].mxu1 }
 0x644   :  { %4205 = vmatprep.mubr.f32.mxu0 %v6629_v16  ;;  %v14150_v16 = vadd.f32 %v7977_v50, %v7976_v57  ;;  %v7979_v46 = vpop.f32.mrb[246].mxu1  ;;  %v6749_v57 = vld [vmem:[%s15067_s4 + $0xeb8] sm:$0xff]  ;;  %v6748_v50 = vld [vmem:[%s15067_s4 + $0xeb0] sm:$0xff] }
 0x645   :  { %v7980_v2 = vpop.f32.mrb[247].mxu1 }
 0x646   :  { %v14158_v58 = vadd.f32 %v7980_v2, %v7979_v46  ;;  %v7982_v4 = vpop.f32.mrb[248].mxu1  ;;  %v6753_v2 = vld [vmem:[%s15067_s4 + $0xed8] sm:$0xff] }
 0x647   :  { %4206 = vmatmul.mubr.f32.gmra.mrb[206].mxu0 %v6628_v19  ;;  %v6733_v19 = vld [vmem:[%s15067_s4 + $0xe38] sm:$0xff]  ;;  %v7983_v11 = vpop.f32.mrb[249].mxu1 }
 0x648   :  { %5201 = vmatprep.mubr.f32.mxu1 %v6733_v19  ;;  %v14166_v62 = vadd.f32 %v7983_v11, %v7982_v4  ;;  %v7985_v59 = vpop.f32.mrb[250].mxu1  ;;  %v6756_v4 = vld [vmem:[%s15067_s4 + $0xef0] sm:$0xff]  ;;  %v6761_v11 = vld [vmem:[%s15067_s4 + $0xf18] sm:$0xff] }
 0x649   :  { %5202 = vmatmul.mubr.f32.gmra.mrb[66].mxu1 %v6732_v43  ;;  %v7986_v22 = vpop.f32.mrb[251].mxu1 }
 0x64a   :  { %5206 = vmatprep.mubr.f32.mxu1 %v6737_v6  ;;  %v14174_v33 = vadd.f32 %v7986_v22, %v7985_v59  ;;  %v7988_v54 = vpop.f32.mrb[252].mxu1  ;;  %v6752_v6 = vld [vmem:[%s15067_s4 + $0xed0] sm:$0xff]  ;;  %v6769_v22 = vld [vmem:[%s15067_s4 + $0xf58] sm:$0xff] }
 0x64b   :  { %v7989_v7 = vpop.f32.mrb[253].mxu1  ;;  %v6764_v59 = vld [vmem:[%s15067_s4 + $0xf30] sm:$0xff] }
 0x64c   :  { %v14182_v48 = vadd.f32 %v7989_v7, %v7988_v54  ;;  %v7991_v19 = vpop.f32.mrb[254].mxu1  ;;  %v6772_v54 = vld [vmem:[%s15067_s4 + $0xf70] sm:$0xff]  ;;  %v6777_v7 = vld [vmem:[%s15067_s4 + $0xf98] sm:$0xff] }
 0x64d   :  { %5207 = vmatmul.mubr.f32.gmra.mrb[68].mxu1 %v6736_v10  ;;  %v7992_v43 = vpop.f32.mrb[255].mxu1  ;;  %v6757_v10 = vld [vmem:[%s15067_s4 + $0xef8] sm:$0xff] }
 0x64e   :  { %5211 = vmatprep.mubr.f32.mxu1 %v6741_v61  ;;  %v14190_v46 = vadd.f32 %v7992_v43, %v7991_v19  ;;  %v6760_v61 = vld [vmem:[%s15067_s4 + $0xf10] sm:$0xff]  ;;  %v6785_v43 = vld [vmem:[%s15067_s4 + $0xfd8] sm:$0xff] }
 0x64f   :  { %v6780_v19 = vld [vmem:[%s15067_s4 + $0xfb0] sm:$0xff] }
 0x651   :  { %5212 = vmatmul.mubr.f32.gmra.mrb[70].mxu1 %v6740_v49  ;;  %v6765_v49 = vld [vmem:[%s15067_s4 + $0xf38] sm:$0xff] }
 0x652   :  { %5216 = vmatprep.mubr.f32.mxu1 %v6745_v32  ;;  %v6768_v32 = vld [vmem:[%s15067_s4 + $0xf50] sm:$0xff] }
 0x655   :  { %5217 = vmatmul.mubr.f32.gmra.mrb[72].mxu1 %v6744_v30  ;;  %v6773_v30 = vld [vmem:[%s15067_s4 + $0xf78] sm:$0xff] }
 0x656   :  { %5221 = vmatprep.mubr.f32.mxu1 %v6749_v57  ;;  %v6776_v57 = vld [vmem:[%s15067_s4 + $0xf90] sm:$0xff] }
 0x659   :  { %5222 = vmatmul.mubr.f32.gmra.mrb[74].mxu1 %v6748_v50  ;;  %v6781_v50 = vld [vmem:[%s15067_s4 + $0xfb8] sm:$0xff] }
 0x65a   :  { %5226 = vmatprep.mubr.f32.mxu1 %v6753_v2  ;;  %v6784_v2 = vld [vmem:[%s15067_s4 + $0xfd0] sm:$0xff] }
 0x65d   :  { %5227 = vmatmul.mubr.f32.gmra.mrb[76].mxu1 %v6752_v6  ;;  %v6789_v6 = vld [vmem:[%s15067_s4 + $0xff8] sm:$0xff] }
 0x65e   :  { %5231 = vmatprep.mubr.f32.mxu1 %v6757_v10  ;;  %v6788_v10 = vld [vmem:[%s15067_s4 + $0xff0] sm:$0xff] }
 0x661   :  { %5232 = vmatmul.mubr.f32.gmra.mrb[78].mxu1 %v6756_v4 }
 0x662   :  { %5236 = vmatprep.mubr.f32.mxu1 %v6761_v11 }
 0x665   :  { %5237 = vmatmul.mubr.f32.gmra.mrb[80].mxu1 %v6760_v61 }
 0x666   :  { %5241 = vmatprep.mubr.f32.mxu1 %v6765_v49  ;;  %v8138_v49 = vpop.f32.mrb[0].mxu1 }
 0x669   :  { %5242 = vmatmul.mubr.f32.gmra.mrb[82].mxu1 %v6764_v59  ;;  %v8139_v59 = vpop.f32.mrb[1].mxu1 }
 0x66a   :  { %5246 = vmatprep.mubr.f32.mxu1 %v6769_v22 }
 0x66d   :  { %5247 = vmatmul.mubr.f32.gmra.mrb[84].mxu1 %v6768_v32 }
 0x66e   :  { %5251 = vmatprep.mubr.f32.mxu1 %v6773_v30  ;;  %v14253_v30 = vadd.f32 %v8139_v59, %v8138_v49 }
 0x671   :  { %5252 = vmatmul.mubr.f32.gmra.mrb[86].mxu1 %v6772_v54  ;;  %v8141_v54 = vpop.f32.mrb[2].mxu1 }
 0x672   :  { %5256 = vmatprep.mubr.f32.mxu1 %v6777_v7 }
 0x675   :  { %5257 = vmatmul.mubr.f32.gmra.mrb[88].mxu1 %v6776_v57  ;;  %v8142_v57 = vpop.f32.mrb[3].mxu1 }
 0x676   :  { %5261 = vmatprep.mubr.f32.mxu1 %v6781_v50 }
 0x679   :  { %5262 = vmatmul.mubr.f32.gmra.mrb[90].mxu1 %v6780_v19  ;;  %v14255_v19 = vadd.f32 %v8142_v57, %v8141_v54 }
 0x67a   :  { %5266 = vmatprep.mubr.f32.mxu1 %v6785_v43  ;;  %v8144_v43 = vpop.f32.mrb[4].mxu1 }
 0x67d   :  { %5267 = vmatmul.mubr.f32.gmra.mrb[92].mxu1 %v6784_v2  ;;  %v8145_v2 = vpop.f32.mrb[5].mxu1 }
 0x67e   :  { %5271 = vmatprep.mubr.f32.mxu1 %v6789_v6 }
 0x681   :  { %5272 = vmatmul.mubr.f32.gmra.mrb[94].mxu1 %v6788_v10 }
 0x6de   :  { %v8026_v4 = vpop.f32.mrb[176].mxu0 }
 0x6df   :  { %v8027_v11 = vpop.f32.mrb[177].mxu0 }
 0x6e0   :  { %v8028_v61 = vadd.f32 %v8027_v11, %v8026_v4  ;;  %v14258_v4 = vadd.f32 %v8145_v2, %v8144_v43  ;;  %v8147_v11 = vpop.f32.mrb[6].mxu1 }
 0x6e2   :  { %v4133_v22 = vadd.f32 %v8028_v61, %v14130_v39  ;;  %v8029_v32 = vpop.f32.mrb[178].mxu0  ;;  %v8148_v39 = vpop.f32.mrb[7].mxu1 }
 0x6e3   :  { %v8030_v7 = vpop.f32.mrb[179].mxu0  ;;  %v14260_v49 = vadd.f32 %v8148_v39, %v8147_v11  ;;  %v8150_v59 = vpop.f32.mrb[8].mxu1 }
 0x6e4   :  { %v8031_v50 = vadd.f32 %v8030_v7, %v8029_v32  ;;  %9098 = vmatprep.mubr.f32.mxu0 %v4133_v22  ;;  %v8151_v22 = vpop.f32.mrb[9].mxu1 }
 0x6e5   :  { %v8153_v7 = vpop.f32.mrb[10].mxu1 }
 0x6e6   :  { %v4138_v6 = vadd.f32 %v8031_v50, %v14132_v35  ;;  %v8032_v10 = vpop.f32.mrb[180].mxu0  ;;  %v14265_v35 = vadd.f32 %v8151_v22, %v8150_v59  ;;  %v8154_v50 = vpop.f32.mrb[11].mxu1 }
 0x6e7   :  { %v8033_v47 = vpop.f32.mrb[181].mxu0  ;;  %v8156_v2 = vpop.f32.mrb[12].mxu1 }
 0x6e8   :  { %v8034_v61 = vadd.f32 %v8033_v47, %v8032_v10  ;;  %9099 = vmatmul.mubr.f32.vlgmr.msra.gmra.mrb[96].mxu0 %v4138_v6  ;;  %v14267_v47 = vadd.f32 %v8154_v50, %v8153_v7  ;;  %v8157_v6 = vpop.f32.mrb[13].mxu1 }
 0x6e9   :  { %9911 = vmatpush3.bf16.msra.mxu0 %v11877_v25  ;;  %v8159_v10 = vpop.f32.mrb[14].mxu1 }
 0x6ea   :  { %v4143_v32 = vadd.f32 %v8034_v61, %v14134_v21  ;;  %9913 = vmatprep.subr.bf16.mxu0 %v11879_v31  ;;  %v8035_v54 = vpop.f32.mrb[182].mxu0  ;;  %v14272_v31 = vadd.f32 %v8157_v6, %v8156_v2  ;;  %v8160_v39 = vpop.f32.mrb[15].mxu1 }
 0x6eb   :  { %v8036_v57 = vpop.f32.mrb[183].mxu0  ;;  %v14274_v59 = vadd.f32 %v8160_v39, %v8159_v10  ;;  %v8162_v22 = vpop.f32.mrb[16].mxu1 }
 0x6ec   :  { %v8037_v43 = vadd.f32 %v8036_v57, %v8035_v54  ;;  %9101 = vmatprep.mubr.f32.mxu0 %v4143_v32  ;;  %v8163_v32 = vpop.f32.mrb[17].mxu1 }
 0x6ed   :  { %9915 = vmatpush3.bf16.msra.mxu0 %v11881_v34  ;;  %v8165_v54 = vpop.f32.mrb[18].mxu1 }
 0x6ee   :  { %v4148_v25 = vadd.f32 %v8037_v43, %v14136_v9  ;;  %9917 = vmatprep.subr.bf16.mxu0 %v11884_v14  ;;  %v8038_v21 = vpop.f32.mrb[184].mxu0  ;;  %v14279_v14 = vadd.f32 %v8163_v32, %v8162_v22  ;;  %v8166_v57 = vpop.f32.mrb[19].mxu1 }
 0x6ef   :  { %v8039_v11 = vpop.f32.mrb[185].mxu0  ;;  %v14281_v43 = vadd.f32 %v8166_v57, %v8165_v54  ;;  %v8168_v2 = vpop.f32.mrb[20].mxu1 }
 0x6f0   :  { %v8040_v61 = vadd.f32 %v8039_v11, %v8038_v21  ;;  %9102 = vmatmul.mubr.f32.gmra.mrb[98].mxu0 %v4148_v25  ;;  %v8169_v6 = vpop.f32.mrb[21].mxu1 }
 0x6f1   :  { %9919 = vmatpush3.bf16.msra.mxu0 %v11886_v12  ;;  %v8171_v25 = vpop.f32.mrb[22].mxu1 }
 0x6f2   :  { %v4153_v34 = vadd.f32 %v8040_v61, %v14138_v63  ;;  %9921 = vmatprep.subr.bf16.mxu0 %v11888_v20  ;;  %v8041_v9 = vpop.f32.mrb[186].mxu0  ;;  %v14286_v20 = vadd.f32 %v8169_v6, %v8168_v2  ;;  %v8172_v10 = vpop.f32.mrb[23].mxu1 }
 0x6f3   :  { %v8042_v7 = vpop.f32.mrb[187].mxu0  ;;  %v14288_v39 = vadd.f32 %v8172_v10, %v8171_v25  ;;  %v8174_v61 = vpop.f32.mrb[24].mxu1  ;;  %v6711_v25 = vld [vmem:[%s15068_s5 + $0x308] sm:$0xff] }
 0x6f4   :  { %v8043_v50 = vadd.f32 %v8042_v7, %v8041_v9  ;;  %9104 = vmatprep.mubr.f32.mxu0 %v4153_v34  ;;  %v8175_v22 = vpop.f32.mrb[25].mxu1 }
 0x6f5   :  { %9923 = vmatpush3.bf16.msra.mxu0 %v11890_v37  ;;  %v8177_v32 = vpop.f32.mrb[26].mxu1 }
 0x6f6   :  { %v4158_v12 = vadd.f32 %v8043_v50, %v14140_v26  ;;  %9925 = vmatprep.subr.bf16.mxu0 %v11893_v15  ;;  %v8044_v63 = vpop.f32.mrb[188].mxu0  ;;  %v14293_v15 = vadd.f32 %v8175_v22, %v8174_v61  ;;  %v8178_v9 = vpop.f32.mrb[27].mxu1 }
 0x6f7   :  { %v8045_v21 = vpop.f32.mrb[189].mxu0  ;;  %v14295_v7 = vadd.f32 %v8178_v9, %v8177_v32  ;;  %v8180_v57 = vpop.f32.mrb[28].mxu1 }
 0x6f8   :  { %v8046_v11 = vadd.f32 %v8045_v21, %v8044_v63  ;;  %9105 = vmatmul.mubr.f32.gmra.mrb[100].mxu0 %v4158_v12  ;;  %v8181_v50 = vpop.f32.mrb[29].mxu1  ;;  %v6710_v63 = vld [vmem:[%s15068_s5 + $0x300] sm:$0xff] }
 0x6f9   :  { %9927 = vmatpush3.bf16.msra.mxu0 %v11895_v55  ;;  %v8183_v2 = vpop.f32.mrb[30].mxu1 }
 0x6fa   :  { %v4163_v37 = vadd.f32 %v8046_v11, %v14142_v13  ;;  %9929 = vmatprep.subr.bf16.mxu0 %v11897_v18  ;;  %v8047_v26 = vpop.f32.mrb[190].mxu0  ;;  %v14300_v18 = vadd.f32 %v8181_v50, %v8180_v57  ;;  %v8184_v12 = vpop.f32.mrb[31].mxu1 }
 0x6fb   :  { %v8048_v34 = vpop.f32.mrb[191].mxu0  ;;  %v14308_v21 = vadd.f32 %v8184_v12, %v8183_v2 }
 0x6fc   :  { %v8049_v54 = vadd.f32 %v8048_v34, %v8047_v26  ;;  %9107 = vmatprep.mubr.f32.mxu0 %v4163_v37  ;;  %v14315_v37 = vpack.c.bf16 %v6711_v25, %v6710_v63 }
 0x6fd   :  { %9931 = vmatpush3.bf16.msra.mxu0 %v11899_v36 }
 0x6fe   :  { %v4168_v55 = vadd.f32 %v8049_v54, %v14144_v28  ;;  %9933 = vmatprep.subr.bf16.mxu0 %v11902_v27  ;;  %v8050_v13 = vpop.f32.mrb[192].mxu0  ;;  %v8330_v28 = vpop.f32.mrb[32].mxu1 }
 0x6ff   :  { %v8051_v6 = vpop.f32.mrb[193].mxu0  ;;  %v8331_v27 = vpop.f32.mrb[33].mxu1 }
 0x700   :  { %v8052_v36 = vadd.f32 %v8051_v6, %v8050_v13  ;;  %9108 = vmatmul.mubr.f32.gmra.mrb[102].mxu0 %v4168_v55  ;;  %v14313_v61 = vadd.f32 %v8331_v27, %v8330_v28  ;;  %v8333_v22 = vpop.f32.mrb[34].mxu1 }
 0x701   :  { %9935 = vmatpush3.bf16.msra.mxu0 %v11904_v53  ;;  %v8334_v32 = vpop.f32.mrb[35].mxu1 }
 0x702   :  { %v4173_v10 = vadd.f32 %v8052_v36, %v14146_v23  ;;  %9937 = vmatprep.subr.bf16.mxu0 %v15406_v44  ;;  %v8053_v11 = vpop.f32.mrb[194].mxu0  ;;  %v14317_v9 = vadd.f32 %v8334_v32, %v8333_v22  ;;  %v8336_v54 = vpop.f32.mrb[36].mxu1 }
 0x703   :  { %v8054_v26 = vpop.f32.mrb[195].mxu0  ;;  %v8337_v53 = vpop.f32.mrb[37].mxu1 }
 0x704   :  { %v8055_v34 = vadd.f32 %v8054_v26, %v8053_v11  ;;  %9110 = vmatprep.mubr.f32.mxu0 %v4173_v10  ;;  %v14321_v44 = vadd.f32 %v8337_v53, %v8336_v54  ;;  %v8339_v50 = vpop.f32.mrb[38].mxu1 }
 0x705   :  { %9939 = vmatpush3.bf16.msra.mxu0 %v11906_v24  ;;  %v8340_v13 = vpop.f32.mrb[39].mxu1 }
 0x706   :  { %v4178_v23 = vadd.f32 %v8055_v34, %v14148_v45  ;;  %v8056_v57 = vpop.f32.mrb[196].mxu0  ;;  %9941 = vmatprep.subr.bf16.mxu0 %v14315_v37  ;;  %v14324_v6 = vadd.f32 %v8340_v13, %v8339_v50  ;;  %v8342_v12 = vpop.f32.mrb[40].mxu1 }
 0x707   :  { %v8057_v55 = vpop.f32.mrb[197].mxu0  ;;  %v8343_v63 = vpop.f32.mrb[41].mxu1 }
 0x708   :  { %v8058_v2 = vadd.f32 %v8057_v55, %v8056_v57  ;;  %9111 = vmatmul.mubr.f32.gmra.mrb[104].mxu0 %v4178_v23  ;;  %v14327_v36 = vadd.f32 %v8343_v63, %v8342_v12  ;;  %v8345_v45 = vpop.f32.mrb[42].mxu1 }
 0x709   :  { %v8346_v27 = vpop.f32.mrb[43].mxu1 }
 0x70a   :  { %v4183_v25 = vadd.f32 %v8058_v2, %v14150_v16  ;;  %v8059_v24 = vpop.f32.mrb[198].mxu0  ;;  %v14329_v11 = vadd.f32 %v8346_v27, %v8345_v45  ;;  %v8348_v22 = vpop.f32.mrb[44].mxu1 }
 0x70b   :  { %v8060_v28 = vpop.f32.mrb[199].mxu0  ;;  %v8349_v26 = vpop.f32.mrb[45].mxu1 }
 0x70c   :  { %v8061_v10 = vadd.f32 %v8060_v28, %v8059_v24  ;;  %9113 = vmatprep.mubr.f32.mxu0 %v4183_v25  ;;  %v14332_v54 = vadd.f32 %v8349_v26, %v8348_v22  ;;  %v8351_v53 = vpop.f32.mrb[46].mxu1 }
 0x70d   :  { %v8352_v16 = vpop.f32.mrb[47].mxu1 }
 0x70e   :  { %v4188_v32 = vadd.f32 %v8061_v10, %v14158_v58  ;;  %v8062_v34 = vpop.f32.mrb[200].mxu0  ;;  %v14334_v50 = vadd.f32 %v8352_v16, %v8351_v53  ;;  %v8354_v55 = vpop.f32.mrb[48].mxu1 }
 0x70f   :  { %v8063_v23 = vpop.f32.mrb[201].mxu0  ;;  %v8355_v13 = vpop.f32.mrb[49].mxu1 }
 0x710   :  { %v8064_v57 = vadd.f32 %v8063_v23, %v8062_v34  ;;  %9114 = vmatmul.mubr.f32.gmra.mrb[106].mxu0 %v4188_v32  ;;  %v14337_v63 = vadd.f32 %v8355_v13, %v8354_v55  ;;  %v8357_v25 = vpop.f32.mrb[50].mxu1 }
 0x711   :  { %v8358_v58 = vpop.f32.mrb[51].mxu1 }
 0x712   :  { %v4193_v2 = vadd.f32 %v8064_v57, %v14166_v62  ;;  %v8065_v12 = vpop.f32.mrb[202].mxu0  ;;  %v14339_v28 = vadd.f32 %v8358_v58, %v8357_v25  ;;  %v8360_v27 = vpop.f32.mrb[52].mxu1 }
 0x713   :  { %v8066_v24 = vpop.f32.mrb[203].mxu0  ;;  %v8361_v10 = vpop.f32.mrb[53].mxu1 }
 0x714   :  { %v8067_v45 = vadd.f32 %v8066_v24, %v8065_v12  ;;  %9116 = vmatprep.mubr.f32.mxu0 %v4193_v2  ;;  %v14342_v32 = vadd.f32 %v8361_v10, %v8360_v27  ;;  %v8363_v34 = vpop.f32.mrb[54].mxu1 }
 0x715   :  { %v8364_v62 = vpop.f32.mrb[55].mxu1 }
 0x716   :  { %v4198_v22 = vadd.f32 %v8067_v45, %v14174_v33  ;;  %v8068_v26 = vpop.f32.mrb[204].mxu0  ;;  %v14344_v16 = vadd.f32 %v8364_v62, %v8363_v34  ;;  %v8366_v57 = vpop.f32.mrb[56].mxu1  ;;  %v6712_v62 = vld [vmem:[%s15068_s5 + $0x310] sm:$0xff] }
 0x717   :  { %v8069_v53 = vpop.f32.mrb[205].mxu0  ;;  %v8367_v55 = vpop.f32.mrb[57].mxu1 }
 0x718   :  { %v8070_v23 = vadd.f32 %v8069_v53, %v8068_v26  ;;  %9117 = vmatmul.mubr.f32.gmra.mrb[108].mxu0 %v4198_v22  ;;  %v14347_v12 = vadd.f32 %v8367_v55, %v8366_v57  ;;  %v8369_v25 = vpop.f32.mrb[58].mxu1  ;;  %v6649_v26 = vld [vmem:[%s15067_s4 + $0xc18] sm:$0xff]  ;;  %v6648_v55 = vld [vmem:[%s15067_s4 + $0xc10] sm:$0xff] }
 0x719   :  { %v8370_v33 = vpop.f32.mrb[59].mxu1 }
 0x71a   :  { %v4203_v13 = vadd.f32 %v8070_v23, %v14182_v48  ;;  %v8071_v2 = vpop.f32.mrb[206].mxu0  ;;  %v14349_v45 = vadd.f32 %v8370_v33, %v8369_v25  ;;  %v8372_v27 = vpop.f32.mrb[60].mxu1  ;;  %v6713_v23 = vld [vmem:[%s15068_s5 + $0x318] sm:$0xff]  ;;  %v6714_v33 = vld [vmem:[%s15068_s5 + $0x320] sm:$0xff] }
 0x71b   :  { %v8072_v24 = vpop.f32.mrb[207].mxu0  ;;  %v8373_v10 = vpop.f32.mrb[61].mxu1 }
 0x71c   :  { %v8073_v58 = vadd.f32 %v8072_v24, %v8071_v2  ;;  %9119 = vmatprep.mubr.f32.mxu0 %v4203_v13  ;;  %v14355_v34 = vadd.f32 %v8373_v10, %v8372_v27  ;;  %v8375_v48 = vpop.f32.mrb[62].mxu1  ;;  %v6653_v2 = vld [vmem:[%s15067_s4 + $0xc38] sm:$0xff]  ;;  %v9944_v24 = vpack.c.bf16 %v6713_v23, %v6712_v62  ;;  %v6652_v10 = vld [vmem:[%s15067_s4 + $0xc30] sm:$0xff]  ;;  %v6718_v23 = vld [vmem:[%s15068_s5 + $0x340] sm:$0xff] }
 0x71d   :  { %v8376_v53 = vpop.f32.mrb[63].mxu1 }
 0x71e   :  { %v4208_v22 = vadd.f32 %v8073_v58, %v14190_v46  ;;  %v14363_v57 = vadd.f32 %v8376_v53, %v8375_v48  ;;  %v8410_v46 = vpop.f32.mrb[64].mxu1  ;;  %v6715_v58 = vld [vmem:[%s15068_s5 + $0x328] sm:$0xff]  ;;  %v6716_v48 = vld [vmem:[%s15068_s5 + $0x330] sm:$0xff]  ;;  %v6661_v53 = vld [vmem:[%s15067_s4 + $0xc78] sm:$0xff] }
 0x71f   :  { %v8411_v13 = vpop.f32.mrb[65].mxu1 }
 0x720   :  { %9120 = vmatmul.mubr.f32.gmra.mrb[110].mxu0 %v4208_v22  ;;  %v8412_v25 = vadd.f32 %v8411_v13, %v8410_v46  ;;  %v6657_v22 = vld [vmem:[%s15067_s4 + $0xc58] sm:$0xff]  ;;  %v6719_v46 = vld [vmem:[%s15068_s5 + $0x348] sm:$0xff] }
 0x721   :  { %4663 = vmatprep.mubr.f32.mxu0 %v6649_v26  ;;  %v9948_v26 = vpack.c.bf16 %v6715_v58, %v6714_v33  ;;  %v6665_v13 = vld [vmem:[%s15067_s4 + $0xc98] sm:$0xff]  ;;  %v6664_v33 = vld [vmem:[%s15067_s4 + $0xc90] sm:$0xff] }
 0x722   :  { %v14378_v27 = vadd.f32 %v8412_v25, %v14313_v61  ;;  %v6717_v61 = vld [vmem:[%s15068_s5 + $0x338] sm:$0xff]  ;;  %v6720_v25 = vld [vmem:[%s15068_s5 + $0x350] sm:$0xff] }
 0x723   :  { %v9952_v62 = vpack.c.bf16 %v6717_v61, %v6716_v48  ;;  %v6669_v58 = vld [vmem:[%s15067_s4 + $0xcb8] sm:$0xff]  ;;  %v6672_v48 = vld [vmem:[%s15067_s4 + $0xcd0] sm:$0xff] }
 0x724   :  { %4664 = vmatmul.mubr.f32.vlgmr.msra.gmra.mrb[208].mxu0 %v6648_v55  ;;  %v6660_v55 = vld [vmem:[%s15067_s4 + $0xc70] sm:$0xff]  ;;  %v6677_v61 = vld [vmem:[%s15067_s4 + $0xcf8] sm:$0xff] }
 0x725   :  { %4668 = vmatprep.mubr.f32.mxu0 %v6653_v2  ;;  %9943 = vmatpush3.bf16.msra.mxu0 %v14315_v37  ;;  %v6656_v37 = vld [vmem:[%s15067_s4 + $0xc50] sm:$0xff]  ;;  %v9956_v2 = vpack.c.bf16 %v6719_v46, %v6718_v23  ;;  %v6685_v23 = vld [vmem:[%s15067_s4 + $0xd38] sm:$0xff] }
 0x726   :  { %9945 = vmatprep.subr.bf16.mxu0 %v9944_v24  ;;  %v6684_v46 = vld [vmem:[%s15067_s4 + $0xd30] sm:$0xff] }
 0x728   :  { %4669 = vmatmul.mubr.f32.gmra.mrb[210].mxu0 %v6652_v10 }
 0x729   :  { %4673 = vmatprep.mubr.f32.mxu0 %v6657_v22  ;;  %9947 = vmatpush3.bf16.msra.mxu0 %v9944_v24  ;;  %v6721_v24 = vld [vmem:[%s15068_s5 + $0x358] sm:$0xff]  ;;  %v6668_v22 = vld [vmem:[%s15067_s4 + $0xcb0] sm:$0xff] }
 0x72a   :  { %9949 = vmatprep.subr.bf16.mxu0 %v9948_v26  ;;  %v9960_v10 = vpack.c.bf16 %v6721_v24, %v6720_v25  ;;  %v6692_v25 = vld [vmem:[%s15067_s4 + $0xd70] sm:$0xff]  ;;  %v6697_v24 = vld [vmem:[%s15067_s4 + $0xd98] sm:$0xff] }
 0x72c   :  { %4674 = vmatmul.mubr.f32.gmra.mrb[212].mxu0 %v6656_v37  ;;  %v6676_v37 = vld [vmem:[%s15067_s4 + $0xcf0] sm:$0xff] }
 0x72d   :  { %4678 = vmatprep.mubr.f32.mxu0 %v6661_v53  ;;  %9951 = vmatpush3.bf16.msra.mxu0 %v9948_v26  ;;  %v6673_v26 = vld [vmem:[%s15067_s4 + $0xcd8] sm:$0xff] }
 0x72e   :  { %9953 = vmatprep.subr.bf16.mxu0 %v9952_v62  ;;  %v6681_v53 = vld [vmem:[%s15067_s4 + $0xd18] sm:$0xff] }
 0x730   :  { %4679 = vmatmul.mubr.f32.gmra.mrb[214].mxu0 %v6660_v55  ;;  %v6689_v55 = vld [vmem:[%s15067_s4 + $0xd58] sm:$0xff] }
 0x731   :  { %4683 = vmatprep.mubr.f32.mxu0 %v6665_v13  ;;  %9955 = vmatpush3.bf16.msra.mxu0 %v9952_v62  ;;  %v6680_v62 = vld [vmem:[%s15067_s4 + $0xd10] sm:$0xff] }
 0x732   :  { %9957 = vmatprep.subr.bf16.mxu0 %v9956_v2  ;;  %v6688_v13 = vld [vmem:[%s15067_s4 + $0xd50] sm:$0xff] }
 0x734   :  { %4684 = vmatmul.mubr.f32.gmra.mrb[216].mxu0 %v6664_v33  ;;  %v6696_v33 = vld [vmem:[%s15067_s4 + $0xd90] sm:$0xff] }
 0x735   :  { %4688 = vmatprep.mubr.f32.mxu0 %v6669_v58  ;;  %9959 = vmatpush3.bf16.msra.mxu0 %v9956_v2  ;;  %v6693_v2 = vld [vmem:[%s15067_s4 + $0xd78] sm:$0xff] }
 0x736   :  { %9961 = vmatprep.subr.bf16.mxu0 %v9960_v10  ;;  %v6701_v58 = vld [vmem:[%s15067_s4 + $0xdb8] sm:$0xff] }
 0x738   :  { %4689 = vmatmul.mubr.f32.gmra.mrb[218].mxu0 %v6668_v22  ;;  %v6705_v22 = vld [vmem:[%s15067_s4 + $0xdd8] sm:$0xff] }
 0x739   :  { %4693 = vmatprep.mubr.f32.mxu0 %v6673_v26  ;;  %9963 = vmatpush3.bf16.msra.mxu0 %v9960_v10  ;;  %v6700_v10 = vld [vmem:[%s15067_s4 + $0xdb0] sm:$0xff] }
 0x73a   :  { %v6704_v26 = vld [vmem:[%s15067_s4 + $0xdd0] sm:$0xff] }
 0x73c   :  { %4694 = vmatmul.mubr.f32.gmra.mrb[220].mxu0 %v6672_v48  ;;  %v6709_v48 = vld [vmem:[%s15067_s4 + $0xdf8] sm:$0xff] }
 0x73d   :  { %4698 = vmatprep.mubr.f32.mxu0 %v6677_v61  ;;  %v6708_v61 = vld [vmem:[%s15067_s4 + $0xdf0] sm:$0xff] }
 0x740   :  { %4699 = vmatmul.mubr.f32.gmra.mrb[222].mxu0 %v6676_v37  ;;  %v8413_v37 = vpop.f32.mrb[66].mxu1 }
 0x741   :  { %4703 = vmatprep.mubr.f32.mxu0 %v6681_v53  ;;  %v8414_v53 = vpop.f32.mrb[67].mxu1 }
 0x744   :  { %4704 = vmatmul.mubr.f32.gmra.mrb[224].mxu0 %v6680_v62  ;;  %v8415_v62 = vadd.f32 %v8414_v53, %v8413_v37 }
 0x745   :  { %4708 = vmatprep.mubr.f32.mxu0 %v6685_v23 }
 0x746   :  { %v14487_v23 = vadd.f32 %v8415_v62, %v14317_v9 }
 0x748   :  { %4709 = vmatmul.mubr.f32.gmra.mrb[226].mxu0 %v6684_v46  ;;  %v8416_v46 = vpop.f32.mrb[68].mxu1 }
 0x749   :  { %4713 = vmatprep.mubr.f32.mxu0 %v6689_v55  ;;  %v8417_v55 = vpop.f32.mrb[69].mxu1 }
 0x74c   :  { %4714 = vmatmul.mubr.f32.gmra.mrb[228].mxu0 %v6688_v13  ;;  %v8418_v13 = vadd.f32 %v8417_v55, %v8416_v46 }
 0x74d   :  { %4718 = vmatprep.mubr.f32.mxu0 %v6693_v2 }
 0x74e   :  { %v14490_v2 = vadd.f32 %v8418_v13, %v14321_v44 }
 0x750   :  { %4719 = vmatmul.mubr.f32.gmra.mrb[230].mxu0 %v6692_v25  ;;  %v8419_v25 = vpop.f32.mrb[70].mxu1 }
 0x751   :  { %4723 = vmatprep.mubr.f32.mxu0 %v6697_v24  ;;  %v8420_v24 = vpop.f32.mrb[71].mxu1 }
 0x754   :  { %4724 = vmatmul.mubr.f32.gmra.mrb[232].mxu0 %v6696_v33  ;;  %v8421_v33 = vadd.f32 %v8420_v24, %v8419_v25 }
 0x755   :  { %4728 = vmatprep.mubr.f32.mxu0 %v6701_v58 }
 0x756   :  { %v14493_v58 = vadd.f32 %v8421_v33, %v14324_v6  ;;  %v6722_v33 = vld [vmem:[%s15068_s5 + $0x360] sm:$0xff] }
 0x758   :  { %4729 = vmatmul.mubr.f32.gmra.mrb[234].mxu0 %v6700_v10  ;;  %v8422_v10 = vpop.f32.mrb[72].mxu1 }
 0x759   :  { %4733 = vmatprep.mubr.f32.mxu0 %v6705_v22  ;;  %v8423_v22 = vpop.f32.mrb[73].mxu1 }
 0x75a   :  { %v8425_v9 = vpop.f32.mrb[74].mxu1 }
 0x75c   :  { %4734 = vmatmul.mubr.f32.gmra.mrb[236].mxu0 %v6704_v26  ;;  %v8424_v26 = vadd.f32 %v8423_v22, %v8422_v10 }
 0x75d   :  { %4738 = vmatprep.mubr.f32.mxu0 %v6709_v48 }
 0x75e   :  { %v14496_v48 = vadd.f32 %v8424_v26, %v14327_v36 }
 0x760   :  { %4739 = vmatmul.mubr.f32.gmra.mrb[238].mxu0 %v6708_v61  ;;  %v8426_v61 = vpop.f32.mrb[75].mxu1 }
 0x761   :  { %v8427_v37 = vadd.f32 %v8426_v61, %v8425_v9  ;;  %v8428_v44 = vpop.f32.mrb[76].mxu1  ;;  %v6725_v61 = vld [vmem:[%s15068_s5 + $0x378] sm:$0xff] }
 0x762   :  { %v8429_v62 = vpop.f32.mrb[77].mxu1 }
 0x763   :  { %v14499_v53 = vadd.f32 %v8427_v37, %v14329_v11  ;;  %v8430_v46 = vadd.f32 %v8429_v62, %v8428_v44  ;;  %v8431_v6 = vpop.f32.mrb[78].mxu1  ;;  %v6723_v11 = vld [vmem:[%s15068_s5 + $0x368] sm:$0xff] }
 0x764   :  { %v8432_v13 = vpop.f32.mrb[79].mxu1  ;;  %v9964_v10 = vpack.c.bf16 %v6723_v11, %v6722_v33 }
 0x765   :  { %v14502_v55 = vadd.f32 %v8430_v46, %v14332_v54  ;;  %v8433_v25 = vadd.f32 %v8432_v13, %v8431_v6  ;;  %v8434_v36 = vpop.f32.mrb[80].mxu1  ;;  %v6790_v6 = vld [vmem:[%s15068_s5 + $0x380] sm:$0xff]  ;;  %v6791_v13 = vld [vmem:[%s15068_s5 + $0x388] sm:$0xff] }
 0x766   :  { %v8435_v22 = vpop.f32.mrb[81].mxu1  ;;  %9965 = vmatprep.subr.bf16.mxu0 %v9964_v10 }
 0x767   :  { %v14505_v24 = vadd.f32 %v8433_v25, %v14334_v50  ;;  %v8436_v26 = vadd.f32 %v8435_v22, %v8434_v36  ;;  %9967 = vmatpush3.bf16.msra.mxu0 %v9964_v10  ;;  %v8437_v9 = vpop.f32.mrb[82].mxu1  ;;  %v6724_v50 = vld [vmem:[%s15068_s5 + $0x370] sm:$0xff]  ;;  %v14531_v36 = vpack.c.bf16 %v6791_v13, %v6790_v6 }
 0x768   :  { %v9968_v37 = vpack.c.bf16 %v6725_v61, %v6724_v50  ;;  %v8438_v44 = vpop.f32.mrb[83].mxu1 }
 0x769   :  { %v14514_v54 = vadd.f32 %v8436_v26, %v14337_v63  ;;  %v8439_v62 = vadd.f32 %v8438_v44, %v8437_v9  ;;  %v8440_v63 = vpop.f32.mrb[84].mxu1 }
 0x76a   :  { %9969 = vmatprep.subr.bf16.mxu0 %v9968_v37  ;;  %v8441_v25 = vpop.f32.mrb[85].mxu1 }
 0x76b   :  { %v14523_v46 = vadd.f32 %v8439_v62, %v14339_v28  ;;  %9971 = vmatpush3.bf16.msra.mxu0 %v9968_v37  ;;  %v8442_v33 = vadd.f32 %v8441_v25, %v8440_v63  ;;  %v8443_v28 = vpop.f32.mrb[86].mxu1 }
 0x76c   :  { %10037 = vmatprep.subr.bf16.mxu0 %v14531_v36  ;;  %v8444_v10 = vpop.f32.mrb[87].mxu1 }
 0x76d   :  { %v14535_v11 = vadd.f32 %v8442_v33, %v14342_v32  ;;  %v8445_v22 = vadd.f32 %v8444_v10, %v8443_v28  ;;  %v8446_v9 = vpop.f32.mrb[88].mxu1 }
 0x76e   :  { %v8447_v50 = vpop.f32.mrb[89].mxu1 }
 0x76f   :  { %v14538_v26 = vadd.f32 %v8445_v22, %v14344_v16  ;;  %v8448_v61 = vadd.f32 %v8447_v50, %v8446_v9  ;;  %v8449_v44 = vpop.f32.mrb[90].mxu1  ;;  %v6817_v9 = vld [vmem:[%s15067_s4 + $0x1058] sm:$0xff]  ;;  %v6816_v50 = vld [vmem:[%s15067_s4 + $0x1050] sm:$0xff] }
 0x770   :  { %v8450_v62 = vpop.f32.mrb[91].mxu1 }
 0x771   :  { %v14541_v37 = vadd.f32 %v8448_v61, %v14347_v12  ;;  %v8451_v63 = vadd.f32 %v8450_v62, %v8449_v44  ;;  %v8452_v32 = vpop.f32.mrb[92].mxu1  ;;  %v6809_v12 = vld [vmem:[%s15067_s4 + $0x1018] sm:$0xff]  ;;  %v6820_v44 = vld [vmem:[%s15067_s4 + $0x1070] sm:$0xff] }
 0x772   :  { %v8453_v13 = vpop.f32.mrb[93].mxu1  ;;  %5729 = vmatprep.mubr.f32.mxu1 %v6809_v12  ;;  %v6821_v61 = vld [vmem:[%s15067_s4 + $0x1078] sm:$0xff] }
 0x773   :  { %v14544_v6 = vadd.f32 %v8451_v63, %v14349_v45  ;;  %v8454_v25 = vadd.f32 %v8453_v13, %v8452_v32  ;;  %v8455_v16 = vpop.f32.mrb[94].mxu1  ;;  %v6808_v45 = vld [vmem:[%s15067_s4 + $0x1010] sm:$0xff]  ;;  %v6825_v62 = vld [vmem:[%s15067_s4 + $0x1098] sm:$0xff] }
 0x774   :  { %v8456_v28 = vpop.f32.mrb[95].mxu1  ;;  %5730 = vmatmul.mubr.f32.vlgmr.msra.gmra.mrb[96].mxu1 %v6808_v45  ;;  %v6824_v63 = vld [vmem:[%s15067_s4 + $0x1090] sm:$0xff]  ;;  %v6829_v32 = vld [vmem:[%s15067_s4 + $0x10b8] sm:$0xff] }
 0x775   :  { %v14547_v33 = vadd.f32 %v8454_v25, %v14355_v34  ;;  %v8457_v10 = vadd.f32 %v8456_v28, %v8455_v16  ;;  %v6813_v34 = vld [vmem:[%s15067_s4 + $0x1038] sm:$0xff]  ;;  %v6828_v13 = vld [vmem:[%s15067_s4 + $0x10b0] sm:$0xff] }
 0x776   :  { %5734 = vmatprep.mubr.f32.mxu1 %v6813_v34  ;;  %v6833_v25 = vld [vmem:[%s15067_s4 + $0x10d8] sm:$0xff]  ;;  %v6832_v16 = vld [vmem:[%s15067_s4 + $0x10d0] sm:$0xff] }
 0x777   :  { %v14550_v22 = vadd.f32 %v8457_v10, %v14363_v57  ;;  %v6812_v57 = vld [vmem:[%s15067_s4 + $0x1030] sm:$0xff]  ;;  %v6837_v28 = vld [vmem:[%s15067_s4 + $0x10f8] sm:$0xff] }
 0x778   :  { %5735 = vmatmul.mubr.f32.gmra.mrb[98].mxu1 %v6812_v57  ;;  %v6836_v34 = vld [vmem:[%s15067_s4 + $0x10f0] sm:$0xff]  ;;  %v6841_v57 = vld [vmem:[%s15067_s4 + $0x1118] sm:$0xff] }
 0x779   :  { %5739 = vmatprep.mubr.f32.mxu1 %v6817_v9 }
 0x77c   :  { %5740 = vmatmul.mubr.f32.gmra.mrb[100].mxu1 %v6816_v50 }
 0x77d   :  { %5744 = vmatprep.mubr.f32.mxu1 %v6821_v61 }
 0x780   :  { %5745 = vmatmul.mubr.f32.gmra.mrb[102].mxu1 %v6820_v44  ;;  %v6792_v44 = vld [vmem:[%s15068_s5 + $0x390] sm:$0xff] }
 0x781   :  { %5749 = vmatprep.mubr.f32.mxu1 %v6825_v62  ;;  %v6793_v62 = vld [vmem:[%s15068_s5 + $0x398] sm:$0xff] }
 0x784   :  { %5750 = vmatmul.mubr.f32.gmra.mrb[104].mxu1 %v6824_v63 }
 0x785   :  { %5754 = vmatprep.mubr.f32.mxu1 %v6829_v32  ;;  %v6840_v32 = vld [vmem:[%s15067_s4 + $0x1110] sm:$0xff] }
 0x788   :  { %5755 = vmatmul.mubr.f32.gmra.mrb[106].mxu1 %v6828_v13 }
 0x789   :  { %5759 = vmatprep.mubr.f32.mxu1 %v6833_v25 }
 0x78c   :  { %5760 = vmatmul.mubr.f32.gmra.mrb[108].mxu1 %v6832_v16  ;;  %v10040_v16 = vpack.c.bf16 %v6793_v62, %v6792_v44  ;;  %v6796_v44 = vld [vmem:[%s15068_s5 + $0x3b0] sm:$0xff] }
 0x78d   :  { %5764 = vmatprep.mubr.f32.mxu1 %v6837_v28 }
 0x790   :  { %5765 = vmatmul.mubr.f32.gmra.mrb[110].mxu1 %v6836_v34  ;;  %v6844_v34 = vld [vmem:[%s15067_s4 + $0x1130] sm:$0xff] }
 0x791   :  { %5769 = vmatprep.mubr.f32.mxu1 %v6841_v57 }
 0x794   :  { %5770 = vmatmul.mubr.f32.gmra.mrb[112].mxu1 %v6840_v32 }
 0x7f7   :  { %v8218_v10 = vpop.f32.mrb[208].mxu0 }
 0x7f8   :  { %v8219_v12 = vpop.f32.mrb[209].mxu0 }
 0x7f9   :  { %v8220_v45 = vadd.f32 %v8219_v12, %v8218_v10  ;;  %v6794_v10 = vld [vmem:[%s15068_s5 + $0x3a0] sm:$0xff]  ;;  %v6795_v12 = vld [vmem:[%s15068_s5 + $0x3a8] sm:$0xff] }
 0x7fb   :  { %v4666_v9 = vadd.f32 %v8220_v45, %v14253_v30  ;;  %v8221_v50 = vpop.f32.mrb[210].mxu0  ;;  %v6845_v30 = vld [vmem:[%s15067_s4 + $0x1138] sm:$0xff] }
 0x7fc   :  { %v8222_v61 = vpop.f32.mrb[211].mxu0  ;;  %5774 = vmatprep.mubr.f32.mxu1 %v6845_v30 }
 0x7fd   :  { %v8223_v63 = vadd.f32 %v8222_v61, %v8221_v50  ;;  %9154 = vmatprep.mubr.f32.mxu0 %v4666_v9  ;;  %5775 = vmatmul.mubr.f32.gmra.mrb[114].mxu1 %v6844_v34  ;;  %v10044_v50 = vpack.c.bf16 %v6795_v12, %v6794_v10  ;;  %v6852_v12 = vld [vmem:[%s15067_s4 + $0x1170] sm:$0xff] }
 0x7ff   :  { %v4671_v13 = vadd.f32 %v8223_v63, %v14255_v19  ;;  %v8224_v25 = vpop.f32.mrb[212].mxu0  ;;  %v6849_v19 = vld [vmem:[%s15067_s4 + $0x1158] sm:$0xff]  ;;  %v6848_v63 = vld [vmem:[%s15067_s4 + $0x1150] sm:$0xff] }
 0x800   :  { %v8225_v28 = vpop.f32.mrb[213].mxu0  ;;  %5779 = vmatprep.mubr.f32.mxu1 %v6849_v19 }
 0x801   :  { %v8226_v45 = vadd.f32 %v8225_v28, %v8224_v25  ;;  %9155 = vmatmul.mubr.f32.vlgmr.msra.gmra.mrb[96].mxu0 %v4671_v13  ;;  %5780 = vmatmul.mubr.f32.gmra.mrb[116].mxu1 %v6848_v63  ;;  %v6798_v28 = vld [vmem:[%s15068_s5 + $0x3c0] sm:$0xff] }
 0x802   :  { %10039 = vmatpush3.bf16.msra.mxu0 %v14531_v36  ;;  %v6797_v36 = vld [vmem:[%s15068_s5 + $0x3b8] sm:$0xff] }
 0x803   :  { %v4676_v57 = vadd.f32 %v8226_v45, %v14258_v4  ;;  %v8227_v9 = vpop.f32.mrb[214].mxu0  ;;  %10041 = vmatprep.subr.bf16.mxu0 %v10040_v16  ;;  %v6853_v4 = vld [vmem:[%s15067_s4 + $0x1178] sm:$0xff]  ;;  %v10048_v13 = vpack.c.bf16 %v6797_v36, %v6796_v44  ;;  %v6856_v44 = vld [vmem:[%s15067_s4 + $0x1190] sm:$0xff] }
 0x804   :  { %v8228_v61 = vpop.f32.mrb[215].mxu0  ;;  %5784 = vmatprep.mubr.f32.mxu1 %v6853_v4 }
 0x805   :  { %v8229_v62 = vadd.f32 %v8228_v61, %v8227_v9  ;;  %9157 = vmatprep.mubr.f32.mxu0 %v4676_v57  ;;  %5785 = vmatmul.mubr.f32.gmra.mrb[118].mxu1 %v6852_v12  ;;  %v6800_v9 = vld [vmem:[%s15068_s5 + $0x3d0] sm:$0xff] }
 0x806   :  { %10043 = vmatpush3.bf16.msra.mxu0 %v10040_v16  ;;  %v6799_v16 = vld [vmem:[%s15068_s5 + $0x3c8] sm:$0xff] }
 0x807   :  { %v4681_v32 = vadd.f32 %v8229_v62, %v14260_v49  ;;  %v8230_v30 = vpop.f32.mrb[216].mxu0  ;;  %10045 = vmatprep.subr.bf16.mxu0 %v10044_v50  ;;  %v6857_v49 = vld [vmem:[%s15067_s4 + $0x1198] sm:$0xff]  ;;  %v10052_v19 = vpack.c.bf16 %v6799_v16, %v6798_v28 }
 0x808   :  { %v8231_v25 = vpop.f32.mrb[217].mxu0  ;;  %5789 = vmatprep.mubr.f32.mxu1 %v6857_v49  ;;  %v6804_v49 = vld [vmem:[%s15068_s5 + $0x3f0] sm:$0xff] }
 0x809   :  { %v8232_v10 = vadd.f32 %v8231_v25, %v8230_v30  ;;  %9158 = vmatmul.mubr.f32.gmra.mrb[98].mxu0 %v4681_v32  ;;  %5790 = vmatmul.mubr.f32.gmra.mrb[120].mxu1 %v6856_v44  ;;  %v6802_v32 = vld [vmem:[%s15068_s5 + $0x3e0] sm:$0xff]  ;;  %v6803_v30 = vld [vmem:[%s15068_s5 + $0x3e8] sm:$0xff]  ;;  %v6860_v25 = vld [vmem:[%s15067_s4 + $0x11b0] sm:$0xff] }
 0x80a   :  { %10047 = vmatpush3.bf16.msra.mxu0 %v10044_v50  ;;  %v6801_v50 = vld [vmem:[%s15068_s5 + $0x3d8] sm:$0xff] }
 0x80b   :  { %v4686_v45 = vadd.f32 %v8232_v10, %v14265_v35  ;;  %v8233_v34 = vpop.f32.mrb[218].mxu0  ;;  %10049 = vmatprep.subr.bf16.mxu0 %v10048_v13  ;;  %v6861_v35 = vld [vmem:[%s15067_s4 + $0x11b8] sm:$0xff]  ;;  %v10056_v63 = vpack.c.bf16 %v6801_v50, %v6800_v9  ;;  %v10060_v10 = vpack.c.bf16 %v6803_v30, %v6802_v32 }
 0x80c   :  { %v8234_v57 = vpop.f32.mrb[219].mxu0  ;;  %5794 = vmatprep.mubr.f32.mxu1 %v6861_v35  ;;  %v6868_v35 = vld [vmem:[%s15067_s4 + $0x11f0] sm:$0xff] }
 0x80d   :  { %v8235_v61 = vadd.f32 %v8234_v57, %v8233_v34  ;;  %9160 = vmatprep.mubr.f32.mxu0 %v4686_v45  ;;  %5795 = vmatmul.mubr.f32.gmra.mrb[122].mxu1 %v6860_v25  ;;  %v6805_v45 = vld [vmem:[%s15068_s5 + $0x3f8] sm:$0xff] }
 0x80e   :  { %10051 = vmatpush3.bf16.msra.mxu0 %v10048_v13  ;;  %v10064_v50 = vpack.c.bf16 %v6805_v45, %v6804_v49 }
 0x80f   :  { %v4691_v36 = vadd.f32 %v8235_v61, %v14267_v47  ;;  %v8236_v62 = vpop.f32.mrb[220].mxu0  ;;  %10053 = vmatprep.subr.bf16.mxu0 %v10052_v19  ;;  %v6865_v47 = vld [vmem:[%s15067_s4 + $0x11d8] sm:$0xff] }
 0x810   :  { %v8237_v4 = vpop.f32.mrb[221].mxu0  ;;  %5799 = vmatprep.mubr.f32.mxu1 %v6865_v47 }
 0x811   :  { %v8238_v13 = vadd.f32 %v8237_v4, %v8236_v62  ;;  %9161 = vmatmul.mubr.f32.gmra.mrb[100].mxu0 %v4691_v36  ;;  %v6870_v36 = vld [vmem:[%s15068_s5 + $0x400] sm:$0xff]  ;;  %v6871_v62 = vld [vmem:[%s15068_s5 + $0x408] sm:$0xff]  ;;  %v6873_v4 = vld [vmem:[%s15068_s5 + $0x418] sm:$0xff] }
 0x812   :  { %10055 = vmatpush3.bf16.msra.mxu0 %v10052_v19  ;;  %v6864_v19 = vld [vmem:[%s15067_s4 + $0x11d0] sm:$0xff] }
 0x813   :  { %v4696_v28 = vadd.f32 %v8238_v13, %v14272_v31  ;;  %v8239_v16 = vpop.f32.mrb[222].mxu0  ;;  %10057 = vmatprep.subr.bf16.mxu0 %v10056_v63  ;;  %5800 = vmatmul.mubr.f32.gmra.mrb[124].mxu1 %v6864_v19  ;;  %v6869_v31 = vld [vmem:[%s15067_s4 + $0x11f8] sm:$0xff] }
 0x814   :  { %v8240_v12 = vpop.f32.mrb[223].mxu0  ;;  %5804 = vmatprep.mubr.f32.mxu1 %v6869_v31  ;;  %v6877_v19 = vld [vmem:[%s15068_s5 + $0x438] sm:$0xff] }
 0x815   :  { %v8241_v34 = vadd.f32 %v8240_v12, %v8239_v16  ;;  %9163 = vmatprep.mubr.f32.mxu0 %v4696_v28  ;;  %v6874_v28 = vld [vmem:[%s15068_s5 + $0x420] sm:$0xff]  ;;  %v6875_v16 = vld [vmem:[%s15068_s5 + $0x428] sm:$0xff] }
 0x816   :  { %10059 = vmatpush3.bf16.msra.mxu0 %v10056_v63  ;;  %v6872_v63 = vld [vmem:[%s15068_s5 + $0x410] sm:$0xff]  ;;  %v14727_v49 = vpack.c.bf16 %v6875_v16, %v6874_v28 }
 0x817   :  { %v4701_v57 = vadd.f32 %v8241_v34, %v14274_v59  ;;  %v8242_v9 = vpop.f32.mrb[224].mxu0  ;;  %10061 = vmatprep.subr.bf16.mxu0 %v10060_v10  ;;  %5805 = vmatmul.mubr.f32.gmra.mrb[126].mxu1 %v6868_v35  ;;  %v14705_v59 = vpack.c.bf16 %v6871_v62, %v6870_v36  ;;  %v14714_v25 = vpack.c.bf16 %v6873_v4, %v6872_v63  ;;  %v6876_v34 = vld [vmem:[%s15068_s5 + $0x430] sm:$0xff] }
 0x818   :  { %v8243_v61 = vpop.f32.mrb[225].mxu0 }
 0x819   :  { %v8244_v44 = vadd.f32 %v8243_v61, %v8242_v9  ;;  %9164 = vmatmul.mubr.f32.gmra.mrb[102].mxu0 %v4701_v57  ;;  %10164 = vmatprep.subr.bf16.mxu1 %v14705_v59  ;;  %v14738_v57 = vpack.c.bf16 %v6877_v19, %v6876_v34  ;;  %v6879_v61 = vld [vmem:[%s15068_s5 + $0x448] sm:$0xff] }
 0x81a   :  { %10063 = vmatpush3.bf16.msra.mxu0 %v10060_v10  ;;  %10172 = vmatpush3.bf16.msra.mxu1 %v14705_v59 }
 0x81b   :  { %v4706_v32 = vadd.f32 %v8244_v44, %v14279_v14  ;;  %v8245_v30 = vpop.f32.mrb[226].mxu0  ;;  %10065 = vmatprep.subr.bf16.mxu0 %v10064_v50  ;;  %10165 = vmatprep.subr.bf16.mxu1 %v14714_v25 }
 0x81c   :  { %v8246_v13 = vpop.f32.mrb[227].mxu0 }
 0x81d   :  { %v8247_v47 = vadd.f32 %v8246_v13, %v8245_v30  ;;  %9166 = vmatprep.mubr.f32.mxu0 %v4706_v32 }
 0x81e   :  { %10067 = vmatpush3.bf16.msra.mxu0 %v10064_v50  ;;  %10173 = vmatpush3.bf16.msra.mxu1 %v14714_v25  ;;  %v6878_v50 = vld [vmem:[%s15068_s5 + $0x440] sm:$0xff] }
 0x81f   :  { %v4711_v14 = vadd.f32 %v8247_v47, %v14281_v43  ;;  %10069 = vmatprep.subr.bf16.mxu0 %v11825_v1  ;;  %v8248_v10 = vpop.f32.mrb[228].mxu0  ;;  %10166 = vmatprep.subr.bf16.mxu1 %v14727_v49  ;;  %v14749_v36 = vpack.c.bf16 %v6879_v61, %v6878_v50  ;;  %v6884_v61 = vld [vmem:[%s15068_s5 + $0x470] sm:$0xff] }
 0x820   :  { %v8249_v12 = vpop.f32.mrb[229].mxu0 }
 0x821   :  { %v8250_v45 = vadd.f32 %v8249_v12, %v8248_v10  ;;  %9167 = vmatmul.mubr.f32.gmra.mrb[104].mxu0 %v4711_v14 }
 0x822   :  { %10174 = vmatpush3.bf16.msra.mxu1 %v14727_v49 }
 0x823   :  { %v4716_v1 = vadd.f32 %v8250_v45, %v14286_v20  ;;  %v8251_v43 = vpop.f32.mrb[230].mxu0  ;;  %10167 = vmatprep.subr.bf16.mxu1 %v14738_v57 }
 0x824   :  { %v8252_v31 = vpop.f32.mrb[231].mxu0 }
 0x825   :  { %v8253_v9 = vadd.f32 %v8252_v31, %v8251_v43  ;;  %9169 = vmatprep.mubr.f32.mxu0 %v4716_v1  ;;  %v6882_v1 = vld [vmem:[%s15068_s5 + $0x460] sm:$0xff]  ;;  %v6883_v43 = vld [vmem:[%s15068_s5 + $0x468] sm:$0xff] }
 0x826   :  { %10175 = vmatpush3.bf16.msra.mxu1 %v14738_v57  ;;  %v10156_v31 = vpack.c.bf16 %v6883_v43, %v6882_v1 }
 0x827   :  { %v4721_v20 = vadd.f32 %v8253_v9, %v14288_v39  ;;  %v8254_v44 = vpop.f32.mrb[232].mxu0  ;;  %10168 = vmatprep.subr.bf16.mxu1 %v14749_v36 }
 0x828   :  { %v8255_v35 = vpop.f32.mrb[233].mxu0 }
 0x829   :  { %v8256_v62 = vadd.f32 %v8255_v35, %v8254_v44  ;;  %9170 = vmatmul.mubr.f32.gmra.mrb[106].mxu0 %v4721_v20  ;;  %v6885_v20 = vld [vmem:[%s15068_s5 + $0x478] sm:$0xff] }
 0x82a   :  { %10176 = vmatpush3.bf16.msra.mxu1 %v14749_v36  ;;  %v10160_v44 = vpack.c.bf16 %v6885_v20, %v6884_v61 }
 0x82b   :  { %v4726_v63 = vadd.f32 %v8256_v62, %v14293_v15  ;;  %v8257_v4 = vpop.f32.mrb[234].mxu0 }
 0x82c   :  { %v8258_v32 = vpop.f32.mrb[235].mxu0 }
 0x82d   :  { %v8259_v30 = vadd.f32 %v8258_v32, %v8257_v4  ;;  %9172 = vmatprep.mubr.f32.mxu0 %v4726_v63 }
 0x82f   :  { %v4731_v39 = vadd.f32 %v8259_v30, %v14295_v7  ;;  %v8260_v13 = vpop.f32.mrb[236].mxu0  ;;  %v6830_v7 = vld [vmem:[%s15067_s4 + $0x10c0] sm:$0xff] }
 0x830   :  { %v8261_v47 = vpop.f32.mrb[237].mxu0 }
 0x831   :  { %v8262_v28 = vadd.f32 %v8261_v47, %v8260_v13  ;;  %9173 = vmatmul.mubr.f32.gmra.mrb[108].mxu0 %v4731_v39 }
 0x833   :  { %v4736_v16 = vadd.f32 %v8262_v28, %v14300_v18  ;;  %v8263_v14 = vpop.f32.mrb[238].mxu0  ;;  %v6835_v18 = vld [vmem:[%s15067_s4 + $0x10e8] sm:$0xff] }
 0x834   :  { %v8264_v10 = vpop.f32.mrb[239].mxu0 }
 0x835   :  { %v8265_v12 = vadd.f32 %v8264_v10, %v8263_v14  ;;  %9175 = vmatprep.mubr.f32.mxu0 %v4736_v16 }
 0x837   :  { %v4741_v15 = vadd.f32 %v8265_v12, %v14308_v21  ;;  %v6834_v21 = vld [vmem:[%s15067_s4 + $0x10e0] sm:$0xff] }
 0x839   :  { %9176 = vmatmul.mubr.f32.gmra.mrb[110].mxu0 %v4741_v15 }
 0x83a   :  { %9210 = vmatprep.mubr.f32.mxu0 %v14378_v27  ;;  %v6839_v27 = vld [vmem:[%s15067_s4 + $0x1108] sm:$0xff] }
 0x83d   :  { %9211 = vmatmul.mubr.f32.vlgmr.msra.gmra.mrb[96].mxu0 %v14487_v23  ;;  %v6838_v23 = vld [vmem:[%s15067_s4 + $0x1100] sm:$0xff] }
 0x83e   :  { %10071 = vmatpush3.bf16.msra.mxu0 %v15432_v42  ;;  %9213 = vmatprep.mubr.f32.mxu0 %v14490_v2  ;;  %v6814_v42 = vld [vmem:[%s15067_s4 + $0x1040] sm:$0xff]  ;;  %v6843_v2 = vld [vmem:[%s15067_s4 + $0x1128] sm:$0xff] }
 0x83f   :  { %10073 = vmatprep.subr.bf16.mxu0 %v15433_v56  ;;  %v6819_v56 = vld [vmem:[%s15067_s4 + $0x1068] sm:$0xff] }
 0x841   :  { %9214 = vmatmul.mubr.f32.gmra.mrb[98].mxu0 %v14493_v58  ;;  %v6842_v58 = vld [vmem:[%s15067_s4 + $0x1120] sm:$0xff] }
 0x842   :  { %10075 = vmatpush3.bf16.msra.mxu0 %v15434_v52  ;;  %9216 = vmatprep.mubr.f32.mxu0 %v14496_v48  ;;  %v6818_v52 = vld [vmem:[%s15067_s4 + $0x1060] sm:$0xff]  ;;  %v6847_v48 = vld [vmem:[%s15067_s4 + $0x1148] sm:$0xff] }
 0x843   :  { %10077 = vmatprep.subr.bf16.mxu0 %v15435_v0  ;;  %v6823_v0 = vld [vmem:[%s15067_s4 + $0x1088] sm:$0xff] }
 0x845   :  { %9217 = vmatmul.mubr.f32.gmra.mrb[100].mxu0 %v14499_v53  ;;  %v6846_v53 = vld [vmem:[%s15067_s4 + $0x1140] sm:$0xff] }
 0x846   :  { %10079 = vmatpush3.bf16.msra.mxu0 %v11841_v40  ;;  %9219 = vmatprep.mubr.f32.mxu0 %v14502_v55  ;;  %v6807_v40 = vld [vmem:[%s15067_s4 + $0x1008] sm:$0xff] }
 0x847   :  { %10081 = vmatprep.subr.bf16.mxu0 %v15436_v5  ;;  %v6822_v5 = vld [vmem:[%s15067_s4 + $0x1080] sm:$0xff]  ;;  %v6851_v55 = vld [vmem:[%s15067_s4 + $0x1168] sm:$0xff]  ;;  %v8602_v45 = vpop.f32.mrb[96].mxu1 }
 0x848   :  { %v8603_v34 = vpop.f32.mrb[97].mxu1 }
 0x849   :  { %9220 = vmatmul.mubr.f32.gmra.mrb[102].mxu0 %v14505_v24  ;;  %v6850_v24 = vld [vmem:[%s15067_s4 + $0x1160] sm:$0xff]  ;;  %v14901_v19 = vadd.f32 %v8603_v34, %v8602_v45 }
 0x84a   :  { %10083 = vmatpush3.bf16.msra.mxu0 %v15437_v51  ;;  %9222 = vmatprep.mubr.f32.mxu0 %v14514_v54  ;;  %v6827_v51 = vld [vmem:[%s15067_s4 + $0x10a8] sm:$0xff] }
 0x84b   :  { %10085 = vmatprep.subr.bf16.mxu0 %v15438_v60  ;;  %v6826_v60 = vld [vmem:[%s15067_s4 + $0x10a0] sm:$0xff]  ;;  %v6855_v54 = vld [vmem:[%s15067_s4 + $0x1188] sm:$0xff] }
 0x84d   :  { %9223 = vmatmul.mubr.f32.gmra.mrb[104].mxu0 %v14523_v46  ;;  %v6854_v46 = vld [vmem:[%s15067_s4 + $0x1180] sm:$0xff] }
 0x84e   :  { %10087 = vmatpush3.bf16.msra.mxu0 %v15415_v3  ;;  %9225 = vmatprep.mubr.f32.mxu0 %v14535_v11  ;;  %v15441_v3 = vld [vmem:[#allocation11_spill] sm:$0xff]  ;;  %v6859_v11 = vld [vmem:[%s15067_s4 + $0x11a8] sm:$0xff] }
 0x84f   :  { %10089 = vmatprep.subr.bf16.mxu0 %v15439_v41  ;;  %v6831_v41 = vld [vmem:[%s15067_s4 + $0x10c8] sm:$0xff] }
 0x851   :  { %9226 = vmatmul.mubr.f32.gmra.mrb[106].mxu0 %v14538_v26  ;;  %v6858_v26 = vld [vmem:[%s15067_s4 + $0x11a0] sm:$0xff] }
 0x852   :  { %10091 = vmatpush3.bf16.msra.mxu0 %v15417_v38  ;;  %9228 = vmatprep.mubr.f32.mxu0 %v14541_v37  ;;  %v6806_v38 = vld [vmem:[%s15067_s4 + $0x1000] sm:$0xff]  ;;  %v6863_v37 = vld [vmem:[%s15067_s4 + $0x11c8] sm:$0xff] }
 0x853   :  { %10093 = vmatprep.subr.bf16.mxu0 %v15418_v17  ;;  %v6811_v17 = vld [vmem:[%s15067_s4 + $0x1028] sm:$0xff] }
 0x855   :  { %9229 = vmatmul.mubr.f32.gmra.mrb[108].mxu0 %v14544_v6  ;;  %v6862_v6 = vld [vmem:[%s15067_s4 + $0x11c0] sm:$0xff] }
 0x856   :  { %10095 = vmatpush3.bf16.msra.mxu0 %v15420_v29  ;;  %9231 = vmatprep.mubr.f32.mxu0 %v14547_v33  ;;  %v6810_v29 = vld [vmem:[%s15067_s4 + $0x1020] sm:$0xff]  ;;  %v6867_v33 = vld [vmem:[%s15067_s4 + $0x11e8] sm:$0xff] }
 0x857   :  { %10097 = vmatprep.subr.bf16.mxu0 %v15422_v8  ;;  %v6815_v8 = vld [vmem:[%s15067_s4 + $0x1048] sm:$0xff] }
 0x859   :  { %9232 = vmatmul.mubr.f32.gmra.mrb[110].mxu0 %v14550_v22  ;;  %v6866_v22 = vld [vmem:[%s15067_s4 + $0x11e0] sm:$0xff] }
 0x85a   :  { %10099 = vmatpush3.bf16.msra.mxu0 %v15441_v3  ;;  %5584 = vmatprep.mubr.f32.mxu0 %v6807_v40 }
 0x85b   :  { %10133 = vmatprep.subr.bf16.mxu0 %v14705_v59 }
 0x85d   :  { %5585 = vmatmul.mubr.f32.vlgmr.msra.gmra.mrb[240].mxu0 %v6806_v38 }
 0x85e   :  { %5589 = vmatprep.mubr.f32.mxu0 %v6811_v17  ;;  %10135 = vmatpush3.bf16.msra.mxu0 %v14705_v59  ;;  %v6880_v59 = vld [vmem:[%s15068_s5 + $0x450] sm:$0xff] }
 0x85f   :  { %10137 = vmatprep.subr.bf16.mxu0 %v14714_v25 }
 0x861   :  { %5590 = vmatmul.mubr.f32.gmra.mrb[242].mxu0 %v6810_v29 }
 0x862   :  { %5594 = vmatprep.mubr.f32.mxu0 %v6815_v8  ;;  %10139 = vmatpush3.bf16.msra.mxu0 %v14714_v25  ;;  %v6881_v25 = vld [vmem:[%s15068_s5 + $0x458] sm:$0xff] }
 0x863   :  { %10141 = vmatprep.subr.bf16.mxu0 %v14727_v49 }
 0x865   :  { %5595 = vmatmul.mubr.f32.gmra.mrb[244].mxu0 %v6814_v42 }
 0x866   :  { %5599 = vmatprep.mubr.f32.mxu0 %v6819_v56  ;;  %10143 = vmatpush3.bf16.msra.mxu0 %v14727_v49  ;;  %v10152_v49 = vpack.c.bf16 %v6881_v25, %v6880_v59 }
 0x867   :  { %10145 = vmatprep.subr.bf16.mxu0 %v14738_v57 }
 0x868   :  { %10169 = vmatprep.subr.bf16.mxu1 %v10152_v49 }
 0x869   :  { %5600 = vmatmul.mubr.f32.gmra.mrb[246].mxu0 %v6818_v52  ;;  %10177 = vmatpush3.bf16.msra.mxu1 %v10152_v49 }
 0x86a   :  { %5604 = vmatprep.mubr.f32.mxu0 %v6823_v0  ;;  %10147 = vmatpush3.bf16.msra.mxu0 %v14738_v57  ;;  %v8605_v57 = vpop.f32.mrb[98].mxu1 }
 0x86b   :  { %10149 = vmatprep.subr.bf16.mxu0 %v14749_v36  ;;  %v8606_v9 = vpop.f32.mrb[99].mxu1  ;;  %10170 = vmatprep.subr.bf16.mxu1 %v10156_v31 }
 0x86c   :  { %v14909_v50 = vadd.f32 %v8606_v9, %v8605_v57  ;;  %v8608_v35 = vpop.f32.mrb[100].mxu1 }
 0x86d   :  { %5605 = vmatmul.mubr.f32.gmra.mrb[248].mxu0 %v6822_v5  ;;  %10178 = vmatpush3.bf16.msra.mxu1 %v10156_v31 }
 0x86e   :  { %5609 = vmatprep.mubr.f32.mxu0 %v6827_v51  ;;  %10151 = vmatpush3.bf16.msra.mxu0 %v14749_v36  ;;  %v8609_v36 = vpop.f32.mrb[101].mxu1 }
 0x86f   :  { %10153 = vmatprep.subr.bf16.mxu0 %v10152_v49  ;;  %v8610_v62 = vadd.f32 %v8609_v36, %v8608_v35  ;;  %10171 = vmatprep.subr.bf16.mxu1 %v10160_v44  ;;  %v8611_v63 = vpop.f32.mrb[102].mxu1 }
 0x870   :  { %v8612_v4 = vpop.f32.mrb[103].mxu1 }
 0x871   :  { %5610 = vmatmul.mubr.f32.gmra.mrb[250].mxu0 %v6826_v60  ;;  %10179 = vmatpush3.bf16.msra.mxu1 %v10160_v44  ;;  %v8613_v32 = vadd.f32 %v8612_v4, %v8611_v63  ;;  %v8614_v30 = vpop.f32.mrb[104].mxu1 }
 0x872   :  { %5614 = vmatprep.mubr.f32.mxu0 %v6831_v41  ;;  %10155 = vmatpush3.bf16.msra.mxu0 %v10152_v49  ;;  %v8615_v39 = vpop.f32.mrb[105].mxu1 }
 0x873   :  { %10157 = vmatprep.subr.bf16.mxu0 %v10156_v31  ;;  %v8616_v13 = vadd.f32 %v8615_v39, %v8614_v30  ;;  %v8617_v47 = vpop.f32.mrb[106].mxu1 }
 0x874   :  { %v8618_v28 = vpop.f32.mrb[107].mxu1 }
 0x875   :  { %5615 = vmatmul.mubr.f32.gmra.mrb[252].mxu0 %v6830_v7  ;;  %v8619_v16 = vadd.f32 %v8618_v28, %v8617_v47  ;;  %v8620_v14 = vpop.f32.mrb[108].mxu1 }
 0x876   :  { %5619 = vmatprep.mubr.f32.mxu0 %v6835_v18  ;;  %10159 = vmatpush3.bf16.msra.mxu0 %v10156_v31  ;;  %v8621_v10 = vpop.f32.mrb[109].mxu1 }
 0x877   :  { %10161 = vmatprep.subr.bf16.mxu0 %v10160_v44  ;;  %v14917_v12 = vadd.f32 %v8621_v10, %v8620_v14  ;;  %v8623_v15 = vpop.f32.mrb[110].mxu1 }
 0x878   :  { %v8624_v40 = vpop.f32.mrb[111].mxu1 }
 0x879   :  { %5620 = vmatmul.mubr.f32.gmra.mrb[254].mxu0 %v6834_v21  ;;  %v14919_v3 = vadd.f32 %v8624_v40, %v8623_v15  ;;  %v8626_v38 = vpop.f32.mrb[112].mxu1 }
 0x87a   :  { %5624 = vmatprep.mubr.f32.mxu0 %v6839_v27  ;;  %10163 = vmatpush3.bf16.msra.mxu0 %v10160_v44  ;;  %v8627_v17 = vpop.f32.mrb[113].mxu1 }
 0x87b   :  { %v14921_v29 = vadd.f32 %v8627_v17, %v8626_v38 }
 0x87d   :  { %5625 = vmatmul.mubr.f32.gmra.mrb[0].mxu0 %v6838_v23 }
 0x87e   :  { %5629 = vmatprep.mubr.f32.mxu0 %v6843_v2 }
 0x881   :  { %5630 = vmatmul.mubr.f32.gmra.mrb[2].mxu0 %v6842_v58 }
 0x882   :  { %5634 = vmatprep.mubr.f32.mxu0 %v6847_v48 }
 0x885   :  { %5635 = vmatmul.mubr.f32.gmra.mrb[4].mxu0 %v6846_v53 }
 0x886   :  { %5639 = vmatprep.mubr.f32.mxu0 %v6851_v55 }
 0x889   :  { %5640 = vmatmul.mubr.f32.gmra.mrb[6].mxu0 %v6850_v24 }
 0x88a   :  { %5644 = vmatprep.mubr.f32.mxu0 %v6855_v54 }
 0x88d   :  { %5645 = vmatmul.mubr.f32.gmra.mrb[8].mxu0 %v6854_v46 }
 0x88e   :  { %5649 = vmatprep.mubr.f32.mxu0 %v6859_v11 }
 0x891   :  { %5650 = vmatmul.mubr.f32.gmra.mrb[10].mxu0 %v6858_v26 }
 0x892   :  { %5654 = vmatprep.mubr.f32.mxu0 %v6863_v37 }
 0x895   :  { %5655 = vmatmul.mubr.f32.gmra.mrb[12].mxu0 %v6862_v6 }
 0x896   :  { %5659 = vmatprep.mubr.f32.mxu0 %v6867_v33 }
 0x899   :  { %5660 = vmatmul.mubr.f32.gmra.mrb[14].mxu0 %v6866_v22 }
 0x8d0   :  { %v8629_v8 = vpop.f32.mrb[114].mxu1 }
 0x8d1   :  { %v8630_v42 = vpop.f32.mrb[115].mxu1 }
 0x8d2   :  { %v14923_v56 = vadd.f32 %v8630_v42, %v8629_v8 }
 0x8d4   :  { %v8632_v52 = vpop.f32.mrb[116].mxu1 }
 0x8d5   :  { %v8633_v0 = vpop.f32.mrb[117].mxu1 }
 0x8d6   :  { %v14925_v5 = vadd.f32 %v8633_v0, %v8632_v52 }
 0x8d8   :  { %v8635_v51 = vpop.f32.mrb[118].mxu1 }
 0x8d9   :  { %v8636_v60 = vpop.f32.mrb[119].mxu1 }
 0x8da   :  { %v14927_v41 = vadd.f32 %v8636_v60, %v8635_v51 }
 0x8dc   :  { %v8638_v7 = vpop.f32.mrb[120].mxu1 }
 0x8dd   :  { %v8639_v18 = vpop.f32.mrb[121].mxu1 }
 0x8de   :  { %v14929_v21 = vadd.f32 %v8639_v18, %v8638_v7 }
 0x8e0   :  { %v8641_v27 = vpop.f32.mrb[122].mxu1 }
 0x8e1   :  { %v8642_v23 = vpop.f32.mrb[123].mxu1 }
 0x8e2   :  { %v14931_v2 = vadd.f32 %v8642_v23, %v8641_v27 }
 0x8e6   :  { %v8644_v58 = vpop.f32.mrb[124].mxu1 }
 0x8e7   :  { %v8645_v48 = vpop.f32.mrb[125].mxu1 }
 0x8e8   :  { %v14933_v53 = vadd.f32 %v8645_v48, %v8644_v58 }
 0x8ea   :  { %v8647_v55 = vpop.f32.mrb[126].mxu1 }
 0x8eb   :  { %v8648_v24 = vpop.f32.mrb[127].mxu1 }
 0x8ec   :  { %v14935_v54 = vadd.f32 %v8648_v24, %v8647_v55 }
 0x92c   :  { %v14937_v46 = vpop.f32.mrb[110].mxu0 }
 0x92d   :  { %v14939_v11 = vpop.f32.mrb[111].mxu0 }
 0x930   :  { %v8522_v26 = vpop.f32.mrb[240].mxu0 }
 0x931   :  { %v8523_v37 = vpop.f32.mrb[241].mxu0 }
 0x932   :  { %v8524_v6 = vadd.f32 %v8523_v37, %v8522_v26 }
 0x934   :  { %v5732_v33 = vadd.f32 %v14901_v19, %v8524_v6  ;;  %v8525_v22 = vpop.f32.mrb[242].mxu0 }
 0x935   :  { %v8526_v59 = vpop.f32.mrb[243].mxu0 }
 0x936   :  { %v8527_v25 = vadd.f32 %v8526_v59, %v8525_v22  ;;  %9266 = vmatprep.mubr.f32.mxu0 %v5732_v33 }
 0x938   :  { %v5737_v49 = vadd.f32 %v14909_v50, %v8527_v25  ;;  %v8528_v45 = vpop.f32.mrb[244].mxu0 }
 0x939   :  { %v8529_v34 = vpop.f32.mrb[245].mxu0 }
 0x93a   :  { %v8530_v1 = vadd.f32 %v8529_v34, %v8528_v45  ;;  %9267 = vmatmul.mubr.f32.vlgmr.msra.gmra.mrb[96].mxu0 %v5737_v49 }
 0x93c   :  { %v5742_v43 = vadd.f32 %v8610_v62, %v8530_v1  ;;  %v8531_v31 = vpop.f32.mrb[246].mxu0 }
 0x93d   :  { %v8532_v57 = vpop.f32.mrb[247].mxu0 }
 0x93e   :  { %v8533_v9 = vadd.f32 %v8532_v57, %v8531_v31  ;;  %9269 = vmatprep.mubr.f32.mxu0 %v5742_v43 }
 0x940   :  { %v5747_v61 = vadd.f32 %v8613_v32, %v8533_v9  ;;  %v8534_v20 = vpop.f32.mrb[248].mxu0 }
 0x941   :  { %v8535_v44 = vpop.f32.mrb[249].mxu0 }
 0x942   :  { %v8536_v35 = vadd.f32 %v8535_v44, %v8534_v20  ;;  %9270 = vmatmul.mubr.f32.gmra.mrb[98].mxu0 %v5747_v61 }
 0x944   :  { %v5752_v19 = vadd.f32 %v8616_v13, %v8536_v35  ;;  %v8537_v36 = vpop.f32.mrb[250].mxu0 }
 0x945   :  { %v8538_v63 = vpop.f32.mrb[251].mxu0 }
 0x946   :  { %v8539_v4 = vadd.f32 %v8538_v63, %v8537_v36  ;;  %9272 = vmatprep.mubr.f32.mxu0 %v5752_v19 }
 0x948   :  { %v5757_v50 = vadd.f32 %v8619_v16, %v8539_v4  ;;  %v8540_v30 = vpop.f32.mrb[252].mxu0 }
 0x949   :  { %v8541_v39 = vpop.f32.mrb[253].mxu0 }
 0x94a   :  { %v8542_v47 = vadd.f32 %v8541_v39, %v8540_v30  ;;  %9273 = vmatmul.mubr.f32.gmra.mrb[100].mxu0 %v5757_v50 }
 0x94c   :  { %v5762_v62 = vadd.f32 %v14917_v12, %v8542_v47  ;;  %v8543_v28 = vpop.f32.mrb[254].mxu0 }
 0x94d   :  { %v8544_v14 = vpop.f32.mrb[255].mxu0 }
 0x94e   :  { %v8545_v10 = vadd.f32 %v8544_v14, %v8543_v28  ;;  %9275 = vmatprep.mubr.f32.mxu0 %v5762_v62 }
 0x950   :  { %v5767_v32 = vadd.f32 %v14919_v3, %v8545_v10  ;;  %v8546_v15 = vpop.f32.mrb[0].mxu0 }
 0x951   :  { %v8547_v40 = vpop.f32.mrb[1].mxu0 }
 0x952   :  { %v8548_v13 = vadd.f32 %v8547_v40, %v8546_v15  ;;  %9276 = vmatmul.mubr.f32.gmra.mrb[102].mxu0 %v5767_v32 }
 0x954   :  { %v5772_v38 = vadd.f32 %v14921_v29, %v8548_v13  ;;  %v8549_v17 = vpop.f32.mrb[2].mxu0 }
 0x955   :  { %v8550_v16 = vpop.f32.mrb[3].mxu0 }
 0x956   :  { %v8551_v8 = vadd.f32 %v8550_v16, %v8549_v17  ;;  %9278 = vmatprep.mubr.f32.mxu0 %v5772_v38 }
 0x958   :  { %v5777_v42 = vadd.f32 %v14923_v56, %v8551_v8  ;;  %v8552_v52 = vpop.f32.mrb[4].mxu0 }
 0x959   :  { %v8553_v12 = vpop.f32.mrb[5].mxu0 }
 0x95a   :  { %v8554_v0 = vadd.f32 %v8553_v12, %v8552_v52  ;;  %9279 = vmatmul.mubr.f32.gmra.mrb[104].mxu0 %v5777_v42 }
 0x95c   :  { %v5782_v51 = vadd.f32 %v14925_v5, %v8554_v0  ;;  %v8555_v60 = vpop.f32.mrb[6].mxu0 }
 0x95d   :  { %v8556_v3 = vpop.f32.mrb[7].mxu0 }
 0x95e   :  { %v8557_v7 = vadd.f32 %v8556_v3, %v8555_v60  ;;  %9281 = vmatprep.mubr.f32.mxu0 %v5782_v51 }
 0x960   :  { %v5787_v18 = vadd.f32 %v14927_v41, %v8557_v7  ;;  %v8558_v27 = vpop.f32.mrb[8].mxu0 }
 0x961   :  { %v8559_v29 = vpop.f32.mrb[9].mxu0 }
 0x962   :  { %v8560_v23 = vadd.f32 %v8559_v29, %v8558_v27  ;;  %9282 = vmatmul.mubr.f32.gmra.mrb[106].mxu0 %v5787_v18 }
 0x964   :  { %v5792_v58 = vadd.f32 %v14929_v21, %v8560_v23  ;;  %v8561_v48 = vpop.f32.mrb[10].mxu0 }
 0x965   :  { %v8562_v56 = vpop.f32.mrb[11].mxu0 }
 0x966   :  { %v8563_v55 = vadd.f32 %v8562_v56, %v8561_v48  ;;  %9284 = vmatprep.mubr.f32.mxu0 %v5792_v58 }
 0x968   :  { %v5797_v24 = vadd.f32 %v14931_v2, %v8563_v55  ;;  %v8564_v26 = vpop.f32.mrb[12].mxu0 }
 0x969   :  { %v8565_v5 = vpop.f32.mrb[13].mxu0 }
 0x96a   :  { %v8566_v37 = vadd.f32 %v8565_v5, %v8564_v26  ;;  %9285 = vmatmul.mubr.f32.gmra.mrb[108].mxu0 %v5797_v24 }
 0x96c   :  { %v5802_v6 = vadd.f32 %v14933_v53, %v8566_v37  ;;  %v8567_v33 = vpop.f32.mrb[14].mxu0 }
 0x96d   :  { %v8568_v41 = vpop.f32.mrb[15].mxu0 }
 0x96e   :  { %v8569_v22 = vadd.f32 %v8568_v41, %v8567_v33  ;;  %9287 = vmatprep.mubr.f32.mxu1 %v5802_v6 }
 0x970   :  { %v5807_v59 = vadd.f32 %v14935_v54, %v8569_v22 }
 0x972   :  { %9288 = vmatmul.mubr.f32.vlgmr.msra.gmra.mrb[128].mxu1 %v5807_v59 }
 0xa0d   :  { %v14953_v21 = vpop.f32.mrb[96].mxu0 }
 0xa0e   :  { %v6012_v25 = vmul.f32 %v14953_v21, %v14953_v21  ;;  %v14957_v49 = vpop.f32.mrb[97].mxu0 }
 0xa0f   :  { %v5990_v2 = vadd.f32 %v14953_v21, %v14957_v49  ;;  %v6011_v53 = vmul.f32 %v14957_v49, %v14957_v49 }
 0xa11   :  { %v6027_v45 = vadd.f32 %v6012_v25, %v6011_v53 }
 0xa15   :  { %v14963_v34 = vpop.f32.mrb[98].mxu0 }
 0xa16   :  { %v14965_v1 = vpop.f32.mrb[99].mxu0  ;;  %v6014_v31 = vmul.f32 %v14963_v34, %v14963_v34 }
 0xa17   :  { %v5991_v54 = vadd.f32 %v5990_v2, %v14965_v1  ;;  %v6013_v43 = vmul.f32 %v14965_v1, %v14965_v1 }
 0xa19   :  { %v6028_v57 = vadd.f32 %v6027_v45, %v6013_v43  ;;  %v5992_v9 = vadd.f32 %v14963_v34, %v5991_v54 }
 0xa1b   :  { %v6029_v61 = vadd.f32 %v6028_v57, %v6014_v31 }
 0xa1d   :  { %v14973_v20 = vpop.f32.mrb[100].mxu0 }
 0xa1e   :  { %v14975_v44 = vpop.f32.mrb[101].mxu0  ;;  %v6016_v36 = vmul.f32 %v14973_v20, %v14973_v20 }
 0xa1f   :  { %v5993_v35 = vadd.f32 %v5992_v9, %v14975_v44  ;;  %v6015_v19 = vmul.f32 %v14975_v44, %v14975_v44 }
 0xa21   :  { %v6030_v63 = vadd.f32 %v6029_v61, %v6015_v19  ;;  %v5994_v4 = vadd.f32 %v14973_v20, %v5993_v35 }
 0xa23   :  { %v6031_v50 = vadd.f32 %v6030_v63, %v6016_v36 }
 0xa25   :  { %v14983_v30 = vpop.f32.mrb[102].mxu0 }
 0xa26   :  { %v14985_v39 = vpop.f32.mrb[103].mxu0  ;;  %v6018_v28 = vmul.f32 %v14983_v30, %v14983_v30 }
 0xa27   :  { %v5995_v47 = vadd.f32 %v5994_v4, %v14985_v39  ;;  %v6017_v62 = vmul.f32 %v14985_v39, %v14985_v39 }
 0xa29   :  { %v6032_v14 = vadd.f32 %v6031_v50, %v6017_v62  ;;  %v5996_v10 = vadd.f32 %v14983_v30, %v5995_v47  ;;  %v5988_v62 = vld [vmem:[%s15069_s6] sm:$0x1]  ;;  %s10341_s6 = smov [#allocation2]  }
 0xa2b   :  { %v6033_v32 = vadd.f32 %v6032_v14, %v6018_v28 }
 0xa2d   :  { %v14993_v15 = vpop.f32.mrb[104].mxu0 }
 0xa2e   :  { %v14995_v40 = vpop.f32.mrb[105].mxu0  ;;  %v6020_v17 = vmul.f32 %v14993_v15, %v14993_v15 }
 0xa2f   :  { %v5997_v13 = vadd.f32 %v5996_v10, %v14995_v40  ;;  %v6019_v38 = vmul.f32 %v14995_v40, %v14995_v40  ;;  %v5989_v10 = vld [vmem:[%s15070_s7] sm:$0x1]  ;;  %s6170_s7 = sshll.u32 %s10341_s6, 4  ;;  %s15036_s7 = int_to_ptr.vmem [resolvable:$true] %s6170_s7 }
 0xa30   :  { %s10316_s16 = scalar_lea.vmem %s15036_s7, 2048  ;;  %p10321_p1 = scmp.lt.s32.totalorder %s15036_s7, %s15036_s7 }
 0xa31   :  { %v6034_v16 = vadd.f32 %v6033_v32, %v6019_v38  ;;  %v5998_v8 = vadd.f32 %v14993_v15, %v5997_v13  ;;  %v15442_v13 = vld [vmem:[#allocation29_spill] sm:$0xff]  ;;  %p10317_p0 = scmp.ne.s32.totalorder %s15036_s7, %s10316_s16  ;;  %p10322_p2 = scmp.lt.s32.totalorder %s10316_s16, %s10316_s16 }
 0xa33   :  { %v6035_v42 = vadd.f32 %v6034_v16, %v6020_v17  ;;  %p10323_p3 = por %p10322_p2, %p10321_p1 }
 0xa35   :  { %v15003_v52 = vpop.f32.mrb[106].mxu0  ;;  %p10324_p4 = pnand %p10323_p3, %p10317_p0 }
 0xa36   :  { %v5943_v12 = vpop.f32.mrb[107].mxu0  ;;  %v6022_v60 = vmul.f32 %v15003_v52, %v15003_v52 }
 0xa37   :  { %v5999_v0 = vadd.f32 %v5998_v8, %v5943_v12  ;;  %v6021_v51 = vmul.f32 %v5943_v12, %v5943_v12 }
 0xa39   :  { %v6036_v3 = vadd.f32 %v6035_v42, %v6021_v51  ;;  %v6000_v7 = vadd.f32 %v15003_v52, %v5999_v0 }
 0xa3b   :  { %v6037_v18 = vadd.f32 %v6036_v3, %v6022_v60 }
 0xa3d   :  { %v9286_v27 = vpop.f32.mrb[108].mxu0 }
 0xa3e   :  { %v5953_v29 = vpop.f32.mrb[109].mxu0  ;;  %v6024_v48 = vmul.f32 %v9286_v27, %v9286_v27 }
 0xa3f   :  { %v6001_v23 = vadd.f32 %v6000_v7, %v5953_v29  ;;  %v6023_v58 = vmul.f32 %v5953_v29, %v5953_v29 }
 0xa41   :  { %v6002_v56 = vadd.f32 %v9286_v27, %v6001_v23  ;;  %v6038_v55 = vadd.f32 %v6037_v18, %v6023_v58 }
 0xa43   :  { %v6039_v24 = vadd.f32 %v6038_v55, %v6024_v48 }
 0xa45   :  { %v9289_v26 = vpop.f32.mrb[128].mxu1 }
 0xa46   :  { %v10180_v5 = vadd.f32 %v9289_v26, %v14937_v46  ;;  %v5963_v37 = vpop.f32.mrb[129].mxu1 }
 0xa47   :  { %v10181_v6 = vadd.f32 %v5963_v37, %v14939_v11 }
 0xa48   :  { %v6026_v22 = vmul.f32 %v10180_v5, %v10180_v5 }
 0xa49   :  { %v6003_v33 = vadd.f32 %v10181_v6, %v6002_v56  ;;  %v6025_v41 = vmul.f32 %v10181_v6, %v10181_v6 }
 0xa4b   :  { %v6004_v59 = vadd.f32 %v10180_v5, %v6003_v33  ;;  %v6040_v25 = vadd.f32 %v6039_v24, %v6025_v41 }
 0xa4d   :  { %v6005_v2 = vrot.slane %v6004_v59, 4  ;;  %v6041_v53 = vadd.f32 %v6040_v25, %v6026_v22 }
 0xa4f   :  { %v6006_v45 = vadd.f32 %v6005_v2, %v6004_v59  ;;  %v6042_v54 = vrot.slane %v6041_v53, 4 }
 0xa51   :  { %v6007_v43 = vrot.slane %v6006_v45, 2  ;;  %v6043_v31 = vadd.f32 %v6042_v54, %v6041_v53 }
 0xa53   :  { %v6008_v57 = vadd.f32 %v6007_v43, %v6006_v45  ;;  %v6044_v9 = vrot.slane %v6043_v31, 2 }
 0xa55   :  { %v6009_v61 = vrot.slane %v6008_v57, 1  ;;  %v6045_v35 = vadd.f32 %v6044_v9, %v6043_v31 }
 0xa57   :  { %v6010_v19 = vadd.f32 %v6009_v61, %v6008_v57  ;;  %v6046_v46 = vrot.slane %v6045_v35, 1 }
 0xa59   :  { %v6047_v36 = vadd.f32 %v6046_v46, %v6045_v35  ;;  %v6048_v63 = vmul.f32 0.0078125, %v6010_v19 }
 0xa5b   :  { %v6049_v11 = vmul.f32 0.0078125, %v6047_v36  ;;  %v6050_v4 = vmul.f32 %v6048_v63, %v6048_v63 }
 0xa5d   :  { %v6051_v50 = vsub.f32 %v6049_v11, %v6050_v4 }
 0xa5f   :  { %v6052_v47 = vadd.f32 1e-05, %v6051_v50 }
 0xa61   :  { %10314 = vrsqrt.f32 %v6052_v47 }
 0xa6b   :  { %v10315_v28 = vpop.eup %10314 }
 0xa6c   :  { %v6054_v14 = vmul.f32 %v10315_v28, %v5988_v62 }
 0xa6e   :  { %v6055_v32 = vmul.f32 %v6054_v14, %v6048_v63  ;;  %v6061_v38 = vrot.slane %v6054_v14, %v15442_v13 }
 0xa70   :  { %v6056_v17 = vsub.f32 %v5989_v10, %v6055_v32  ;;  %v6077_v16 = vmul.f32 %v10181_v6, %v6061_v38  ;;  %v6063_v8 = vmul.f32 %v6061_v38, %v14957_v49  ;;  %v6064_v42 = vmul.f32 %v14953_v21, %v6061_v38 }
 0xa71   :  { %v6065_v0 = vmul.f32 %v6061_v38, %v14965_v1  ;;  %v6066_v51 = vmul.f32 %v14963_v34, %v6061_v38  ;;  %v6067_v60 = vmul.f32 %v6061_v38, %v14975_v44  ;;  %v6068_v3 = vmul.f32 %v14973_v20, %v6061_v38 }
 0xa72   :  { %v6083_v7 = vrot.slane %v6056_v17, %v15442_v13  ;;  %v6069_v18 = vmul.f32 %v6061_v38, %v14985_v39  ;;  %v6070_v23 = vmul.f32 %v14983_v30, %v6061_v38  ;;  %v6071_v58 = vmul.f32 %v6061_v38, %v14995_v40 }
 0xa73   :  { %v6072_v49 = vmul.f32 %v14993_v15, %v6061_v38  ;;  %v6073_v48 = vmul.f32 %v6061_v38, %v5943_v12  ;;  %v6074_v21 = vmul.f32 %v15003_v52, %v6061_v38  ;;  %v6075_v1 = vmul.f32 %v6061_v38, %v5953_v29 }
 0xa74   :  { %v6099_v56 = vadd.f32 %v6083_v7, %v6077_v16  ;;  %v6076_v34 = vmul.f32 %v9286_v27, %v6061_v38  ;;  %v6078_v55 = vmul.f32 %v10180_v5, %v6061_v38  ;;  %v6085_v44 = vadd.f32 %v6083_v7, %v6063_v8 }
 0xa75   :  { %v6086_v24 = vadd.f32 %v6083_v7, %v6064_v42  ;;  %v6087_v20 = vadd.f32 %v6083_v7, %v6065_v0  ;;  %v6088_v26 = vadd.f32 %v6083_v7, %v6066_v51  ;;  %v6089_v37 = vadd.f32 %v6083_v7, %v6067_v60 }
 0xa76   :  { %vm6115_vm11 = vcmp.ge.f32.partialorder %v6099_v56, 0.0  ;;  %v6131_v39 = vmul.f32 0.1, %v6099_v56  ;;  %v6090_v6 = vadd.f32 %v6083_v7, %v6068_v3  ;;  %v6091_v30 = vadd.f32 %v6083_v7, %v6069_v18 }
 0xa77   :  { %v6092_v33 = vadd.f32 %v6083_v7, %v6070_v23  ;;  %v6093_v40 = vadd.f32 %v6083_v7, %v6071_v58  ;;  %v6094_v41 = vadd.f32 %v6083_v7, %v6072_v49  ;;  %v6095_v15 = vadd.f32 %v6083_v7, %v6073_v48 }
 0xa78   :  { %v6147_v12 = vsel %vm6115_vm11, %v6099_v56, %v6131_v39  ;;  %v6096_v22 = vadd.f32 %v6083_v7, %v6074_v21  ;;  %v6097_v52 = vadd.f32 %v6083_v7, %v6075_v1  ;;  %v6098_v29 = vadd.f32 %v6083_v7, %v6076_v34 }
 0xa79   :  { %6163 = vst [vmem:[#allocation2 + $0x70] sm:$0xff] %v6147_v12  ;;  %v6100_v27 = vadd.f32 %v6083_v7, %v6078_v55  ;;  %vm6101_vm4 = vcmp.ge.f32.partialorder %v6085_v44, 0.0  ;;  %vm6102_vm5 = vcmp.ge.f32.partialorder %v6086_v24, 0.0  ;;  %vm6103_vm6 = vcmp.ge.f32.partialorder %v6087_v20, 0.0 }
 0xa7a   :  { %vm6104_vm9 = vcmp.ge.f32.partialorder %v6088_v26, 0.0  ;;  %vm6105_vm7 = vcmp.ge.f32.partialorder %v6089_v37, 0.0  ;;  %vm6106_vm2 = vcmp.ge.f32.partialorder %v6090_v6, 0.0  ;;  %vm6107_vm15 = vcmp.ge.f32.partialorder %v6091_v30, 0.0 }
 0xa7b   :  { %vm6108_vm12 = vcmp.ge.f32.partialorder %v6092_v33, 0.0  ;;  %vm6109_vm13 = vcmp.ge.f32.partialorder %v6093_v40, 0.0  ;;  %vm6110_vm3 = vcmp.ge.f32.partialorder %v6094_v41, 0.0  ;;  %vm6111_vm0 = vcmp.ge.f32.partialorder %v6095_v15, 0.0 }
 0xa7c   :  { %vm6112_vm8 = vcmp.ge.f32.partialorder %v6096_v22, 0.0  ;;  %vm6113_vm14 = vcmp.ge.f32.partialorder %v6097_v52, 0.0  ;;  %vm6114_vm1 = vcmp.ge.f32.partialorder %v6098_v29, 0.0  ;;  %vm6116_vm10 = vcmp.ge.f32.partialorder %v6100_v27, 0.0 }
 0xa7d   :  { %v6117_v5 = vmul.f32 0.1, %v6085_v44  ;;  %v6118_v59 = vmul.f32 0.1, %v6086_v24  ;;  %v6119_v25 = vmul.f32 0.1, %v6087_v20 }
 0xa7e   :  { %v6120_v2 = vmul.f32 0.1, %v6088_v26  ;;  %v6121_v53 = vmul.f32 0.1, %v6089_v37  ;;  %v6122_v45 = vmul.f32 0.1, %v6090_v6 }
 0xa7f   :  { %v6123_v54 = vmul.f32 0.1, %v6091_v30  ;;  %v6124_v43 = vmul.f32 0.1, %v6092_v33  ;;  %v6125_v31 = vmul.f32 0.1, %v6093_v40  ;;  %v6133_v57 = vsel %vm6101_vm4, %v6085_v44, %v6117_v5 }
 0xa80   :  { %v6126_v9 = vmul.f32 0.1, %v6094_v41  ;;  %v6127_v61 = vmul.f32 0.1, %v6095_v15  ;;  %v6128_v35 = vmul.f32 0.1, %v6096_v22  ;;  %v6134_v19 = vsel %vm6102_vm5, %v6086_v24, %v6118_v59 }
 0xa81   :  { %6149 = vst [vmem:[#allocation2] sm:$0xff] %v6133_v57  ;;  %v6129_v46 = vmul.f32 0.1, %v6097_v52  ;;  %v6130_v36 = vmul.f32 0.1, %v6098_v29  ;;  %v6135_v11 = vsel %vm6103_vm6, %v6087_v20, %v6119_v25  ;;  %6150 = vst [vmem:[#allocation2 + $0x8] sm:$0xff] %v6134_v19  ;;  %v6136_v4 = vsel %vm6104_vm9, %v6088_v26, %v6120_v2 }
 0xa82   :  { %v6132_v63 = vmul.f32 0.1, %v6100_v27  ;;  %v6137_v50 = vsel %vm6105_vm7, %v6089_v37, %v6121_v53  ;;  %v6138_v47 = vsel %vm6106_vm2, %v6090_v6, %v6122_v45  ;;  %v6139_v62 = vsel %vm6107_vm15, %v6091_v30, %v6123_v54  ;;  %6151 = vst [vmem:[#allocation2 + $0x10] sm:$0xff] %v6135_v11  ;;  %6152 = vst [vmem:[#allocation2 + $0x18] sm:$0xff] %v6136_v4 }
 0xa83   :  { %v6140_v28 = vsel %vm6108_vm12, %v6092_v33, %v6124_v43  ;;  %v6141_v14 = vsel %vm6109_vm13, %v6093_v40, %v6125_v31  ;;  %v6142_v10 = vsel %vm6110_vm3, %v6094_v41, %v6126_v9  ;;  %v6143_v32 = vsel %vm6111_vm0, %v6095_v15, %v6127_v61  ;;  %6153 = vst [vmem:[#allocation2 + $0x20] sm:$0xff] %v6137_v50 }
 0xa84   :  { %6154 = vst [vmem:[#allocation2 + $0x28] sm:$0xff] %v6138_v47  ;;  %6155 = vst [vmem:[#allocation2 + $0x30] sm:$0xff] %v6139_v62  ;;  %v6144_v13 = vsel %vm6112_vm8, %v6096_v22, %v6128_v35  ;;  %v6145_v38 = vsel %vm6113_vm14, %v6097_v52, %v6129_v46  ;;  %v6146_v17 = vsel %vm6114_vm1, %v6098_v29, %v6130_v36 }
 0xa85   :  { %v6148_v16 = vsel %vm6116_vm10, %v6100_v27, %v6132_v63  ;;  %6156 = vst [vmem:[#allocation2 + $0x38] sm:$0xff] %v6140_v28  ;;  %6157 = vst [vmem:[#allocation2 + $0x40] sm:$0xff] %v6141_v14 }
 0xa86   :  { %6158 = vst [vmem:[#allocation2 + $0x48] sm:$0xff] %v6142_v10  ;;  %6159 = vst [vmem:[#allocation2 + $0x50] sm:$0xff] %v6143_v32 }
 0xa87   :  { %6160 = vst [vmem:[#allocation2 + $0x58] sm:$0xff] %v6144_v13  ;;  %6161 = vst [vmem:[#allocation2 + $0x60] sm:$0xff] %v6145_v38 }
 0xa88   :  { %6162 = vst [vmem:[#allocation2 + $0x68] sm:$0xff] %v6146_v17  ;;  %6164 = vst [vmem:[#allocation2 + $0x78] sm:$0xff] %v6148_v16 }
 0xa89   :  { %10327 = shalt.err (!%p10324_p4)
}
 0xa8a   :  { %s10328_s1 = scalar_lea.hbm %s15071_s8, 2048 }
 0xa8b   :  { %p10329_p5 = scmp.ne.s32.totalorder %s15071_s8, %s10328_s1  ;;  %p10332_p6 = scmp.lt.u32.totalorder %s10328_s1, %s15071_s8 }
 0xa8d   :  { %p10334_p7 = pnand %p10332_p6, %p10329_p5 }
 0xa8f   :  { %10337 = shalt.err (!%p10334_p7)
}
 0xa90   :  { %s10342_s23 = smov 128   ;;  %s10343_s24 = smov 8  }
 0xa91   :  { %6176 = dma.vmem_to_hbm [thread:$0]  %s15036_s7, 2048, %s15071_s8, [#allocation3], %s10342_s23, %s10342_s23, %s10343_s24  }
 0xa92   :  { %10338 = dma.done.wait [#allocation3], 2048  }
 0xa93   :  { %10339 = vsyncadd [#allocation3], 4294965248 }
 0xa94   :  { %6180 = vsyncpa [#allocation3], 1 }

</bundles_post_ra>
